<compile_context>
chip_gen: v5e
topology: v5e:2x2
jax: 0.10.0
libtpu: 0.0.40
codegen_flags: <defaults>
</compile_context>

<pallas_src>
import jax
import jax.numpy as jnp
from jax.experimental import pallas as pl
from jax.experimental.pallas import tpu as pltpu

EPS = 1e-5

_CPARAMS = pltpu.CompilerParams(
    dimension_semantics=("parallel",),
    vmem_limit_bytes=32 * 1024 * 1024,
)


# --------------------------------------------------------------------------- #
# Kernels
# --------------------------------------------------------------------------- #
def _conv1_kernel(x_ref, w_ref, y_ref, st_ref):
    """1x1 conv (row-tiled matmul) + fused partial BN stats (sum, sum-of-sq)."""
    y = jnp.dot(x_ref[...].astype(jnp.bfloat16), w_ref[...],
                preferred_element_type=jnp.float32)
    y_ref[...] = y
    ssum = jnp.sum(y, axis=0, keepdims=True)          # (1, P)
    ssq = jnp.sum(y * y, axis=0, keepdims=True)       # (1, P)
    st_ref[...] = jnp.concatenate([ssum, ssq], axis=0)[None]   # (1, 2, P)


def _bn_relu_conv_kernel(y_ref, scale_ref, shift_ref, w_ref, o_ref, st_ref):
    """Apply previous BN (as fused affine) + ReLU, then 1x1 conv + partial stats."""
    yn = jnp.maximum(y_ref[...] * scale_ref[...] + shift_ref[...], 0.0)
    o = jnp.dot(yn.astype(jnp.bfloat16), w_ref[...],
                preferred_element_type=jnp.float32)
    o_ref[...] = o
    ssum = jnp.sum(o, axis=0, keepdims=True)
    ssq = jnp.sum(o * o, axis=0, keepdims=True)
    st_ref[...] = jnp.concatenate([ssum, ssq], axis=0)[None]


def _bn_relu_conv3x3_kernel(y_ref, scale_ref, shift_ref, w_ref, o_ref, st_ref,
                            pad_ref, patch_ref):
    """BN1+ReLU, then 3x3 conv (stride=1, pad=1) as a single im2col matmul.

    y_ref:     (1, H, W, P) f32  raw conv1 output for one sample
    w_ref:     (9P, P)      bf16 flattened 3x3 weights ((ky*3+kx)*P + cin major)
    pad_ref:   (H+2, W+2, P) bf16 scratch (1-pixel zero halo)
    patch_ref: (H*W, 9P)     bf16 scratch (im2col patch matrix)
    """
    _, H, W, P = y_ref.shape

    # BN (fused affine) + ReLU in f32, then cast once to bf16.
    yn = jnp.maximum(y_ref[...].reshape(H * W, P) * scale_ref[...]
                     + shift_ref[...], 0.0)

    # Zero only the 1-pixel halo (cheap; redone every step so stale data from a
    # previous grid step / other core can never leak in). Interior overwritten.
    zrow = jnp.zeros((1, W + 2, P), jnp.bfloat16)
    zcol = jnp.zeros((H + 2, 1, P), jnp.bfloat16)
    pad_ref[0:1, :, :] = zrow
    pad_ref[H + 1:H + 2, :, :] = zrow
    pad_ref[:, 0:1, :] = zcol
    pad_ref[:, W + 1:W + 2, :] = zcol
    pad_ref[1:H + 1, 1:W + 1, :] = yn.astype(jnp.bfloat16).reshape(H, W, P)

    # im2col: build (H*W, 9P) patch matrix, then one matmul with K = 9P
    # (fills the MXU far better than 9 separate K=P dots).
    for k in range(9):
        ky, kx = k // 3, k % 3
        patch_ref[:, k * P:(k + 1) * P] = (
            pad_ref[ky:ky + H, kx:kx + W, :].reshape(H * W, P))

    o = jnp.dot(patch_ref[...], w_ref[...], preferred_element_type=jnp.float32)
    o_ref[...] = o.reshape(1, H, W, P)
    ssum = jnp.sum(o, axis=0, keepdims=True)
    ssq = jnp.sum(o * o, axis=0, keepdims=True)
    st_ref[...] = jnp.concatenate([ssum, ssq], axis=0)[None]


def _bn_add_relu_kernel(y_ref, x_ref, scale_ref, shift_ref, o_ref):
    """BN3 (fused affine) + identity residual + final ReLU (all f32)."""
    o_ref[...] = jnp.maximum(
        y_ref[...] * scale_ref[...] + shift_ref[...] + x_ref[...], 0.0)


# --------------------------------------------------------------------------- #
# Wrapper
# --------------------------------------------------------------------------- #
def _pick_row_tile(m, target=512):
    """Largest multiple-of-8 divisor of m that is <= target (else m)."""
    if m <= target:
        return m
    t = (target // 8) * 8
    while t >= 8:
        if m % t == 0:
            return t
        t -= 8
    return m


def _affine_from_stats(stats, gamma, beta, count):
    """Reduce per-tile (sum, sumsq) partials -> per-channel BN scale/shift."""
    s = jnp.sum(stats, axis=0)                       # (2, C)
    mean = s[0] / count
    var = s[1] / count - mean * mean                 # biased var (training BN)
    inv = gamma.reshape(-1) * jax.lax.rsqrt(var + EPS)
    scale = inv.reshape(1, -1).astype(jnp.float32)
    shift = (beta.reshape(-1) - mean * inv).reshape(1, -1).astype(jnp.float32)
    return scale, shift


@jax.jit
def bottleneck_forward(x, params):
    """BottleneckBlock forward.  x: (N, H, W, Cin) NHWC float32, Cin == 4*planes."""
    N, H, W, Cin = x.shape
    P = params["w1"].shape[1]
    assert Cin == 4 * P, "identity residual requires inplanes == 4 * planes"
    M = N * H * W
    TM = _pick_row_tile(M)
    nt = M // TM

    # Weights as bf16 once (MXU-native operands); activations cast in-kernel.
    w1 = params["w1"].astype(jnp.bfloat16)                    # (Cin, P)
    w2 = params["w2"].reshape(9 * P, P).astype(jnp.bfloat16)  # (9P, P)
    w3 = params["w3"].astype(jnp.bfloat16)                    # (P, Cin)

    x2d = x.reshape(M, Cin).astype(jnp.float32)

    row_spec = lambda c: pl.BlockSpec((TM, c), lambda i: (i, 0))
    full_spec = lambda a: pl.BlockSpec(a.shape, lambda i: (0,) * a.ndim)
    st_spec = lambda c: pl.BlockSpec((1, 2, c), lambda i: (i, 0, 0))

    # ---- pass 1: conv1 (1x1) + bn1 partial stats ---------------------------
    y1, st1 = pl.pallas_call(
        _conv1_kernel,
        grid=(nt,),
        in_specs=[row_spec(Cin), full_spec(w1)],
        out_specs=(row_spec(P), st_spec(P)),
        out_shape=(jax.ShapeDtypeStruct((M, P), jnp.float32),
                   jax.ShapeDtypeStruct((nt, 2, P), jnp.float32)),
        compiler_params=_CPARAMS,
    )(x2d, w1)
    sc1, sh1 = _affine_from_stats(st1, params["g1"], params["b1"], M)

    # ---- pass 2: bn1 + relu -> conv2 (3x3, im2col) + bn2 partial stats -----
    y2, st2 = pl.pallas_call(
        _bn_relu_conv3x3_kernel,
        grid=(N,),
        in_specs=[pl.BlockSpec((1, H, W, P), lambda n: (n, 0, 0, 0)),
                  pl.BlockSpec((1, P), lambda n: (0, 0)),
                  pl.BlockSpec((1, P), lambda n: (0, 0)),
                  pl.BlockSpec((9 * P, P), lambda n: (0, 0))],
        out_specs=(pl.BlockSpec((1, H, W, P), lambda n: (n, 0, 0, 0)),
                   pl.BlockSpec((1, 2, P), lambda n: (n, 0, 0))),
        out_shape=(jax.ShapeDtypeStruct((N, H, W, P), jnp.float32),
                   jax.ShapeDtypeStruct((N, 2, P), jnp.float32)),
        scratch_shapes=[pltpu.VMEM((H + 2, W + 2, P), jnp.bfloat16),
                        pltpu.VMEM((H * W, 9 * P), jnp.bfloat16)],
        compiler_params=_CPARAMS,
    )(y1.reshape(N, H, W, P), sc1, sh1, w2)
    sc2, sh2 = _affine_from_stats(st2, params["g2"], params["b2"], M)

    # ---- pass 3: bn2 + relu -> conv3 (1x1) + bn3 partial stats -------------
    y3, st3 = pl.pallas_call(
        _bn_relu_conv_kernel,
        grid=(nt,),
        in_specs=[row_spec(P), full_spec(sc2), full_spec(sh2), full_spec(w3)],
        out_specs=(row_spec(Cin), st_spec(Cin)),
        out_shape=(jax.ShapeDtypeStruct((M, Cin), jnp.float32),
                   jax.ShapeDtypeStruct((nt, 2, Cin), jnp.float32)),
        compiler_params=_CPARAMS,
    )(y2.reshape(M, P), sc2, sh2, w3)
    sc3, sh3 = _affine_from_stats(st3, params["g3"], params["b3"], M)

    # ---- pass 4: bn3 + identity residual + final relu ----------------------
    out2d = pl.pallas_call(
        _bn_add_relu_kernel,
        grid=(nt,),
        in_specs=[row_spec(Cin), row_spec(Cin), full_spec(sc3), full_spec(sh3)],
        out_specs=row_spec(Cin),
        out_shape=jax.ShapeDtypeStruct((M, Cin), jnp.float32),
        compiler_params=_CPARAMS,
    )(y3, x2d, sc3, sh3)

    return out2d.reshape(N, H, W, Cin)


def bottleneck_forward_nchw(x_nchw, params):
    """Compat wrapper for the PyTorch NCHW interface (adds two transposes;
    prefer calling bottleneck_forward directly with NHWC data)."""
    out = bottleneck_forward(jnp.transpose(x_nchw, (0, 2, 3, 1)), params)
    return jnp.transpose(out, (0, 3, 1, 2))


# --------------------------------------------------------------------------- #
# Pure-JAX reference (same bf16-operand / f32-accumulate convs, f32 BN math)
# --------------------------------------------------------------------------- #
def ref_forward(x, params):
    dn = ("NHWC", "HWIO", "NHWC")

    def conv(y, w, padding):
        return jax.lax.conv_general_dilated(
            y.astype(jnp.bfloat16), w.astype(jnp.bfloat16), (1, 1), padding,
            dimension_numbers=dn, preferred_element_type=jnp.float32)

    def bn(y, g, b, relu):
        mean = y.mean(axis=(0, 1, 2), keepdims=True)
        var = ((y - mean) ** 2).mean(axis=(0, 1, 2), keepdims=True)
        o = (y - mean) * jax.lax.rsqrt(var + EPS) * g.reshape(1, 1, 1, -1) \
            + b.reshape(1, 1, 1, -1)
        return jnp.maximum(o, 0.0) if relu else o

    Cin = x.shape[-1]
    P = params["w1"].shape[1]
    x = x.astype(jnp.float32)
    y = conv(x, params["w1"].reshape(1, 1, Cin, P), "VALID")
    y = bn(y, params["g1"], params["b1"], True)
    y = conv(y, params["w2"], "SAME")
    y = bn(y, params["g2"], params["b2"], True)
    y = conv(y, params["w3"].reshape(1, 1, P, Cin), "VALID")
    y = bn(y, params["g3"], params["b3"], False)
    return jnp.maximum(y + x, 0.0)


def init_params(key, inplanes, planes):
    P, E = planes, 4 * planes
    assert inplanes == E
    ks = jax.random.split(key, 9)
    return dict(
        w1=0.1 * jax.random.normal(ks[0], (inplanes, P), jnp.float32),
        w2=0.1 * jax.random.normal(ks[1], (3, 3, P, P), jnp.float32),   # HWIO
        w3=0.1 * jax.random.normal(ks[2], (P, E), jnp.float32),
        g1=1.0 + 0.1 * jax.random.normal(ks[3], (P,), jnp.float32),
        b1=0.1 * jax.random.normal(ks[4], (P,), jnp.float32),
        g2=1.0 + 0.1 * jax.random.normal(ks[5], (P,), jnp.float32),
        b2=0.1 * jax.random.normal(ks[6], (P,), jnp.float32),
        g3=1.0 + 0.1 * jax.random.normal(ks[7], (E,), jnp.float32),
        b3=0.1 * jax.random.normal(ks[8], (E,), jnp.float32),
    )


if __name__ == "__main__":
    # Small but lane-friendly shapes: planes=32 -> Cin = 4*planes = 128
    # (lane-dense residual / output channels); identity residual requires
    # inplanes == 4 * planes (module defaults: stride=1, downsample=None).
    N, planes, H, W = 4, 32, 16, 16
    inplanes = 4 * planes

    key = jax.random.PRNGKey(0)
    kx, kp = jax.random.split(key)
    x = jax.random.normal(kx, (N, H, W, inplanes), jnp.float32)     # NHWC
    params = init_params(kp, inplanes, planes)

    out = jax.block_until_ready(bottleneck_forward(x, params))
    ref = jax.block_until_ready(ref_forward(x, params))

    assert out.shape == (N, H, W, inplanes)
    err = float(jnp.max(jnp.abs(out - ref)))
    assert jnp.allclose(out, ref, rtol=2e-2, atol=2e-2), \
        f"mismatch: max abs err = {err}"
    print("KERNEL_OK")
</pallas_src>

<mosaic_0001>
module attributes {stable_mosaic.version = 11 : i64} {
  func.func @_conv1_kernel(%arg0: i32, %arg1: memref<512x128xf32, #tpu.memory_space<vmem>>, %arg2: memref<128x32xbf16, #tpu.memory_space<vmem>>, %arg3: memref<512x32xf32, #tpu.memory_space<vmem>>, %arg4: memref<1x2x32xf32, #tpu.memory_space<vmem>>) attributes {dimension_semantics = [#tpu.dimension_semantics<parallel>], iteration_bounds = array<i64: 2>, scalar_prefetch = 0 : i64, scratch_operands = 0 : i64, tpu.core_type = #tpu.core_type<tc>, window_params = [{transform_indices = @transform_0, window_bounds = array<i64: 512, 128>}, {pipeline_mode = #tpu.pipeline_mode<synchronous>, transform_indices = @transform_1, window_bounds = array<i64: 128, 32>}, {transform_indices = @transform_2, window_bounds = array<i64: 512, 32>}, {transform_indices = @transform_3, window_bounds = array<i64: 1, 2, 32>}]} {
    %c0 = arith.constant 0 : index
    %c0_0 = arith.constant 0 : index
    %0 = vector.load %arg1[%c0, %c0_0] : memref<512x128xf32, #tpu.memory_space<vmem>>, vector<512x128xf32>
    %1 = arith.truncf %0 : vector<512x128xf32> to vector<512x128xbf16>
    %c0_1 = arith.constant 0 : index
    %c0_2 = arith.constant 0 : index
    %2 = vector.load %arg2[%c0_1, %c0_2] : memref<128x32xbf16, #tpu.memory_space<vmem>>, vector<128x32xbf16>
    %cst = arith.constant dense<0.000000e+00> : vector<512x32xf32>
    %3 = tpu.matmul %1, %2, %cst {dimension_numbers = #tpu.dot_dimension_numbers<[1], [0], [0], [1], [0, 0, 1, 1], [], []>} : vector<512x128xbf16>, vector<128x32xbf16>, vector<512x32xf32> -> vector<512x32xf32>
    %c0_3 = arith.constant 0 : index
    %c0_4 = arith.constant 0 : index
    %4 = vector.load %arg3[%c0_3, %c0_4] : memref<512x32xf32, #tpu.memory_space<vmem>>, vector<512x32xf32>
    tpu.vector_store %arg3[%c0_3, %c0_4], %3 {strides = array<i32>} : memref<512x32xf32, #tpu.memory_space<vmem>>, vector<512x32xf32>,
    %cst_5 = arith.constant dense<0.000000e+00> : vector<32xf32>
    %5 = vector.multi_reduction <add>, %3, %cst_5 [0] : vector<512x32xf32> to vector<32xf32>
    %6 = vector.shape_cast %5 : vector<32xf32> to vector<1x32xf32>
    %7 = arith.mulf %3, %3 : vector<512x32xf32>
    %cst_6 = arith.constant dense<0.000000e+00> : vector<32xf32>
    %8 = vector.multi_reduction <add>, %7, %cst_6 [0] : vector<512x32xf32> to vector<32xf32>
    %9 = vector.shape_cast %8 : vector<32xf32> to vector<1x32xf32>
    %10 = tpu.concatenate %6, %9 in 0 : vector<1x32xf32>, vector<1x32xf32> -> vector<2x32xf32>
    %11 = vector.shape_cast %10 : vector<2x32xf32> to vector<1x2x32xf32>
    %c0_7 = arith.constant 0 : index
    %c0_8 = arith.constant 0 : index
    %c0_9 = arith.constant 0 : index
    %12 = vector.load %arg4[%c0_7, %c0_8, %c0_9] : memref<1x2x32xf32, #tpu.memory_space<vmem>>, vector<1x2x32xf32>
    tpu.vector_store %arg4[%c0_7, %c0_8, %c0_9], %11 {strides = array<i32>} : memref<1x2x32xf32, #tpu.memory_space<vmem>>, vector<1x2x32xf32>,
    return
  }
  func.func @transform_0(%arg0: i32) -> (i32, i32) {
    %c0_i32 = arith.constant 0 : i32
    %c0_i32_0 = arith.constant 0 : i32
    return %arg0, %c0_i32 : i32, i32
  }
  func.func @transform_1(%arg0: i32) -> (i32, i32) {
    %c0_i32 = arith.constant 0 : i32
    %c0_i32_0 = arith.constant 0 : i32
    %c0_i32_1 = arith.constant 0 : i32
    return %c0_i32, %c0_i32_0 : i32, i32
  }
  func.func @transform_2(%arg0: i32) -> (i32, i32) {
    %c0_i32 = arith.constant 0 : i32
    %c0_i32_0 = arith.constant 0 : i32
    return %arg0, %c0_i32 : i32, i32
  }
  func.func @transform_3(%arg0: i32) -> (i32, i32, i32) {
    %c0_i32 = arith.constant 0 : i32
    %c0_i32_0 = arith.constant 0 : i32
    %c0_i32_1 = arith.constant 0 : i32
    return %arg0, %c0_i32, %c0_i32_0 : i32, i32, i32
  }
}

module attributes {stable_mosaic.version = 11 : i64} {
  func.func @_bn_relu_conv3x3_kernel(%arg0: i32, %arg1: memref<1x16x16x32xf32, #tpu.memory_space<vmem>>, %arg2: memref<1x32xf32, #tpu.memory_space<vmem>>, %arg3: memref<1x32xf32, #tpu.memory_space<vmem>>, %arg4: memref<288x32xbf16, #tpu.memory_space<vmem>>, %arg5: memref<1x16x16x32xf32, #tpu.memory_space<vmem>>, %arg6: memref<1x2x32xf32, #tpu.memory_space<vmem>>, %arg7: memref<18x18x32xbf16, #tpu.memory_space<vmem>>, %arg8: memref<256x288xbf16, #tpu.memory_space<vmem>>) attributes {dimension_semantics = [#tpu.dimension_semantics<parallel>], iteration_bounds = array<i64: 4>, scalar_prefetch = 0 : i64, scratch_operands = 2 : i64, tpu.core_type = #tpu.core_type<tc>, window_params = [{transform_indices = @transform_0, window_bounds = array<i64: 1, 16, 16, 32>}, {pipeline_mode = #tpu.pipeline_mode<synchronous>, transform_indices = @transform_1, window_bounds = array<i64: 1, 32>}, {pipeline_mode = #tpu.pipeline_mode<synchronous>, transform_indices = @transform_2, window_bounds = array<i64: 1, 32>}, {pipeline_mode = #tpu.pipeline_mode<synchronous>, transform_indices = @transform_3, window_bounds = array<i64: 288, 32>}, {transform_indices = @transform_4, window_bounds = array<i64: 1, 16, 16, 32>}, {transform_indices = @transform_5, window_bounds = array<i64: 1, 2, 32>}]} {
    %c0 = arith.constant 0 : index
    %c0_0 = arith.constant 0 : index
    %c0_1 = arith.constant 0 : index
    %c0_2 = arith.constant 0 : index
    %0 = vector.load %arg1[%c0, %c0_0, %c0_1, %c0_2] : memref<1x16x16x32xf32, #tpu.memory_space<vmem>>, vector<1x16x16x32xf32>
    %1 = vector.shape_cast %0 : vector<1x16x16x32xf32> to vector<256x32xf32>
    %c0_3 = arith.constant 0 : index
    %c0_4 = arith.constant 0 : index
    %2 = vector.load %arg2[%c0_3, %c0_4] : memref<1x32xf32, #tpu.memory_space<vmem>>, vector<1x32xf32>
    %3 = vector.broadcast %2 : vector<1x32xf32> to vector<256x32xf32>
    %4 = arith.mulf %1, %3 : vector<256x32xf32>
    %c0_5 = arith.constant 0 : index
    %c0_6 = arith.constant 0 : index
    %5 = vector.load %arg3[%c0_5, %c0_6] : memref<1x32xf32, #tpu.memory_space<vmem>>, vector<1x32xf32>
    %6 = vector.broadcast %5 : vector<1x32xf32> to vector<256x32xf32>
    %7 = arith.addf %4, %6 : vector<256x32xf32>
    %cst = arith.constant 0.000000e+00 : f32
    %8 = vector.broadcast %cst : f32 to vector<256x32xf32>
    %9 = arith.maximumf %7, %8 : vector<256x32xf32>
    %cst_7 = arith.constant 0.000000e+00 : bf16
    %10 = vector.broadcast %cst_7 : bf16 to vector<1x18x32xbf16>
    %cst_8 = arith.constant 0.000000e+00 : bf16
    %11 = vector.broadcast %cst_8 : bf16 to vector<18x1x32xbf16>
    %c0_9 = arith.constant 0 : index
    %c0_10 = arith.constant 0 : index
    %c0_11 = arith.constant 0 : index
    %12 = vector.load %arg7[%c0_9, %c0_10, %c0_11] : memref<18x18x32xbf16, #tpu.memory_space<vmem>>, vector<1x18x32xbf16>
    tpu.vector_store %arg7[%c0_9, %c0_10, %c0_11], %10 {strides = array<i32>} : memref<18x18x32xbf16, #tpu.memory_space<vmem>>, vector<1x18x32xbf16>,
    %c17 = arith.constant 17 : index
    %c0_12 = arith.constant 0 : index
    %c0_13 = arith.constant 0 : index
    %13 = vector.load %arg7[%c17, %c0_12, %c0_13] : memref<18x18x32xbf16, #tpu.memory_space<vmem>>, vector<1x18x32xbf16>
    tpu.vector_store %arg7[%c17, %c0_12, %c0_13], %10 {strides = array<i32>} : memref<18x18x32xbf16, #tpu.memory_space<vmem>>, vector<1x18x32xbf16>,
    %c0_14 = arith.constant 0 : index
    %c0_15 = arith.constant 0 : index
    %c0_16 = arith.constant 0 : index
    %14 = vector.load %arg7[%c0_14, %c0_15, %c0_16] : memref<18x18x32xbf16, #tpu.memory_space<vmem>>, vector<18x1x32xbf16>
    tpu.vector_store %arg7[%c0_14, %c0_15, %c0_16], %11 {strides = array<i32>} : memref<18x18x32xbf16, #tpu.memory_space<vmem>>, vector<18x1x32xbf16>,
    %c0_17 = arith.constant 0 : index
    %c17_18 = arith.constant 17 : index
    %c0_19 = arith.constant 0 : index
    %15 = vector.load %arg7[%c0_17, %c17_18, %c0_19] : memref<18x18x32xbf16, #tpu.memory_space<vmem>>, vector<18x1x32xbf16>
    tpu.vector_store %arg7[%c0_17, %c17_18, %c0_19], %11 {strides = array<i32>} : memref<18x18x32xbf16, #tpu.memory_space<vmem>>, vector<18x1x32xbf16>,
    %16 = arith.truncf %9 : vector<256x32xf32> to vector<256x32xbf16>
    %17 = vector.shape_cast %16 : vector<256x32xbf16> to vector<16x16x32xbf16>
    %c1 = arith.constant 1 : index
    %c1_20 = arith.constant 1 : index
    %c0_21 = arith.constant 0 : index
    %18 = vector.load %arg7[%c1, %c1_20, %c0_21] : memref<18x18x32xbf16, #tpu.memory_space<vmem>>, vector<16x16x32xbf16>
    tpu.vector_store %arg7[%c1, %c1_20, %c0_21], %17 {strides = array<i32>} : memref<18x18x32xbf16, #tpu.memory_space<vmem>>, vector<16x16x32xbf16>,
    %c0_22 = arith.constant 0 : index
    %c0_23 = arith.constant 0 : index
    %c0_24 = arith.constant 0 : index
    %19 = vector.load %arg7[%c0_22, %c0_23, %c0_24] : memref<18x18x32xbf16, #tpu.memory_space<vmem>>, vector<16x16x32xbf16>
    %20 = vector.shape_cast %19 : vector<16x16x32xbf16> to vector<256x32xbf16>
    %c0_25 = arith.constant 0 : index
    %c0_26 = arith.constant 0 : index
    %21 = vector.load %arg8[%c0_25, %c0_26] : memref<256x288xbf16, #tpu.memory_space<vmem>>, vector<256x32xbf16>
    tpu.vector_store %arg8[%c0_25, %c0_26], %20 {strides = array<i32>} : memref<256x288xbf16, #tpu.memory_space<vmem>>, vector<256x32xbf16>,
    %c0_27 = arith.constant 0 : index
    %c1_28 = arith.constant 1 : index
    %c0_29 = arith.constant 0 : index
    %22 = vector.load %arg7[%c0_27, %c1_28, %c0_29] : memref<18x18x32xbf16, #tpu.memory_space<vmem>>, vector<16x16x32xbf16>
    %23 = vector.shape_cast %22 : vector<16x16x32xbf16> to vector<256x32xbf16>
    %c0_30 = arith.constant 0 : index
    %c32 = arith.constant 32 : index
    %24 = vector.load %arg8[%c0_30, %c32] : memref<256x288xbf16, #tpu.memory_space<vmem>>, vector<256x32xbf16>
    tpu.vector_store %arg8[%c0_30, %c32], %23 {strides = array<i32>} : memref<256x288xbf16, #tpu.memory_space<vmem>>, vector<256x32xbf16>,
    %c0_31 = arith.constant 0 : index
    %c2 = arith.constant 2 : index
    %c0_32 = arith.constant 0 : index
    %25 = vector.load %arg7[%c0_31, %c2, %c0_32] : memref<18x18x32xbf16, #tpu.memory_space<vmem>>, vector<16x16x32xbf16>
    %26 = vector.shape_cast %25 : vector<16x16x32xbf16> to vector<256x32xbf16>
    %c0_33 = arith.constant 0 : index
    %c64 = arith.constant 64 : index
    %27 = vector.load %arg8[%c0_33, %c64] : memref<256x288xbf16, #tpu.memory_space<vmem>>, vector<256x32xbf16>
    tpu.vector_store %arg8[%c0_33, %c64], %26 {strides = array<i32>} : memref<256x288xbf16, #tpu.memory_space<vmem>>, vector<256x32xbf16>,
    %c1_34 = arith.constant 1 : index
    %c0_35 = arith.constant 0 : index
    %c0_36 = arith.constant 0 : index
    %28 = vector.load %arg7[%c1_34, %c0_35, %c0_36] : memref<18x18x32xbf16, #tpu.memory_space<vmem>>, vector<16x16x32xbf16>
    %29 = vector.shape_cast %28 : vector<16x16x32xbf16> to vector<256x32xbf16>
    %c0_37 = arith.constant 0 : index
    %c96 = arith.constant 96 : index
    %30 = vector.load %arg8[%c0_37, %c96] : memref<256x288xbf16, #tpu.memory_space<vmem>>, vector<256x32xbf16>
    tpu.vector_store %arg8[%c0_37, %c96], %29 {strides = array<i32>} : memref<256x288xbf16, #tpu.memory_space<vmem>>, vector<256x32xbf16>,
    %c1_38 = arith.constant 1 : index
    %c1_39 = arith.constant 1 : index
    %c0_40 = arith.constant 0 : index
    %31 = vector.load %arg7[%c1_38, %c1_39, %c0_40] : memref<18x18x32xbf16, #tpu.memory_space<vmem>>, vector<16x16x32xbf16>
    %32 = vector.shape_cast %31 : vector<16x16x32xbf16> to vector<256x32xbf16>
    %c0_41 = arith.constant 0 : index
    %c128 = arith.constant 128 : index
    %33 = vector.load %arg8[%c0_41, %c128] : memref<256x288xbf16, #tpu.memory_space<vmem>>, vector<256x32xbf16>
    tpu.vector_store %arg8[%c0_41, %c128], %32 {strides = array<i32>} : memref<256x288xbf16, #tpu.memory_space<vmem>>, vector<256x32xbf16>,
    %c1_42 = arith.constant 1 : index
    %c2_43 = arith.constant 2 : index
    %c0_44 = arith.constant 0 : index
    %34 = vector.load %arg7[%c1_42, %c2_43, %c0_44] : memref<18x18x32xbf16, #tpu.memory_space<vmem>>, vector<16x16x32xbf16>
    %35 = vector.shape_cast %34 : vector<16x16x32xbf16> to vector<256x32xbf16>
    %c0_45 = arith.constant 0 : index
    %c160 = arith.constant 160 : index
    %36 = vector.load %arg8[%c0_45, %c160] : memref<256x288xbf16, #tpu.memory_space<vmem>>, vector<256x32xbf16>
    tpu.vector_store %arg8[%c0_45, %c160], %35 {strides = array<i32>} : memref<256x288xbf16, #tpu.memory_space<vmem>>, vector<256x32xbf16>,
    %c2_46 = arith.constant 2 : index
    %c0_47 = arith.constant 0 : index
    %c0_48 = arith.constant 0 : index
    %37 = vector.load %arg7[%c2_46, %c0_47, %c0_48] : memref<18x18x32xbf16, #tpu.memory_space<vmem>>, vector<16x16x32xbf16>
    %38 = vector.shape_cast %37 : vector<16x16x32xbf16> to vector<256x32xbf16>
    %c0_49 = arith.constant 0 : index
    %c192 = arith.constant 192 : index
    %39 = vector.load %arg8[%c0_49, %c192] : memref<256x288xbf16, #tpu.memory_space<vmem>>, vector<256x32xbf16>
    tpu.vector_store %arg8[%c0_49, %c192], %38 {strides = array<i32>} : memref<256x288xbf16, #tpu.memory_space<vmem>>, vector<256x32xbf16>,
    %c2_50 = arith.constant 2 : index
    %c1_51 = arith.constant 1 : index
    %c0_52 = arith.constant 0 : index
    %40 = vector.load %arg7[%c2_50, %c1_51, %c0_52] : memref<18x18x32xbf16, #tpu.memory_space<vmem>>, vector<16x16x32xbf16>
    %41 = vector.shape_cast %40 : vector<16x16x32xbf16> to vector<256x32xbf16>
    %c0_53 = arith.constant 0 : index
    %c224 = arith.constant 224 : index
    %42 = vector.load %arg8[%c0_53, %c224] : memref<256x288xbf16, #tpu.memory_space<vmem>>, vector<256x32xbf16>
    tpu.vector_store %arg8[%c0_53, %c224], %41 {strides = array<i32>} : memref<256x288xbf16, #tpu.memory_space<vmem>>, vector<256x32xbf16>,
    %c2_54 = arith.constant 2 : index
    %c2_55 = arith.constant 2 : index
    %c0_56 = arith.constant 0 : index
    %43 = vector.load %arg7[%c2_54, %c2_55, %c0_56] : memref<18x18x32xbf16, #tpu.memory_space<vmem>>, vector<16x16x32xbf16>
    %44 = vector.shape_cast %43 : vector<16x16x32xbf16> to vector<256x32xbf16>
    %c0_57 = arith.constant 0 : index
    %c256 = arith.constant 256 : index
    %45 = vector.load %arg8[%c0_57, %c256] : memref<256x288xbf16, #tpu.memory_space<vmem>>, vector<256x32xbf16>
    tpu.vector_store %arg8[%c0_57, %c256], %44 {strides = array<i32>} : memref<256x288xbf16, #tpu.memory_space<vmem>>, vector<256x32xbf16>,
    %c0_58 = arith.constant 0 : index
    %c0_59 = arith.constant 0 : index
    %46 = vector.load %arg8[%c0_58, %c0_59] : memref<256x288xbf16, #tpu.memory_space<vmem>>, vector<256x288xbf16>
    %c0_60 = arith.constant 0 : index
    %c0_61 = arith.constant 0 : index
    %47 = vector.load %arg4[%c0_60, %c0_61] : memref<288x32xbf16, #tpu.memory_space<vmem>>, vector<288x32xbf16>
    %cst_62 = arith.constant dense<0.000000e+00> : vector<256x32xf32>
    %48 = tpu.matmul %46, %47, %cst_62 {dimension_numbers = #tpu.dot_dimension_numbers<[1], [0], [0], [1], [0, 0, 1, 1], [], []>} : vector<256x288xbf16>, vector<288x32xbf16>, vector<256x32xf32> -> vector<256x32xf32>
    %49 = vector.shape_cast %48 : vector<256x32xf32> to vector<1x16x16x32xf32>
    %c0_63 = arith.constant 0 : index
    %c0_64 = arith.constant 0 : index
    %c0_65 = arith.constant 0 : index
    %c0_66 = arith.constant 0 : index
    %50 = vector.load %arg5[%c0_63, %c0_64, %c0_65, %c0_66] : memref<1x16x16x32xf32, #tpu.memory_space<vmem>>, vector<1x16x16x32xf32>
    tpu.vector_store %arg5[%c0_63, %c0_64, %c0_65, %c0_66], %49 {strides = array<i32>} : memref<1x16x16x32xf32, #tpu.memory_space<vmem>>, vector<1x16x16x32xf32>,
    %cst_67 = arith.constant dense<0.000000e+00> : vector<32xf32>
    %51 = vector.multi_reduction <add>, %48, %cst_67 [0] : vector<256x32xf32> to vector<32xf32>
    %52 = vector.shape_cast %51 : vector<32xf32> to vector<1x32xf32>
    %53 = arith.mulf %48, %48 : vector<256x32xf32>
    %cst_68 = arith.constant dense<0.000000e+00> : vector<32xf32>
    %54 = vector.multi_reduction <add>, %53, %cst_68 [0] : vector<256x32xf32> to vector<32xf32>
    %55 = vector.shape_cast %54 : vector<32xf32> to vector<1x32xf32>
    %56 = tpu.concatenate %52, %55 in 0 : vector<1x32xf32>, vector<1x32xf32> -> vector<2x32xf32>
    %57 = vector.shape_cast %56 : vector<2x32xf32> to vector<1x2x32xf32>
    %c0_69 = arith.constant 0 : index
    %c0_70 = arith.constant 0 : index
    %c0_71 = arith.constant 0 : index
    %58 = vector.load %arg6[%c0_69, %c0_70, %c0_71] : memref<1x2x32xf32, #tpu.memory_space<vmem>>, vector<1x2x32xf32>
    tpu.vector_store %arg6[%c0_69, %c0_70, %c0_71], %57 {strides = array<i32>} : memref<1x2x32xf32, #tpu.memory_space<vmem>>, vector<1x2x32xf32>,
    return
  }
  func.func @transform_0(%arg0: i32) -> (i32, i32, i32, i32) {
    %c0_i32 = arith.constant 0 : i32
    %c0_i32_0 = arith.constant 0 : i32
    %c0_i32_1 = arith.constant 0 : i32
    %c0_i32_2 = arith.constant 0 : i32
    return %arg0, %c0_i32, %c0_i32_0, %c0_i32_1 : i32, i32, i32, i32
  }
  func.func @transform_1(%arg0: i32) -> (i32, i32) {
    %c0_i32 = arith.constant 0 : i32
    %c0_i32_0 = arith.constant 0 : i32
    %c0_i32_1 = arith.constant 0 : i32
    return %c0_i32, %c0_i32_0 : i32, i32
  }
  func.func @transform_2(%arg0: i32) -> (i32, i32) {
    %c0_i32 = arith.constant 0 : i32
    %c0_i32_0 = arith.constant 0 : i32
    %c0_i32_1 = arith.constant 0 : i32
    return %c0_i32, %c0_i32_0 : i32, i32
  }
  func.func @transform_3(%arg0: i32) -> (i32, i32) {
    %c0_i32 = arith.constant 0 : i32
    %c0_i32_0 = arith.constant 0 : i32
    %c0_i32_1 = arith.constant 0 : i32
    return %c0_i32, %c0_i32_0 : i32, i32
  }
  func.func @transform_4(%arg0: i32) -> (i32, i32, i32, i32) {
    %c0_i32 = arith.constant 0 : i32
    %c0_i32_0 = arith.constant 0 : i32
    %c0_i32_1 = arith.constant 0 : i32
    %c0_i32_2 = arith.constant 0 : i32
    return %arg0, %c0_i32, %c0_i32_0, %c0_i32_1 : i32, i32, i32, i32
  }
  func.func @transform_5(%arg0: i32) -> (i32, i32, i32) {
    %c0_i32 = arith.constant 0 : i32
    %c0_i32_0 = arith.constant 0 : i32
    %c0_i32_1 = arith.constant 0 : i32
    return %arg0, %c0_i32, %c0_i32_0 : i32, i32, i32
  }
}

module attributes {stable_mosaic.version = 11 : i64} {
  func.func @_bn_relu_conv_kernel(%arg0: i32, %arg1: memref<512x32xf32, #tpu.memory_space<vmem>>, %arg2: memref<1x32xf32, #tpu.memory_space<vmem>>, %arg3: memref<1x32xf32, #tpu.memory_space<vmem>>, %arg4: memref<32x128xbf16, #tpu.memory_space<vmem>>, %arg5: memref<512x128xf32, #tpu.memory_space<vmem>>, %arg6: memref<1x2x128xf32, #tpu.memory_space<vmem>>) attributes {dimension_semantics = [#tpu.dimension_semantics<parallel>], iteration_bounds = array<i64: 2>, scalar_prefetch = 0 : i64, scratch_operands = 0 : i64, tpu.core_type = #tpu.core_type<tc>, window_params = [{transform_indices = @transform_0, window_bounds = array<i64: 512, 32>}, {pipeline_mode = #tpu.pipeline_mode<synchronous>, transform_indices = @transform_1, window_bounds = array<i64: 1, 32>}, {pipeline_mode = #tpu.pipeline_mode<synchronous>, transform_indices = @transform_2, window_bounds = array<i64: 1, 32>}, {pipeline_mode = #tpu.pipeline_mode<synchronous>, transform_indices = @transform_3, window_bounds = array<i64: 32, 128>}, {transform_indices = @transform_4, window_bounds = array<i64: 512, 128>}, {transform_indices = @transform_5, window_bounds = array<i64: 1, 2, 128>}]} {
    %c0 = arith.constant 0 : index
    %c0_0 = arith.constant 0 : index
    %0 = vector.load %arg1[%c0, %c0_0] : memref<512x32xf32, #tpu.memory_space<vmem>>, vector<512x32xf32>
    %c0_1 = arith.constant 0 : index
    %c0_2 = arith.constant 0 : index
    %1 = vector.load %arg2[%c0_1, %c0_2] : memref<1x32xf32, #tpu.memory_space<vmem>>, vector<1x32xf32>
    %2 = vector.broadcast %1 : vector<1x32xf32> to vector<512x32xf32>
    %3 = arith.mulf %0, %2 : vector<512x32xf32>
    %c0_3 = arith.constant 0 : index
    %c0_4 = arith.constant 0 : index
    %4 = vector.load %arg3[%c0_3, %c0_4] : memref<1x32xf32, #tpu.memory_space<vmem>>, vector<1x32xf32>
    %5 = vector.broadcast %4 : vector<1x32xf32> to vector<512x32xf32>
    %6 = arith.addf %3, %5 : vector<512x32xf32>
    %cst = arith.constant 0.000000e+00 : f32
    %7 = vector.broadcast %cst : f32 to vector<512x32xf32>
    %8 = arith.maximumf %6, %7 : vector<512x32xf32>
    %9 = arith.truncf %8 : vector<512x32xf32> to vector<512x32xbf16>
    %c0_5 = arith.constant 0 : index
    %c0_6 = arith.constant 0 : index
    %10 = vector.load %arg4[%c0_5, %c0_6] : memref<32x128xbf16, #tpu.memory_space<vmem>>, vector<32x128xbf16>
    %cst_7 = arith.constant dense<0.000000e+00> : vector<512x128xf32>
    %11 = tpu.matmul %9, %10, %cst_7 {dimension_numbers = #tpu.dot_dimension_numbers<[1], [0], [0], [1], [0, 0, 1, 1], [], []>} : vector<512x32xbf16>, vector<32x128xbf16>, vector<512x128xf32> -> vector<512x128xf32>
    %c0_8 = arith.constant 0 : index
    %c0_9 = arith.constant 0 : index
    %12 = vector.load %arg5[%c0_8, %c0_9] : memref<512x128xf32, #tpu.memory_space<vmem>>, vector<512x128xf32>
    tpu.vector_store %arg5[%c0_8, %c0_9], %11 {strides = array<i32>} : memref<512x128xf32, #tpu.memory_space<vmem>>, vector<512x128xf32>,
    %cst_10 = arith.constant dense<0.000000e+00> : vector<128xf32>
    %13 = vector.multi_reduction <add>, %11, %cst_10 [0] : vector<512x128xf32> to vector<128xf32>
    %14 = vector.shape_cast %13 : vector<128xf32> to vector<1x128xf32>
    %15 = arith.mulf %11, %11 : vector<512x128xf32>
    %cst_11 = arith.constant dense<0.000000e+00> : vector<128xf32>
    %16 = vector.multi_reduction <add>, %15, %cst_11 [0] : vector<512x128xf32> to vector<128xf32>
    %17 = vector.shape_cast %16 : vector<128xf32> to vector<1x128xf32>
    %18 = tpu.concatenate %14, %17 in 0 : vector<1x128xf32>, vector<1x128xf32> -> vector<2x128xf32>
    %19 = vector.shape_cast %18 : vector<2x128xf32> to vector<1x2x128xf32>
    %c0_12 = arith.constant 0 : index
    %c0_13 = arith.constant 0 : index
    %c0_14 = arith.constant 0 : index
    %20 = vector.load %arg6[%c0_12, %c0_13, %c0_14] : memref<1x2x128xf32, #tpu.memory_space<vmem>>, vector<1x2x128xf32>
    tpu.vector_store %arg6[%c0_12, %c0_13, %c0_14], %19 {strides = array<i32>} : memref<1x2x128xf32, #tpu.memory_space<vmem>>, vector<1x2x128xf32>,
    return
  }
  func.func @transform_0(%arg0: i32) -> (i32, i32) {
    %c0_i32 = arith.constant 0 : i32
    %c0_i32_0 = arith.constant 0 : i32
    return %arg0, %c0_i32 : i32, i32
  }
  func.func @transform_1(%arg0: i32) -> (i32, i32) {
    %c0_i32 = arith.constant 0 : i32
    %c0_i32_0 = arith.constant 0 : i32
    %c0_i32_1 = arith.constant 0 : i32
    return %c0_i32, %c0_i32_0 : i32, i32
  }
  func.func @transform_2(%arg0: i32) -> (i32, i32) {
    %c0_i32 = arith.constant 0 : i32
    %c0_i32_0 = arith.constant 0 : i32
    %c0_i32_1 = arith.constant 0 : i32
    return %c0_i32, %c0_i32_0 : i32, i32
  }
  func.func @transform_3(%arg0: i32) -> (i32, i32) {
    %c0_i32 = arith.constant 0 : i32
    %c0_i32_0 = arith.constant 0 : i32
    %c0_i32_1 = arith.constant 0 : i32
    return %c0_i32, %c0_i32_0 : i32, i32
  }
  func.func @transform_4(%arg0: i32) -> (i32, i32) {
    %c0_i32 = arith.constant 0 : i32
    %c0_i32_0 = arith.constant 0 : i32
    return %arg0, %c0_i32 : i32, i32
  }
  func.func @transform_5(%arg0: i32) -> (i32, i32, i32) {
    %c0_i32 = arith.constant 0 : i32
    %c0_i32_0 = arith.constant 0 : i32
    %c0_i32_1 = arith.constant 0 : i32
    return %arg0, %c0_i32, %c0_i32_0 : i32, i32, i32
  }
}

module attributes {stable_mosaic.version = 11 : i64} {
  func.func @_bn_add_relu_kernel(%arg0: i32, %arg1: memref<512x128xf32, #tpu.memory_space<vmem>>, %arg2: memref<512x128xf32, #tpu.memory_space<vmem>>, %arg3: memref<1x128xf32, #tpu.memory_space<vmem>>, %arg4: memref<1x128xf32, #tpu.memory_space<vmem>>, %arg5: memref<512x128xf32, #tpu.memory_space<vmem>>) attributes {dimension_semantics = [#tpu.dimension_semantics<parallel>], iteration_bounds = array<i64: 2>, scalar_prefetch = 0 : i64, scratch_operands = 0 : i64, tpu.core_type = #tpu.core_type<tc>, window_params = [{transform_indices = @transform_0, window_bounds = array<i64: 512, 128>}, {transform_indices = @transform_1, window_bounds = array<i64: 512, 128>}, {pipeline_mode = #tpu.pipeline_mode<synchronous>, transform_indices = @transform_2, window_bounds = array<i64: 1, 128>}, {pipeline_mode = #tpu.pipeline_mode<synchronous>, transform_indices = @transform_3, window_bounds = array<i64: 1, 128>}, {transform_indices = @transform_4, window_bounds = array<i64: 512, 128>}]} {
    %c0 = arith.constant 0 : index
    %c0_0 = arith.constant 0 : index
    %0 = vector.load %arg1[%c0, %c0_0] : memref<512x128xf32, #tpu.memory_space<vmem>>, vector<512x128xf32>
    %c0_1 = arith.constant 0 : index
    %c0_2 = arith.constant 0 : index
    %1 = vector.load %arg3[%c0_1, %c0_2] : memref<1x128xf32, #tpu.memory_space<vmem>>, vector<1x128xf32>
    %2 = vector.broadcast %1 : vector<1x128xf32> to vector<512x128xf32>
    %3 = arith.mulf %0, %2 : vector<512x128xf32>
    %c0_3 = arith.constant 0 : index
    %c0_4 = arith.constant 0 : index
    %4 = vector.load %arg4[%c0_3, %c0_4] : memref<1x128xf32, #tpu.memory_space<vmem>>, vector<1x128xf32>
    %5 = vector.broadcast %4 : vector<1x128xf32> to vector<512x128xf32>
    %6 = arith.addf %3, %5 : vector<512x128xf32>
    %c0_5 = arith.constant 0 : index
    %c0_6 = arith.constant 0 : index
    %7 = vector.load %arg2[%c0_5, %c0_6] : memref<512x128xf32, #tpu.memory_space<vmem>>, vector<512x128xf32>
    %8 = arith.addf %6, %7 : vector<512x128xf32>
    %cst = arith.constant 0.000000e+00 : f32
    %9 = vector.broadcast %cst : f32 to vector<512x128xf32>
    %10 = arith.maximumf %8, %9 : vector<512x128xf32>
    %c0_7 = arith.constant 0 : index
    %c0_8 = arith.constant 0 : index
    %11 = vector.load %arg5[%c0_7, %c0_8] : memref<512x128xf32, #tpu.memory_space<vmem>>, vector<512x128xf32>
    tpu.vector_store %arg5[%c0_7, %c0_8], %10 {strides = array<i32>} : memref<512x128xf32, #tpu.memory_space<vmem>>, vector<512x128xf32>,
    return
  }
  func.func @transform_0(%arg0: i32) -> (i32, i32) {
    %c0_i32 = arith.constant 0 : i32
    %c0_i32_0 = arith.constant 0 : i32
    return %arg0, %c0_i32 : i32, i32
  }
  func.func @transform_1(%arg0: i32) -> (i32, i32) {
    %c0_i32 = arith.constant 0 : i32
    %c0_i32_0 = arith.constant 0 : i32
    return %arg0, %c0_i32 : i32, i32
  }
  func.func @transform_2(%arg0: i32) -> (i32, i32) {
    %c0_i32 = arith.constant 0 : i32
    %c0_i32_0 = arith.constant 0 : i32
    %c0_i32_1 = arith.constant 0 : i32
    return %c0_i32, %c0_i32_0 : i32, i32
  }
  func.func @transform_3(%arg0: i32) -> (i32, i32) {
    %c0_i32 = arith.constant 0 : i32
    %c0_i32_0 = arith.constant 0 : i32
    %c0_i32_1 = arith.constant 0 : i32
    return %c0_i32, %c0_i32_0 : i32, i32
  }
  func.func @transform_4(%arg0: i32) -> (i32, i32) {
    %c0_i32 = arith.constant 0 : i32
    %c0_i32_0 = arith.constant 0 : i32
    return %arg0, %c0_i32 : i32, i32
  }
}

</mosaic_0001>

<bundles_post_ra>
// kernel: bottleneck_forward.4
= control target key start
LH: loop header
LB: loop body
LE: loop exit
PB: predicated region body
PF: predicated region fallthrough
CT: control target
= control target key end

     0   :  { %9 = vsyncpa [#allocation3], 0  ;;  %s1978_s0 = inlined_call_operand.hbm [shape: f32[1024,128], index: 0, kind: input, shape index: {}]   ;;  %s1979_s1 = inlined_call_operand.vmem [shape: bf16[128,32], index: 1, kind: input, shape index: {}]   ;;  %s1980_s2 = inlined_call_operand.vmem [shape: f32[1024,32], index: 2, kind: output, shape index: {0}]   ;;  %s1981_s3 = inlined_call_operand.vmem [shape: f32[2,2,32], index: 3, kind: output, shape index: {1}]  }
   0x1   :  { %11 = vsyncpa [#allocation3 + $0x1], 0  ;;  %s1240_s12 = smov 0   ;;  %s1242_s13 = smov 0  }
   0x2   :  { %s1244_s14 = smov 0   ;;  %s1246_s15 = smov 0  }
   0x3 LB: > { %s1259_s16 = sadd.s32 4294967295, %s1216_s15   ;;  %s1262_s17 = sadd.s32 1, %s1216_s15   ;;  %s1216_s15 = sphi %s1246_s15, %s1988_s15   ;;  %s1212_s14 = sphi %s1244_s14, %s1987_s14   ;;  %s1208_s13 = sphi %s1242_s13, %s1986_s13   ;;  %s1204_s12 = sphi %s1240_s12, %s1985_s12  }
   0x4   : > { %s21_s18 = ssub.s32 %s1216_s15, %s1262_s17  ;;  %s24_s19 = sadd.s32 1, %s1212_s14 }
   0x5   : > { %p22_p0 = scmp.eq.s32.totalorder %s21_s18, 0  ;;  %p31_p1 = scmp.ne.s32.totalorder %s1212_s14, %s1208_s13 }
   0x6   : > { %p32_p2 = scmp.eq.s32.totalorder %s1216_s15, 0  ;;  %p37_p3 = scmp.ne.s32.totalorder %s1208_s13, %s1204_s12 }
   0x7   : > { %s1272_s20 = scalar_select %p22_p0, %s1212_s14, %s24_s19  }
   0x8   : > { %p1274_p4 = por %p32_p2, %p31_p1  ;;  %p38_p5 = scmp.eq.s32.totalorder %s1259_s16, 0 }
   0x9   : > { %p1117_p6 = scmp.lt.s32.totalorder %s1216_s15, 2  ;;  %s137_s23 = sand.u32 1, %s1212_s14  }
   0xa   : > { %p1280_p7 = por %p38_p5, %p37_p3  ;;  %s1036_s24 = sshll.u32 %s137_s23, 9 }
   0xb   : > { %s1078_s25 = sshll.u32 %s1216_s15, 9  ;;  %s141_s29 = scalar_lea.vmem [#allocation2], %s1036_s24 }
   0xc   : > { %s146_s28 = scalar_lea.hbm %s1978_s0, %s1078_s25  ;;  %s149_s30 = sshll.u32 %s141_s29, 4  ;;  %s150_s30 = int_to_ptr.vmem [resolvable:$true] %s149_s30 }
   0xd   : > { %s147_s4 = sshll.u32 %s146_s28, 4  ;;  %p1291_p8 = pnand %p1117_p6, %p1274_p4  ;;  %s148_s4 = int_to_ptr.hbm [resolvable:$true] %s147_s4 }
   0xe   : > { %p1039_p9 = scmp.ge.s32.totalorder %s1216_s15, 1  ;;  %s138_s6 = scalar_lea.sflag [#allocation3], %s137_s23 }
   0xf   : > { %s1152_s7 = sshra.s32 %s148_s4, 4  ;;  %p1156_p11 = pneg %p1291_p8  ;;  %s1153_s7 = int_to_ptr.hbm [resolvable:$true] %s1152_s7 }
  0x10   : > { %s1154_s8 = scalar_lea.hbm %s1153_s7, 512  ;;  %s1159_s11 = scalar_lea.hbm %s1978_s0, 1024 }
  0x11   : > { %p1155_p10 = scmp.ne.s32.totalorder %s1153_s7, %s1154_s8  ;;  %p1160_p0 = scmp.lt.s32.totalorder %s1153_s7, %s1978_s0 }
  0x12   : > { %p1161_p1 = scmp.lt.s32.totalorder %s1159_s11, %s1154_s8 }
  0x13   : > { %p1157_p12 = pnand %p1156_p11, %p1155_p10 }
  0x14   : > { %p1162_p2 = por %p1161_p1, %p1160_p0 }
  0x15   : > { %p1158_p13 = pneg %p1157_p12 }
  0x17   : > { %p1163_p3 = pnand %p1162_p2, %p1158_p13 }
  0x19   : > { %1166 = shalt.err (!%p1163_p3)
}
  0x1a   : > { %s1218_s19 = smov 128   ;;  %s1219_s21 = smov 8  }
  0x1b   : > { %1116 = dma.hbm_to_vmem [thread:$0]  (!%p1291_p8), %s148_s4, 8192, %s150_s30, %s138_s6, %s1218_s19, %s1218_s19, %s1219_s21  }
  0x1c   : > { %p157_p4 = scmp.lt.s32.totalorder %s1216_s15, 3 }
  0x1e   : > { %p158_p5 = pnand %p1039_p9, %p157_p4 }
  0x1f   : > { %s163_s23 = sand.u32 (!%p158_p5), 1, %s1208_s13  }
  0x20   : > { %161 = sbr.rel (%p158_p5) target bundleno = 431 (0x1af), region = 28  ;;  %s1040_s24 = sshll.u32 (!%p158_p5), %s163_s23, 9 }
  0x21   : > { %s164_s25 = scalar_lea.sflag (!%p158_p5), [#allocation3], %s163_s23  ;;  %s1310_s26 = scalar_lea.vmem (!%p158_p5), [#allocation2], %s1040_s24 }
  0x25   : > { %1199 = dma.done.wait (%p1280_p7), %s164_s25, 8192  }
  0x26   : > { %1201 = vsyncadd (%p1280_p7), %s164_s25, 4294959104  ;;  %v1086_v0 = vld [vmem:[%s1979_s1 + $0x38] sm:$0xff]  ;;  %v1085_v1 = vld [vmem:[%s1979_s1 + $0x30] sm:$0xff]  ;;  %s1041_s19 = sshll.u32 %s1259_s16, 6  ;;  %vm535_vm0 = vcmask 261120   ;;  %p202_p7 = scmp.lt.s32.totalorder %s1259_s16, 1 }
  0x27   : > { %366 = vmatpush.bf16.msra.mxu0 %v1086_v0  ;;  %1087 = vmatpush.bf16.msra.mxu1 %v1086_v0  ;;  %v1084_v2 = vld [vmem:[%s1979_s1 + $0x28] sm:$0xff]  ;;  %v1083_v3 = vld [vmem:[%s1979_s1 + $0x20] sm:$0xff]  ;;  %v1082_v4 = vld [vmem:[%s1979_s1 + $0x18] sm:$0xff]  ;;  %p197_p6 = scmp.lt.s32.totalorder %s1041_s19, 127  ;;  %vm930_vm1 = vcmask 1040384   ;;  %vm932_vm2 = vcmask 254976  }
  0x28   : > { %1088 = vmatpush.bf16.msra.mxu2 %v1086_v0  ;;  %1089 = vmatpush.bf16.msra.mxu3 %v1086_v0  ;;  %v1081_v5 = vld [vmem:[%s1979_s1 + $0x10] sm:$0xff]  ;;  %v1080_v6 = vld [vmem:[%s1979_s1 + $0x8] sm:$0xff]  ;;  %v1079_v7 = vld [vmem:[%s1979_s1] sm:$0xff]  ;;  %s1992_s16 = smov (!%p202_p7, %s1259_s16), 1 }
  0x29   : > { %v206_v8 = vld [vmem:[%s1310_s26] sm:$0xff]  ;;  %v207_v9 = vld [vmem:[%s1310_s26 + $0x8] sm:$0xff]  ;;  %v208_v14 = vld [vmem:[%s1310_s26 + $0x10] sm:$0xff]  ;;  %s1990_s19 = smov (!%p197_p6, %s1041_s19), 127 }
  0x2a   : > { %v222_v10 = vld [vmem:[%s1310_s26 + $0x80] sm:$0xff]  ;;  %v223_v11 = vld [vmem:[%s1310_s26 + $0x88] sm:$0xff]  ;;  %v270_v12 = vpack.c.bf16 %v207_v9, %v206_v8  ;;  %v209_v15 = vld [vmem:[%s1310_s26 + $0x18] sm:$0xff]  ;;  %s1042_s21 = sshll.u32 %s1990_s19, 3 }
  0x2b   : > { %367 = vmatpush.bf16.msra.mxu0 %v1085_v1  ;;  %1090 = vmatpush.bf16.msra.mxu1 %v1085_v1  ;;  %v278_v13 = vpack.c.bf16 %v223_v11, %v222_v10  ;;  %v224_v16 = vld [vmem:[%s1310_s26 + $0x90] sm:$0xff]  ;;  %v225_v17 = vld [vmem:[%s1310_s26 + $0x98] sm:$0xff]  ;;  %v271_v18 = vpack.c.bf16 %v209_v15, %v208_v14  ;;  %v238_v20 = vld [vmem:[%s1310_s26 + $0x100] sm:$0xff]  ;;  %s1400_s25 = scalar_lea.vmem %s1980_s2, %s1042_s21 }
  0x2c   : > { %1091 = vmatpush.bf16.msra.mxu2 %v1085_v1  ;;  %1092 = vmatpush.bf16.msra.mxu3 %v1085_v1  ;;  %v279_v19 = vpack.c.bf16 %v225_v17, %v224_v16  ;;  %v239_v21 = vld [vmem:[%s1310_s26 + $0x108] sm:$0xff]  ;;  %v210_v23 = vld [vmem:[%s1310_s26 + $0x20] sm:$0xff]  ;;  %v240_v29 = vld [vmem:[%s1310_s26 + $0x110] sm:$0xff] }
  0x2d   : > { %v286_v22 = vpack.c.bf16 %v239_v21, %v238_v20  ;;  %v211_v24 = vld [vmem:[%s1310_s26 + $0x28] sm:$0xff]  ;;  %v226_v25 = vld [vmem:[%s1310_s26 + $0xa0] sm:$0xff]  ;;  %v241_v30 = vld [vmem:[%s1310_s26 + $0x118] sm:$0xff] }
  0x2e   : > { %v227_v26 = vld [vmem:[%s1310_s26 + $0xa8] sm:$0xff]  ;;  %v272_v27 = vpack.c.bf16 %v211_v24, %v210_v23  ;;  %v287_v31 = vpack.c.bf16 %v241_v30, %v240_v29  ;;  %v212_v32 = vld [vmem:[%s1310_s26 + $0x30] sm:$0xff]  ;;  %v213_v33 = vld [vmem:[%s1310_s26 + $0x38] sm:$0xff] }
  0x2f   : > { %368 = vmatpush.bf16.msra.mxu0 %v1084_v2  ;;  %1093 = vmatpush.bf16.msra.mxu1 %v1084_v2  ;;  %v280_v28 = vpack.c.bf16 %v227_v26, %v226_v25  ;;  %v228_v34 = vld [vmem:[%s1310_s26 + $0xb0] sm:$0xff]  ;;  %v229_v35 = vld [vmem:[%s1310_s26 + $0xb8] sm:$0xff]  ;;  %v273_v36 = vpack.c.bf16 %v213_v33, %v212_v32  ;;  %v242_v38 = vld [vmem:[%s1310_s26 + $0x120] sm:$0xff] }
  0x30   : > { %1094 = vmatpush.bf16.msra.mxu2 %v1084_v2  ;;  %1095 = vmatpush.bf16.msra.mxu3 %v1084_v2  ;;  %v281_v37 = vpack.c.bf16 %v229_v35, %v228_v34  ;;  %v243_v39 = vld [vmem:[%s1310_s26 + $0x128] sm:$0xff]  ;;  %v254_v40 = vld [vmem:[%s1310_s26 + $0x180] sm:$0xff]  ;;  %v244_v50 = vld [vmem:[%s1310_s26 + $0x130] sm:$0xff] }
  0x31   : > { %v288_v41 = vpack.c.bf16 %v243_v39, %v242_v38  ;;  %v255_v42 = vld [vmem:[%s1310_s26 + $0x188] sm:$0xff]  ;;  %v214_v44 = vld [vmem:[%s1310_s26 + $0x40] sm:$0xff]  ;;  %v245_v51 = vld [vmem:[%s1310_s26 + $0x138] sm:$0xff] }
  0x32   : > { %v294_v43 = vpack.c.bf16 %v255_v42, %v254_v40  ;;  %v215_v45 = vld [vmem:[%s1310_s26 + $0x48] sm:$0xff]  ;;  %v230_v46 = vld [vmem:[%s1310_s26 + $0xc0] sm:$0xff]  ;;  %v256_v52 = vld [vmem:[%s1310_s26 + $0x190] sm:$0xff]  ;;  %v289_v53 = vpack.c.bf16 %v245_v51, %v244_v50 }
  0x33   : > { %369 = vmatpush.bf16.msra.mxu0 %v1083_v3  ;;  %1096 = vmatpush.bf16.msra.mxu1 %v1083_v3  ;;  %v231_v47 = vld [vmem:[%s1310_s26 + $0xc8] sm:$0xff]  ;;  %v274_v48 = vpack.c.bf16 %v215_v45, %v214_v44  ;;  %v257_v54 = vld [vmem:[%s1310_s26 + $0x198] sm:$0xff]  ;;  %v216_v56 = vld [vmem:[%s1310_s26 + $0x50] sm:$0xff] }
  0x34   : > { %1097 = vmatpush.bf16.msra.mxu2 %v1083_v3  ;;  %1098 = vmatpush.bf16.msra.mxu3 %v1083_v3  ;;  %v282_v49 = vpack.c.bf16 %v231_v47, %v230_v46  ;;  %v295_v55 = vpack.c.bf16 %v257_v54, %v256_v52  ;;  %v217_v57 = vld [vmem:[%s1310_s26 + $0x58] sm:$0xff]  ;;  %v232_v58 = vld [vmem:[%s1310_s26 + $0xd0] sm:$0xff]  ;;  %v246_v62 = vld [vmem:[%s1310_s26 + $0x140] sm:$0xff] }
  0x35   : > { %v233_v59 = vld [vmem:[%s1310_s26 + $0xd8] sm:$0xff]  ;;  %v275_v60 = vpack.c.bf16 %v217_v57, %v216_v56  ;;  %v247_v63 = vld [vmem:[%s1310_s26 + $0x148] sm:$0xff]  ;;  %v258_v0 = vld [vmem:[%s1310_s26 + $0x1a0] sm:$0xff] }
  0x36   : > { %v283_v61 = vpack.c.bf16 %v233_v59, %v232_v58  ;;  %v290_v1 = vpack.c.bf16 %v247_v63, %v246_v62  ;;  %v259_v2 = vld [vmem:[%s1310_s26 + $0x1a8] sm:$0xff]  ;;  %v248_v10 = vld [vmem:[%s1310_s26 + $0x150] sm:$0xff]  ;;  %v249_v11 = vld [vmem:[%s1310_s26 + $0x158] sm:$0xff] }
  0x37   : > { %370 = vmatpush.bf16.msra.mxu0 %v1082_v4  ;;  %1099 = vmatpush.bf16.msra.mxu1 %v1082_v4  ;;  %v296_v3 = vpack.c.bf16 %v259_v2, %v258_v0  ;;  %v261_v14 = vld [vmem:[%s1310_s26 + $0x1b8] sm:$0xff]  ;;  %v220_v16 = vld [vmem:[%s1310_s26 + $0x70] sm:$0xff]  ;;  %v251_v23 = vld [vmem:[%s1310_s26 + $0x168] sm:$0xff] }
  0x38   : > { %1100 = vmatpush.bf16.msra.mxu2 %v1082_v4  ;;  %1101 = vmatpush.bf16.msra.mxu3 %v1082_v4  ;;  %v218_v4 = vld [vmem:[%s1310_s26 + $0x60] sm:$0xff]  ;;  %v221_v17 = vld [vmem:[%s1310_s26 + $0x78] sm:$0xff]  ;;  %v263_v26 = vld [vmem:[%s1310_s26 + $0x1c8] sm:$0xff] }
  0x39   : > { %v277_v20 = vpack.c.bf16 %v221_v17, %v220_v16  ;;  %v262_v24 = vld [vmem:[%s1310_s26 + $0x1c0] sm:$0xff]  ;;  %v252_v30 = vld [vmem:[%s1310_s26 + $0x170] sm:$0xff]  ;;  %v265_v34 = vld [vmem:[%s1310_s26 + $0x1d8] sm:$0xff] }
  0x3a   : > { %v264_v32 = vld [vmem:[%s1310_s26 + $0x1d0] sm:$0xff]  ;;  %v266_v51 = vld [vmem:[%s1310_s26 + $0x1e0] sm:$0xff]  ;;  %v267_v52 = vld [vmem:[%s1310_s26 + $0x1e8] sm:$0xff] }
  0x3b   : > { %371 = vmatpush.bf16.msra.mxu0 %v1081_v5  ;;  %1102 = vmatpush.bf16.msra.mxu1 %v1081_v5  ;;  %v299_v35 = vpack.c.bf16 %v265_v34, %v264_v32  ;;  %v300_v54 = vpack.c.bf16 %v267_v52, %v266_v51 }
  0x3c   : > { %1103 = vmatpush.bf16.msra.mxu2 %v1081_v5  ;;  %1104 = vmatpush.bf16.msra.mxu3 %v1081_v5  ;;  %v219_v5 = vld [vmem:[%s1310_s26 + $0x68] sm:$0xff] }
  0x3d   : > { %v276_v8 = vpack.c.bf16 %v219_v5, %v218_v4 }
  0x3f   : > { %372 = vmatpush.bf16.msra.mxu0 %v1080_v6  ;;  %1105 = vmatpush.bf16.msra.mxu1 %v1080_v6 }
  0x40   : > { %1106 = vmatpush.bf16.msra.mxu2 %v1080_v6  ;;  %1107 = vmatpush.bf16.msra.mxu3 %v1080_v6  ;;  %v234_v6 = vld [vmem:[%s1310_s26 + $0xe0] sm:$0xff] }
  0x43   : > { %373 = vmatpush.bf16.msra.mxu0 %v1079_v7  ;;  %1108 = vmatpush.bf16.msra.mxu1 %v1079_v7 }
  0x44   : > { %1109 = vmatpush.bf16.msra.mxu2 %v1079_v7  ;;  %1110 = vmatpush.bf16.msra.mxu3 %v1079_v7  ;;  %v235_v7 = vld [vmem:[%s1310_s26 + $0xe8] sm:$0xff] }
  0x45   : > { %v284_v9 = vpack.c.bf16 %v235_v7, %v234_v6  ;;  %v268_v6 = vld [vmem:[%s1310_s26 + $0x1f0] sm:$0xff]  ;;  %v269_v7 = vld [vmem:[%s1310_s26 + $0x1f8] sm:$0xff] }
  0x46   : > { %374 = vmatmul.bf16.vlgmr.msra.gmra.mxu0 %v270_v12  ;;  %414 = vmatmul.bf16.vlgmr.msra.gmra.mxu1 %v278_v13  ;;  %v260_v12 = vld [vmem:[%s1310_s26 + $0x1b0] sm:$0xff]  ;;  %v291_v13 = vpack.c.bf16 %v249_v11, %v248_v10 }
  0x47   : > { %454 = vmatmul.bf16.vlgmr.msra.gmra.mxu2 %v286_v22  ;;  %494 = vmatmul.bf16.vlgmr.msra.gmra.mxu3 %v294_v43  ;;  %v297_v15 = vpack.c.bf16 %v261_v14, %v260_v12  ;;  %v250_v22 = vld [vmem:[%s1310_s26 + $0x160] sm:$0xff] }
  0x48   : > { %v292_v25 = vpack.c.bf16 %v251_v23, %v250_v22 }
  0x56   : > { %379 = vmatmul.bf16.gmra.mxu0 %v271_v18  ;;  %419 = vmatmul.bf16.gmra.mxu1 %v279_v19  ;;  %v236_v18 = vld [vmem:[%s1310_s26 + $0xf0] sm:$0xff]  ;;  %v237_v19 = vld [vmem:[%s1310_s26 + $0xf8] sm:$0xff] }
  0x57   : > { %459 = vmatmul.bf16.gmra.mxu2 %v287_v31  ;;  %499 = vmatmul.bf16.gmra.mxu3 %v295_v55  ;;  %v285_v21 = vpack.c.bf16 %v237_v19, %v236_v18  ;;  %v253_v31 = vld [vmem:[%s1310_s26 + $0x178] sm:$0xff]  ;;  %s1043_s26 = sshll.u32 %s1992_s16, 1 }
  0x58   : > { %v293_v33 = vpack.c.bf16 %v253_v31, %v252_v30  ;;  %s205_s15 = scalar_lea.vmem %s1981_s3, %s1043_s26 }
  0x66   : > { %384 = vmatmul.bf16.gmra.mxu0 %v272_v27  ;;  %424 = vmatmul.bf16.gmra.mxu1 %v280_v28  ;;  %v298_v27 = vpack.c.bf16 %v263_v26, %v262_v24 }
  0x67   : > { %464 = vmatmul.bf16.gmra.mxu2 %v288_v41  ;;  %504 = vmatmul.bf16.gmra.mxu3 %v296_v3 }
  0x76   : > { %389 = vmatmul.bf16.gmra.mxu0 %v273_v36  ;;  %429 = vmatmul.bf16.gmra.mxu1 %v281_v37 }
  0x77   : > { %469 = vmatmul.bf16.gmra.mxu2 %v289_v53  ;;  %509 = vmatmul.bf16.gmra.mxu3 %v297_v15 }
  0x86   : > { %394 = vmatmul.bf16.gmra.mxu0 %v274_v48  ;;  %434 = vmatmul.bf16.gmra.mxu1 %v282_v49 }
  0x87   : > { %474 = vmatmul.bf16.gmra.mxu2 %v290_v1  ;;  %514 = vmatmul.bf16.gmra.mxu3 %v298_v27 }
  0x96   : > { %399 = vmatmul.bf16.gmra.mxu0 %v275_v60  ;;  %439 = vmatmul.bf16.gmra.mxu1 %v283_v61 }
  0x97   : > { %479 = vmatmul.bf16.gmra.mxu2 %v291_v13  ;;  %519 = vmatmul.bf16.gmra.mxu3 %v299_v35 }
  0xa6   : > { %404 = vmatmul.bf16.gmra.mxu0 %v276_v8  ;;  %444 = vmatmul.bf16.gmra.mxu1 %v284_v9  ;;  %v301_v9 = vpack.c.bf16 %v269_v7, %v268_v6 }
  0xa7   : > { %484 = vmatmul.bf16.gmra.mxu2 %v292_v25  ;;  %524 = vmatmul.bf16.gmra.mxu3 %v300_v54 }
  0xb6   : > { %409 = vmatmul.bf16.gmra.mxu0 %v277_v20  ;;  %449 = vmatmul.bf16.gmra.mxu1 %v285_v21 }
  0xb7   : > { %489 = vmatmul.bf16.gmra.mxu2 %v293_v33  ;;  %529 = vmatmul.bf16.gmra.mxu3 %v301_v9 }
  0xc3   : > { %v375_v28 = vpop.f32.mrf.mxu0  ;;  %v1402_v29 = vpop.f32.mrf.mxu1 }
  0xc4   : > { %536 = vst.msk [vmem:[%s1400_s25] sm:$0xff] %vm535_vm0, %v375_v28  ;;  %v733_v36 = vmul.f32 %v375_v28, %v375_v28  ;;  %v600_v39 = vsel %vm535_vm0, %v375_v28, 0.0 }
  0xc5   : > { %552 = vst.msk [vmem:[%s1400_s25 + $0x80] sm:$0xff] %vm535_vm0, %v1402_v29 }
  0xc6   : > { %v797_v43 = vsel %vm535_vm0, %v733_v36, 0.0 }
  0xca   : > { %v1440_v60 = vpop.f32.mrf.mxu2  ;;  %v1499_v20 = vpop.f32.mrf.mxu3 }
  0xcb   : > { %v377_v37 = vpop.f32.mrf.mxu0  ;;  %v1413_v38 = vpop.f32.mrf.mxu1  ;;  %568 = vst.msk [vmem:[%s1400_s25 + $0x100] sm:$0xff] %vm535_vm0, %v1440_v60 }
  0xcc   : > { %537 = vst.msk [vmem:[%s1400_s25 + $0x8] sm:$0xff] %vm535_vm0, %v377_v37  ;;  %v601_v40 = vsel %vm535_vm0, %v377_v37, 0.0  ;;  %v734_v41 = vmul.f32 %v377_v37, %v377_v37 }
  0xcd   : > { %v602_v42 = vadd.f32 %v601_v40, %v600_v39  ;;  %553 = vst.msk [vmem:[%s1400_s25 + $0x88] sm:$0xff] %vm535_vm0, %v1413_v38 }
  0xce   : > { %v798_v44 = vsel %vm535_vm0, %v734_v41, 0.0  ;;  %584 = vst.msk [vmem:[%s1400_s25 + $0x180] sm:$0xff] %vm535_vm0, %v1499_v20 }
  0xcf   : > { %v799_v45 = vadd.f32 %v798_v44, %v797_v43 }
  0xd2   : > { %v1454_v4 = vpop.f32.mrf.mxu2  ;;  %v1516_v24 = vpop.f32.mrf.mxu3 }
  0xd3   : > { %v380_v46 = vpop.f32.mrf.mxu0  ;;  %v1424_v47 = vpop.f32.mrf.mxu1  ;;  %569 = vst.msk [vmem:[%s1400_s25 + $0x108] sm:$0xff] %vm535_vm0, %v1454_v4 }
  0xd4   : > { %538 = vst.msk [vmem:[%s1400_s25 + $0x10] sm:$0xff] %vm535_vm0, %v380_v46  ;;  %v603_v48 = vsel %vm535_vm0, %v380_v46, 0.0  ;;  %v735_v49 = vmul.f32 %v380_v46, %v380_v46 }
  0xd5   : > { %v604_v50 = vadd.f32 %v603_v48, %v602_v42  ;;  %554 = vst.msk [vmem:[%s1400_s25 + $0x90] sm:$0xff] %vm535_vm0, %v1424_v47 }
  0xd6   : > { %v800_v53 = vsel %vm535_vm0, %v735_v49, 0.0  ;;  %585 = vst.msk [vmem:[%s1400_s25 + $0x188] sm:$0xff] %vm535_vm0, %v1516_v24 }
  0xd7   : > { %v801_v55 = vadd.f32 %v800_v53, %v799_v45 }
  0xda   : > { %v1473_v13 = vpop.f32.mrf.mxu2  ;;  %v1533_v28 = vpop.f32.mrf.mxu3 }
  0xdb   : > { %v382_v56 = vpop.f32.mrf.mxu0  ;;  %v1435_v57 = vpop.f32.mrf.mxu1  ;;  %570 = vst.msk [vmem:[%s1400_s25 + $0x110] sm:$0xff] %vm535_vm0, %v1473_v13 }
  0xdc   : > { %539 = vst.msk [vmem:[%s1400_s25 + $0x18] sm:$0xff] %vm535_vm0, %v382_v56  ;;  %v605_v58 = vsel %vm535_vm0, %v382_v56, 0.0  ;;  %v736_v59 = vmul.f32 %v382_v56, %v382_v56 }
  0xdd   : > { %v606_v61 = vadd.f32 %v605_v58, %v604_v50  ;;  %555 = vst.msk [vmem:[%s1400_s25 + $0x98] sm:$0xff] %vm535_vm0, %v1435_v57 }
  0xde   : > { %v802_v62 = vsel %vm535_vm0, %v736_v59, 0.0  ;;  %586 = vst.msk [vmem:[%s1400_s25 + $0x190] sm:$0xff] %vm535_vm0, %v1533_v28 }
  0xdf   : > { %v803_v63 = vadd.f32 %v802_v62, %v801_v55 }
  0xe2   : > { %v1485_v16 = vpop.f32.mrf.mxu2  ;;  %v1550_v33 = vpop.f32.mrf.mxu3 }
  0xe3   : > { %v385_v0 = vpop.f32.mrf.mxu0  ;;  %v1449_v1 = vpop.f32.mrf.mxu1  ;;  %571 = vst.msk [vmem:[%s1400_s25 + $0x118] sm:$0xff] %vm535_vm0, %v1485_v16 }
  0xe4   : > { %540 = vst.msk [vmem:[%s1400_s25 + $0x20] sm:$0xff] %vm535_vm0, %v385_v0  ;;  %v607_v2 = vsel %vm535_vm0, %v385_v0, 0.0  ;;  %v737_v3 = vmul.f32 %v385_v0, %v385_v0 }
  0xe5   : > { %v1456_v5 = vadd.f32 %v607_v2, %v606_v61  ;;  %556 = vst.msk [vmem:[%s1400_s25 + $0xa0] sm:$0xff] %vm535_vm0, %v1449_v1 }
  0xe6   : > { %v804_v8 = vsel %vm535_vm0, %v737_v3, 0.0  ;;  %587 = vst.msk [vmem:[%s1400_s25 + $0x198] sm:$0xff] %vm535_vm0, %v1550_v33 }
  0xe7   : > { %v1467_v10 = vadd.f32 %v804_v8, %v803_v63 }
  0xea   : > { %v1497_v19 = vpop.f32.mrf.mxu2  ;;  %v1567_v37 = vpop.f32.mrf.mxu3 }
  0xeb   : > { %v387_v11 = vpop.f32.mrf.mxu0  ;;  %v1469_v12 = vpop.f32.mrf.mxu1  ;;  %572 = vst.msk [vmem:[%s1400_s25 + $0x120] sm:$0xff] %vm535_vm0, %v1497_v19 }
  0xec   : > { %541 = vst.msk [vmem:[%s1400_s25 + $0x28] sm:$0xff] %vm535_vm0, %v387_v11  ;;  %v738_v41 = vmul.f32 %v387_v11, %v387_v11  ;;  %v609_v44 = vsel %vm535_vm0, %v387_v11, 0.0 }
  0xed   : > { %557 = vst.msk [vmem:[%s1400_s25 + $0xa8] sm:$0xff] %vm535_vm0, %v1469_v12  ;;  %v610_v50 = vadd.f32 %v609_v44, %v1456_v5 }
  0xee   : > { %588 = vst.msk [vmem:[%s1400_s25 + $0x1a0] sm:$0xff] %vm535_vm0, %v1567_v37  ;;  %v806_v46 = vsel %vm535_vm0, %v738_v41, 0.0 }
  0xef   : > { %v807_v54 = vadd.f32 %v806_v46, %v1467_v10 }
  0xf2   : > { %v1514_v23 = vpop.f32.mrf.mxu2  ;;  %v1584_v43 = vpop.f32.mrf.mxu3 }
  0xf3   : > { %v390_v14 = vpop.f32.mrf.mxu0  ;;  %v1481_v15 = vpop.f32.mrf.mxu1  ;;  %573 = vst.msk [vmem:[%s1400_s25 + $0x128] sm:$0xff] %vm535_vm0, %v1514_v23 }
  0xf4   : > { %542 = vst.msk [vmem:[%s1400_s25 + $0x30] sm:$0xff] %vm535_vm0, %v390_v14  ;;  %v739_v45 = vmul.f32 %v390_v14, %v390_v14  ;;  %v611_v48 = vsel %vm535_vm0, %v390_v14, 0.0 }
  0xf5   : > { %558 = vst.msk [vmem:[%s1400_s25 + $0xb0] sm:$0xff] %vm535_vm0, %v1481_v15  ;;  %v612_v55 = vadd.f32 %v611_v48, %v610_v50 }
  0xf6   : > { %589 = vst.msk [vmem:[%s1400_s25 + $0x1a8] sm:$0xff] %vm535_vm0, %v1584_v43  ;;  %v808_v51 = vsel %vm535_vm0, %v739_v45, 0.0 }
  0xf7   : > { %v809_v2 = vadd.f32 %v808_v51, %v807_v54 }
  0xfa   : > { %v1531_v27 = vpop.f32.mrf.mxu2  ;;  %v1610_v0 = vpop.f32.mrf.mxu3 }
  0xfb   : > { %v392_v17 = vpop.f32.mrf.mxu0  ;;  %v1493_v18 = vpop.f32.mrf.mxu1  ;;  %574 = vst.msk [vmem:[%s1400_s25 + $0x130] sm:$0xff] %vm535_vm0, %v1531_v27 }
  0xfc   : > { %543 = vst.msk [vmem:[%s1400_s25 + $0x38] sm:$0xff] %vm535_vm0, %v392_v17  ;;  %v740_v49 = vmul.f32 %v392_v17, %v392_v17  ;;  %v613_v52 = vsel %vm535_vm0, %v392_v17, 0.0 }
  0xfd   : > { %559 = vst.msk [vmem:[%s1400_s25 + $0xb8] sm:$0xff] %vm535_vm0, %v1493_v18  ;;  %v614_v3 = vadd.f32 %v613_v52, %v612_v55 }
  0xfe   : > { %v810_v59 = vsel %vm535_vm0, %v740_v49, 0.0  ;;  %590 = vst.msk [vmem:[%s1400_s25 + $0x1b0] sm:$0xff] %vm535_vm0, %v1610_v0 }
  0xff   : > { %v811_v8 = vadd.f32 %v810_v59, %v809_v2 }
 0x102   : > { %v1548_v32 = vpop.f32.mrf.mxu2 }
 0x103   : > { %v395_v21 = vpop.f32.mrf.mxu0  ;;  %v1510_v22 = vpop.f32.mrf.mxu1  ;;  %575 = vst.msk [vmem:[%s1400_s25 + $0x138] sm:$0xff] %vm535_vm0, %v1548_v32 }
 0x104   : > { %544 = vst.msk [vmem:[%s1400_s25 + $0x40] sm:$0xff] %vm535_vm0, %v395_v21  ;;  %v741_v53 = vmul.f32 %v395_v21, %v395_v21  ;;  %v615_v61 = vsel %vm535_vm0, %v395_v21, 0.0 }
 0x105   : > { %560 = vst.msk [vmem:[%s1400_s25 + $0xc0] sm:$0xff] %vm535_vm0, %v1510_v22  ;;  %v616_v9 = vadd.f32 %v615_v61, %v614_v3 }
 0x106   : > { %v812_v5 = vsel %vm535_vm0, %v741_v53, 0.0  ;;  %v1635_v53 = vpop.f32.mrf.mxu3 }
 0x107   : > { %v813_v17 = vadd.f32 %v812_v5, %v811_v8  ;;  %591 = vst.msk [vmem:[%s1400_s25 + $0x1b8] sm:$0xff] %vm535_vm0, %v1635_v53 }
 0x10a   : > { %v1565_v36 = vpop.f32.mrf.mxu2 }
 0x10b   : > { %v397_v25 = vpop.f32.mrf.mxu0  ;;  %v1527_v26 = vpop.f32.mrf.mxu1  ;;  %576 = vst.msk [vmem:[%s1400_s25 + $0x140] sm:$0xff] %vm535_vm0, %v1565_v36 }
 0x10c   : > { %545 = vst.msk [vmem:[%s1400_s25 + $0x48] sm:$0xff] %vm535_vm0, %v397_v25  ;;  %v742_v62 = vmul.f32 %v397_v25, %v397_v25  ;;  %v617_v6 = vsel %vm535_vm0, %v397_v25, 0.0 }
 0x10d   : > { %561 = vst.msk [vmem:[%s1400_s25 + $0xc8] sm:$0xff] %vm535_vm0, %v1527_v26  ;;  %v618_v21 = vadd.f32 %v617_v6, %v616_v9 }
 0x10e   : > { %v814_v10 = vsel %vm535_vm0, %v742_v62, 0.0 }
 0x10f   : > { %v815_v45 = vadd.f32 %v814_v10, %v813_v17 }
 0x112   : > { %v1582_v42 = vpop.f32.mrf.mxu2 }
 0x113   : > { %v400_v30 = vpop.f32.mrf.mxu0  ;;  %v1544_v31 = vpop.f32.mrf.mxu1  ;;  %577 = vst.msk [vmem:[%s1400_s25 + $0x148] sm:$0xff] %vm535_vm0, %v1582_v42 }
 0x114   : > { %546 = vst.msk [vmem:[%s1400_s25 + $0x50] sm:$0xff] %vm535_vm0, %v400_v30  ;;  %v743_v7 = vmul.f32 %v400_v30, %v400_v30  ;;  %v619_v11 = vsel %vm535_vm0, %v400_v30, 0.0 }
 0x115   : > { %562 = vst.msk [vmem:[%s1400_s25 + $0xd0] sm:$0xff] %vm535_vm0, %v1544_v31  ;;  %v620_v46 = vadd.f32 %v619_v11, %v618_v21  ;;  %v749_v11 = vmul.f32 %v1402_v29, %v1402_v29 }
 0x116   : > { %v816_v25 = vsel %vm535_vm0, %v743_v7, 0.0 }
 0x11a   : > { %v1608_v63 = vpop.f32.mrf.mxu2 }
 0x11b   : > { %v402_v34 = vpop.f32.mrf.mxu0  ;;  %v1561_v35 = vpop.f32.mrf.mxu1  ;;  %578 = vst.msk [vmem:[%s1400_s25 + $0x150] sm:$0xff] %vm535_vm0, %v1608_v63 }
 0x11c   : > { %547 = vst.msk [vmem:[%s1400_s25 + $0x58] sm:$0xff] %vm535_vm0, %v402_v34  ;;  %v744_v14 = vmul.f32 %v402_v34, %v402_v34  ;;  %v621_v41 = vsel %vm535_vm0, %v402_v34, 0.0  ;;  %v817_v34 = vadd.f32 %v816_v25, %v815_v45  ;;  %v1660_v25 = vpop.f32.mrf.mxu3  ;;  %v631_v45 = vsel %vm535_vm0, %v1402_v29, 0.0 }
 0x11d   : > { %563 = vst.msk [vmem:[%s1400_s25 + $0xd8] sm:$0xff] %vm535_vm0, %v1561_v35  ;;  %v622_v54 = vadd.f32 %v621_v41, %v620_v46  ;;  %v750_v46 = vmul.f32 %v1413_v38, %v1413_v38  ;;  %v751_v29 = vmul.f32 %v1424_v47, %v1424_v47 }
 0x11e   : > { %v818_v50 = vsel %vm535_vm0, %v744_v14, 0.0  ;;  %592 = vst.msk [vmem:[%s1400_s25 + $0x1c0] sm:$0xff] %vm535_vm0, %v1660_v25 }
 0x122   : > { %v1633_v52 = vpop.f32.mrf.mxu2 }
 0x123   : > { %v405_v39 = vpop.f32.mrf.mxu0  ;;  %v1578_v40 = vpop.f32.mrf.mxu1  ;;  %579 = vst.msk [vmem:[%s1400_s25 + $0x158] sm:$0xff] %vm535_vm0, %v1633_v52 }
 0x124   : > { %548 = vst.msk [vmem:[%s1400_s25 + $0x60] sm:$0xff] %vm535_vm0, %v405_v39  ;;  %v745_v44 = vmul.f32 %v405_v39, %v405_v39  ;;  %v623_v30 = vsel %vm535_vm0, %v405_v39, 0.0  ;;  %v819_v39 = vadd.f32 %v818_v50, %v817_v34  ;;  %v633_v34 = vsel %vm535_vm0, %v1413_v38, 0.0 }
 0x125   : > { %564 = vst.msk [vmem:[%s1400_s25 + $0xe0] sm:$0xff] %vm535_vm0, %v1578_v40  ;;  %v624_v62 = vadd.f32 %v623_v30, %v622_v54  ;;  %v637_v38 = vsel %vm535_vm0, %v1435_v57, 0.0 }
 0x126   : > { %v820_v55 = vsel %vm535_vm0, %v745_v44, 0.0 }
 0x127   : > { %v821_v5 = vadd.f32 %v820_v55, %v819_v39  ;;  %v752_v39 = vmul.f32 %v1435_v57, %v1435_v57  ;;  %v754_v57 = vmul.f32 %v1469_v12, %v1469_v12 }
 0x12a   : > { %v1658_v21 = vpop.f32.mrf.mxu2 }
 0x12b   : > { %v407_v56 = vpop.f32.mrf.mxu0  ;;  %v1602_v58 = vpop.f32.mrf.mxu1  ;;  %580 = vst.msk [vmem:[%s1400_s25 + $0x160] sm:$0xff] %vm535_vm0, %v1658_v21 }
 0x12c   : > { %549 = vst.msk [vmem:[%s1400_s25 + $0x68] sm:$0xff] %vm535_vm0, %v407_v56  ;;  %v746_v51 = vmul.f32 %v407_v56, %v407_v56  ;;  %v625_v59 = vsel %vm535_vm0, %v407_v56, 0.0 }
 0x12d   : > { %565 = vst.msk [vmem:[%s1400_s25 + $0xe8] sm:$0xff] %vm535_vm0, %v1602_v58  ;;  %v626_v6 = vadd.f32 %v625_v59, %v624_v62  ;;  %v830_v59 = vsel %vm535_vm0, %v750_v46, 0.0 }
 0x12e   : > { %v822_v2 = vsel %vm535_vm0, %v746_v51, 0.0  ;;  %v828_v51 = vsel %vm535_vm0, %v749_v11, 0.0 }
 0x12f   : > { %v823_v56 = vadd.f32 %v822_v2, %v821_v5  ;;  %v753_v5 = vmul.f32 %v1449_v1, %v1449_v1 }
 0x133   : > { %v410_v48 = vpop.f32.mrf.mxu0  ;;  %v1627_v49 = vpop.f32.mrf.mxu1 }
 0x134   : > { %550 = vst.msk [vmem:[%s1400_s25 + $0x70] sm:$0xff] %vm535_vm0, %v410_v48  ;;  %v747_v61 = vmul.f32 %v410_v48, %v410_v48  ;;  %v627_v3 = vsel %vm535_vm0, %v410_v48, 0.0 }
 0x135   : > { %566 = vst.msk [vmem:[%s1400_s25 + $0xf0] sm:$0xff] %vm535_vm0, %v1627_v49  ;;  %v628_v8 = vadd.f32 %v627_v3, %v626_v6  ;;  %v832_v3 = vsel %vm535_vm0, %v751_v29, 0.0  ;;  %v1691_v6 = vpop.f32.mrf.mxu2  ;;  %v757_v29 = vmul.f32 %v1510_v22, %v1510_v22 }
 0x136   : > { %v824_v7 = vsel %vm535_vm0, %v747_v61, 0.0  ;;  %v635_v61 = vsel %vm535_vm0, %v1424_v47, 0.0  ;;  %581 = vst.msk [vmem:[%s1400_s25 + $0x168] sm:$0xff] %vm535_vm0, %v1691_v6  ;;  %v834_v47 = vsel %vm535_vm0, %v752_v39, 0.0  ;;  %v647_v39 = vsel %vm535_vm0, %v1510_v22, 0.0 }
 0x137   : > { %v825_v41 = vadd.f32 %v824_v7, %v823_v56  ;;  %v1693_v7 = vpop.f32.mrf.mxu3 }
 0x138   : > { %593 = vst.msk [vmem:[%s1400_s25 + $0x1c8] sm:$0xff] %vm535_vm0, %v1693_v7 }
 0x13b   : > { %v412_v9 = vpop.f32.mrf.mxu0  ;;  %v1651_v10 = vpop.f32.mrf.mxu1 }
 0x13c   : > { %551 = vst.msk [vmem:[%s1400_s25 + $0x78] sm:$0xff] %vm535_vm0, %v412_v9  ;;  %v629_v14 = vsel %vm535_vm0, %v412_v9, 0.0  ;;  %v748_v17 = vmul.f32 %v412_v9, %v412_v9  ;;  %v639_v9 = vsel %vm535_vm0, %v1449_v1, 0.0  ;;  %v838_v1 = vsel %vm535_vm0, %v754_v57, 0.0 }
 0x13d   : > { %v630_v44 = vadd.f32 %v629_v14, %v628_v8  ;;  %567 = vst.msk [vmem:[%s1400_s25 + $0xf8] sm:$0xff] %vm535_vm0, %v1651_v10 }
 0x13e   : > { %v826_v48 = vsel %vm535_vm0, %v748_v17, 0.0  ;;  %v836_v17 = vsel %vm535_vm0, %v753_v5, 0.0  ;;  %v759_v5 = vmul.f32 %v1544_v31, %v1544_v31 }
 0x13f   : > { %v632_v50 = vadd.f32 %v631_v45, %v630_v44  ;;  %v827_v30 = vadd.f32 %v826_v48, %v825_v41  ;;  %v641_v41 = vsel %vm535_vm0, %v1469_v12, 0.0  ;;  %v755_v44 = vmul.f32 %v1481_v15, %v1481_v15 }
 0x140   : > { %v643_v48 = vsel %vm535_vm0, %v1481_v15, 0.0  ;;  %v645_v12 = vsel %vm535_vm0, %v1493_v18, 0.0 }
 0x141   : > { %v634_v54 = vadd.f32 %v633_v34, %v632_v50  ;;  %v829_v55 = vadd.f32 %v828_v51, %v827_v30  ;;  %v756_v50 = vmul.f32 %v1493_v18, %v1493_v18  ;;  %v840_v34 = vsel %vm535_vm0, %v755_v44, 0.0 }
 0x142   : > { %v758_v18 = vmul.f32 %v1527_v26, %v1527_v26 }
 0x143   : > { %v636_v62 = vadd.f32 %v635_v61, %v634_v54  ;;  %v831_v2 = vadd.f32 %v830_v59, %v829_v55  ;;  %v1721_v54 = vpop.f32.mrf.mxu2  ;;  %v1723_v55 = vpop.f32.mrf.mxu3  ;;  %v842_v15 = vsel %vm535_vm0, %v756_v50, 0.0 }
 0x144   : > { %582 = vst.msk [vmem:[%s1400_s25 + $0x170] sm:$0xff] %vm535_vm0, %v1721_v54  ;;  %v846_v22 = vsel %vm535_vm0, %v758_v18, 0.0  ;;  %v765_v18 = vmul.f32 %v1440_v60, %v1440_v60 }
 0x145   : > { %v638_v56 = vadd.f32 %v637_v38, %v636_v62  ;;  %v833_v8 = vadd.f32 %v832_v3, %v831_v2  ;;  %594 = vst.msk [vmem:[%s1400_s25 + $0x1d0] sm:$0xff] %vm535_vm0, %v1723_v55  ;;  %v844_v3 = vsel %vm535_vm0, %v757_v29, 0.0  ;;  %v649_v38 = vsel %vm535_vm0, %v1527_v26, 0.0 }
 0x146   : > { %v653_v26 = vsel %vm535_vm0, %v1561_v35, 0.0 }
 0x147   : > { %v640_v11 = vadd.f32 %v639_v9, %v638_v56  ;;  %v835_v14 = vadd.f32 %v834_v47, %v833_v8  ;;  %v651_v47 = vsel %vm535_vm0, %v1544_v31, 0.0  ;;  %v760_v9 = vmul.f32 %v1561_v35, %v1561_v35 }
 0x148   : > { %v762_v35 = vmul.f32 %v1602_v58, %v1602_v58 }
 0x149   : > { %v642_v45 = vadd.f32 %v641_v41, %v640_v11  ;;  %v837_v46 = vadd.f32 %v836_v17, %v835_v14  ;;  %v848_v14 = vsel %vm535_vm0, %v759_v5, 0.0  ;;  %v761_v17 = vmul.f32 %v1578_v40, %v1578_v40 }
 0x14a   : > { %v850_v31 = vsel %vm535_vm0, %v760_v9, 0.0  ;;  %v766_v5 = vmul.f32 %v1454_v4, %v1454_v4  ;;  %v767_v9 = vmul.f32 %v1473_v13, %v1473_v13 }
 0x14b   : > { %v839_v30 = vadd.f32 %v838_v1, %v837_v46  ;;  %v644_v51 = vadd.f32 %v643_v48, %v642_v45  ;;  %v1751_v41 = vpop.f32.mrf.mxu2  ;;  %v1753_v44 = vpop.f32.mrf.mxu3  ;;  %v655_v1 = vsel %vm535_vm0, %v1578_v40, 0.0  ;;  %v854_v40 = vsel %vm535_vm0, %v762_v35, 0.0 }
 0x14c   : > { %583 = vst.msk [vmem:[%s1400_s25 + $0x178] sm:$0xff] %vm535_vm0, %v1751_v41 }
 0x14d   : > { %v646_v59 = vadd.f32 %v645_v12, %v644_v51  ;;  %v841_v61 = vadd.f32 %v840_v34, %v839_v30  ;;  %595 = vst.msk [vmem:[%s1400_s25 + $0x1d8] sm:$0xff] %vm535_vm0, %v1753_v44  ;;  %v852_v30 = vsel %vm535_vm0, %v761_v17, 0.0  ;;  %v657_v51 = vsel %vm535_vm0, %v1602_v58, 0.0 }
 0x14e   : > { %v763_v34 = vmul.f32 %v1627_v49, %v1627_v49 }
 0x14f   : > { %v648_v62 = vadd.f32 %v647_v39, %v646_v59  ;;  %v843_v2 = vadd.f32 %v842_v15, %v841_v61  ;;  %v659_v59 = vsel %vm535_vm0, %v1627_v49, 0.0  ;;  %v764_v61 = vmul.f32 %v1651_v10, %v1651_v10 }
 0x150   : > { %v856_v58 = vsel %vm535_vm0, %v763_v34, 0.0  ;;  %v663_v49 = vsel %vm535_vm0, %v1440_v60, 0.0  ;;  %v862_v60 = vsel %vm535_vm0, %v766_v5, 0.0  ;;  %v679_v5 = vsel %vm535_vm0, %v1565_v36, 0.0 }
 0x151   : > { %v650_v56 = vadd.f32 %v649_v38, %v648_v62  ;;  %v845_v8 = vadd.f32 %v844_v3, %v843_v2  ;;  %v661_v62 = vsel %vm535_vm0, %v1651_v10, 0.0  ;;  %v665_v10 = vsel %vm535_vm0, %v1454_v4, 0.0 }
 0x152   : > { %v669_v4 = vsel %vm535_vm0, %v1485_v16, 0.0 }
 0x153   : > { %v652_v57 = vadd.f32 %v651_v47, %v650_v56  ;;  %v847_v11 = vadd.f32 %v846_v22, %v845_v8  ;;  %v1781_v2 = vpop.f32.mrf.mxu3  ;;  %v858_v56 = vsel %vm535_vm0, %v764_v61, 0.0  ;;  %v860_v47 = vsel %vm535_vm0, %v765_v18, 0.0 }
 0x154   : > { %596 = vst.msk [vmem:[%s1400_s25 + $0x1e0] sm:$0xff] %vm535_vm0, %v1781_v2 }
 0x155   : > { %v654_v45 = vadd.f32 %v653_v26, %v652_v57  ;;  %v849_v46 = vadd.f32 %v848_v14, %v847_v11  ;;  %v667_v14 = vsel %vm535_vm0, %v1473_v13, 0.0  ;;  %v768_v26 = vmul.f32 %v1485_v16, %v1485_v16 }
 0x157   : > { %v656_v48 = vadd.f32 %v655_v1, %v654_v45  ;;  %v851_v50 = vadd.f32 %v850_v31, %v849_v46  ;;  %v864_v46 = vsel %vm535_vm0, %v767_v9, 0.0  ;;  %v769_v31 = vmul.f32 %v1497_v19, %v1497_v19 }
 0x158   : > { %v866_v13 = vsel %vm535_vm0, %v768_v26, 0.0 }
 0x159   : > { %v853_v12 = vadd.f32 %v852_v30, %v851_v50  ;;  %v658_v29 = vadd.f32 %v657_v51, %v656_v48  ;;  %v671_v50 = vsel %vm535_vm0, %v1497_v19, 0.0  ;;  %v770_v30 = vmul.f32 %v1514_v23, %v1514_v23 }
 0x15a   : > { %v868_v34 = vsel %vm535_vm0, %v769_v31, 0.0  ;;  %v675_v19 = vsel %vm535_vm0, %v1531_v27, 0.0 }
 0x15b   : > { %v855_v15 = vadd.f32 %v854_v40, %v853_v12  ;;  %v660_v39 = vadd.f32 %v659_v59, %v658_v29  ;;  %v1806_v1 = vpop.f32.mrf.mxu3  ;;  %v673_v12 = vsel %vm535_vm0, %v1514_v23, 0.0  ;;  %v771_v29 = vmul.f32 %v1531_v27, %v1531_v27 }
 0x15c   : > { %597 = vst.msk [vmem:[%s1400_s25 + $0x1e8] sm:$0xff] %vm535_vm0, %v1806_v1  ;;  %v870_v61 = vsel %vm535_vm0, %v770_v30, 0.0  ;;  %v677_v23 = vsel %vm535_vm0, %v1548_v32, 0.0  ;;  %v689_v30 = vsel %vm535_vm0, %v1691_v6, 0.0 }
 0x15d   : > { %v857_v3 = vadd.f32 %v856_v58, %v855_v15  ;;  %v662_v38 = vadd.f32 %v661_v62, %v660_v39  ;;  %v772_v15 = vmul.f32 %v1548_v32, %v1548_v32  ;;  %v872_v58 = vsel %vm535_vm0, %v771_v29, 0.0 }
 0x15e   : > { %v773_v62 = vmul.f32 %v1565_v36, %v1565_v36  ;;  %v683_v36 = vsel %vm535_vm0, %v1608_v63, 0.0  ;;  %v780_v29 = vmul.f32 %v1751_v41, %v1751_v41 }
 0x15f   : > { %v664_v8 = vadd.f32 %v663_v49, %v662_v38  ;;  %v859_v22 = vadd.f32 %v858_v56, %v857_v3  ;;  %v874_v27 = vsel %vm535_vm0, %v772_v15, 0.0  ;;  %v774_v56 = vmul.f32 %v1582_v42, %v1582_v42 }
 0x161   : > { %v666_v57 = vadd.f32 %v665_v10, %v664_v8  ;;  %v861_v11 = vadd.f32 %v860_v47, %v859_v22  ;;  %v876_v22 = vsel %vm535_vm0, %v773_v62, 0.0  ;;  %v681_v47 = vsel %vm535_vm0, %v1582_v42, 0.0 }
 0x162   : > { %v775_v10 = vmul.f32 %v1608_v63, %v1608_v63  ;;  %v685_v42 = vsel %vm535_vm0, %v1633_v52, 0.0 }
 0x163   : > { %v668_v17 = vadd.f32 %v667_v14, %v666_v57  ;;  %v863_v45 = vadd.f32 %v862_v60, %v861_v11  ;;  %v1831_v3 = vpop.f32.mrf.mxu3  ;;  %v878_v11 = vsel %vm535_vm0, %v774_v56, 0.0  ;;  %v776_v60 = vmul.f32 %v1633_v52, %v1633_v52 }
 0x164   : > { %598 = vst.msk [vmem:[%s1400_s25 + $0x1f0] sm:$0xff] %vm535_vm0, %v1831_v3 }
 0x165   : > { %v670_v35 = vadd.f32 %v669_v4, %v668_v17  ;;  %v865_v48 = vadd.f32 %v864_v46, %v863_v45  ;;  %v880_v17 = vsel %vm535_vm0, %v775_v10, 0.0  ;;  %v777_v45 = vmul.f32 %v1658_v21, %v1658_v21 }
 0x166   : > { %v882_v63 = vsel %vm535_vm0, %v776_v60, 0.0  ;;  %v785_v10 = vmul.f32 %v1567_v37, %v1567_v37 }
 0x167   : > { %v672_v51 = vadd.f32 %v671_v50, %v670_v35  ;;  %v867_v16 = vadd.f32 %v866_v13, %v865_v48  ;;  %v687_v35 = vsel %vm535_vm0, %v1658_v21, 0.0  ;;  %v778_v48 = vmul.f32 %v1691_v6, %v1691_v6 }
 0x168   : > { %v884_v50 = vsel %vm535_vm0, %v777_v45, 0.0  ;;  %v691_v21 = vsel %vm535_vm0, %v1721_v54, 0.0 }
 0x169   : > { %v674_v40 = vadd.f32 %v673_v12, %v672_v51  ;;  %v869_v59 = vadd.f32 %v868_v34, %v867_v16  ;;  %v779_v51 = vmul.f32 %v1721_v54, %v1721_v54  ;;  %v886_v12 = vsel %vm535_vm0, %v778_v48, 0.0 }
 0x16a   : > { %v782_v54 = vmul.f32 %v1516_v24, %v1516_v24 }
 0x16b   : > { %v871_v39 = vadd.f32 %v870_v61, %v869_v59  ;;  %v676_v18 = vadd.f32 %v675_v19, %v674_v40  ;;  %v1856_v46 = vpop.f32.mrf.mxu3  ;;  %v781_v61 = vmul.f32 %v1499_v20, %v1499_v20  ;;  %v888_v6 = vsel %vm535_vm0, %v779_v51, 0.0 }
 0x16c   : > { %599 = vst.msk [vmem:[%s1400_s25 + $0x1f8] sm:$0xff] %vm535_vm0, %v1856_v46  ;;  %v693_v19 = vsel %vm535_vm0, %v1751_v41, 0.0  ;;  %v783_v41 = vmul.f32 %v1533_v28, %v1533_v28  ;;  %v894_v56 = vsel %vm535_vm0, %v782_v54, 0.0  ;;  %v790_v51 = vmul.f32 %v1693_v7, %v1693_v7 }
 0x16d   : > { %v678_v38 = vadd.f32 %v677_v23, %v676_v18  ;;  %v873_v49 = vadd.f32 %v872_v58, %v871_v39  ;;  %v695_v18 = vsel %vm535_vm0, %v1499_v20, 0.0  ;;  %v890_v58 = vsel %vm535_vm0, %v780_v29, 0.0 }
 0x16e   : > { %v699_v20 = vsel %vm535_vm0, %v1533_v28, 0.0  ;;  %v703_v28 = vsel %vm535_vm0, %v1567_v37, 0.0  ;;  %v707_v37 = vsel %vm535_vm0, %v1610_v0, 0.0 }
 0x16f   : > { %v680_v8 = vadd.f32 %v679_v5, %v678_v38  ;;  %v875_v32 = vadd.f32 %v874_v27, %v873_v49  ;;  %v892_v38 = vsel %vm535_vm0, %v781_v61, 0.0  ;;  %v697_v49 = vsel %vm535_vm0, %v1516_v24, 0.0 }
 0x170   : > { %v701_v24 = vsel %vm535_vm0, %v1550_v33, 0.0  ;;  %v792_v61 = vmul.f32 %v1753_v44, %v1753_v44 }
 0x171   : > { %v682_v9 = vadd.f32 %v681_v47, %v680_v8  ;;  %v877_v57 = vadd.f32 %v876_v22, %v875_v32  ;;  %v784_v8 = vmul.f32 %v1550_v33, %v1550_v33  ;;  %v896_v47 = vsel %vm535_vm0, %v783_v41, 0.0 }
 0x172   : > { %v705_v33 = vsel %vm535_vm0, %v1584_v43, 0.0  ;;  %v795_v41 = vmul.f32 %v1831_v3, %v1831_v3 }
 0x173   : > { %v684_v14 = vadd.f32 %v683_v36, %v682_v9  ;;  %v879_v26 = vadd.f32 %v878_v11, %v877_v57  ;;  %v898_v11 = vsel %vm535_vm0, %v784_v8, 0.0  ;;  %v786_v36 = vmul.f32 %v1584_v43, %v1584_v43 }
 0x174   : > { %v709_v43 = vsel %vm535_vm0, %v1635_v53, 0.0 }
 0x175   : > { %v686_v4 = vadd.f32 %v685_v42, %v684_v14  ;;  %v881_v31 = vadd.f32 %v880_v17, %v879_v26  ;;  %v900_v26 = vsel %vm535_vm0, %v785_v10, 0.0  ;;  %v787_v17 = vmul.f32 %v1610_v0, %v1610_v0 }
 0x176   : > { %v711_v0 = vsel %vm535_vm0, %v1660_v25, 0.0 }
 0x177   : > { %v883_v13 = vadd.f32 %v882_v63, %v881_v31  ;;  %v688_v52 = vadd.f32 %v687_v35, %v686_v4  ;;  %v902_v4 = vsel %vm535_vm0, %v786_v36, 0.0  ;;  %v788_v31 = vmul.f32 %v1635_v53, %v1635_v53 }
 0x178   : > { %v904_v48 = vsel %vm535_vm0, %v787_v17, 0.0  ;;  %v713_v53 = vsel %vm535_vm0, %v1693_v7, 0.0  ;;  %v717_v7 = vsel %vm535_vm0, %v1753_v44, 0.0  ;;  %v721_v44 = vsel %vm535_vm0, %v1806_v1, 0.0 }
 0x179   : > { %v885_v16 = vadd.f32 %v884_v50, %v883_v13  ;;  %v690_v34 = vadd.f32 %v689_v30, %v688_v52  ;;  %v789_v13 = vmul.f32 %v1660_v25, %v1660_v25  ;;  %v906_v30 = vsel %vm535_vm0, %v788_v31, 0.0 }
 0x17a   : > { %v715_v25 = vsel %vm535_vm0, %v1723_v55, 0.0 }
 0x17b   : > { %v887_v40 = vadd.f32 %v886_v12, %v885_v16  ;;  %v692_v59 = vadd.f32 %v691_v21, %v690_v34  ;;  %v908_v12 = vsel %vm535_vm0, %v789_v13, 0.0  ;;  %v791_v21 = vmul.f32 %v1723_v55, %v1723_v55 }
 0x17c   : > { %v719_v55 = vsel %vm535_vm0, %v1781_v2, 0.0 }
 0x17d   : > { %v889_v15 = vadd.f32 %v888_v6, %v887_v40  ;;  %v694_v39 = vadd.f32 %v693_v19, %v692_v59  ;;  %v910_v59 = vsel %vm535_vm0, %v790_v51, 0.0 }
 0x17f   : > { %v696_v23 = vadd.f32 %v695_v18, %v694_v39  ;;  %v891_v62 = vadd.f32 %v890_v58, %v889_v15  ;;  %v912_v15 = vsel %vm535_vm0, %v791_v21, 0.0  ;;  %v793_v39 = vmul.f32 %v1781_v2, %v1781_v2 }
 0x180   : > { %v914_v58 = vsel %vm535_vm0, %v792_v61, 0.0  ;;  %v723_v2 = vsel %vm535_vm0, %v1831_v3, 0.0 }
 0x181   : > { %v698_v27 = vadd.f32 %v697_v49, %v696_v23  ;;  %v893_v5 = vadd.f32 %v892_v38, %v891_v62  ;;  %v794_v23 = vmul.f32 %v1806_v1, %v1806_v1  ;;  %v916_v49 = vsel %vm535_vm0, %v793_v39, 0.0 }
 0x182   : > { %v725_v1 = vsel %vm535_vm0, %v1856_v46, 0.0 }
 0x183   : > { %v700_v32 = vadd.f32 %v699_v20, %v698_v27  ;;  %v895_v22 = vadd.f32 %v894_v56, %v893_v5  ;;  %v918_v56 = vsel %vm535_vm0, %v794_v23, 0.0  ;;  %v796_v20 = vmul.f32 %v1856_v46, %v1856_v46 }
 0x185   : > { %v702_v9 = vadd.f32 %v701_v24, %v700_v32  ;;  %v897_v57 = vadd.f32 %v896_v47, %v895_v22  ;;  %v920_v22 = vsel %vm535_vm0, %v795_v41, 0.0  ;;  %v922_v10 = vsel %vm535_vm0, %v796_v20, 0.0 }
 0x187   : > { %v704_v60 = vadd.f32 %v703_v28, %v702_v9  ;;  %v899_v14 = vadd.f32 %v898_v11, %v897_v57 }
 0x189   : > { %v706_v42 = vadd.f32 %v705_v33, %v704_v60  ;;  %v901_v45 = vadd.f32 %v900_v26, %v899_v14 }
 0x18b   : > { %v903_v63 = vadd.f32 %v902_v4, %v901_v45  ;;  %v708_v35 = vadd.f32 %v707_v37, %v706_v42 }
 0x18d   : > { %v710_v52 = vadd.f32 %v709_v43, %v708_v35  ;;  %v905_v50 = vadd.f32 %v904_v48, %v903_v63 }
 0x18f   : > { %v712_v16 = vadd.f32 %v711_v0, %v710_v52  ;;  %v907_v34 = vadd.f32 %v906_v30, %v905_v50 }
 0x191   : > { %v714_v29 = vadd.f32 %v713_v53, %v712_v16  ;;  %v909_v40 = vadd.f32 %v908_v12, %v907_v34 }
 0x193   : > { %v716_v6 = vadd.f32 %v715_v25, %v714_v29  ;;  %v911_v19 = vadd.f32 %v910_v59, %v909_v40 }
 0x195   : > { %v718_v18 = vadd.f32 %v717_v7, %v716_v6  ;;  %v913_v54 = vadd.f32 %v912_v15, %v911_v19 }
 0x197   : > { %v915_v62 = vadd.f32 %v914_v58, %v913_v54  ;;  %v720_v38 = vadd.f32 %v719_v55, %v718_v18 }
 0x199   : > { %v917_v27 = vadd.f32 %v916_v49, %v915_v62  ;;  %v722_v5 = vadd.f32 %v721_v44, %v720_v38 }
 0x19b   : > { %v919_v8 = vadd.f32 %v918_v56, %v917_v27  ;;  %v724_v32 = vadd.f32 %v723_v2, %v722_v5 }
 0x19d   : > { %v921_v47 = vadd.f32 %v920_v22, %v919_v8  ;;  %v726_v24 = vadd.f32 %v725_v1, %v724_v32 }
 0x19f   : > { %v727_v9 = vrot.slane %v726_v24, 4  ;;  %v923_v57 = vadd.f32 %v922_v10, %v921_v47 }
 0x1a1   : > { %v728_v11 = vadd.f32 %v727_v9, %v726_v24  ;;  %v924_v3 = vrot.slane %v923_v57, 4 }
 0x1a3   : > { %v729_v28 = vrot.slane %v728_v11, 2  ;;  %v925_v36 = vadd.f32 %v924_v3, %v923_v57 }
 0x1a5   : > { %v730_v60 = vadd.f32 %v729_v28, %v728_v11  ;;  %v926_v14 = vrot.slane %v925_v36, 2 }
 0x1a7   : > { %v731_v26 = vrot.slane %v730_v60, 1  ;;  %v927_v33 = vadd.f32 %v926_v14, %v925_v36 }
 0x1a9   : > { %v928_v17 = vrot.slane %v927_v33, 1  ;;  %v732_v46 = vadd.f32 %v731_v26, %v730_v60 }
 0x1ab   : > { %v929_v42 = vadd.f32 %v928_v17, %v927_v33 }
 0x1ad   : > { %v931_v45 = vsel %vm930_vm1, %v732_v46, %v929_v42 }
 0x1ae   : > { %933 = vst.msk [vmem:[%s205_s15] sm:$0x3] %vm932_vm2, %v931_v45 }
 0x1af PF: > { %p14_p8 = scmp.ge.s32.totalorder %s1262_s17, 4   ;;  %s1985_s12 = smov %s1208_s13 }
 0x1b0   : > { %s1986_s13 = smov %s1212_s14  ;;  %s1987_s14 = smov %s1272_s20 }
 0x1b1   : > { %s1988_s15 = smov %s1262_s17  ;;  %16 = sbr.rel (!%p14_p8) target bundleno = 3 (0x3), region = 80 }
 0x1b6   :  { %970 = vsyncpa [#allocation3], 1 }
 0x1b7   :  { %972 = vsyncpa [#allocation3 + $0x1], 1 }

// kernel: bottleneck_forward.7
= control target key start
LH: loop header
LB: loop body
LE: loop exit
PB: predicated region body
PF: predicated region fallthrough
CT: control target
= control target key end

     0   :  { %9 = vsyncpa [#allocation3], 0  ;;  %s1468_s0 = inlined_call_operand.vmem [shape: f32[1024,128], index: 0, kind: input, shape index: {}]   ;;  %s1469_s1 = inlined_call_operand.hbm [shape: f32[1024,128], index: 1, kind: input, shape index: {}]   ;;  %s1470_s2 = inlined_call_operand.vmem [shape: f32[1,128], index: 2, kind: input, shape index: {}]   ;;  %s1471_s3 = inlined_call_operand.vmem [shape: f32[1,128], index: 3, kind: input, shape index: {}]   ;;  %s1472_s4 = inlined_call_operand.hbm [shape: f32[1024,128], index: 4, kind: output, shape index: {}]  }
   0x1   :  { %11 = vsyncpa [#allocation3 + $0x1], 0 }
   0x2   :  { %12 = vsyncpa [#allocation4], 0 }
   0x3   :  { %14 = vsyncpa [#allocation4 + $0x1], 0  ;;  %s996_s15 = smov 0   ;;  %s998_s16 = smov 0  }
   0x4   :  { %s1000_s17 = smov 0   ;;  %s1002_s18 = smov 0  }
   0x5 LB: > { %s1017_s19 = sadd.s32 4294967295, %s965_s18   ;;  %s799_s20 = sadd.s32 4294967294, %s965_s18   ;;  %s965_s18 = sphi %s1002_s18, %s1482_s18   ;;  %s961_s17 = sphi %s1000_s17, %s1481_s17   ;;  %s957_s16 = sphi %s998_s16, %s1480_s16   ;;  %s953_s15 = sphi %s996_s15, %s1479_s15  }
   0x6   : > { %s1021_s21 = sadd.s32 1, %s965_s18   ;;  %s53_s22 = sadd.s32 1, %s961_s17 }
   0x7   : > { %s50_s23 = ssub.s32 %s965_s18, %s1021_s21  ;;  %p60_p0 = scmp.ne.s32.totalorder %s961_s17, %s957_s16 }
   0x8   : > { %p51_p1 = scmp.eq.s32.totalorder %s50_s23, 0  ;;  %p61_p2 = scmp.eq.s32.totalorder %s965_s18, 0 }
   0x9   : > { %p66_p3 = scmp.ne.s32.totalorder %s957_s16, %s953_s15  ;;  %p67_p4 = scmp.eq.s32.totalorder %s1017_s19, 0 }
   0xa   : > { %s1033_s24 = scalar_select %p51_p1, %s961_s17, %s53_s22  }
   0xb   : > { %p1035_p5 = por %p61_p2, %p60_p0  ;;  %p1039_p6 = por %p67_p4, %p66_p3 }
   0xc   : > { %p132_p7 = scmp.eq.s32.totalorder %s1017_s19, 1  ;;  %p138_p8 = scmp.eq.s32.totalorder %s799_s20, 1 }
   0xd   : > { %p829_p10 = scmp.lt.s32.totalorder %s965_s18, 2  ;;  %s173_s29 = sand.u32 1, %s961_s17  }
   0xe   : > { %p1046_p11 = por %p132_p7, %p60_p0  ;;  %p1050_p12 = por %p138_p8, %p66_p3 }
   0xf   : > { %s815_s30 = sshll.u32 %s965_s18, 9  ;;  %s802_s5 = sshll.u32 %s173_s29, 9 }
  0x10   : > { %s182_s8 = scalar_lea.hbm %s1469_s1, %s815_s30  ;;  %s177_s10 = scalar_lea.vmem [#allocation2], %s802_s5 }
  0x11   : > { %s183_s9 = sshll.u32 %s182_s8, 4  ;;  %s185_s11 = sshll.u32 %s177_s10, 4  ;;  %s184_s9 = int_to_ptr.hbm [resolvable:$true] %s183_s9  ;;  %s186_s11 = int_to_ptr.vmem [resolvable:$true] %s185_s11 }
  0x12   : > { %p1061_p13 = pnand %p829_p10, %p1035_p5  ;;  %p805_p0 = scmp.ge.s32.totalorder %s965_s18, 1 }
  0x13   : > { %p193_p1 = scmp.lt.s32.totalorder %s965_s18, 3  ;;  %s174_s13 = scalar_lea.sflag [#allocation3], %s173_s29 }
  0x14   : > { %s869_s14 = sshra.s32 %s184_s9, 4  ;;  %p873_p3 = pneg %p1061_p13  ;;  %s870_s14 = int_to_ptr.hbm [resolvable:$true] %s869_s14 }
  0x15   : > { %s871_s20 = scalar_lea.hbm %s870_s14, 512  ;;  %s876_s25 = scalar_lea.hbm %s1469_s1, 1024 }
  0x16   : > { %p872_p2 = scmp.ne.s32.totalorder %s870_s14, %s871_s20  ;;  %p877_p5 = scmp.lt.s32.totalorder %s870_s14, %s1469_s1 }
  0x17   : > { %p878_p8 = scmp.lt.s32.totalorder %s876_s25, %s871_s20 }
  0x18   : > { %p874_p4 = pnand %p873_p3, %p872_p2 }
  0x19   : > { %p879_p10 = por %p878_p8, %p877_p5 }
  0x1a   : > { %p875_p7 = pneg %p874_p4 }
  0x1c   : > { %p880_p9 = pnand %p879_p10, %p875_p7 }
  0x1e   : > { %883 = shalt.err (!%p880_p9)
}
  0x1f   : > { %s967_s29 = smov 128   ;;  %s968_s6 = smov 8  }
  0x20   : > { %824 = dma.hbm_to_vmem [thread:$0]  (!%p1061_p13), %s184_s9, 8192, %s186_s11, %s174_s13, %s967_s29, %s967_s29, %s968_s6  }
  0x21   : > { %p194_p2 = pnand %p805_p0, %p193_p1 }
  0x22   : > { %s1082_s7 = sand.u32 (!%p194_p2), 1, %s957_s16  }
  0x23   : > { %197 = sbr.rel (%p194_p2) target bundleno = 123 (0x7b), region = 36  ;;  %s806_s8 = sshll.u32 (!%p194_p2), %s1082_s7, 9 }
  0x24   : > { %s200_s10 = scalar_lea.sflag (!%p194_p2), [#allocation3], %s1082_s7  ;;  %s1088_s14 = scalar_lea.vmem (!%p194_p2), [#allocation2], %s806_s8 }
  0x28   : > { %944 = dma.done.wait (%p1039_p6), %s200_s10, 8192  }
  0x29   : > { %946 = vsyncadd (%p1039_p6), %s200_s10, 4294959104  ;;  %s808_s9 = sshll.u32 %s1017_s19, 6  ;;  %v1104_v1 = vld [vmem:[%s1470_s2] ss:$0 sm:$0xff]  ;;  %v443_v8 = vld [vmem:[%s1088_s14 + $0x8] sm:$0xff]  ;;  %s1147_s30 = scalar_lea.vmem [#allocation5], %s806_s8 }
  0x2a   : > { %p235_p9 = scmp.lt.s32.totalorder %s808_s9, 127  ;;  %v1109_v2 = vld [vmem:[%s1471_s3] ss:$0 sm:$0xff]  ;;  %v444_v12 = vld [vmem:[%s1088_s14 + $0x10] sm:$0xff]  ;;  %v445_v18 = vld [vmem:[%s1088_s14 + $0x18] sm:$0xff]  ;;  %s816_s5 = sshll.u32 %s1017_s19, 9 }
  0x2b   : > { %v442_v6 = vld [vmem:[%s1088_s14] sm:$0xff]  ;;  %v447_v25 = vld [vmem:[%s1088_s14 + $0x28] sm:$0xff]  ;;  %v448_v32 = vld [vmem:[%s1088_s14 + $0x30] sm:$0xff]  ;;  %s710_s6 = scalar_lea.hbm %s1472_s4, %s816_s5  ;;  %s711_s8 = sshll.u32 %s1147_s30, 4  ;;  %s712_s8 = int_to_ptr.vmem [resolvable:$true] %s711_s8 }
  0x2c   : > { %s1484_s9 = smov (!%p235_p9, %s808_s9), 127  ;;  %v446_v24 = vld [vmem:[%s1088_s14 + $0x20] sm:$0xff]  ;;  %v449_v44 = vld [vmem:[%s1088_s14 + $0x38] sm:$0xff]  ;;  %v451_v61 = vld [vmem:[%s1088_s14 + $0x48] sm:$0xff]  ;;  %s713_s10 = sshll.u32 %s710_s6, 4  ;;  %s714_s10 = int_to_ptr.hbm [resolvable:$true] %s713_s10 }
  0x2d   : > { %s809_s11 = sshll.u32 %s1484_s9, 3  ;;  %v450_v54 = vld [vmem:[%s1088_s14 + $0x40] sm:$0xff]  ;;  %v452_v62 = vld [vmem:[%s1088_s14 + $0x50] sm:$0xff]  ;;  %s913_s9 = sshra.s32 %s714_s10, 4  ;;  %s914_s9 = int_to_ptr.hbm [resolvable:$true] %s913_s9 }
  0x2e   : > { %s1098_s20 = scalar_lea.vmem %s1468_s0, %s809_s11  ;;  %s915_s11 = scalar_lea.hbm %s914_s9, 512 }
  0x2f   : > { %v242_v0 = vld [vmem:[%s1098_s20] sm:$0xff]  ;;  %v243_v4 = vld [vmem:[%s1098_s20 + $0x8] sm:$0xff]  ;;  %v244_v5 = vld [vmem:[%s1098_s20 + $0x10] sm:$0xff]  ;;  %p916_p6 = scmp.ne.s32.totalorder %s914_s9, %s915_s11  ;;  %p920_p1 = scmp.lt.s32.totalorder %s914_s9, %s1472_s4 }
  0x30   : > { %v310_v3 = vmul.f32 %v1104_v1, %v242_v0  ;;  %v311_v7 = vmul.f32 %v1104_v1, %v243_v4  ;;  %v312_v9 = vmul.f32 %v1104_v1, %v244_v5  ;;  %v245_v10 = vld [vmem:[%s1098_s20 + $0x18] sm:$0xff]  ;;  %v246_v14 = vld [vmem:[%s1098_s20 + $0x20] sm:$0xff]  ;;  %v247_v15 = vld [vmem:[%s1098_s20 + $0x28] sm:$0xff] }
  0x31   : > { %v313_v13 = vmul.f32 %v1104_v1, %v245_v10  ;;  %v314_v19 = vmul.f32 %v1104_v1, %v246_v14  ;;  %v315_v20 = vmul.f32 %v1104_v1, %v247_v15  ;;  %v248_v21 = vld [vmem:[%s1098_s20 + $0x30] sm:$0xff]  ;;  %v249_v27 = vld [vmem:[%s1098_s20 + $0x38] sm:$0xff]  ;;  %v250_v33 = vld [vmem:[%s1098_s20 + $0x40] sm:$0xff]  ;;  %p917_p13 = pnand %p916_p6, %p1046_p11 }
  0x32   : > { %v378_v11 = vadd.f32 %v1109_v2, %v310_v3  ;;  %v379_v16 = vadd.f32 %v1109_v2, %v311_v7  ;;  %v380_v17 = vadd.f32 %v1109_v2, %v312_v9  ;;  %v316_v26 = vmul.f32 %v1104_v1, %v248_v21  ;;  %v251_v38 = vld [vmem:[%s1098_s20 + $0x48] sm:$0xff]  ;;  %v252_v39 = vld [vmem:[%s1098_s20 + $0x50] sm:$0xff]  ;;  %v253_v45 = vld [vmem:[%s1098_s20 + $0x58] sm:$0xff] }
  0x33   : > { %v381_v23 = vadd.f32 %v1109_v2, %v313_v13  ;;  %v382_v30 = vadd.f32 %v1109_v2, %v314_v19  ;;  %v383_v31 = vadd.f32 %v1109_v2, %v315_v20  ;;  %v317_v37 = vmul.f32 %v1104_v1, %v249_v27  ;;  %v254_v50 = vld [vmem:[%s1098_s20 + $0x60] sm:$0xff]  ;;  %v255_v51 = vld [vmem:[%s1098_s20 + $0x68] sm:$0xff]  ;;  %v256_v57 = vld [vmem:[%s1098_s20 + $0x70] sm:$0xff]  ;;  %p918_p0 = pneg %p917_p13 }
  0x34   : > { %v506_v22 = vadd.f32 %v442_v6, %v378_v11  ;;  %v507_v28 = vadd.f32 %v443_v8, %v379_v16  ;;  %v508_v29 = vadd.f32 %v444_v12, %v380_v17  ;;  %v384_v36 = vadd.f32 %v1109_v2, %v316_v26  ;;  %v453_v4 = vld [vmem:[%s1088_s14 + $0x58] sm:$0xff]  ;;  %v454_v11 = vld [vmem:[%s1088_s14 + $0x60] sm:$0xff]  ;;  %v455_v12 = vld [vmem:[%s1088_s14 + $0x68] sm:$0xff] }
  0x35   : > { %v509_v35 = vadd.f32 %v445_v18, %v381_v23  ;;  %v510_v42 = vadd.f32 %v446_v24, %v382_v30  ;;  %v511_v43 = vadd.f32 %v447_v25, %v383_v31  ;;  %v385_v48 = vadd.f32 %v1109_v2, %v317_v37  ;;  %v257_v7 = vld [vmem:[%s1098_s20 + $0x78] sm:$0xff]  ;;  %v456_v18 = vld [vmem:[%s1088_s14 + $0x70] sm:$0xff]  ;;  %v258_v19 = vld [vmem:[%s1098_s20 + $0x80] sm:$0xff] }
  0x36   : > { %v570_v34 = vmax.f32 %v506_v22, 0.0  ;;  %v571_v40 = vmax.f32 %v507_v28, 0.0  ;;  %v572_v41 = vmax.f32 %v508_v29, 0.0  ;;  %v512_v47 = vadd.f32 %v448_v32, %v384_v36  ;;  %v259_v24 = vld [vmem:[%s1098_s20 + $0x88] sm:$0xff]  ;;  %v260_v25 = vld [vmem:[%s1098_s20 + $0x90] sm:$0xff]  ;;  %v457_v30 = vld [vmem:[%s1088_s14 + $0x78] sm:$0xff] }
  0x37   : > { %v573_v46 = vmax.f32 %v509_v35, 0.0  ;;  %v318_v49 = vmul.f32 %v1104_v1, %v250_v33  ;;  %v574_v52 = vmax.f32 %v510_v42, 0.0  ;;  %v575_v53 = vmax.f32 %v511_v43, 0.0  ;;  %v261_v31 = vld [vmem:[%s1098_s20 + $0x98] sm:$0xff]  ;;  %v262_v36 = vld [vmem:[%s1098_s20 + $0xa0] sm:$0xff]  ;;  %v263_v37 = vld [vmem:[%s1098_s20 + $0xa8] sm:$0xff] }
  0x38   : > { %634 = vst [vmem:[%s1147_s30] sm:$0xff] %v570_v34  ;;  %v319_v55 = vmul.f32 %v1104_v1, %v251_v38  ;;  %v320_v56 = vmul.f32 %v1104_v1, %v252_v39  ;;  %v576_v58 = vmax.f32 %v512_v47, 0.0  ;;  %v513_v59 = vadd.f32 %v449_v44, %v385_v48  ;;  %v264_v43 = vld [vmem:[%s1098_s20 + $0xb0] sm:$0xff]  ;;  %v459_v47 = vld [vmem:[%s1088_s14 + $0x88] sm:$0xff] }
  0x39   : > { %635 = vst [vmem:[%s1147_s30 + $0x8] sm:$0xff] %v571_v40  ;;  %v386_v60 = vadd.f32 %v1109_v2, %v318_v49  ;;  %v321_v63 = vmul.f32 %v1104_v1, %v253_v45  ;;  %v322_v5 = vmul.f32 %v1104_v1, %v254_v50  ;;  %v323_v6 = vmul.f32 %v1104_v1, %v255_v51  ;;  %v458_v40 = vld [vmem:[%s1088_s14 + $0x80] sm:$0xff]  ;;  %v460_v48 = vld [vmem:[%s1088_s14 + $0x90] sm:$0xff] }
  0x3a   : > { %636 = vst [vmem:[%s1147_s30 + $0x10] sm:$0xff] %v572_v41  ;;  %v387_v0 = vadd.f32 %v1109_v2, %v319_v55  ;;  %v388_v3 = vadd.f32 %v1109_v2, %v320_v56  ;;  %v577_v8 = vmax.f32 %v513_v59, 0.0  ;;  %v324_v13 = vmul.f32 %v1104_v1, %v256_v57  ;;  %v265_v55 = vld [vmem:[%s1098_s20 + $0xb8] sm:$0xff]  ;;  %v462_v59 = vld [vmem:[%s1088_s14 + $0xa0] sm:$0xff] }
  0x3b   : > { %637 = vst [vmem:[%s1147_s30 + $0x18] sm:$0xff] %v573_v46  ;;  %v514_v9 = vadd.f32 %v450_v54, %v386_v60  ;;  %v389_v10 = vadd.f32 %v1109_v2, %v321_v63  ;;  %v390_v16 = vadd.f32 %v1109_v2, %v322_v5  ;;  %v391_v17 = vadd.f32 %v1109_v2, %v323_v6  ;;  %v463_v60 = vld [vmem:[%s1088_s14 + $0xa8] sm:$0xff]  ;;  %v266_v5 = vld [vmem:[%s1098_s20 + $0xc0] sm:$0xff] }
  0x3c   : > { %638 = vst [vmem:[%s1147_s30 + $0x20] sm:$0xff] %v574_v52  ;;  %v515_v14 = vadd.f32 %v451_v61, %v387_v0  ;;  %v516_v15 = vadd.f32 %v452_v62, %v388_v3  ;;  %v392_v22 = vadd.f32 %v1109_v2, %v324_v13  ;;  %v325_v23 = vmul.f32 %v1104_v1, %v257_v7  ;;  %v461_v52 = vld [vmem:[%s1088_s14 + $0x98] sm:$0xff] }
  0x3d   : > { %639 = vst [vmem:[%s1147_s30 + $0x28] sm:$0xff] %v575_v53  ;;  %v578_v20 = vmax.f32 %v514_v9, 0.0  ;;  %v517_v21 = vadd.f32 %v453_v4, %v389_v10  ;;  %v518_v28 = vadd.f32 %v454_v11, %v390_v16  ;;  %v519_v29 = vadd.f32 %v455_v12, %v391_v17  ;;  %v464_v4 = vld [vmem:[%s1088_s14 + $0xb0] sm:$0xff]  ;;  %v267_v10 = vld [vmem:[%s1098_s20 + $0xc8] sm:$0xff]  ;;  %v465_v16 = vld [vmem:[%s1088_s14 + $0xb8] sm:$0xff] }
  0x3e   : > { %640 = vst [vmem:[%s1147_s30 + $0x30] sm:$0xff] %v576_v58  ;;  %v579_v26 = vmax.f32 %v515_v14, 0.0  ;;  %v580_v27 = vmax.f32 %v516_v15, 0.0  ;;  %v520_v33 = vadd.f32 %v456_v18, %v392_v22  ;;  %v393_v34 = vadd.f32 %v1109_v2, %v325_v23  ;;  %v268_v11 = vld [vmem:[%s1098_s20 + $0xd0] sm:$0xff]  ;;  %v269_v17 = vld [vmem:[%s1098_s20 + $0xd8] sm:$0xff]  ;;  %v270_v22 = vld [vmem:[%s1098_s20 + $0xe0] sm:$0xff] }
  0x3f   : > { %641 = vst [vmem:[%s1147_s30 + $0x38] sm:$0xff] %v577_v8  ;;  %v581_v32 = vmax.f32 %v517_v21, 0.0  ;;  %v326_v35 = vmul.f32 %v1104_v1, %v258_v19  ;;  %v582_v38 = vmax.f32 %v518_v28, 0.0  ;;  %v583_v39 = vmax.f32 %v519_v29, 0.0  ;;  %v271_v23 = vld [vmem:[%s1098_s20 + $0xe8] sm:$0xff]  ;;  %v272_v29 = vld [vmem:[%s1098_s20 + $0xf0] sm:$0xff] }
  0x40   : > { %642 = vst [vmem:[%s1147_s30 + $0x40] sm:$0xff] %v578_v20  ;;  %v327_v41 = vmul.f32 %v1104_v1, %v259_v24  ;;  %v328_v42 = vmul.f32 %v1104_v1, %v260_v25  ;;  %v584_v44 = vmax.f32 %v520_v33, 0.0  ;;  %v521_v45 = vadd.f32 %v457_v30, %v393_v34  ;;  %v467_v33 = vld [vmem:[%s1088_s14 + $0xc8] sm:$0xff]  ;;  %v468_v34 = vld [vmem:[%s1088_s14 + $0xd0] sm:$0xff] }
  0x41   : > { %643 = vst [vmem:[%s1147_s30 + $0x48] sm:$0xff] %v579_v26  ;;  %v394_v46 = vadd.f32 %v1109_v2, %v326_v35  ;;  %v329_v49 = vmul.f32 %v1104_v1, %v261_v31  ;;  %v330_v53 = vmul.f32 %v1104_v1, %v262_v36  ;;  %v331_v54 = vmul.f32 %v1104_v1, %v263_v37  ;;  %v466_v26 = vld [vmem:[%s1088_s14 + $0xc0] sm:$0xff] }
  0x42   : > { %644 = vst [vmem:[%s1147_s30 + $0x50] sm:$0xff] %v580_v27  ;;  %v395_v50 = vadd.f32 %v1109_v2, %v327_v41  ;;  %v396_v51 = vadd.f32 %v1109_v2, %v328_v42  ;;  %v585_v56 = vmax.f32 %v521_v45, 0.0  ;;  %v332_v61 = vmul.f32 %v1104_v1, %v264_v43  ;;  %v273_v41 = vld [vmem:[%s1098_s20 + $0xf8] sm:$0xff]  ;;  %v470_v45 = vld [vmem:[%s1088_s14 + $0xe0] sm:$0xff] }
  0x43   : > { %645 = vst [vmem:[%s1147_s30 + $0x58] sm:$0xff] %v581_v32  ;;  %v522_v57 = vadd.f32 %v458_v40, %v394_v46  ;;  %v397_v58 = vadd.f32 %v1109_v2, %v329_v49  ;;  %v398_v0 = vadd.f32 %v1109_v2, %v330_v53  ;;  %v399_v3 = vadd.f32 %v1109_v2, %v331_v54  ;;  %v471_v46 = vld [vmem:[%s1088_s14 + $0xe8] sm:$0xff]  ;;  %v274_v53 = vld [vmem:[%s1098_s20 + $0x100] sm:$0xff] }
  0x44   : > { %646 = vst [vmem:[%s1147_s30 + $0x60] sm:$0xff] %v582_v38  ;;  %v523_v62 = vadd.f32 %v459_v47, %v395_v50  ;;  %v524_v63 = vadd.f32 %v460_v48, %v396_v51  ;;  %v400_v8 = vadd.f32 %v1109_v2, %v332_v61  ;;  %v333_v9 = vmul.f32 %v1104_v1, %v265_v55  ;;  %v469_v38 = vld [vmem:[%s1088_s14 + $0xd8] sm:$0xff] }
  0x45   : > { %647 = vst [vmem:[%s1147_s30 + $0x68] sm:$0xff] %v583_v39  ;;  %v586_v6 = vmax.f32 %v522_v57, 0.0  ;;  %v525_v7 = vadd.f32 %v461_v52, %v397_v58  ;;  %v526_v14 = vadd.f32 %v462_v59, %v398_v0  ;;  %v527_v15 = vadd.f32 %v463_v60, %v399_v3  ;;  %v472_v52 = vld [vmem:[%s1088_s14 + $0xf0] sm:$0xff]  ;;  %v275_v58 = vld [vmem:[%s1098_s20 + $0x108] sm:$0xff]  ;;  %v473_v0 = vld [vmem:[%s1088_s14 + $0xf8] sm:$0xff] }
  0x46   : > { %648 = vst [vmem:[%s1147_s30 + $0x70] sm:$0xff] %v584_v44  ;;  %v587_v12 = vmax.f32 %v523_v62, 0.0  ;;  %v588_v13 = vmax.f32 %v524_v63, 0.0  ;;  %v528_v19 = vadd.f32 %v464_v4, %v400_v8  ;;  %v401_v20 = vadd.f32 %v1109_v2, %v333_v9  ;;  %v276_v59 = vld [vmem:[%s1098_s20 + $0x110] sm:$0xff]  ;;  %v277_v3 = vld [vmem:[%s1098_s20 + $0x118] sm:$0xff]  ;;  %v278_v8 = vld [vmem:[%s1098_s20 + $0x120] sm:$0xff] }
  0x47   : > { %649 = vst [vmem:[%s1147_s30 + $0x78] sm:$0xff] %v585_v56  ;;  %v589_v18 = vmax.f32 %v525_v7, 0.0  ;;  %v334_v21 = vmul.f32 %v1104_v1, %v266_v5  ;;  %v590_v24 = vmax.f32 %v526_v14, 0.0  ;;  %v591_v25 = vmax.f32 %v527_v15, 0.0  ;;  %v279_v9 = vld [vmem:[%s1098_s20 + $0x128] sm:$0xff]  ;;  %v280_v15 = vld [vmem:[%s1098_s20 + $0x130] sm:$0xff] }
  0x48   : > { %650 = vst [vmem:[%s1147_s30 + $0x80] sm:$0xff] %v586_v6  ;;  %v335_v27 = vmul.f32 %v1104_v1, %v267_v10  ;;  %v336_v28 = vmul.f32 %v1104_v1, %v268_v11  ;;  %v592_v30 = vmax.f32 %v528_v19, 0.0  ;;  %v529_v31 = vadd.f32 %v465_v16, %v401_v20  ;;  %v475_v19 = vld [vmem:[%s1088_s14 + $0x108] sm:$0xff]  ;;  %v476_v20 = vld [vmem:[%s1088_s14 + $0x110] sm:$0xff] }
  0x49   : > { %651 = vst [vmem:[%s1147_s30 + $0x88] sm:$0xff] %v587_v12  ;;  %v402_v32 = vadd.f32 %v1109_v2, %v334_v21  ;;  %v337_v35 = vmul.f32 %v1104_v1, %v269_v17  ;;  %v338_v39 = vmul.f32 %v1104_v1, %v270_v22  ;;  %v339_v40 = vmul.f32 %v1104_v1, %v271_v23  ;;  %v474_v12 = vld [vmem:[%s1088_s14 + $0x100] sm:$0xff] }
  0x4a   : > { %652 = vst [vmem:[%s1147_s30 + $0x90] sm:$0xff] %v588_v13  ;;  %v403_v36 = vadd.f32 %v1109_v2, %v335_v27  ;;  %v404_v37 = vadd.f32 %v1109_v2, %v336_v28  ;;  %v593_v42 = vmax.f32 %v529_v31, 0.0  ;;  %v340_v47 = vmul.f32 %v1104_v1, %v272_v29  ;;  %v281_v27 = vld [vmem:[%s1098_s20 + $0x138] sm:$0xff]  ;;  %v478_v31 = vld [vmem:[%s1088_s14 + $0x120] sm:$0xff] }
  0x4b   : > { %653 = vst [vmem:[%s1147_s30 + $0x98] sm:$0xff] %v589_v18  ;;  %v530_v43 = vadd.f32 %v466_v26, %v402_v32  ;;  %v405_v44 = vadd.f32 %v1109_v2, %v337_v35  ;;  %v406_v50 = vadd.f32 %v1109_v2, %v338_v39  ;;  %v407_v51 = vadd.f32 %v1109_v2, %v339_v40  ;;  %v479_v32 = vld [vmem:[%s1088_s14 + $0x128] sm:$0xff]  ;;  %v282_v39 = vld [vmem:[%s1098_s20 + $0x140] sm:$0xff] }
  0x4c   : > { %654 = vst [vmem:[%s1147_s30 + $0xa0] sm:$0xff] %v590_v24  ;;  %v531_v48 = vadd.f32 %v467_v33, %v403_v36  ;;  %v532_v49 = vadd.f32 %v468_v34, %v404_v37  ;;  %v408_v56 = vadd.f32 %v1109_v2, %v340_v47  ;;  %v341_v57 = vmul.f32 %v1104_v1, %v273_v41  ;;  %v477_v24 = vld [vmem:[%s1088_s14 + $0x118] sm:$0xff] }
  0x4d   : > { %655 = vst [vmem:[%s1147_s30 + $0xa8] sm:$0xff] %v591_v25  ;;  %v594_v54 = vmax.f32 %v530_v43, 0.0  ;;  %v533_v55 = vadd.f32 %v469_v38, %v405_v44  ;;  %v534_v62 = vadd.f32 %v470_v45, %v406_v50  ;;  %v535_v63 = vadd.f32 %v471_v46, %v407_v51  ;;  %v480_v38 = vld [vmem:[%s1088_s14 + $0x130] sm:$0xff]  ;;  %v283_v44 = vld [vmem:[%s1098_s20 + $0x148] sm:$0xff]  ;;  %v481_v50 = vld [vmem:[%s1088_s14 + $0x138] sm:$0xff] }
  0x4e   : > { %656 = vst [vmem:[%s1147_s30 + $0xb0] sm:$0xff] %v592_v30  ;;  %v595_v60 = vmax.f32 %v531_v48, 0.0  ;;  %v596_v61 = vmax.f32 %v532_v49, 0.0  ;;  %v536_v5 = vadd.f32 %v472_v52, %v408_v56  ;;  %v409_v6 = vadd.f32 %v1109_v2, %v341_v57  ;;  %v284_v45 = vld [vmem:[%s1098_s20 + $0x150] sm:$0xff]  ;;  %v285_v51 = vld [vmem:[%s1098_s20 + $0x158] sm:$0xff]  ;;  %v286_v56 = vld [vmem:[%s1098_s20 + $0x160] sm:$0xff] }
  0x4f   : > { %657 = vst [vmem:[%s1147_s30 + $0xb8] sm:$0xff] %v593_v42  ;;  %v597_v4 = vmax.f32 %v533_v55, 0.0  ;;  %v342_v7 = vmul.f32 %v1104_v1, %v274_v53  ;;  %v598_v10 = vmax.f32 %v534_v62, 0.0  ;;  %v599_v11 = vmax.f32 %v535_v63, 0.0  ;;  %v287_v57 = vld [vmem:[%s1098_s20 + $0x168] sm:$0xff]  ;;  %v288_v63 = vld [vmem:[%s1098_s20 + $0x170] sm:$0xff] }
  0x50   : > { %658 = vst [vmem:[%s1147_s30 + $0xc0] sm:$0xff] %v594_v54  ;;  %v343_v13 = vmul.f32 %v1104_v1, %v275_v58  ;;  %v344_v14 = vmul.f32 %v1104_v1, %v276_v59  ;;  %v600_v16 = vmax.f32 %v536_v5, 0.0  ;;  %v537_v17 = vadd.f32 %v473_v0, %v409_v6  ;;  %v483_v5 = vld [vmem:[%s1088_s14 + $0x148] sm:$0xff]  ;;  %v484_v6 = vld [vmem:[%s1088_s14 + $0x150] sm:$0xff] }
  0x51   : > { %659 = vst [vmem:[%s1147_s30 + $0xc8] sm:$0xff] %v595_v60  ;;  %v410_v18 = vadd.f32 %v1109_v2, %v342_v7  ;;  %v345_v21 = vmul.f32 %v1104_v1, %v277_v3  ;;  %v346_v25 = vmul.f32 %v1104_v1, %v278_v8  ;;  %v347_v26 = vmul.f32 %v1104_v1, %v279_v9  ;;  %v482_v60 = vld [vmem:[%s1088_s14 + $0x140] sm:$0xff] }
  0x52   : > { %660 = vst [vmem:[%s1147_s30 + $0xd0] sm:$0xff] %v596_v61  ;;  %v411_v22 = vadd.f32 %v1109_v2, %v343_v13  ;;  %v412_v23 = vadd.f32 %v1109_v2, %v344_v14  ;;  %v601_v28 = vmax.f32 %v537_v17, 0.0  ;;  %v348_v33 = vmul.f32 %v1104_v1, %v280_v15  ;;  %v289_v13 = vld [vmem:[%s1098_s20 + $0x178] sm:$0xff]  ;;  %v486_v17 = vld [vmem:[%s1088_s14 + $0x160] sm:$0xff] }
  0x53   : > { %661 = vst [vmem:[%s1147_s30 + $0xd8] sm:$0xff] %v597_v4  ;;  %v538_v29 = vadd.f32 %v474_v12, %v410_v18  ;;  %v413_v30 = vadd.f32 %v1109_v2, %v345_v21  ;;  %v414_v36 = vadd.f32 %v1109_v2, %v346_v25  ;;  %v415_v37 = vadd.f32 %v1109_v2, %v347_v26  ;;  %v487_v18 = vld [vmem:[%s1088_s14 + $0x168] sm:$0xff]  ;;  %v290_v25 = vld [vmem:[%s1098_s20 + $0x180] sm:$0xff] }
  0x54   : > { %662 = vst [vmem:[%s1147_s30 + $0xe0] sm:$0xff] %v598_v10  ;;  %v539_v34 = vadd.f32 %v475_v19, %v411_v22  ;;  %v540_v35 = vadd.f32 %v476_v20, %v412_v23  ;;  %v416_v42 = vadd.f32 %v1109_v2, %v348_v33  ;;  %v349_v43 = vmul.f32 %v1104_v1, %v281_v27  ;;  %v485_v10 = vld [vmem:[%s1088_s14 + $0x158] sm:$0xff] }
  0x55   : > { %663 = vst [vmem:[%s1147_s30 + $0xe8] sm:$0xff] %v599_v11  ;;  %v602_v40 = vmax.f32 %v538_v29, 0.0  ;;  %v541_v41 = vadd.f32 %v477_v24, %v413_v30  ;;  %v542_v48 = vadd.f32 %v478_v31, %v414_v36  ;;  %v543_v49 = vadd.f32 %v479_v32, %v415_v37  ;;  %v488_v24 = vld [vmem:[%s1088_s14 + $0x170] sm:$0xff]  ;;  %v291_v30 = vld [vmem:[%s1098_s20 + $0x188] sm:$0xff]  ;;  %v489_v36 = vld [vmem:[%s1088_s14 + $0x178] sm:$0xff] }
  0x56   : > { %664 = vst [vmem:[%s1147_s30 + $0xf0] sm:$0xff] %v600_v16  ;;  %v603_v46 = vmax.f32 %v539_v34, 0.0  ;;  %v604_v47 = vmax.f32 %v540_v35, 0.0  ;;  %v544_v53 = vadd.f32 %v480_v38, %v416_v42  ;;  %v417_v54 = vadd.f32 %v1109_v2, %v349_v43  ;;  %v292_v31 = vld [vmem:[%s1098_s20 + $0x190] sm:$0xff]  ;;  %v293_v37 = vld [vmem:[%s1098_s20 + $0x198] sm:$0xff]  ;;  %v294_v42 = vld [vmem:[%s1098_s20 + $0x1a0] sm:$0xff] }
  0x57   : > { %665 = vst [vmem:[%s1147_s30 + $0xf8] sm:$0xff] %v601_v28  ;;  %v605_v52 = vmax.f32 %v541_v41, 0.0  ;;  %v350_v55 = vmul.f32 %v1104_v1, %v282_v39  ;;  %v606_v58 = vmax.f32 %v542_v48, 0.0  ;;  %v607_v59 = vmax.f32 %v543_v49, 0.0  ;;  %v295_v43 = vld [vmem:[%s1098_s20 + $0x1a8] sm:$0xff]  ;;  %v296_v49 = vld [vmem:[%s1098_s20 + $0x1b0] sm:$0xff] }
  0x58   : > { %666 = vst [vmem:[%s1147_s30 + $0x100] sm:$0xff] %v602_v40  ;;  %v351_v61 = vmul.f32 %v1104_v1, %v283_v44  ;;  %v352_v62 = vmul.f32 %v1104_v1, %v284_v45  ;;  %v608_v0 = vmax.f32 %v544_v53, 0.0  ;;  %v545_v3 = vadd.f32 %v481_v50, %v417_v54  ;;  %v491_v53 = vld [vmem:[%s1088_s14 + $0x188] sm:$0xff]  ;;  %v492_v54 = vld [vmem:[%s1088_s14 + $0x190] sm:$0xff] }
  0x59   : > { %667 = vst [vmem:[%s1147_s30 + $0x108] sm:$0xff] %v603_v46  ;;  %v418_v4 = vadd.f32 %v1109_v2, %v350_v55  ;;  %v353_v7 = vmul.f32 %v1104_v1, %v285_v51  ;;  %v354_v11 = vmul.f32 %v1104_v1, %v286_v56  ;;  %v355_v12 = vmul.f32 %v1104_v1, %v287_v57  ;;  %v490_v46 = vld [vmem:[%s1088_s14 + $0x180] sm:$0xff] }
  0x5a   : > { %668 = vst [vmem:[%s1147_s30 + $0x110] sm:$0xff] %v604_v47  ;;  %v419_v8 = vadd.f32 %v1109_v2, %v351_v61  ;;  %v420_v9 = vadd.f32 %v1109_v2, %v352_v62  ;;  %v609_v14 = vmax.f32 %v545_v3, 0.0  ;;  %v356_v19 = vmul.f32 %v1104_v1, %v288_v63  ;;  %v297_v61 = vld [vmem:[%s1098_s20 + $0x1b8] sm:$0xff]  ;;  %v494_v3 = vld [vmem:[%s1088_s14 + $0x1a0] sm:$0xff] }
  0x5b   : > { %669 = vst [vmem:[%s1147_s30 + $0x118] sm:$0xff] %v605_v52  ;;  %v546_v15 = vadd.f32 %v482_v60, %v418_v4  ;;  %v421_v16 = vadd.f32 %v1109_v2, %v353_v7  ;;  %v422_v22 = vadd.f32 %v1109_v2, %v354_v11  ;;  %v423_v23 = vadd.f32 %v1109_v2, %v355_v12  ;;  %v495_v4 = vld [vmem:[%s1088_s14 + $0x1a8] sm:$0xff]  ;;  %v298_v11 = vld [vmem:[%s1098_s20 + $0x1c0] sm:$0xff] }
  0x5c   : > { %670 = vst [vmem:[%s1147_s30 + $0x120] sm:$0xff] %v606_v58  ;;  %v547_v20 = vadd.f32 %v483_v5, %v419_v8  ;;  %v548_v21 = vadd.f32 %v484_v6, %v420_v9  ;;  %v424_v28 = vadd.f32 %v1109_v2, %v356_v19  ;;  %v357_v29 = vmul.f32 %v1104_v1, %v289_v13  ;;  %v493_v58 = vld [vmem:[%s1088_s14 + $0x198] sm:$0xff] }
  0x5d   : > { %671 = vst [vmem:[%s1147_s30 + $0x128] sm:$0xff] %v607_v59  ;;  %v610_v26 = vmax.f32 %v546_v15, 0.0  ;;  %v549_v27 = vadd.f32 %v485_v10, %v421_v16  ;;  %v550_v34 = vadd.f32 %v486_v17, %v422_v22  ;;  %v551_v35 = vadd.f32 %v487_v18, %v423_v23  ;;  %v496_v10 = vld [vmem:[%s1088_s14 + $0x1b0] sm:$0xff]  ;;  %v299_v16 = vld [vmem:[%s1098_s20 + $0x1c8] sm:$0xff]  ;;  %v497_v22 = vld [vmem:[%s1088_s14 + $0x1b8] sm:$0xff] }
  0x5e   : > { %672 = vst [vmem:[%s1147_s30 + $0x130] sm:$0xff] %v608_v0  ;;  %v611_v32 = vmax.f32 %v547_v20, 0.0  ;;  %v612_v33 = vmax.f32 %v548_v21, 0.0  ;;  %v552_v39 = vadd.f32 %v488_v24, %v424_v28  ;;  %v425_v40 = vadd.f32 %v1109_v2, %v357_v29  ;;  %v300_v17 = vld [vmem:[%s1098_s20 + $0x1d0] sm:$0xff]  ;;  %v301_v23 = vld [vmem:[%s1098_s20 + $0x1d8] sm:$0xff]  ;;  %v302_v28 = vld [vmem:[%s1098_s20 + $0x1e0] sm:$0xff] }
  0x5f   : > { %673 = vst [vmem:[%s1147_s30 + $0x138] sm:$0xff] %v609_v14  ;;  %v613_v38 = vmax.f32 %v549_v27, 0.0  ;;  %v358_v41 = vmul.f32 %v1104_v1, %v290_v25  ;;  %v614_v44 = vmax.f32 %v550_v34, 0.0  ;;  %v615_v45 = vmax.f32 %v551_v35, 0.0  ;;  %v303_v29 = vld [vmem:[%s1098_s20 + $0x1e8] sm:$0xff]  ;;  %v304_v35 = vld [vmem:[%s1098_s20 + $0x1f0] sm:$0xff] }
  0x60   : > { %674 = vst [vmem:[%s1147_s30 + $0x140] sm:$0xff] %v610_v26  ;;  %v359_v47 = vmul.f32 %v1104_v1, %v291_v30  ;;  %v360_v48 = vmul.f32 %v1104_v1, %v292_v31  ;;  %v616_v50 = vmax.f32 %v552_v39, 0.0  ;;  %v553_v51 = vadd.f32 %v489_v36, %v425_v40  ;;  %v499_v39 = vld [vmem:[%s1088_s14 + $0x1c8] sm:$0xff]  ;;  %v500_v40 = vld [vmem:[%s1088_s14 + $0x1d0] sm:$0xff] }
  0x61   : > { %675 = vst [vmem:[%s1147_s30 + $0x148] sm:$0xff] %v611_v32  ;;  %v426_v52 = vadd.f32 %v1109_v2, %v358_v41  ;;  %v361_v55 = vmul.f32 %v1104_v1, %v293_v37  ;;  %v362_v59 = vmul.f32 %v1104_v1, %v294_v42  ;;  %v363_v60 = vmul.f32 %v1104_v1, %v295_v43  ;;  %v498_v32 = vld [vmem:[%s1088_s14 + $0x1c0] sm:$0xff] }
  0x62   : > { %676 = vst [vmem:[%s1147_s30 + $0x150] sm:$0xff] %v612_v33  ;;  %v427_v56 = vadd.f32 %v1109_v2, %v359_v47  ;;  %v428_v57 = vadd.f32 %v1109_v2, %v360_v48  ;;  %v617_v62 = vmax.f32 %v553_v51, 0.0  ;;  %v364_v5 = vmul.f32 %v1104_v1, %v296_v49  ;;  %v305_v47 = vld [vmem:[%s1098_s20 + $0x1f8] sm:$0xff]  ;;  %v502_v51 = vld [vmem:[%s1088_s14 + $0x1e0] sm:$0xff]  ;;  %s919_s20 = scalar_lea.hbm %s1472_s4, 1024 }
  0x63   : > { %677 = vst [vmem:[%s1147_s30 + $0x158] sm:$0xff] %v613_v38  ;;  %v554_v63 = vadd.f32 %v490_v46, %v426_v52  ;;  %v429_v0 = vadd.f32 %v1109_v2, %v361_v55  ;;  %v430_v8 = vadd.f32 %v1109_v2, %v362_v59  ;;  %v431_v9 = vadd.f32 %v1109_v2, %v363_v60  ;;  %v503_v52 = vld [vmem:[%s1088_s14 + $0x1e8] sm:$0xff]  ;;  %p921_p3 = scmp.lt.s32.totalorder %s919_s20, %s915_s11 }
  0x64   : > { %678 = vst [vmem:[%s1147_s30 + $0x160] sm:$0xff] %v614_v44  ;;  %v555_v6 = vadd.f32 %v491_v53, %v427_v56  ;;  %v556_v7 = vadd.f32 %v492_v54, %v428_v57  ;;  %v432_v14 = vadd.f32 %v1109_v2, %v364_v5  ;;  %v365_v15 = vmul.f32 %v1104_v1, %v297_v61  ;;  %v501_v44 = vld [vmem:[%s1088_s14 + $0x1d8] sm:$0xff] }
  0x65   : > { %679 = vst [vmem:[%s1147_s30 + $0x168] sm:$0xff] %v615_v45  ;;  %v618_v12 = vmax.f32 %v554_v63, 0.0  ;;  %v557_v13 = vadd.f32 %v493_v58, %v429_v0  ;;  %v558_v20 = vadd.f32 %v494_v3, %v430_v8  ;;  %v559_v21 = vadd.f32 %v495_v4, %v431_v9  ;;  %v504_v58 = vld [vmem:[%s1088_s14 + $0x1f0] sm:$0xff]  ;;  %v505_v5 = vld [vmem:[%s1088_s14 + $0x1f8] sm:$0xff]  ;;  %s699_s14 = scalar_lea.sflag [#allocation4], %s1082_s7  ;;  %p922_p4 = por %p921_p3, %p920_p1 }
  0x66   : > { %680 = vst [vmem:[%s1147_s30 + $0x170] sm:$0xff] %v616_v50  ;;  %v619_v18 = vmax.f32 %v555_v6, 0.0  ;;  %v620_v19 = vmax.f32 %v556_v7, 0.0  ;;  %v560_v25 = vadd.f32 %v496_v10, %v432_v14  ;;  %v433_v26 = vadd.f32 %v1109_v2, %v365_v15 }
  0x67   : > { %681 = vst [vmem:[%s1147_s30 + $0x178] sm:$0xff] %v617_v62  ;;  %v621_v24 = vmax.f32 %v557_v13, 0.0  ;;  %v366_v27 = vmul.f32 %v1104_v1, %v298_v11  ;;  %v622_v30 = vmax.f32 %v558_v20, 0.0  ;;  %v623_v31 = vmax.f32 %v559_v21, 0.0  ;;  %p923_p7 = pnand %p922_p4, %p918_p0 }
  0x68   : > { %682 = vst [vmem:[%s1147_s30 + $0x180] sm:$0xff] %v618_v12  ;;  %v367_v33 = vmul.f32 %v1104_v1, %v299_v16  ;;  %v368_v34 = vmul.f32 %v1104_v1, %v300_v17  ;;  %v624_v36 = vmax.f32 %v560_v25, 0.0  ;;  %v561_v37 = vadd.f32 %v497_v22, %v433_v26 }
  0x69   : > { %683 = vst [vmem:[%s1147_s30 + $0x188] sm:$0xff] %v619_v18  ;;  %v434_v38 = vadd.f32 %v1109_v2, %v366_v27  ;;  %v369_v41 = vmul.f32 %v1104_v1, %v301_v23  ;;  %v370_v45 = vmul.f32 %v1104_v1, %v302_v28  ;;  %v371_v46 = vmul.f32 %v1104_v1, %v303_v29 }
  0x6a   : > { %684 = vst [vmem:[%s1147_s30 + $0x190] sm:$0xff] %v620_v19  ;;  %v435_v42 = vadd.f32 %v1109_v2, %v367_v33  ;;  %v436_v43 = vadd.f32 %v1109_v2, %v368_v34  ;;  %v625_v48 = vmax.f32 %v561_v37, 0.0  ;;  %v372_v53 = vmul.f32 %v1104_v1, %v304_v35 }
  0x6b   : > { %685 = vst [vmem:[%s1147_s30 + $0x198] sm:$0xff] %v621_v24  ;;  %v562_v49 = vadd.f32 %v498_v32, %v434_v38  ;;  %v437_v50 = vadd.f32 %v1109_v2, %v369_v41  ;;  %v438_v56 = vadd.f32 %v1109_v2, %v370_v45  ;;  %v439_v57 = vadd.f32 %v1109_v2, %v371_v46 }
  0x6c   : > { %686 = vst [vmem:[%s1147_s30 + $0x1a0] sm:$0xff] %v622_v30  ;;  %v563_v54 = vadd.f32 %v499_v39, %v435_v42  ;;  %v564_v55 = vadd.f32 %v500_v40, %v436_v43  ;;  %v440_v61 = vadd.f32 %v1109_v2, %v372_v53  ;;  %v373_v62 = vmul.f32 %v1104_v1, %v305_v47 }
  0x6d   : > { %687 = vst [vmem:[%s1147_s30 + $0x1a8] sm:$0xff] %v623_v31  ;;  %v626_v59 = vmax.f32 %v562_v49, 0.0  ;;  %v565_v60 = vadd.f32 %v501_v44, %v437_v50  ;;  %v566_v3 = vadd.f32 %v502_v51, %v438_v56  ;;  %v567_v4 = vadd.f32 %v503_v52, %v439_v57 }
  0x6e   : > { %688 = vst [vmem:[%s1147_s30 + $0x1b0] sm:$0xff] %v624_v36  ;;  %v627_v63 = vmax.f32 %v563_v54, 0.0  ;;  %v628_v0 = vmax.f32 %v564_v55, 0.0  ;;  %v568_v7 = vadd.f32 %v504_v58, %v440_v61  ;;  %v441_v1 = vadd.f32 %v1109_v2, %v373_v62 }
  0x6f   : > { %689 = vst [vmem:[%s1147_s30 + $0x1b8] sm:$0xff] %v625_v48  ;;  %v629_v6 = vmax.f32 %v565_v60, 0.0  ;;  %v630_v8 = vmax.f32 %v566_v3, 0.0  ;;  %v631_v9 = vmax.f32 %v567_v4, 0.0 }
  0x70   : > { %690 = vst [vmem:[%s1147_s30 + $0x1c0] sm:$0xff] %v626_v59  ;;  %v632_v10 = vmax.f32 %v568_v7, 0.0  ;;  %v569_v11 = vadd.f32 %v505_v5, %v441_v1 }
  0x71   : > { %691 = vst [vmem:[%s1147_s30 + $0x1c8] sm:$0xff] %v627_v63 }
  0x72   : > { %692 = vst [vmem:[%s1147_s30 + $0x1d0] sm:$0xff] %v628_v0  ;;  %v633_v12 = vmax.f32 %v569_v11, 0.0 }
  0x73   : > { %693 = vst [vmem:[%s1147_s30 + $0x1d8] sm:$0xff] %v629_v6 }
  0x74   : > { %694 = vst [vmem:[%s1147_s30 + $0x1e0] sm:$0xff] %v630_v8 }
  0x75   : > { %695 = vst [vmem:[%s1147_s30 + $0x1e8] sm:$0xff] %v631_v9 }
  0x76   : > { %696 = vst [vmem:[%s1147_s30 + $0x1f0] sm:$0xff] %v632_v10 }
  0x77   : > { %697 = vst [vmem:[%s1147_s30 + $0x1f8] sm:$0xff] %v633_v12 }
  0x78   : > { %926 = shalt.err (!%p923_p7)
}
  0x79   : > { %s969_s7 = smov 128   ;;  %s970_s23 = smov 8  }
  0x7a   : > { %819 = dma.vmem_to_hbm [thread:$0]  (%p1046_p11), %s712_s8, 8192, %s714_s10, %s699_s14, %s969_s7, %s969_s7, %s970_s23  }
  0x7b PF: > { %s728_s25 = sand.u32 1, %s953_s15   ;;  %p1478_p5 = scmp.ge.s32.totalorder %s965_s18, 2 }
  0x7c   : > { %s729_s30 = scalar_lea.sflag [#allocation4], %s728_s25 }
  0x7d   : > { %p826_p8 = pnand %p1478_p5, %p1050_p12 }
  0x7f   : > { %p827_p10 = pneg %p826_p8 }
  0x81   : > { %948 = dma.done.wait (%p827_p10), %s729_s30, 8192  }
  0x82   : > { %950 = vsyncadd (%p827_p10), %s729_s30, 4294959104  ;;  %p17_p2 = scmp.ge.s32.totalorder %s1021_s21, 4   ;;  %s1479_s15 = smov %s957_s16 }
  0x83   : > { %s1480_s16 = smov %s961_s17  ;;  %s1481_s17 = smov %s1033_s24 }
  0x84   : > { %s1482_s18 = smov %s1021_s21  ;;  %19 = sbr.rel (!%p17_p2) target bundleno = 5 (0x5), region = 84 }
  0x89   :  { %735 = vsyncpa [#allocation3], 1 }
  0x8a   :  { %737 = vsyncpa [#allocation3 + $0x1], 1 }
  0x8b   :  { %738 = vsyncpa [#allocation4], 1 }
  0x8c   :  { %740 = vsyncpa [#allocation4 + $0x1], 1 }

// kernel: bottleneck_forward.6
= control target key start
LH: loop header
LB: loop body
LE: loop exit
PB: predicated region body
PF: predicated region fallthrough
CT: control target
= control target key end

     0   :  { %s1282_s18 = smov 0   ;;  %s1910_s0 = inlined_call_operand.vmem [shape: f32[1024,32], index: 0, kind: input, shape index: {}]   ;;  %s1911_s1 = inlined_call_operand.vmem [shape: f32[1,32], index: 1, kind: input, shape index: {}]   ;;  %s1912_s2 = inlined_call_operand.vmem [shape: f32[1,32], index: 2, kind: input, shape index: {}]   ;;  %s1913_s3 = inlined_call_operand.vmem [shape: bf16[32,128], index: 3, kind: input, shape index: {}]   ;;  %s1914_s4 = inlined_call_operand.vmem [shape: f32[1024,128], index: 4, kind: output, shape index: {0}]   ;;  %s1915_s5 = inlined_call_operand.vmem [shape: f32[2,2,128], index: 5, kind: output, shape index: {1}]  }
   0x1 LB: > { %s1288_s19 = sadd.s32 4294967295, %s1250_s18   ;;  %p1178_p0 = scmp.ge.s32.totalorder %s1250_s18, 1  ;;  %s1250_s18 = sphi %s1282_s18, %s16_s18  }
   0x2   : > { %p191_p1 = scmp.lt.s32.totalorder %s1250_s18, 3 }
   0x4   : > { %p192_p2 = pnand %p1178_p0, %p191_p1 }
   0x5   : > { %s1179_s22 = sshll.u32 (!%p192_p2), %s1288_s19, 6  ;;  %p235_p4 = scmp.lt.s32.totalorder (!%p192_p2), %s1288_s19, 1 }
   0x6   : > { %195 = sbr.rel (%p192_p2) target bundleno = 383 (0x17f), region = 36  ;;  %p224_p3 = scmp.lt.s32.totalorder (!%p192_p2), %s1179_s22, 127 }
   0xb   : > { %v1227_v0 = vld [vmem:[%s1913_s3 + $0x8] sm:$0xff]  ;;  %v1226_v1 = vld [vmem:[%s1913_s3] sm:$0xff]  ;;  %s1917_s22 = smov (!%p224_p3, %s1179_s22), 127  ;;  %vm552_vm0 = vcmask 261120   ;;  %s1919_s19 = smov (!%p235_p4, %s1288_s19), 1  ;;  %vm1084_vm1 = vcmask 1040384  }
   0xc   : > { %655 = vmatpush.bf16.msra.mxu0 %v1227_v0  ;;  %1228 = vmatpush.bf16.msra.mxu1 %v1227_v0  ;;  %v1304_v2 = vld [vmem:[%s1911_s1] ss:$0 sm:$0xff]  ;;  %s1180_s27 = sshll.u32 %s1917_s22, 3  ;;  %s1183_s11 = sshll.u32 %s1919_s19, 1 }
   0xd   : > { %1229 = vmatpush.bf16.msra.mxu2 %v1227_v0  ;;  %1230 = vmatpush.bf16.msra.mxu3 %v1227_v0  ;;  %s1312_s30 = scalar_lea.vmem %s1910_s0, %s1180_s27  ;;  %v1317_v3 = vld [vmem:[%s1912_s2] ss:$0 sm:$0xff]  ;;  %s1527_s10 = scalar_lea.vmem %s1914_s4, %s1180_s27 }
   0xe   : > { %v240_v4 = vld [vmem:[%s1312_s30] sm:$0xff]  ;;  %v241_v5 = vld [vmem:[%s1312_s30 + $0x8] sm:$0xff]  ;;  %v242_v18 = vld [vmem:[%s1312_s30 + $0x10] sm:$0xff]  ;;  %s238_s14 = scalar_lea.vmem %s1915_s5, %s1183_s11 }
   0xf   : > { %v308_v6 = vmul.f32 %v1304_v2, %v240_v4  ;;  %v309_v7 = vmul.f32 %v1304_v2, %v241_v5  ;;  %v256_v8 = vld [vmem:[%s1312_s30 + $0x80] sm:$0xff]  ;;  %v257_v9 = vld [vmem:[%s1312_s30 + $0x88] sm:$0xff]  ;;  %v243_v19 = vld [vmem:[%s1312_s30 + $0x18] sm:$0xff]  ;;  %v310_v26 = vmul.f32 %v1304_v2, %v242_v18 }
  0x10   : > { %656 = vmatpush.bf16.msra.mxu0 %v1226_v1  ;;  %1231 = vmatpush.bf16.msra.mxu1 %v1226_v1  ;;  %v324_v10 = vmul.f32 %v1304_v2, %v256_v8  ;;  %v325_v11 = vmul.f32 %v1304_v2, %v257_v9  ;;  %v258_v24 = vld [vmem:[%s1312_s30 + $0x90] sm:$0xff]  ;;  %v259_v25 = vld [vmem:[%s1312_s30 + $0x98] sm:$0xff]  ;;  %v311_v27 = vmul.f32 %v1304_v2, %v243_v19  ;;  %v272_v38 = vld [vmem:[%s1312_s30 + $0x100] sm:$0xff] }
  0x11   : > { %1232 = vmatpush.bf16.msra.mxu2 %v1226_v1  ;;  %1233 = vmatpush.bf16.msra.mxu3 %v1226_v1  ;;  %v376_v12 = vadd.f32 %v1317_v3, %v308_v6  ;;  %v377_v13 = vadd.f32 %v1317_v3, %v309_v7  ;;  %v326_v28 = vmul.f32 %v1304_v2, %v258_v24  ;;  %v273_v39 = vld [vmem:[%s1312_s30 + $0x108] sm:$0xff]  ;;  %v244_v45 = vld [vmem:[%s1312_s30 + $0x20] sm:$0xff]  ;;  %v274_v1 = vld [vmem:[%s1312_s30 + $0x110] sm:$0xff] }
  0x12   : > { %v392_v14 = vadd.f32 %v1317_v3, %v324_v10  ;;  %v393_v15 = vadd.f32 %v1317_v3, %v325_v11  ;;  %v327_v29 = vmul.f32 %v1304_v2, %v259_v25  ;;  %v378_v30 = vadd.f32 %v1317_v3, %v310_v26  ;;  %v245_v46 = vld [vmem:[%s1312_s30 + $0x28] sm:$0xff]  ;;  %v260_v50 = vld [vmem:[%s1312_s30 + $0xa0] sm:$0xff]  ;;  %v275_v4 = vld [vmem:[%s1312_s30 + $0x118] sm:$0xff] }
  0x13   : > { %v440_v16 = vmax.f32 %v376_v12, 0.0  ;;  %v441_v17 = vmax.f32 %v377_v13, 0.0  ;;  %v379_v31 = vadd.f32 %v1317_v3, %v311_v27  ;;  %v394_v32 = vadd.f32 %v1317_v3, %v326_v28  ;;  %v261_v51 = vld [vmem:[%s1312_s30 + $0xa8] sm:$0xff]  ;;  %v246_v10 = vld [vmem:[%s1312_s30 + $0x30] sm:$0xff]  ;;  %v247_v11 = vld [vmem:[%s1312_s30 + $0x38] sm:$0xff] }
  0x14   : > { %v456_v20 = vmax.f32 %v392_v14, 0.0  ;;  %v457_v21 = vmax.f32 %v393_v15, 0.0  ;;  %v395_v33 = vadd.f32 %v1317_v3, %v327_v29  ;;  %v442_v34 = vmax.f32 %v378_v30, 0.0  ;;  %v262_v15 = vld [vmem:[%s1312_s30 + $0xb0] sm:$0xff]  ;;  %v276_v30 = vld [vmem:[%s1312_s30 + $0x120] sm:$0xff] }
  0x15   : > { %v504_v22 = vpack.c.bf16 %v441_v17, %v440_v16  ;;  %v443_v35 = vmax.f32 %v379_v31, 0.0  ;;  %v458_v36 = vmax.f32 %v394_v32, 0.0  ;;  %v340_v40 = vmul.f32 %v1304_v2, %v272_v38  ;;  %v263_v16 = vld [vmem:[%s1312_s30 + $0xb8] sm:$0xff]  ;;  %v277_v31 = vld [vmem:[%s1312_s30 + $0x128] sm:$0xff]  ;;  %v288_v32 = vld [vmem:[%s1312_s30 + $0x180] sm:$0xff] }
  0x16   : > { %v512_v23 = vpack.c.bf16 %v457_v21, %v456_v20  ;;  %v459_v37 = vmax.f32 %v395_v33, 0.0  ;;  %v341_v41 = vmul.f32 %v1304_v2, %v273_v39  ;;  %v312_v52 = vmul.f32 %v1304_v2, %v244_v45 }
  0x17   : > { %1192 = vmatmul.msk.bf16.vlgmr.msra.gmra.mxu0 %vm552_vm0, %v504_v22  ;;  %v505_v42 = vpack.c.bf16 %v443_v35, %v442_v34  ;;  %v408_v43 = vadd.f32 %v1317_v3, %v340_v40  ;;  %v313_v53 = vmul.f32 %v1304_v2, %v245_v46  ;;  %v328_v55 = vmul.f32 %v1304_v2, %v260_v50  ;;  %v289_v35 = vld [vmem:[%s1312_s30 + $0x188] sm:$0xff]  ;;  %v264_v50 = vld [vmem:[%s1312_s30 + $0xc0] sm:$0xff] }
  0x18   : > { %1200 = vmatmul.msk.bf16.vlgmr.msra.gmra.mxu1 %vm552_vm0, %v512_v23  ;;  %v409_v44 = vadd.f32 %v1317_v3, %v341_v41  ;;  %v513_v47 = vpack.c.bf16 %v459_v37, %v458_v36  ;;  %v329_v56 = vmul.f32 %v1304_v2, %v261_v51  ;;  %v380_v57 = vadd.f32 %v1317_v3, %v312_v52  ;;  %v265_v51 = vld [vmem:[%s1312_s30 + $0xc8] sm:$0xff] }
  0x19   : > { %v472_v48 = vmax.f32 %v408_v43, 0.0  ;;  %v381_v58 = vadd.f32 %v1317_v3, %v313_v53  ;;  %v396_v59 = vadd.f32 %v1317_v3, %v328_v55  ;;  %v342_v5 = vmul.f32 %v1304_v2, %v274_v1  ;;  %v249_v43 = vld [vmem:[%s1312_s30 + $0x48] sm:$0xff] }
  0x1a   : > { %v473_v49 = vmax.f32 %v409_v44, 0.0  ;;  %v397_v60 = vadd.f32 %v1317_v3, %v329_v56  ;;  %v444_v61 = vmax.f32 %v380_v57, 0.0  ;;  %v343_v6 = vmul.f32 %v1304_v2, %v275_v4  ;;  %v278_v4 = vld [vmem:[%s1312_s30 + $0x130] sm:$0xff] }
  0x1b   : > { %v445_v62 = vmax.f32 %v381_v58, 0.0  ;;  %v460_v63 = vmax.f32 %v396_v59, 0.0  ;;  %v410_v8 = vadd.f32 %v1317_v3, %v342_v5  ;;  %v314_v17 = vmul.f32 %v1304_v2, %v246_v10  ;;  %v279_v5 = vld [vmem:[%s1312_s30 + $0x138] sm:$0xff] }
  0x1c   : > { %v520_v54 = vpack.c.bf16 %v473_v49, %v472_v48  ;;  %v461_v0 = vmax.f32 %v397_v60, 0.0  ;;  %v411_v9 = vadd.f32 %v1317_v3, %v343_v6  ;;  %v315_v18 = vmul.f32 %v1304_v2, %v247_v11  ;;  %v290_v6 = vld [vmem:[%s1312_s30 + $0x190] sm:$0xff] }
  0x1d   : > { %v506_v7 = vpack.c.bf16 %v445_v62, %v444_v61  ;;  %v474_v13 = vmax.f32 %v410_v8, 0.0  ;;  %v330_v20 = vmul.f32 %v1304_v2, %v262_v15  ;;  %v331_v21 = vmul.f32 %v1304_v2, %v263_v16  ;;  %v250_v16 = vld [vmem:[%s1312_s30 + $0x50] sm:$0xff] }
  0x1e   : > { %1208 = vmatmul.msk.bf16.vlgmr.msra.gmra.mxu2 %vm552_vm0, %v520_v54  ;;  %v514_v12 = vpack.c.bf16 %v461_v0, %v460_v63  ;;  %v475_v14 = vmax.f32 %v411_v9, 0.0  ;;  %v382_v22 = vadd.f32 %v1317_v3, %v314_v17  ;;  %v383_v23 = vadd.f32 %v1317_v3, %v315_v18  ;;  %v291_v9 = vld [vmem:[%s1312_s30 + $0x198] sm:$0xff] }
  0x1f   : > { %v398_v24 = vadd.f32 %v1317_v3, %v330_v20  ;;  %v399_v25 = vadd.f32 %v1317_v3, %v331_v21  ;;  %v344_v33 = vmul.f32 %v1304_v2, %v276_v30  ;;  %v345_v34 = vmul.f32 %v1304_v2, %v277_v31  ;;  %v251_v17 = vld [vmem:[%s1312_s30 + $0x58] sm:$0xff] }
  0x20   : > { %v521_v19 = vpack.c.bf16 %v475_v14, %v474_v13  ;;  %v446_v26 = vmax.f32 %v382_v22, 0.0  ;;  %v447_v27 = vmax.f32 %v383_v23, 0.0  ;;  %v356_v36 = vmul.f32 %v1304_v2, %v288_v32 }
  0x21   : > { %v462_v28 = vmax.f32 %v398_v24, 0.0  ;;  %v463_v29 = vmax.f32 %v399_v25, 0.0  ;;  %v357_v37 = vmul.f32 %v1304_v2, %v289_v35  ;;  %v412_v39 = vadd.f32 %v1317_v3, %v344_v33  ;;  %v266_v24 = vld [vmem:[%s1312_s30 + $0xd0] sm:$0xff]  ;;  %v267_v25 = vld [vmem:[%s1312_s30 + $0xd8] sm:$0xff] }
  0x22   : > { %v507_v38 = vpack.c.bf16 %v447_v27, %v446_v26  ;;  %v413_v40 = vadd.f32 %v1317_v3, %v345_v34  ;;  %v424_v41 = vadd.f32 %v1317_v3, %v356_v36  ;;  %v317_v53 = vmul.f32 %v1304_v2, %v249_v43 }
  0x23   : > { %v515_v44 = vpack.c.bf16 %v463_v29, %v462_v28  ;;  %v425_v45 = vadd.f32 %v1317_v3, %v357_v37  ;;  %v476_v46 = vmax.f32 %v412_v39, 0.0  ;;  %v332_v56 = vmul.f32 %v1304_v2, %v264_v50 }
  0x24   : > { %v488_v48 = vmax.f32 %v424_v41, 0.0  ;;  %v333_v57 = vmul.f32 %v1304_v2, %v265_v51  ;;  %v385_v59 = vadd.f32 %v1317_v3, %v317_v53  ;;  %v347_v8 = vmul.f32 %v1304_v2, %v279_v5  ;;  %v281_v41 = vld [vmem:[%s1312_s30 + $0x148] sm:$0xff] }
  0x25   : > { %v489_v49 = vmax.f32 %v425_v45, 0.0  ;;  %v400_v60 = vadd.f32 %v1317_v3, %v332_v56  ;;  %v358_v10 = vmul.f32 %v1304_v2, %v290_v6  ;;  %v359_v11 = vmul.f32 %v1304_v2, %v291_v9  ;;  %v293_v45 = vld [vmem:[%s1312_s30 + $0x1a8] sm:$0xff] }
  0x26   : > { %v401_v61 = vadd.f32 %v1317_v3, %v333_v57  ;;  %v449_v63 = vmax.f32 %v385_v59, 0.0  ;;  %v415_v14 = vadd.f32 %v1317_v3, %v347_v8  ;;  %v318_v26 = vmul.f32 %v1304_v2, %v250_v16  ;;  %v253_v53 = vld [vmem:[%s1312_s30 + $0x68] sm:$0xff]  ;;  %v294_v16 = vld [vmem:[%s1312_s30 + $0x1b0] sm:$0xff] }
  0x27   : > { %1193 = vmatmul.msk.bf16.gmra.mxu0 %vm552_vm0, %v505_v42  ;;  %v248_v42 = vld [vmem:[%s1312_s30 + $0x40] sm:$0xff]  ;;  %v528_v55 = vpack.c.bf16 %v489_v49, %v488_v48  ;;  %v464_v0 = vmax.f32 %v400_v60, 0.0  ;;  %v426_v15 = vadd.f32 %v1317_v3, %v358_v10  ;;  %v319_v27 = vmul.f32 %v1304_v2, %v251_v17 }
  0x28   : > { %1201 = vmatmul.msk.bf16.gmra.mxu1 %vm552_vm0, %v513_v47  ;;  %v477_v47 = vmax.f32 %v413_v40, 0.0  ;;  %v316_v52 = vmul.f32 %v1304_v2, %v248_v42  ;;  %v465_v1 = vmax.f32 %v401_v61, 0.0  ;;  %v479_v21 = vmax.f32 %v415_v14, 0.0  ;;  %v280_v40 = vld [vmem:[%s1312_s30 + $0x140] sm:$0xff]  ;;  %v269_v61 = vld [vmem:[%s1312_s30 + $0xe8] sm:$0xff]  ;;  %v282_v14 = vld [vmem:[%s1312_s30 + $0x150] sm:$0xff] }
  0x29   : > { %1216 = vmatmul.msk.bf16.vlgmr.msra.gmra.mxu3 %vm552_vm0, %v528_v55  ;;  %v490_v22 = vmax.f32 %v426_v15, 0.0  ;;  %v334_v30 = vmul.f32 %v1304_v2, %v266_v24  ;;  %v335_v31 = vmul.f32 %v1304_v2, %v267_v25  ;;  %v386_v32 = vadd.f32 %v1317_v3, %v318_v26  ;;  %v292_v42 = vld [vmem:[%s1312_s30 + $0x1a0] sm:$0xff]  ;;  %v283_v15 = vld [vmem:[%s1312_s30 + $0x158] sm:$0xff]  ;;  %v254_v26 = vld [vmem:[%s1312_s30 + $0x70] sm:$0xff] }
  0x2a   : > { %v522_v54 = vpack.c.bf16 %v477_v47, %v476_v46  ;;  %v384_v58 = vadd.f32 %v1317_v3, %v316_v52  ;;  %v516_v18 = vpack.c.bf16 %v465_v1, %v464_v0  ;;  %v387_v33 = vadd.f32 %v1317_v3, %v319_v27  ;;  %v252_v52 = vld [vmem:[%s1312_s30 + $0x60] sm:$0xff]  ;;  %v255_v27 = vld [vmem:[%s1312_s30 + $0x78] sm:$0xff] }
  0x2b   : > { %v402_v34 = vadd.f32 %v1317_v3, %v334_v30  ;;  %v403_v35 = vadd.f32 %v1317_v3, %v335_v31  ;;  %v450_v36 = vmax.f32 %v386_v32, 0.0  ;;  %v348_v43 = vmul.f32 %v1304_v2, %v280_v40  ;;  %v268_v60 = vld [vmem:[%s1312_s30 + $0xe0] sm:$0xff] }
  0x2c   : > { %v448_v62 = vmax.f32 %v384_v58, 0.0  ;;  %v451_v37 = vmax.f32 %v387_v33, 0.0  ;;  %v360_v46 = vmul.f32 %v1304_v2, %v292_v42  ;;  %v361_v47 = vmul.f32 %v1304_v2, %v293_v45 }
  0x2d   : > { %v467_v39 = vmax.f32 %v403_v35, 0.0  ;;  %v416_v49 = vadd.f32 %v1317_v3, %v348_v43  ;;  %v337_v5 = vmul.f32 %v1304_v2, %v269_v61  ;;  %v350_v17 = vmul.f32 %v1304_v2, %v282_v14  ;;  %v271_v35 = vld [vmem:[%s1312_s30 + $0xf8] sm:$0xff] }
  0x2e   : > { %1209 = vmatmul.msk.bf16.gmra.mxu2 %vm552_vm0, %v521_v19  ;;  %v427_v19 = vadd.f32 %v1317_v3, %v359_v11  ;;  %v509_v48 = vpack.c.bf16 %v451_v37, %v450_v36  ;;  %v428_v51 = vadd.f32 %v1317_v3, %v360_v46  ;;  %v429_v55 = vadd.f32 %v1317_v3, %v361_v47 }
  0x2f   : > { %v480_v56 = vmax.f32 %v416_v49, 0.0  ;;  %v405_v9 = vadd.f32 %v1317_v3, %v337_v5  ;;  %v322_v36 = vmul.f32 %v1304_v2, %v254_v26  ;;  %v323_v37 = vmul.f32 %v1304_v2, %v255_v27 }
  0x30   : > { %v491_v23 = vmax.f32 %v427_v19, 0.0  ;;  %v492_v58 = vmax.f32 %v428_v51, 0.0  ;;  %v493_v59 = vmax.f32 %v429_v55, 0.0  ;;  %v295_v19 = vld [vmem:[%s1312_s30 + $0x1b8] sm:$0xff]  ;;  %v285_v51 = vld [vmem:[%s1312_s30 + $0x168] sm:$0xff] }
  0x31   : > { %v390_v42 = vadd.f32 %v1317_v3, %v322_v36  ;;  %v391_v43 = vadd.f32 %v1317_v3, %v323_v37  ;;  %v297_v55 = vld [vmem:[%s1312_s30 + $0x1c8] sm:$0xff] }
  0x32   : > { %v529_v29 = vpack.c.bf16 %v491_v23, %v490_v22  ;;  %v530_v1 = vpack.c.bf16 %v493_v59, %v492_v58  ;;  %v418_v23 = vadd.f32 %v1317_v3, %v350_v17 }
  0x33   : > { %v454_v46 = vmax.f32 %v390_v42, 0.0  ;;  %v455_v47 = vmax.f32 %v391_v43, 0.0 }
  0x34   : > { %v482_v30 = vmax.f32 %v418_v23, 0.0 }
  0x35   : > { %v511_v58 = vpack.c.bf16 %v455_v47, %v454_v46 }
  0x37   : > { %1194 = vmatmul.msk.bf16.gmra.mxu0 %vm552_vm0, %v506_v7  ;;  %v346_v7 = vmul.f32 %v1304_v2, %v278_v4  ;;  %v336_v4 = vmul.f32 %v1304_v2, %v268_v60 }
  0x38   : > { %1202 = vmatmul.msk.bf16.gmra.mxu1 %vm552_vm0, %v514_v12  ;;  %v508_v12 = vpack.c.bf16 %v449_v63, %v448_v62  ;;  %v320_v62 = vmul.f32 %v1304_v2, %v252_v52  ;;  %v321_v63 = vmul.f32 %v1304_v2, %v253_v53  ;;  %v296_v52 = vld [vmem:[%s1312_s30 + $0x1c0] sm:$0xff] }
  0x39   : > { %v414_v13 = vadd.f32 %v1317_v3, %v346_v7  ;;  %1217 = vmatmul.msk.bf16.gmra.mxu3 %vm552_vm0, %v529_v29  ;;  %v404_v8 = vadd.f32 %v1317_v3, %v336_v4 }
  0x3a   : > { %v388_v6 = vadd.f32 %v1317_v3, %v320_v62  ;;  %v389_v7 = vadd.f32 %v1317_v3, %v321_v63 }
  0x3b   : > { %v478_v20 = vmax.f32 %v414_v13, 0.0  ;;  %v469_v13 = vmax.f32 %v405_v9, 0.0  ;;  %v287_v9 = vld [vmem:[%s1312_s30 + $0x178] sm:$0xff] }
  0x3c   : > { %v452_v10 = vmax.f32 %v388_v6, 0.0  ;;  %v453_v11 = vmax.f32 %v389_v7, 0.0 }
  0x3d   : > { %v523_v28 = vpack.c.bf16 %v479_v21, %v478_v20  ;;  %v362_v20 = vmul.f32 %v1304_v2, %v294_v16  ;;  %v363_v21 = vmul.f32 %v1304_v2, %v295_v19 }
  0x3e   : > { %1210 = vmatmul.msk.bf16.gmra.mxu2 %vm552_vm0, %v522_v54  ;;  %v510_v22 = vpack.c.bf16 %v453_v11, %v452_v10  ;;  %v298_v10 = vld [vmem:[%s1312_s30 + $0x1d0] sm:$0xff] }
  0x3f   : > { %v430_v25 = vadd.f32 %v1317_v3, %v362_v20  ;;  %v431_v29 = vadd.f32 %v1317_v3, %v363_v21  ;;  %v366_v14 = vmul.f32 %v1304_v2, %v298_v10 }
  0x41   : > { %v494_v32 = vmax.f32 %v430_v25, 0.0  ;;  %v495_v33 = vmax.f32 %v431_v29, 0.0 }
  0x47   : > { %1195 = vmatmul.msk.bf16.gmra.mxu0 %vm552_vm0, %v507_v38  ;;  %v466_v38 = vmax.f32 %v402_v34, 0.0  ;;  %v270_v34 = vld [vmem:[%s1312_s30 + $0xf0] sm:$0xff] }
  0x48   : > { %1203 = vmatmul.msk.bf16.gmra.mxu1 %vm552_vm0, %v515_v44  ;;  %v349_v44 = vmul.f32 %v1304_v2, %v281_v41  ;;  %v338_v40 = vmul.f32 %v1304_v2, %v270_v34  ;;  %v339_v41 = vmul.f32 %v1304_v2, %v271_v35  ;;  %v300_v34 = vld [vmem:[%s1312_s30 + $0x1e0] sm:$0xff]  ;;  %v301_v35 = vld [vmem:[%s1312_s30 + $0x1e8] sm:$0xff] }
  0x49   : > { %v517_v54 = vpack.c.bf16 %v467_v39, %v466_v38  ;;  %1218 = vmatmul.msk.bf16.gmra.mxu3 %vm552_vm0, %v530_v1  ;;  %v531_v39 = vpack.c.bf16 %v495_v33, %v494_v32  ;;  %v368_v36 = vmul.f32 %v1304_v2, %v300_v34  ;;  %v369_v37 = vmul.f32 %v1304_v2, %v301_v35 }
  0x4a   : > { %v417_v50 = vadd.f32 %v1317_v3, %v349_v44  ;;  %v406_v44 = vadd.f32 %v1317_v3, %v338_v40  ;;  %v407_v45 = vadd.f32 %v1317_v3, %v339_v41 }
  0x4c   : > { %v481_v57 = vmax.f32 %v417_v50, 0.0  ;;  %v471_v49 = vmax.f32 %v407_v45, 0.0  ;;  %v284_v50 = vld [vmem:[%s1312_s30 + $0x160] sm:$0xff] }
  0x4d   : > { %v352_v53 = vmul.f32 %v1304_v2, %v284_v50 }
  0x4e   : > { %1211 = vmatmul.msk.bf16.gmra.mxu2 %vm552_vm0, %v523_v28  ;;  %v524_v0 = vpack.c.bf16 %v481_v57, %v480_v56  ;;  %v364_v56 = vmul.f32 %v1304_v2, %v296_v52  ;;  %v365_v57 = vmul.f32 %v1304_v2, %v297_v55  ;;  %v303_v55 = vld [vmem:[%s1312_s30 + $0x1f8] sm:$0xff] }
  0x4f   : > { %v420_v59 = vadd.f32 %v1317_v3, %v352_v53 }
  0x50   : > { %v432_v61 = vadd.f32 %v1317_v3, %v364_v56  ;;  %v433_v63 = vadd.f32 %v1317_v3, %v365_v57  ;;  %v371_v57 = vmul.f32 %v1304_v2, %v303_v55 }
  0x52   : > { %v496_v4 = vmax.f32 %v432_v61, 0.0  ;;  %v497_v5 = vmax.f32 %v433_v63, 0.0 }
  0x54   : > { %v532_v7 = vpack.c.bf16 %v497_v5, %v496_v4 }
  0x57   : > { %1196 = vmatmul.msk.bf16.gmra.mxu0 %vm552_vm0, %v508_v12  ;;  %v468_v12 = vmax.f32 %v404_v8, 0.0  ;;  %v286_v8 = vld [vmem:[%s1312_s30 + $0x170] sm:$0xff] }
  0x58   : > { %1204 = vmatmul.msk.bf16.gmra.mxu1 %vm552_vm0, %v516_v18  ;;  %v351_v18 = vmul.f32 %v1304_v2, %v283_v15  ;;  %v354_v11 = vmul.f32 %v1304_v2, %v286_v8 }
  0x59   : > { %v518_v28 = vpack.c.bf16 %v469_v13, %v468_v12  ;;  %1219 = vmatmul.msk.bf16.gmra.mxu3 %vm552_vm0, %v531_v39  ;;  %v355_v12 = vmul.f32 %v1304_v2, %v287_v9  ;;  %v299_v13 = vld [vmem:[%s1312_s30 + $0x1d8] sm:$0xff]  ;;  %v437_v39 = vadd.f32 %v1317_v3, %v369_v37 }
  0x5a   : > { %v419_v24 = vadd.f32 %v1317_v3, %v351_v18  ;;  %v367_v15 = vmul.f32 %v1304_v2, %v299_v13  ;;  %v422_v16 = vadd.f32 %v1317_v3, %v354_v11  ;;  %v434_v18 = vadd.f32 %v1317_v3, %v366_v14 }
  0x5b   : > { %v423_v17 = vadd.f32 %v1317_v3, %v355_v12  ;;  %v501_v45 = vmax.f32 %v437_v39, 0.0 }
  0x5c   : > { %v483_v31 = vmax.f32 %v419_v24, 0.0  ;;  %v435_v20 = vadd.f32 %v1317_v3, %v367_v15  ;;  %v498_v24 = vmax.f32 %v434_v18, 0.0 }
  0x5d   : > { %v487_v23 = vmax.f32 %v423_v17, 0.0 }
  0x5e   : > { %1212 = vmatmul.msk.bf16.gmra.mxu2 %vm552_vm0, %v524_v0  ;;  %v525_v38 = vpack.c.bf16 %v483_v31, %v482_v30  ;;  %v484_v0 = vmax.f32 %v420_v59, 0.0  ;;  %v499_v25 = vmax.f32 %v435_v20, 0.0  ;;  %v439_v59 = vadd.f32 %v1317_v3, %v371_v57 }
  0x60   : > { %v533_v27 = vpack.c.bf16 %v499_v25, %v498_v24 }
  0x67   : > { %1197 = vmatmul.msk.bf16.gmra.mxu0 %vm552_vm0, %v509_v48  ;;  %v470_v48 = vmax.f32 %v406_v44, 0.0 }
  0x68   : > { %1205 = vmatmul.msk.bf16.gmra.mxu1 %vm552_vm0, %v517_v54  ;;  %v353_v54 = vmul.f32 %v1304_v2, %v285_v51 }
  0x69   : > { %v519_v62 = vpack.c.bf16 %v471_v49, %v470_v48  ;;  %1220 = vmatmul.msk.bf16.gmra.mxu3 %vm552_vm0, %v532_v7 }
  0x6a   : > { %v421_v60 = vadd.f32 %v1317_v3, %v353_v54  ;;  %v302_v54 = vld [vmem:[%s1312_s30 + $0x1f0] sm:$0xff] }
  0x6b   : > { %v370_v56 = vmul.f32 %v1304_v2, %v302_v54  ;;  %v503_v2 = vmax.f32 %v439_v59, 0.0 }
  0x6c   : > { %v485_v1 = vmax.f32 %v421_v60, 0.0 }
  0x6e   : > { %1213 = vmatmul.msk.bf16.gmra.mxu2 %vm552_vm0, %v525_v38  ;;  %v526_v6 = vpack.c.bf16 %v485_v1, %v484_v0  ;;  %v436_v38 = vadd.f32 %v1317_v3, %v368_v36 }
  0x70   : > { %v500_v44 = vmax.f32 %v436_v38, 0.0 }
  0x72   : > { %v534_v47 = vpack.c.bf16 %v501_v45, %v500_v44 }
  0x77   : > { %1198 = vmatmul.msk.bf16.gmra.mxu0 %vm552_vm0, %v510_v22  ;;  %v486_v22 = vmax.f32 %v422_v16, 0.0 }
  0x78   : > { %1206 = vmatmul.msk.bf16.gmra.mxu1 %vm552_vm0, %v518_v28 }
  0x79   : > { %v527_v26 = vpack.c.bf16 %v487_v23, %v486_v22  ;;  %1221 = vmatmul.msk.bf16.gmra.mxu3 %vm552_vm0, %v533_v27 }
  0x7e   : > { %1214 = vmatmul.msk.bf16.gmra.mxu2 %vm552_vm0, %v526_v6 }
  0x87   : > { %1199 = vmatmul.msk.bf16.gmra.mxu0 %vm552_vm0, %v511_v58  ;;  %v438_v58 = vadd.f32 %v1317_v3, %v370_v56 }
  0x88   : > { %1207 = vmatmul.msk.bf16.gmra.mxu1 %vm552_vm0, %v519_v62 }
  0x89   : > { %1222 = vmatmul.msk.bf16.gmra.mxu3 %vm552_vm0, %v534_v47  ;;  %v502_v1 = vmax.f32 %v438_v58, 0.0 }
  0x8b   : > { %v535_v4 = vpack.c.bf16 %v503_v2, %v502_v1 }
  0x8e   : > { %1215 = vmatmul.msk.bf16.gmra.mxu2 %vm552_vm0, %v527_v26 }
  0x94   : > { %v658_v19 = vpop.f32.mrf.mxu0 }
  0x95   : > { %818 = vst [vmem:[%s1527_s10] sm:$0xff] %v658_v19  ;;  %v1535_v21 = vpop.f32.mrf.mxu1  ;;  %v951_v29 = vmul.f32 %v658_v19, %v658_v19 }
  0x96   : > { %834 = vst [vmem:[%s1527_s10 + $0x80] sm:$0xff] %v1535_v21 }
  0x99   : > { %1223 = vmatmul.msk.bf16.gmra.mxu3 %vm552_vm0, %v535_v4 }
  0x9c   : > { %v660_v28 = vpop.f32.mrf.mxu0 }
  0x9d   : > { %819 = vst [vmem:[%s1527_s10 + $0x8] sm:$0xff] %v660_v28  ;;  %v882_v30 = vadd.f32 %v660_v28, %v658_v19  ;;  %v952_v31 = vmul.f32 %v660_v28, %v660_v28  ;;  %v1542_v32 = vpop.f32.mrf.mxu1 }
  0x9e   : > { %835 = vst [vmem:[%s1527_s10 + $0x88] sm:$0xff] %v1542_v32 }
  0x9f   : > { %v1015_v33 = vadd.f32 %v952_v31, %v951_v29 }
  0xa1   : > { %v1558_v49 = vpop.f32.mrf.mxu2 }
  0xa2   : > { %850 = vst [vmem:[%s1527_s10 + $0x100] sm:$0xff] %v1558_v49 }
  0xa4   : > { %v663_v40 = vpop.f32.mrf.mxu0 }
  0xa5   : > { %820 = vst [vmem:[%s1527_s10 + $0x10] sm:$0xff] %v663_v40  ;;  %v883_v41 = vadd.f32 %v882_v30, %v663_v40  ;;  %v953_v42 = vmul.f32 %v663_v40, %v663_v40  ;;  %v1553_v43 = vpop.f32.mrf.mxu1 }
  0xa6   : > { %836 = vst [vmem:[%s1527_s10 + $0x90] sm:$0xff] %v1553_v43 }
  0xa7   : > { %v1016_v46 = vadd.f32 %v1015_v33, %v953_v42 }
  0xa9   : > { %v1573_v61 = vpop.f32.mrf.mxu2 }
  0xaa   : > { %851 = vst [vmem:[%s1527_s10 + $0x108] sm:$0xff] %v1573_v61 }
  0xac   : > { %v665_v48 = vpop.f32.mrf.mxu0  ;;  %v1610_v14 = vpop.f32.mrf.mxu3 }
  0xad   : > { %821 = vst [vmem:[%s1527_s10 + $0x18] sm:$0xff] %v665_v48  ;;  %v884_v50 = vadd.f32 %v883_v41, %v665_v48  ;;  %v954_v51 = vmul.f32 %v665_v48, %v665_v48  ;;  %v1561_v52 = vpop.f32.mrf.mxu1 }
  0xae   : > { %837 = vst [vmem:[%s1527_s10 + $0x98] sm:$0xff] %v1561_v52 }
  0xaf   : > { %v1017_v53 = vadd.f32 %v1016_v46, %v954_v51  ;;  %866 = vst [vmem:[%s1527_s10 + $0x180] sm:$0xff] %v1610_v14 }
  0xb1   : > { %v1587_v6 = vpop.f32.mrf.mxu2 }
  0xb2   : > { %852 = vst [vmem:[%s1527_s10 + $0x110] sm:$0xff] %v1587_v6 }
  0xb4   : > { %v668_v60 = vpop.f32.mrf.mxu0  ;;  %v1623_v18 = vpop.f32.mrf.mxu3 }
  0xb5   : > { %822 = vst [vmem:[%s1527_s10 + $0x20] sm:$0xff] %v668_v60  ;;  %v1576_v62 = vadd.f32 %v884_v50, %v668_v60  ;;  %v955_v63 = vmul.f32 %v668_v60, %v668_v60  ;;  %v1578_v0 = vpop.f32.mrf.mxu1 }
  0xb6   : > { %838 = vst [vmem:[%s1527_s10 + $0xa0] sm:$0xff] %v1578_v0 }
  0xb7   : > { %v1582_v3 = vadd.f32 %v1017_v53, %v955_v63  ;;  %867 = vst [vmem:[%s1527_s10 + $0x188] sm:$0xff] %v1623_v18 }
  0xb9   : > { %v1596_v9 = vpop.f32.mrf.mxu2 }
  0xba   : > { %853 = vst [vmem:[%s1527_s10 + $0x118] sm:$0xff] %v1596_v9 }
  0xbc   : > { %v670_v5 = vpop.f32.mrf.mxu0  ;;  %v1636_v23 = vpop.f32.mrf.mxu3 }
  0xbd   : > { %823 = vst [vmem:[%s1527_s10 + $0x28] sm:$0xff] %v670_v5  ;;  %v1590_v7 = vpop.f32.mrf.mxu1  ;;  %v956_v37 = vmul.f32 %v670_v5, %v670_v5  ;;  %v886_v38 = vadd.f32 %v1576_v62, %v670_v5 }
  0xbe   : > { %839 = vst [vmem:[%s1527_s10 + $0xa8] sm:$0xff] %v1590_v7 }
  0xbf   : > { %868 = vst [vmem:[%s1527_s10 + $0x190] sm:$0xff] %v1636_v23  ;;  %v1019_v40 = vadd.f32 %v1582_v3, %v956_v37 }
  0xc1   : > { %v1605_v12 = vpop.f32.mrf.mxu2 }
  0xc2   : > { %854 = vst [vmem:[%s1527_s10 + $0x120] sm:$0xff] %v1605_v12 }
  0xc4   : > { %v673_v8 = vpop.f32.mrf.mxu0  ;;  %v1649_v27 = vpop.f32.mrf.mxu3 }
  0xc5   : > { %824 = vst [vmem:[%s1527_s10 + $0x30] sm:$0xff] %v673_v8  ;;  %v1599_v10 = vpop.f32.mrf.mxu1  ;;  %v957_v39 = vmul.f32 %v673_v8, %v673_v8  ;;  %v887_v41 = vadd.f32 %v886_v38, %v673_v8 }
  0xc6   : > { %840 = vst [vmem:[%s1527_s10 + $0xb0] sm:$0xff] %v1599_v10 }
  0xc7   : > { %869 = vst [vmem:[%s1527_s10 + $0x198] sm:$0xff] %v1649_v27  ;;  %v1020_v46 = vadd.f32 %v1019_v40, %v957_v39 }
  0xc9   : > { %v1618_v16 = vpop.f32.mrf.mxu2 }
  0xca   : > { %855 = vst [vmem:[%s1527_s10 + $0x128] sm:$0xff] %v1618_v16 }
  0xcc   : > { %v675_v11 = vpop.f32.mrf.mxu0  ;;  %v1662_v31 = vpop.f32.mrf.mxu3 }
  0xcd   : > { %825 = vst [vmem:[%s1527_s10 + $0x38] sm:$0xff] %v675_v11  ;;  %v1608_v13 = vpop.f32.mrf.mxu1  ;;  %v958_v42 = vmul.f32 %v675_v11, %v675_v11  ;;  %v888_v47 = vadd.f32 %v887_v41, %v675_v11 }
  0xce   : > { %841 = vst [vmem:[%s1527_s10 + $0xb8] sm:$0xff] %v1608_v13 }
  0xcf   : > { %870 = vst [vmem:[%s1527_s10 + $0x1a0] sm:$0xff] %v1662_v31  ;;  %v1021_v53 = vadd.f32 %v1020_v46, %v958_v42 }
  0xd1   : > { %v1631_v20 = vpop.f32.mrf.mxu2 }
  0xd2   : > { %856 = vst [vmem:[%s1527_s10 + $0x130] sm:$0xff] %v1631_v20 }
  0xd4   : > { %v678_v15 = vpop.f32.mrf.mxu0  ;;  %v1675_v36 = vpop.f32.mrf.mxu3 }
  0xd5   : > { %826 = vst [vmem:[%s1527_s10 + $0x40] sm:$0xff] %v678_v15  ;;  %v1621_v17 = vpop.f32.mrf.mxu1  ;;  %v959_v48 = vmul.f32 %v678_v15, %v678_v15  ;;  %v889_v54 = vadd.f32 %v888_v47, %v678_v15 }
  0xd6   : > { %842 = vst [vmem:[%s1527_s10 + $0xc0] sm:$0xff] %v1621_v17 }
  0xd7   : > { %871 = vst [vmem:[%s1527_s10 + $0x1a8] sm:$0xff] %v1675_v36  ;;  %v1022_v56 = vadd.f32 %v1021_v53, %v959_v48 }
  0xd9   : > { %v1644_v25 = vpop.f32.mrf.mxu2 }
  0xda   : > { %857 = vst [vmem:[%s1527_s10 + $0x138] sm:$0xff] %v1644_v25 }
  0xdc   : > { %v680_v19 = vpop.f32.mrf.mxu0  ;;  %v1690_v51 = vpop.f32.mrf.mxu3 }
  0xdd   : > { %827 = vst [vmem:[%s1527_s10 + $0x48] sm:$0xff] %v680_v19  ;;  %v1634_v22 = vpop.f32.mrf.mxu1  ;;  %v960_v55 = vmul.f32 %v680_v19, %v680_v19  ;;  %v890_v57 = vadd.f32 %v889_v54, %v680_v19 }
  0xde   : > { %843 = vst [vmem:[%s1527_s10 + $0xc8] sm:$0xff] %v1634_v22 }
  0xdf   : > { %872 = vst [vmem:[%s1527_s10 + $0x1b0] sm:$0xff] %v1690_v51  ;;  %v1023_v59 = vadd.f32 %v1022_v56, %v960_v55  ;;  %v968_v55 = vmul.f32 %v1542_v32, %v1542_v32 }
  0xe1   : > { %v1657_v29 = vpop.f32.mrf.mxu2 }
  0xe2   : > { %858 = vst [vmem:[%s1527_s10 + $0x140] sm:$0xff] %v1657_v29 }
  0xe4   : > { %v683_v24 = vpop.f32.mrf.mxu0  ;;  %v1703_v8 = vpop.f32.mrf.mxu3 }
  0xe5   : > { %828 = vst [vmem:[%s1527_s10 + $0x50] sm:$0xff] %v683_v24  ;;  %v1647_v26 = vpop.f32.mrf.mxu1  ;;  %v961_v58 = vmul.f32 %v683_v24, %v683_v24  ;;  %v891_v60 = vadd.f32 %v890_v57, %v683_v24 }
  0xe6   : > { %844 = vst [vmem:[%s1527_s10 + $0xd0] sm:$0xff] %v1647_v26 }
  0xe7   : > { %v1024_v2 = vadd.f32 %v1023_v59, %v961_v58  ;;  %873 = vst [vmem:[%s1527_s10 + $0x1b8] sm:$0xff] %v1703_v8  ;;  %v969_v58 = vmul.f32 %v1553_v43, %v1553_v43 }
  0xe9   : > { %v1670_v34 = vpop.f32.mrf.mxu2 }
  0xea   : > { %859 = vst [vmem:[%s1527_s10 + $0x148] sm:$0xff] %v1670_v34 }
  0xec   : > { %v685_v28 = vpop.f32.mrf.mxu0  ;;  %v1716_v48 = vpop.f32.mrf.mxu3 }
  0xed   : > { %829 = vst [vmem:[%s1527_s10 + $0x58] sm:$0xff] %v685_v28  ;;  %v1660_v30 = vpop.f32.mrf.mxu1  ;;  %v962_v62 = vmul.f32 %v685_v28, %v685_v28  ;;  %v892_v3 = vadd.f32 %v891_v60, %v685_v28 }
  0xee   : > { %845 = vst [vmem:[%s1527_s10 + $0xd8] sm:$0xff] %v1660_v30 }
  0xef   : > { %v1025_v11 = vadd.f32 %v1024_v2, %v962_v62  ;;  %874 = vst [vmem:[%s1527_s10 + $0x1c0] sm:$0xff] %v1716_v48 }
  0xf1   : > { %v1685_v45 = vpop.f32.mrf.mxu2 }
  0xf2   : > { %860 = vst [vmem:[%s1527_s10 + $0x150] sm:$0xff] %v1685_v45 }
  0xf4   : > { %v688_v33 = vpop.f32.mrf.mxu0 }
  0xf5   : > { %830 = vst [vmem:[%s1527_s10 + $0x60] sm:$0xff] %v688_v33  ;;  %v1673_v35 = vpop.f32.mrf.mxu1  ;;  %v963_v4 = vmul.f32 %v688_v33, %v688_v33  ;;  %v893_v15 = vadd.f32 %v892_v3, %v688_v33  ;;  %v1740_v3 = vpop.f32.mrf.mxu3 }
  0xf6   : > { %846 = vst [vmem:[%s1527_s10 + $0xe0] sm:$0xff] %v1673_v35 }
  0xf7   : > { %v1026_v24 = vadd.f32 %v1025_v11, %v963_v4  ;;  %875 = vst [vmem:[%s1527_s10 + $0x1c8] sm:$0xff] %v1740_v3  ;;  %v972_v11 = vmul.f32 %v1590_v7, %v1590_v7 }
  0xf9   : > { %v1698_v1 = vpop.f32.mrf.mxu2 }
  0xfa   : > { %861 = vst [vmem:[%s1527_s10 + $0x158] sm:$0xff] %v1698_v1 }
  0xfc   : > { %v690_v44 = vpop.f32.mrf.mxu0 }
  0xfd   : > { %831 = vst [vmem:[%s1527_s10 + $0x68] sm:$0xff] %v690_v44  ;;  %v1688_v50 = vpop.f32.mrf.mxu1  ;;  %v964_v19 = vmul.f32 %v690_v44, %v690_v44  ;;  %v894_v37 = vadd.f32 %v893_v15, %v690_v44  ;;  %v967_v44 = vmul.f32 %v1535_v21, %v1535_v21 }
  0xfe   : > { %847 = vst [vmem:[%s1527_s10 + $0xe8] sm:$0xff] %v1688_v50 }
  0xff   : > { %v1027_v38 = vadd.f32 %v1026_v24, %v964_v19  ;;  %v973_v19 = vmul.f32 %v1599_v10, %v1599_v10 }
 0x101   : > { %v1711_v41 = vpop.f32.mrf.mxu2 }
 0x102   : > { %862 = vst [vmem:[%s1527_s10 + $0x160] sm:$0xff] %v1711_v41 }
 0x104   : > { %v693_v63 = vpop.f32.mrf.mxu0 }
 0x105   : > { %832 = vst [vmem:[%s1527_s10 + $0x70] sm:$0xff] %v693_v63  ;;  %v1701_v5 = vpop.f32.mrf.mxu1  ;;  %v965_v28 = vmul.f32 %v693_v63, %v693_v63  ;;  %v895_v39 = vadd.f32 %v894_v37, %v693_v63 }
 0x106   : > { %848 = vst [vmem:[%s1527_s10 + $0xf0] sm:$0xff] %v1701_v5 }
 0x107   : > { %v1028_v42 = vadd.f32 %v1027_v38, %v965_v28  ;;  %v974_v38 = vmul.f32 %v1608_v13, %v1608_v13 }
 0x109   : > { %v1733_v62 = vpop.f32.mrf.mxu2 }
 0x10a   : > { %863 = vst [vmem:[%s1527_s10 + $0x168] sm:$0xff] %v1733_v62 }
 0x10c   : > { %v695_v40 = vpop.f32.mrf.mxu0 }
 0x10d   : > { %833 = vst [vmem:[%s1527_s10 + $0x78] sm:$0xff] %v695_v40  ;;  %v896_v46 = vadd.f32 %v895_v39, %v695_v40  ;;  %v966_v33 = vmul.f32 %v695_v40, %v695_v40  ;;  %v1714_v47 = vpop.f32.mrf.mxu1  ;;  %v1760_v40 = vpop.f32.mrf.mxu3 }
 0x10e   : > { %849 = vst [vmem:[%s1527_s10 + $0xf8] sm:$0xff] %v1714_v47 }
 0x10f   : > { %v897_v53 = vadd.f32 %v896_v46, %v1535_v21  ;;  %v1029_v54 = vadd.f32 %v1028_v42, %v966_v33  ;;  %v970_v21 = vmul.f32 %v1561_v52, %v1561_v52  ;;  %876 = vst [vmem:[%s1527_s10 + $0x1d0] sm:$0xff] %v1760_v40  ;;  %v976_v46 = vmul.f32 %v1634_v22, %v1634_v22 }
 0x111   : > { %v898_v56 = vadd.f32 %v897_v53, %v1542_v32  ;;  %v1030_v57 = vadd.f32 %v1029_v54, %v967_v44  ;;  %v971_v32 = vmul.f32 %v1578_v0, %v1578_v0  ;;  %v1753_v28 = vpop.f32.mrf.mxu2  ;;  %v977_v44 = vmul.f32 %v1647_v26, %v1647_v26 }
 0x112   : > { %864 = vst [vmem:[%s1527_s10 + $0x170] sm:$0xff] %v1753_v28 }
 0x113   : > { %v899_v59 = vadd.f32 %v898_v56, %v1553_v43  ;;  %v1031_v60 = vadd.f32 %v1030_v57, %v968_v55  ;;  %v978_v56 = vmul.f32 %v1660_v30, %v1660_v30 }
 0x115   : > { %v900_v63 = vadd.f32 %v899_v59, %v1561_v52  ;;  %v1032_v2 = vadd.f32 %v1031_v60, %v969_v58  ;;  %v1780_v58 = vpop.f32.mrf.mxu3 }
 0x116   : > { %877 = vst [vmem:[%s1527_s10 + $0x1d8] sm:$0xff] %v1780_v58 }
 0x117   : > { %v901_v43 = vadd.f32 %v900_v63, %v1578_v0  ;;  %v1033_v4 = vadd.f32 %v1032_v2, %v970_v21 }
 0x119   : > { %v902_v52 = vadd.f32 %v901_v43, %v1590_v7  ;;  %v1034_v15 = vadd.f32 %v1033_v4, %v971_v32  ;;  %v975_v7 = vmul.f32 %v1621_v17, %v1621_v17  ;;  %v1773_v55 = vpop.f32.mrf.mxu2  ;;  %v981_v32 = vmul.f32 %v1701_v5, %v1701_v5 }
 0x11a   : > { %865 = vst [vmem:[%s1527_s10 + $0x178] sm:$0xff] %v1773_v55 }
 0x11b   : > { %v1035_v24 = vadd.f32 %v1034_v15, %v972_v11  ;;  %v903_v37 = vadd.f32 %v902_v52, %v1599_v10  ;;  %v982_v11 = vmul.f32 %v1714_v47, %v1714_v47 }
 0x11d   : > { %v904_v0 = vadd.f32 %v903_v37, %v1608_v13  ;;  %v1036_v39 = vadd.f32 %v1035_v24, %v973_v19 }
 0x11f   : > { %v905_v10 = vadd.f32 %v904_v0, %v1621_v17  ;;  %v1037_v42 = vadd.f32 %v1036_v39, %v974_v38  ;;  %v986_v0 = vmul.f32 %v1596_v9, %v1596_v9 }
 0x121   : > { %v906_v13 = vadd.f32 %v905_v10, %v1634_v22  ;;  %v1038_v33 = vadd.f32 %v1037_v42, %v975_v7 }
 0x123   : > { %v907_v53 = vadd.f32 %v906_v13, %v1647_v26  ;;  %v1039_v54 = vadd.f32 %v1038_v33, %v976_v46  ;;  %v979_v26 = vmul.f32 %v1673_v35, %v1673_v35 }
 0x125   : > { %v908_v17 = vadd.f32 %v907_v53, %v1660_v30  ;;  %v1040_v57 = vadd.f32 %v1039_v54, %v977_v44  ;;  %v980_v30 = vmul.f32 %v1688_v50, %v1688_v50  ;;  %v990_v53 = vmul.f32 %v1644_v25, %v1644_v25 }
 0x127   : > { %v909_v22 = vadd.f32 %v908_v17, %v1673_v35  ;;  %v1041_v59 = vadd.f32 %v1040_v57, %v978_v56  ;;  %v1796_v35 = vpop.f32.mrf.mxu3 }
 0x128   : > { %878 = vst [vmem:[%s1527_s10 + $0x1e0] sm:$0xff] %v1796_v35 }
 0x129   : > { %v1042_v60 = vadd.f32 %v1041_v59, %v979_v26  ;;  %v910_v21 = vadd.f32 %v909_v22, %v1688_v50  ;;  %v983_v50 = vmul.f32 %v1558_v49, %v1558_v49 }
 0x12b   : > { %v1043_v63 = vadd.f32 %v1042_v60, %v980_v30  ;;  %v911_v2 = vadd.f32 %v910_v21, %v1701_v5  ;;  %v984_v5 = vmul.f32 %v1573_v61, %v1573_v61  ;;  %v994_v30 = vmul.f32 %v1698_v1, %v1698_v1 }
 0x12d   : > { %v1044_v43 = vadd.f32 %v1043_v63, %v981_v32  ;;  %v912_v4 = vadd.f32 %v911_v2, %v1714_v47  ;;  %v985_v47 = vmul.f32 %v1587_v6, %v1587_v6 }
 0x12f   : > { %v913_v52 = vadd.f32 %v912_v4, %v1558_v49  ;;  %v1045_v15 = vadd.f32 %v1044_v43, %v982_v11  ;;  %v1812_v49 = vpop.f32.mrf.mxu3 }
 0x130   : > { %879 = vst [vmem:[%s1527_s10 + $0x1e8] sm:$0xff] %v1812_v49 }
 0x131   : > { %v914_v19 = vadd.f32 %v913_v52, %v1573_v61  ;;  %v1046_v24 = vadd.f32 %v1045_v15, %v983_v50  ;;  %v987_v61 = vmul.f32 %v1605_v12, %v1605_v12 }
 0x133   : > { %v915_v37 = vadd.f32 %v914_v19, %v1587_v6  ;;  %v1047_v38 = vadd.f32 %v1046_v24, %v984_v5  ;;  %v988_v6 = vmul.f32 %v1618_v16, %v1618_v16  ;;  %v998_v5 = vmul.f32 %v1773_v55, %v1773_v55 }
 0x135   : > { %v916_v39 = vadd.f32 %v915_v37, %v1596_v9  ;;  %v1048_v7 = vadd.f32 %v1047_v38, %v985_v47  ;;  %v989_v9 = vmul.f32 %v1631_v20, %v1631_v20 }
 0x137   : > { %v917_v10 = vadd.f32 %v916_v39, %v1605_v12  ;;  %v1049_v42 = vadd.f32 %v1048_v7, %v986_v0  ;;  %v1828_v12 = vpop.f32.mrf.mxu3 }
 0x138   : > { %880 = vst [vmem:[%s1527_s10 + $0x1f0] sm:$0xff] %v1828_v12 }
 0x139   : > { %v918_v46 = vadd.f32 %v917_v10, %v1618_v16  ;;  %v1050_v13 = vadd.f32 %v1049_v42, %v987_v61  ;;  %v991_v16 = vmul.f32 %v1657_v29, %v1657_v29 }
 0x13b   : > { %v1051_v33 = vadd.f32 %v1050_v13, %v988_v6  ;;  %v919_v44 = vadd.f32 %v918_v46, %v1631_v20  ;;  %v992_v20 = vmul.f32 %v1670_v34, %v1670_v34 }
 0x13d   : > { %v920_v54 = vadd.f32 %v919_v44, %v1644_v25  ;;  %v1052_v56 = vadd.f32 %v1051_v33, %v989_v9  ;;  %v993_v25 = vmul.f32 %v1685_v45, %v1685_v45 }
 0x13f   : > { %v921_v17 = vadd.f32 %v920_v54, %v1657_v29  ;;  %v1053_v57 = vadd.f32 %v1052_v56, %v990_v53  ;;  %v815_v29 = vpop.f32.mrf.mxu3 }
 0x140   : > { %881 = vst [vmem:[%s1527_s10 + $0x1f8] sm:$0xff] %v815_v29 }
 0x141   : > { %v922_v22 = vadd.f32 %v921_v17, %v1670_v34  ;;  %v1054_v26 = vadd.f32 %v1053_v57, %v991_v16  ;;  %v995_v34 = vmul.f32 %v1711_v41, %v1711_v41  ;;  %v1010_v57 = vmul.f32 %v1780_v58, %v1780_v58 }
 0x143   : > { %v923_v59 = vadd.f32 %v922_v22, %v1685_v45  ;;  %v1055_v60 = vadd.f32 %v1054_v26, %v992_v20  ;;  %v996_v45 = vmul.f32 %v1733_v62, %v1733_v62 }
 0x145   : > { %v924_v21 = vadd.f32 %v923_v59, %v1698_v1  ;;  %v1056_v63 = vadd.f32 %v1055_v60, %v993_v25  ;;  %v997_v1 = vmul.f32 %v1753_v28, %v1753_v28 }
 0x147   : > { %v1057_v2 = vadd.f32 %v1056_v63, %v994_v30  ;;  %v925_v32 = vadd.f32 %v924_v21, %v1711_v41  ;;  %v999_v41 = vmul.f32 %v1610_v14, %v1610_v14  ;;  %v1014_v63 = vmul.f32 %v815_v29, %v815_v29 }
 0x149   : > { %v1058_v43 = vadd.f32 %v1057_v2, %v995_v34  ;;  %v926_v4 = vadd.f32 %v925_v32, %v1733_v62  ;;  %v1000_v62 = vmul.f32 %v1623_v18, %v1623_v18 }
 0x14b   : > { %v1059_v11 = vadd.f32 %v1058_v43, %v996_v45  ;;  %v927_v50 = vadd.f32 %v926_v4, %v1753_v28  ;;  %v1001_v28 = vmul.f32 %v1636_v23, %v1636_v23 }
 0x14d   : > { %v1060_v52 = vadd.f32 %v1059_v11, %v997_v1  ;;  %v928_v15 = vadd.f32 %v927_v50, %v1773_v55  ;;  %v1002_v55 = vmul.f32 %v1649_v27, %v1649_v27 }
 0x14f   : > { %v929_v19 = vadd.f32 %v928_v15, %v1610_v14  ;;  %v1061_v24 = vadd.f32 %v1060_v52, %v998_v5  ;;  %v1003_v14 = vmul.f32 %v1662_v31, %v1662_v31 }
 0x151   : > { %v930_v47 = vadd.f32 %v929_v19, %v1623_v18  ;;  %v1062_v37 = vadd.f32 %v1061_v24, %v999_v41  ;;  %v1004_v18 = vmul.f32 %v1675_v36, %v1675_v36 }
 0x153   : > { %v931_v38 = vadd.f32 %v930_v47, %v1636_v23  ;;  %v1063_v0 = vadd.f32 %v1062_v37, %v1000_v62  ;;  %v1005_v23 = vmul.f32 %v1690_v51, %v1690_v51 }
 0x155   : > { %v932_v39 = vadd.f32 %v931_v38, %v1649_v27  ;;  %v1064_v7 = vadd.f32 %v1063_v0, %v1001_v28  ;;  %v1006_v27 = vmul.f32 %v1703_v8, %v1703_v8 }
 0x157   : > { %v933_v61 = vadd.f32 %v932_v39, %v1662_v31  ;;  %v1065_v10 = vadd.f32 %v1064_v7, %v1002_v55  ;;  %v1007_v31 = vmul.f32 %v1716_v48, %v1716_v48 }
 0x159   : > { %v934_v42 = vadd.f32 %v933_v61, %v1675_v36  ;;  %v1066_v6 = vadd.f32 %v1065_v10, %v1003_v14  ;;  %v1008_v36 = vmul.f32 %v1740_v3, %v1740_v3 }
 0x15b   : > { %v1067_v46 = vadd.f32 %v1066_v6, %v1004_v18  ;;  %v935_v13 = vadd.f32 %v934_v42, %v1690_v51  ;;  %v1009_v51 = vmul.f32 %v1760_v40, %v1760_v40 }
 0x15d   : > { %v936_v9 = vadd.f32 %v935_v13, %v1703_v8  ;;  %v1068_v33 = vadd.f32 %v1067_v46, %v1005_v23 }
 0x15f   : > { %v937_v44 = vadd.f32 %v936_v9, %v1716_v48  ;;  %v1069_v53 = vadd.f32 %v1068_v33, %v1006_v27 }
 0x161   : > { %v938_v54 = vadd.f32 %v937_v44, %v1740_v3  ;;  %v1070_v56 = vadd.f32 %v1069_v53, %v1007_v31  ;;  %v1011_v3 = vmul.f32 %v1796_v35, %v1796_v35 }
 0x163   : > { %v939_v16 = vadd.f32 %v938_v54, %v1760_v40  ;;  %v1071_v17 = vadd.f32 %v1070_v56, %v1008_v36  ;;  %v1012_v40 = vmul.f32 %v1812_v49, %v1812_v49 }
 0x165   : > { %v940_v8 = vadd.f32 %v939_v16, %v1780_v58  ;;  %v1072_v48 = vadd.f32 %v1071_v17, %v1009_v51  ;;  %v1013_v58 = vmul.f32 %v1828_v12, %v1828_v12 }
 0x167   : > { %v1073_v20 = vadd.f32 %v1072_v48, %v1010_v57  ;;  %v941_v22 = vadd.f32 %v940_v8, %v1796_v35 }
 0x169   : > { %v1074_v26 = vadd.f32 %v1073_v20, %v1011_v3  ;;  %v942_v25 = vadd.f32 %v941_v22, %v1812_v49 }
 0x16b   : > { %v1075_v59 = vadd.f32 %v1074_v26, %v1012_v40  ;;  %v943_v60 = vadd.f32 %v942_v25, %v1828_v12 }
 0x16d   : > { %v1076_v21 = vadd.f32 %v1075_v59, %v1013_v58  ;;  %v944_v30 = vadd.f32 %v943_v60, %v815_v29 }
 0x16f   : > { %v945_v2 = vrot.slane %v944_v30, 4  ;;  %v1077_v32 = vadd.f32 %v1076_v21, %v1014_v63 }
 0x171   : > { %v946_v35 = vadd.f32 %v945_v2, %v944_v30  ;;  %v1078_v34 = vrot.slane %v1077_v32, 4 }
 0x173   : > { %v947_v43 = vrot.slane %v946_v35, 2  ;;  %v1079_v4 = vadd.f32 %v1078_v34, %v1077_v32 }
 0x175   : > { %v948_v45 = vadd.f32 %v947_v43, %v946_v35  ;;  %v1080_v11 = vrot.slane %v1079_v4, 2 }
 0x177   : > { %v949_v49 = vrot.slane %v948_v45, 1  ;;  %v1081_v50 = vadd.f32 %v1080_v11, %v1079_v4 }
 0x179   : > { %v1082_v1 = vrot.slane %v1081_v50, 1  ;;  %v950_v12 = vadd.f32 %v949_v49, %v948_v45 }
 0x17b   : > { %v1083_v29 = vadd.f32 %v1082_v1, %v1081_v50 }
 0x17d   : > { %v1085_v52 = vsel %vm1084_vm1, %v950_v12, %v1083_v29 }
 0x17e   : > { %1086 = vst [vmem:[%s238_s14] sm:$0x3] %v1085_v52 }
 0x17f PF: > { %s16_s18 = sadd.s32 1, %s1250_s18  }
 0x180   : > { %p13_p5 = scmp.ge.s32.totalorder %s16_s18, 4  }
 0x182   :  { %15 = sbr.rel (!%p13_p5) target bundleno = 1 (0x1), region = 78 }

// kernel: bottleneck_forward.5
= control target key start
LH: loop header
LB: loop body
LE: loop exit
PB: predicated region body
PF: predicated region fallthrough
CT: control target
= control target key end

     0   :  { %s5524_s18 = smov 0   ;;  %s7702_s0 = inlined_call_operand.vmem [shape: f32[4,16,16,32], index: 0, kind: input, shape index: {}]   ;;  %s7703_s1 = inlined_call_operand.vmem [shape: f32[1,32], index: 1, kind: input, shape index: {}]   ;;  %s7704_s2 = inlined_call_operand.vmem [shape: f32[1,32], index: 2, kind: input, shape index: {}]   ;;  %s7705_s3 = inlined_call_operand.vmem [shape: bf16[288,32], index: 3, kind: input, shape index: {}]   ;;  %s7706_s4 = inlined_call_operand.vmem [shape: f32[4,16,16,32], index: 4, kind: output, shape index: {0}]   ;;  %s7707_s5 = inlined_call_operand.vmem [shape: f32[4,2,32], index: 5, kind: output, shape index: {1}]  }
   0x1 LB: > { %s5038_s19 = sadd.s32 4294967295, %s5488_s18   ;;  %p5042_p0 = scmp.ge.s32.totalorder %s5488_s18, 1  ;;  %s5488_s18 = sphi %s5524_s18, %s16_s18  }
   0x2   : > { %p190_p1 = scmp.lt.s32.totalorder %s5488_s18, 5 }
   0x4   : > { %p191_p2 = pnand %p5042_p0, %p190_p1 }
   0x5   : > { %p222_p3 = scmp.lt.s32.totalorder (!%p191_p2), %s5038_s19, 3  ;;  %s5491_s28 = smov (!%p191_p2), 32  }
   0x6   : > { %194 = sbr.rel (%p191_p2) target bundleno = 906 (0x38a), region = 36  ;;  %s5492_s8 = smov (!%p191_p2), 64  }
   0x7   : > { %s5493_s9 = smov (!%p191_p2), 96  }
   0xb   : > { %vm373_vm0 = vcmask 257024   ;;  %vm376_vm1 = vcmask 253952   ;;  %vm383_vm2 = vsmask.f32 256  ;;  %v5490_v0 = vmov 0   ;;  %s7721_s19 = smov (!%p222_p3, %s5038_s19), 3 }
   0xc   : > { %375 = vst.msk [vmem:[#allocation2 + $0x4] sm:$0xf] %vm373_vm0, %v5490_v0  ;;  %vm5536_vm3 = vmand %vm376_vm1, %vm383_vm2  ;;  %vm439_vm4 = vsmask.f32 7938  ;;  %v5548_v2 = vld [vmem:[%s7703_s1] ss:$0 sm:$0xff] }
   0xd   : > { %377 = vst.msk [vmem:[#allocation2 + $0x8] sm:$0x1] %vm376_vm1, %v5490_v0  ;;  %v394_v3 = vld [vmem:[#allocation2 + $0x24] sm:$0x1]  ;;  %s5378_s22 = sshll.u32 %s7721_s19, 8  ;;  %vm5561_vm5 = vmand %vm376_vm1, %vm439_vm4  ;;  %vm1688_vm12 = vcmask 1042432  }
   0xe   : > { %374 = vst.msk [vmem:[#allocation2] sm:$0xf] %vm373_vm0, %v5490_v0  ;;  %v5555_v4 = vld [vmem:[%s7704_s2] ss:$0 sm:$0xff]  ;;  %v395_v5 = vsel %vm5536_vm3, 0, %v394_v3  ;;  %s5570_s27 = scalar_lea.vmem %s7702_s0, %s5378_s22  ;;  %vm5609_vm9 = vmand %vm373_vm0, %vm439_vm4  ;;  %vm1689_vm13 = vcmask 1046532   ;;  %s7116_s15 = scalar_lea.vmem %s7706_s4, %s5378_s22 }
   0xf   : > { %379 = vst.msk [vmem:[#allocation2 + $0xcc] sm:$0xf] %vm373_vm0, %v5490_v0  ;;  %v388_v7 = vld [vmem:[#allocation2 + $0xc] sm:$0x1]  ;;  %v453_v8 = vld [vmem:[#allocation2 + $0x38] sm:$0x1]  ;;  %vm6088_vm14 = vmor %vm1688_vm12, %vm1689_vm13 }
  0x10   : > { %380 = vst.msk [vmem:[#allocation2 + $0xd0] sm:$0xf] %vm373_vm0, %v5490_v0  ;;  %v241_v10 = vld [vmem:[%s5570_s27 + $0x20] sm:$0xff]  ;;  %v242_v11 = vld [vmem:[%s5570_s27 + $0x28] sm:$0xff]  ;;  %v389_v12 = vsel %vm5536_vm3, 0, %v388_v7  ;;  %v454_v13 = vsel %vm5561_vm5, 0, %v453_v8 }
  0x11   : > { %381 = vst.msk [vmem:[#allocation2 + $0xd4] sm:$0x1] %vm376_vm1, %v5490_v0  ;;  %vm1076_vm6 = vsmask.f32 3328  ;;  %vm1077_vm7 = vsmask.f32 7440  ;;  %v277_v17 = vmul.f32 %v5548_v2, %v241_v10  ;;  %v278_v18 = vmul.f32 %v5548_v2, %v242_v11 }
  0x12   : > { %396 = vst [vmem:[#allocation2 + $0x24] sm:$0x1] %v395_v5  ;;  %v237_v19 = vld [vmem:[%s5570_s27] sm:$0xff]  ;;  %v238_v20 = vld [vmem:[%s5570_s27 + $0x8] sm:$0xff]  ;;  %vm527_vm8 = vsmask.f32 4368  ;;  %vm5615_vm10 = vmor %vm1076_vm6, %vm1077_vm7 }
  0x13   : > { %v1029_v9 = vld [vmem:[#allocation2 + $0x4] sm:$0xf]  ;;  %v273_v23 = vmul.f32 %v5548_v2, %v237_v19  ;;  %v274_v24 = vmul.f32 %v5548_v2, %v238_v20  ;;  %390 = vst [vmem:[#allocation2 + $0xc] sm:$0x1] %v389_v12  ;;  %v243_v25 = vld [vmem:[%s5570_s27 + $0x30] sm:$0xff]  ;;  %v313_v29 = vadd.f32 %v5555_v4, %v277_v17  ;;  %v244_v30 = vld [vmem:[%s5570_s27 + $0x38] sm:$0xff]  ;;  %v314_v31 = vadd.f32 %v5555_v4, %v278_v18 }
  0x14   : > { %v441_v14 = vld [vmem:[#allocation2 + $0x8] sm:$0x1]  ;;  %v1089_v15 = vshll.u32 %v1029_v9, 16  ;;  %v1093_v16 = vshrl.u32 %v1029_v9, 16  ;;  %v279_v34 = vmul.f32 %v5548_v2, %v243_v25  ;;  %v444_v35 = vld [vmem:[#allocation2 + $0x14] sm:$0x1]  ;;  %v280_v39 = vmul.f32 %v5548_v2, %v244_v30  ;;  %vm5623_vm11 = vmor %vm383_vm2, %vm527_vm8 }
  0x15   : > { %v442_v21 = vsel %vm5561_vm5, 0, %v441_v14  ;;  %v385_v22 = vld [vmem:[#allocation2] sm:$0x1]  ;;  %v309_v32 = vadd.f32 %v5555_v4, %v273_v23  ;;  %v310_v33 = vadd.f32 %v5555_v4, %v274_v24  ;;  %v247_v36 = vld [vmem:[%s5570_s27 + $0x50] sm:$0xff]  ;;  %v345_v38 = vmax.f32 %v313_v29, 0.0  ;;  %v248_v45 = vld [vmem:[%s5570_s27 + $0x58] sm:$0xff] }
  0x16   : > { %443 = vst [vmem:[#allocation2 + $0x8] sm:$0x1] %v442_v21  ;;  %v5587_v26 = vrot.slane %v1089_v15, 5  ;;  %v1095_v27 = vrot.slane %v1093_v16, 4  ;;  %v386_v28 = vsel %vm5536_vm3, 0, %v385_v22  ;;  %v445_v40 = vsel %vm5561_vm5, 0, %v444_v35 }
  0x17   : > { %387 = vst [vmem:[#allocation2] sm:$0x1] %v386_v28  ;;  %v346_v41 = vmax.f32 %v314_v31, 0.0  ;;  %v341_v42 = vmax.f32 %v309_v32, 0.0  ;;  %v342_v43 = vmax.f32 %v310_v33, 0.0  ;;  %v315_v44 = vadd.f32 %v5555_v4, %v279_v34  ;;  %s5047_s22 = sshll.u32 %s7721_s19, 1 }
  0x18   : > { %v1096_v37 = vor.u32 %v1095_v27, %v5587_v26  ;;  %455 = vst [vmem:[#allocation2 + $0x38] sm:$0x1] %v454_v13  ;;  %v499_v47 = vpack.c.bf16 %v345_v38, %v345_v38  ;;  %v316_v48 = vadd.f32 %v5555_v4, %v280_v39  ;;  %v283_v49 = vmul.f32 %v5548_v2, %v247_v36  ;;  %v403_v31 = vld [vmem:[#allocation2 + $0x48] sm:$0x1] }
  0x19   : > { %446 = vst [vmem:[#allocation2 + $0x14] sm:$0x1] %v445_v40  ;;  %v500_v50 = vpack.c.bf16 %v346_v41, %v346_v41  ;;  %v495_v51 = vpack.c.bf16 %v341_v42, %v341_v42  ;;  %v496_v52 = vpack.c.bf16 %v342_v43, %v342_v43  ;;  %v347_v53 = vmax.f32 %v315_v44, 0.0  ;;  %v866_v13 = vld [vmem:[#allocation2 + $0x24] sm:$0xf]  ;;  %v239_v40 = vld [vmem:[%s5570_s27 + $0x10] sm:$0xff] }
  0x1a   : > { %v1097_v46 = vrot.slane %v1096_v37, 4  ;;  %v564_v54 = vshrl.u32 %v499_v47, 16  ;;  %v567_v55 = vshll.u32 %v499_v47, 16  ;;  %v348_v56 = vmax.f32 %v316_v48, 0.0  ;;  %v852_v20 = vld [vmem:[#allocation2 + $0xc] sm:$0xf] }
  0x1b   : > { %v284_v57 = vmul.f32 %v5548_v2, %v248_v45  ;;  %v572_v59 = vshrl.u32 %v500_v50, 16  ;;  %v575_v60 = vshll.u32 %v500_v50, 16  ;;  %v530_v61 = vshrl.u32 %v495_v51, 16  ;;  %v240_v41 = vld [vmem:[%s5570_s27 + $0x18] sm:$0xff]  ;;  %v450_v47 = vld [vmem:[#allocation2 + $0x2c] sm:$0x1] }
  0x1c   : > { %v533_v62 = vshll.u32 %v495_v51, 16  ;;  %v566_v5 = vrot.slane %v564_v54, 7  ;;  %v538_v7 = vshrl.u32 %v496_v52, 16  ;;  %v541_v8 = vshll.u32 %v496_v52, 16  ;;  %v391_v42 = vld [vmem:[#allocation2 + $0x18] sm:$0x1] }
  0x1d   : > { %v1030_v58 = vld [vmem:[#allocation2 + $0x8] sm:$0x1]  ;;  %v5619_v12 = vrot.slane %v572_v59, 7  ;;  %v532_v14 = vrot.slane %v530_v61, 7  ;;  %v5640_v37 = vpack.c.bf16 %v347_v53, %v347_v53  ;;  %v502_v38 = vpack.c.bf16 %v348_v56, %v348_v56 }
  0x1e   : > { %v1099_v0 = vshll.u32 %v1030_v58, 16  ;;  %v1028_v3 = vld [vmem:[#allocation2] sm:$0xf]  ;;  %v569_v17 = vor.u32 %v567_v55, %v566_v5  ;;  %v570_v18 = vrot.slane %v566_v5, 4  ;;  %v540_v19 = vrot.slane %v538_v7, 7 }
  0x1f   : > { %v1080_v10 = vshrl.u32 %v1028_v3, 16  ;;  %v1083_v11 = vshll.u32 %v1028_v3, 16  ;;  %v577_v23 = vor.u32 %v575_v60, %v5619_v12  ;;  %v535_v24 = vor.u32 %v533_v62, %v532_v14  ;;  %v877_v60 = vld [vmem:[#allocation2 + $0x38] sm:$0x1] }
  0x20   : > { %v1101_v15 = vrot.slane %v1099_v0, 5  ;;  %v867_v27 = vsel %vm5609_vm9, %v569_v17, %v866_v13  ;;  %v536_v28 = vrot.slane %v532_v14, 4  ;;  %v543_v29 = vor.u32 %v541_v8, %v540_v19  ;;  %v856_v30 = vld [vmem:[#allocation2 + $0x14] sm:$0x1] }
  0x21   : > { %v1082_v21 = vrot.slane %v1080_v10, 4  ;;  %v1085_v22 = vrot.slane %v1083_v11, 5  ;;  %v578_v33 = vsel %vm5623_vm11, %v570_v18, %v577_v23  ;;  %868 = vst [vmem:[#allocation2 + $0x24] sm:$0xf] %v867_v27  ;;  %v853_v34 = vsel %vm5609_vm9, %v535_v24, %v852_v20  ;;  %v249_v11 = vld [vmem:[%s5570_s27 + $0x60] sm:$0xff] }
  0x22   : > { %v1102_v25 = vsel %vm5615_vm10, %v1097_v46, %v1101_v15  ;;  %v545_v35 = vrot.slane %v540_v19, 4  ;;  %869 = vst.msk [vmem:[#allocation2 + $0x28] sm:$0xf] %vm373_vm0, %v578_v33  ;;  %v544_v36 = vsel %vm5623_vm11, %v536_v28, %v543_v29  ;;  %v319_v39 = vadd.f32 %v5555_v4, %v283_v49 }
  0x23   : > { %1465 = vrot.lane.b32.xlu0 %v1102_v25, %s5491_s28  ;;  %v1086_v32 = vor.u32 %v1085_v22, %v1082_v21  ;;  %854 = vst [vmem:[#allocation2 + $0xc] sm:$0xf] %v853_v34  ;;  %v320_v45 = vadd.f32 %v5555_v4, %v284_v57  ;;  %v404_v46 = vsel %vm5536_vm3, 0, %v403_v31  ;;  %v581_v48 = vshrl.u32 %v5640_v37, 16 }
  0x24   : > { %v857_v44 = vsel %vm5536_vm3, %v545_v35, %v856_v30  ;;  %855 = vst.msk [vmem:[#allocation2 + $0x10] sm:$0xf] %vm373_vm0, %v544_v36  ;;  %v589_v50 = vshrl.u32 %v502_v38, 16  ;;  %v592_v49 = vshll.u32 %v502_v38, 16  ;;  %v351_v51 = vmax.f32 %v319_v39, 0.0 }
  0x25   : > { %v1087_v43 = vrot.slane %v1086_v32, 4  ;;  %858 = vst [vmem:[#allocation2 + $0x14] sm:$0x1] %v857_v44  ;;  %v352_v53 = vmax.f32 %v320_v45, 0.0  ;;  %v275_v54 = vmul.f32 %v5548_v2, %v239_v40  ;;  %v276_v55 = vmul.f32 %v5548_v2, %v240_v41 }
  0x26   : > { %v5657_v56 = vrot.slane %v581_v48, 7  ;;  %v591_v57 = vrot.slane %v589_v50, 7  ;;  %405 = vst [vmem:[#allocation2 + $0x48] sm:$0x1] %v404_v46  ;;  %v505_v58 = vpack.c.bf16 %v351_v51, %v351_v51  ;;  %v392_v59 = vsel %vm5536_vm3, 0, %v391_v42 }
  0x27   : > { %v1092_v52 = vsel %vm5615_vm10, %v1087_v43, %v5587_v26  ;;  %v506_v61 = vpack.c.bf16 %v352_v53, %v352_v53  ;;  %v5662_v62 = vadd.f32 %v5555_v4, %v275_v54  ;;  %v5665_v26 = vadd.f32 %v5555_v4, %v276_v55  ;;  %393 = vst [vmem:[#allocation2 + $0x18] sm:$0x1] %v392_v59  ;;  %v250_v53 = vld [vmem:[%s5570_s27 + $0x68] sm:$0xff] }
  0x28   : > { %v451_v0 = vsel %vm5561_vm5, 0, %v450_v47  ;;  %v1037_v3 = vld [vmem:[#allocation2 + $0x24] sm:$0xf]  ;;  %v587_v5 = vrot.slane %v5657_v56, 4  ;;  %v594_v7 = vor.u32 %v592_v49, %v591_v57  ;;  %v596_v8 = vrot.slane %v591_v57, 4 }
  0x29   : > { %v615_v10 = vshrl.u32 %v505_v58, 16  ;;  %v1038_v13 = vld [vmem:[#allocation2 + $0x28] sm:$0xf]  ;;  %v1152_v14 = vshrl.u32 %v1037_v3, 16  ;;  %v1155_v15 = vshll.u32 %v1037_v3, 16  ;;  %v618_v17 = vshll.u32 %v505_v58, 16 }
  0x2a   : > { %v623_v18 = vshrl.u32 %v506_v61, 16  ;;  %v1161_v19 = vshll.u32 %v1038_v13, 16  ;;  %v1165_v20 = vshrl.u32 %v1038_v13, 16  ;;  %v1031_v21 = vld [vmem:[#allocation2 + $0xc] sm:$0xf]  ;;  %v595_v22 = vsel %vm5623_vm11, %v587_v5, %v594_v7 }
  0x2b   : > { %1463 = vrot.lane.b32.xlu0 %v1092_v52, %s5491_s28  ;;  %v878_v23 = vsel %vm5536_vm3, %v596_v8, %v877_v60  ;;  %452 = vst [vmem:[#allocation2 + $0x2c] sm:$0x1] %v451_v0  ;;  %v1154_v24 = vrot.slane %v1152_v14, 4  ;;  %v1157_v25 = vrot.slane %v1155_v15, 5  ;;  %v1032_v27 = vld [vmem:[#allocation2 + $0x10] sm:$0xf]  ;;  %v285_v39 = vmul.f32 %v5548_v2, %v249_v11 }
  0x2c   : > { %v1104_v28 = vshrl.u32 %v1031_v21, 16  ;;  %v1107_v29 = vshll.u32 %v1031_v21, 16  ;;  %v5676_v30 = vrot.slane %v1161_v19, 5  ;;  %v1113_v31 = vshll.u32 %v1032_v27, 16  ;;  %876 = vst.msk [vmem:[#allocation2 + $0x34] sm:$0xf] %vm373_vm0, %v595_v22 }
  0x2d   : > { %v1117_v32 = vshrl.u32 %v1032_v27, 16  ;;  %v617_v33 = vrot.slane %v615_v10, 7  ;;  %v1158_v34 = vor.u32 %v1157_v25, %v1154_v24  ;;  %879 = vst [vmem:[#allocation2 + $0x38] sm:$0x1] %v878_v23  ;;  %v1033_v38 = vld [vmem:[#allocation2 + $0x14] sm:$0x1]  ;;  %v286_v11 = vmul.f32 %v5548_v2, %v250_v53 }
  0x2e   : > { %v1106_v35 = vrot.slane %v1104_v28, 4  ;;  %v1109_v36 = vrot.slane %v1107_v29, 5  ;;  %v1115_v40 = vrot.slane %v1113_v31, 5  ;;  %v1123_v42 = vshll.u32 %v1033_v38, 16  ;;  %v887_v44 = vld [vmem:[#allocation2 + $0x48] sm:$0xf] }
  0x2f   : > { %v1119_v41 = vrot.slane %v1117_v32, 4  ;;  %v620_v43 = vor.u32 %v618_v17, %v617_v33  ;;  %v1159_v45 = vrot.slane %v1158_v34, 4  ;;  %v621_v47 = vrot.slane %v617_v33, 4  ;;  %v462_v15 = vld [vmem:[#allocation2 + $0x5c] sm:$0x1] }
  0x30   : > { %v1110_v46 = vor.u32 %v1109_v36, %v1106_v35  ;;  %v5680_v48 = vrot.slane %v623_v18, 7  ;;  %v5682_v49 = vrot.slane %v1123_v42, 5  ;;  %v626_v51 = vshll.u32 %v506_v61, 16  ;;  %v447_v31 = vld [vmem:[#allocation2 + $0x20] sm:$0x1] }
  0x31   : > { %v1120_v50 = vor.u32 %v1119_v41, %v1115_v40  ;;  %v888_v52 = vsel %vm5609_vm9, %v620_v43, %v887_v44  ;;  %v1164_v54 = vsel %vm5615_vm10, %v1159_v45, %v5676_v30  ;;  %v343_v57 = vmax.f32 %v5662_v62, 0.0  ;;  %v859_v34 = vld [vmem:[#allocation2 + $0x18] sm:$0xf] }
  0x32   : > { %v1111_v55 = vrot.slane %v1110_v46, 4  ;;  %889 = vst [vmem:[#allocation2 + $0x48] sm:$0xf] %v888_v52  ;;  %v344_v58 = vmax.f32 %v5665_v26, 0.0  ;;  %v628_v60 = vor.u32 %v626_v51, %v5680_v48  ;;  %v579_v61 = vrot.slane %v5619_v12, 4  ;;  %v245_v51 = vld [vmem:[%s5570_s27 + $0x40] sm:$0xff] }
  0x33   : > { %1475 = vrot.lane.b32.xlu0 %v1164_v54, %s5491_s28  ;;  %v1121_v59 = vrot.slane %v1120_v50, 4  ;;  %v1167_v0 = vrot.slane %v1165_v20, 4  ;;  %v1041_v5 = vld [vmem:[#allocation2 + $0x34] sm:$0xf]  ;;  %v497_v7 = vpack.c.bf16 %v343_v57, %v343_v57  ;;  %v870_v10 = vld [vmem:[#allocation2 + $0x2c] sm:$0x1]  ;;  %v321_v35 = vadd.f32 %v5555_v4, %v285_v39 }
  0x34   : > { %v1116_v3 = vsel %vm5615_vm10, %v1111_v55, %v1115_v40  ;;  %v498_v8 = vpack.c.bf16 %v344_v58, %v344_v58  ;;  %v1042_v62 = vld [vmem:[#allocation2 + $0x38] sm:$0x1]  ;;  %v1185_v26 = vshll.u32 %v1041_v5, 16  ;;  %v1189_v13 = vshrl.u32 %v1041_v5, 16  ;;  %v246_v52 = vld [vmem:[%s5570_s27 + $0x48] sm:$0xff] }
  0x35   : > { %1467 = vrot.lane.b32.xlu1 %v1116_v3, %s5491_s28  ;;  %v1126_v14 = vsel %vm5615_vm10, %v1121_v59, %v5682_v49  ;;  %v629_v12 = vsel %vm5623_vm11, %v621_v47, %v628_v60  ;;  %v1195_v17 = vshll.u32 %v1042_v62, 16  ;;  %v547_v18 = vshrl.u32 %v497_v7, 16  ;;  %v400_v3 = vld [vmem:[#allocation2 + $0x3c] sm:$0x1] }
  0x36   : > { %890 = vst.msk [vmem:[#allocation2 + $0x4c] sm:$0xf] %vm373_vm0, %v629_v12  ;;  %v550_v19 = vshll.u32 %v497_v7, 16  ;;  %v555_v20 = vshrl.u32 %v498_v8, 16  ;;  %v5705_v21 = vrot.slane %v1185_v26, 5  ;;  %v1191_v22 = vrot.slane %v1189_v13, 4 }
  0x37   : > { %v558_v23 = vshll.u32 %v498_v8, 16  ;;  %v871_v24 = vsel %vm5536_vm3, %v579_v61, %v870_v10  ;;  %v1197_v25 = vrot.slane %v1195_v17, 5  ;;  %v549_v27 = vrot.slane %v547_v18, 7  ;;  %v253_v12 = vld [vmem:[%s5570_s27 + $0x80] sm:$0xff] }
  0x38   : > { %v5709_v28 = vrot.slane %v555_v20, 7  ;;  %872 = vst [vmem:[#allocation2 + $0x2c] sm:$0x1] %v871_v24  ;;  %v1168_v29 = vor.u32 %v1167_v0, %v5676_v30  ;;  %v1192_v32 = vor.u32 %v1191_v22, %v5705_v21  ;;  %v322_v36 = vadd.f32 %v5555_v4, %v286_v11  ;;  %v254_v20 = vld [vmem:[%s5570_s27 + $0x88] sm:$0xff] }
  0x39   : > { %v1046_v33 = vld [vmem:[#allocation2 + $0x48] sm:$0xf]  ;;  %v463_v38 = vsel %vm5561_vm5, 0, %v462_v15  ;;  %v552_v42 = vor.u32 %v550_v19, %v549_v27  ;;  %v553_v43 = vrot.slane %v549_v27, 4  ;;  %v353_v46 = vmax.f32 %v321_v35, 0.0 }
  0x3a   : > { %v1224_v40 = vshrl.u32 %v1046_v33, 16  ;;  %v1227_v41 = vshll.u32 %v1046_v33, 16  ;;  %464 = vst [vmem:[#allocation2 + $0x5c] sm:$0x1] %v463_v38  ;;  %v1193_v30 = vrot.slane %v1192_v32, 4  ;;  %v560_v44 = vor.u32 %v558_v23, %v5709_v28 }
  0x3b   : > { %v1169_v45 = vrot.slane %v1168_v29, 4  ;;  %v860_v39 = vsel %vm5609_vm9, %v552_v42, %v859_v34  ;;  %v354_v49 = vmax.f32 %v322_v36, 0.0  ;;  %v5729_v57 = vpack.c.bf16 %v353_v46, %v353_v46 }
  0x3c   : > { %v1226_v47 = vrot.slane %v1224_v40, 4  ;;  %v1229_v50 = vrot.slane %v1227_v41, 5  ;;  %v1198_v53 = vsel %vm5615_vm10, %v1193_v30, %v1197_v25  ;;  %v561_v55 = vsel %vm5623_vm11, %v553_v43, %v560_v44  ;;  %861 = vst [vmem:[#allocation2 + $0x18] sm:$0xf] %v860_v39  ;;  %v412_v39 = vld [vmem:[#allocation2 + $0x6c] sm:$0x1] }
  0x3d   : > { %1469 = vrot.lane.b32.xlu1 %v1126_v14, %s5491_s28  ;;  %v5725_v54 = vld [vmem:[#allocation2 + $0x4c] sm:$0xf]  ;;  %v448_v58 = vsel %vm5561_vm5, 0, %v447_v31  ;;  %1481 = vrot.lane.b32.xlu0 %v1198_v53, %s5491_s28  ;;  %862 = vst.msk [vmem:[#allocation2 + $0x1c] sm:$0xf] %vm373_vm0, %v561_v55  ;;  %v508_v0 = vpack.c.bf16 %v354_v49, %v354_v49  ;;  %v632_v7 = vshrl.u32 %v5729_v57, 16  ;;  %v281_v10 = vmul.f32 %v5548_v2, %v245_v51 }
  0x3e   : > { %v1230_v59 = vor.u32 %v1229_v50, %v1226_v47  ;;  %v1233_v60 = vshll.u32 %v5725_v54, 16  ;;  %v1237_v61 = vshrl.u32 %v5725_v54, 16  ;;  %449 = vst [vmem:[#allocation2 + $0x20] sm:$0x1] %v448_v58  ;;  %v562_v8 = vrot.slane %v5709_v28, 4 }
  0x3f   : > { %v1039_v5 = vld [vmem:[#allocation2 + $0x2c] sm:$0x1]  ;;  %v282_v11 = vmul.f32 %v5548_v2, %v246_v52  ;;  %v640_v14 = vshrl.u32 %v508_v0, 16  ;;  %v5744_v15 = vrot.slane %v632_v7, 7  ;;  %v643_v17 = vshll.u32 %v508_v0, 16 }
  0x40   : > { %v1231_v62 = vrot.slane %v1230_v59, 4  ;;  %v5741_v26 = vrot.slane %v1233_v60, 5  ;;  %v1171_v13 = vshll.u32 %v1039_v5, 16  ;;  %v317_v18 = vadd.f32 %v5555_v4, %v281_v10  ;;  %v397_v10 = vld [vmem:[#allocation2 + $0x30] sm:$0x1] }
  0x41   : > { %v318_v19 = vadd.f32 %v5555_v4, %v282_v11  ;;  %v642_v24 = vrot.slane %v640_v14, 7  ;;  %v898_v25 = vld [vmem:[#allocation2 + $0x5c] sm:$0x1]  ;;  %v401_v27 = vsel %vm5536_vm3, 0, %v400_v3  ;;  %v638_v28 = vrot.slane %v5744_v15, 4 }
  0x42   : > { %v1236_v22 = vsel %vm5615_vm10, %v1231_v62, %v5741_v26  ;;  %v1173_v23 = vrot.slane %v1171_v13, 5  ;;  %v349_v29 = vmax.f32 %v317_v18, 0.0  ;;  %402 = vst [vmem:[#allocation2 + $0x3c] sm:$0x1] %v401_v27  ;;  %v289_v32 = vmul.f32 %v5548_v2, %v253_v12  ;;  %v459_v12 = vld [vmem:[#allocation2 + $0x50] sm:$0x1] }
  0x43   : > { %v350_v31 = vmax.f32 %v318_v19, 0.0  ;;  %v1034_v33 = vld [vmem:[#allocation2 + $0x18] sm:$0xf]  ;;  %v645_v35 = vor.u32 %v643_v17, %v642_v24  ;;  %v647_v36 = vrot.slane %v642_v24, 4  ;;  %v290_v38 = vmul.f32 %v5548_v2, %v254_v20  ;;  %v255_v27 = vld [vmem:[%s5570_s27 + $0x90] sm:$0xff] }
  0x44   : > { %v1174_v34 = vsel %vm5615_vm10, %v1169_v45, %v1173_v23  ;;  %v1035_v40 = vld [vmem:[#allocation2 + $0x1c] sm:$0xf]  ;;  %v1128_v41 = vshrl.u32 %v1034_v33, 16  ;;  %v1131_v42 = vshll.u32 %v1034_v33, 16  ;;  %v503_v43 = vpack.c.bf16 %v349_v29, %v349_v29 }
  0x45   : > { %1477 = vrot.lane.b32.xlu1 %v1174_v34, %s5491_s28  ;;  %v504_v30 = vpack.c.bf16 %v350_v31, %v350_v31  ;;  %1487 = vrot.lane.b32.xlu0 %v1236_v22, %s5491_s28  ;;  %v1137_v44 = vshll.u32 %v1035_v40, 16  ;;  %v1141_v46 = vshrl.u32 %v1035_v40, 16  ;;  %v646_v47 = vsel %vm5623_vm11, %v638_v28, %v645_v35  ;;  %v863_v50 = vld [vmem:[#allocation2 + $0x20] sm:$0x1]  ;;  %v256_v40 = vld [vmem:[%s5570_s27 + $0x98] sm:$0xff] }
  0x46   : > { %v899_v45 = vsel %vm5536_vm3, %v647_v36, %v898_v25  ;;  %v1130_v49 = vrot.slane %v1128_v41, 4  ;;  %v1133_v51 = vrot.slane %v1131_v42, 5  ;;  %897 = vst.msk [vmem:[#allocation2 + $0x58] sm:$0xf] %vm373_vm0, %v646_v47  ;;  %v864_v52 = vsel %vm5536_vm3, %v562_v8, %v863_v50 }
  0x47   : > { %v598_v53 = vshrl.u32 %v503_v43, 16  ;;  %v1139_v55 = vrot.slane %v1137_v44, 5  ;;  %v1143_v58 = vrot.slane %v1141_v46, 4  ;;  %900 = vst [vmem:[#allocation2 + $0x5c] sm:$0x1] %v899_v45  ;;  %v601_v59 = vshll.u32 %v503_v43, 16 }
  0x48   : > { %v606_v60 = vshrl.u32 %v504_v30, 16  ;;  %v1134_v0 = vor.u32 %v1133_v51, %v1130_v49  ;;  %865 = vst [vmem:[#allocation2 + $0x20] sm:$0x1] %v864_v52  ;;  %v609_v5 = vshll.u32 %v504_v30, 16  ;;  %v325_v7 = vadd.f32 %v5555_v4, %v289_v32 }
  0x49   : > { %v600_v3 = vrot.slane %v598_v53, 7  ;;  %v1144_v11 = vor.u32 %v1143_v58, %v1139_v55  ;;  %v880_v13 = vld [vmem:[#allocation2 + $0x3c] sm:$0xf]  ;;  %v326_v8 = vadd.f32 %v5555_v4, %v290_v38  ;;  %v413_v14 = vsel %vm5536_vm3, 0, %v412_v39 }
  0x4a   : > { %v5769_v62 = vrot.slane %v606_v60, 7  ;;  %v1135_v17 = vrot.slane %v1134_v0, 4  ;;  %v357_v20 = vmax.f32 %v325_v7, 0.0  ;;  %414 = vst [vmem:[#allocation2 + $0x6c] sm:$0x1] %v413_v14  ;;  %v398_v25 = vsel %vm5536_vm3, 0, %v397_v10 }
  0x4b   : > { %v603_v18 = vor.u32 %v601_v59, %v600_v3  ;;  %v604_v19 = vrot.slane %v600_v3, 4  ;;  %v1145_v22 = vrot.slane %v1144_v11, 4  ;;  %v358_v24 = vmax.f32 %v326_v8, 0.0  ;;  %399 = vst [vmem:[#allocation2 + $0x30] sm:$0x1] %v398_v25  ;;  %v251_v8 = vld [vmem:[%s5570_s27 + $0x70] sm:$0xff] }
  0x4c   : > { %v611_v23 = vor.u32 %v609_v5, %v5769_v62  ;;  %v1140_v28 = vsel %vm5615_vm10, %v1135_v17, %v1139_v55  ;;  %v511_v31 = vpack.c.bf16 %v357_v20, %v357_v20  ;;  %v584_v32 = vshll.u32 %v5640_v37, 16  ;;  %v252_v20 = vld [vmem:[%s5570_s27 + $0x78] sm:$0xff] }
  0x4d   : > { %v881_v29 = vsel %vm5609_vm9, %v603_v18, %v880_v13  ;;  %1471 = vrot.lane.b32.xlu2 %v1140_v28, %s5491_s28  ;;  %v1050_v33 = vld [vmem:[#allocation2 + $0x58] sm:$0xf]  ;;  %v512_v35 = vpack.c.bf16 %v358_v24, %v358_v24  ;;  %v460_v36 = vsel %vm5561_vm5, 0, %v459_v12  ;;  %v630_v38 = vrot.slane %v5680_v48, 4  ;;  %v471_v18 = vld [vmem:[#allocation2 + $0x80] sm:$0x1] }
  0x4e   : > { %v612_v34 = vsel %vm5623_vm11, %v604_v19, %v611_v23  ;;  %882 = vst [vmem:[#allocation2 + $0x3c] sm:$0xf] %v881_v29  ;;  %v1051_v41 = vld [vmem:[#allocation2 + $0x5c] sm:$0x1]  ;;  %v1257_v42 = vshll.u32 %v1050_v33, 16  ;;  %v1261_v43 = vshrl.u32 %v1050_v33, 16  ;;  %v586_v37 = vor.u32 %v584_v32, %v5657_v56 }
  0x4f   : > { %883 = vst.msk [vmem:[#allocation2 + $0x40] sm:$0xf] %vm373_vm0, %v612_v34  ;;  %v291_v30 = vmul.f32 %v5548_v2, %v255_v27  ;;  %v1267_v44 = vshll.u32 %v1051_v41, 16  ;;  %v1036_v46 = vld [vmem:[#allocation2 + $0x20] sm:$0x1]  ;;  %v666_v47 = vshrl.u32 %v511_v31, 16  ;;  %v292_v0 = vmul.f32 %v5548_v2, %v256_v40 }
  0x50   : > { %v669_v45 = vshll.u32 %v511_v31, 16  ;;  %v674_v50 = vshrl.u32 %v512_v35, 16  ;;  %v5793_v39 = vrot.slane %v1257_v42, 5  ;;  %v1263_v49 = vrot.slane %v1261_v43, 4  ;;  %461 = vst [vmem:[#allocation2 + $0x50] sm:$0x1] %v460_v36 }
  0x51   : > { %v1147_v51 = vshll.u32 %v1036_v46, 16  ;;  %v677_v48 = vshll.u32 %v512_v35, 16  ;;  %v1269_v52 = vrot.slane %v1267_v44, 5  ;;  %v668_v53 = vrot.slane %v666_v47, 7  ;;  %v908_v60 = vld [vmem:[#allocation2 + $0x6c] sm:$0xf] }
  0x52   : > { %v5795_v55 = vrot.slane %v674_v50, 7  ;;  %v1239_v56 = vrot.slane %v1237_v61, 4  ;;  %v1264_v58 = vor.u32 %v1263_v49, %v5793_v39  ;;  %v327_v3 = vadd.f32 %v5555_v4, %v291_v30  ;;  %v873_v11 = vld [vmem:[#allocation2 + $0x30] sm:$0xf]  ;;  %v456_v19 = vld [vmem:[#allocation2 + $0x44] sm:$0x1] }
  0x53   : > { %v1149_v59 = vrot.slane %v1147_v51, 5  ;;  %v671_v5 = vor.u32 %v669_v45, %v668_v53  ;;  %v672_v7 = vrot.slane %v668_v53, 4  ;;  %v874_v12 = vsel %vm5609_vm9, %v586_v37, %v873_v11  ;;  %v409_v37 = vld [vmem:[#allocation2 + $0x60] sm:$0x1]  ;;  %v259_v30 = vld [vmem:[%s5570_s27 + $0xb0] sm:$0xff] }
  0x54   : > { %v679_v10 = vor.u32 %v677_v48, %v5795_v55  ;;  %v1240_v13 = vor.u32 %v1239_v56, %v5741_v26  ;;  %v1265_v14 = vrot.slane %v1264_v58, 4  ;;  %v328_v17 = vadd.f32 %v5555_v4, %v292_v0  ;;  %875 = vst [vmem:[#allocation2 + $0x30] sm:$0xf] %v874_v12 }
  0x55   : > { %v1150_v54 = vsel %vm5615_vm10, %v1145_v22, %v1149_v59  ;;  %v1043_v61 = vld [vmem:[#allocation2 + $0x3c] sm:$0xf]  ;;  %v909_v22 = vsel %vm5609_vm9, %v671_v5, %v908_v60  ;;  %v287_v35 = vmul.f32 %v5548_v2, %v251_v8  ;;  %v288_v36 = vmul.f32 %v5548_v2, %v252_v20 }
  0x56   : > { %1473 = vrot.lane.b32.xlu2 %v1150_v54, %s5491_s28  ;;  %v1044_v23 = vld [vmem:[#allocation2 + $0x40] sm:$0xf]  ;;  %v1200_v24 = vshrl.u32 %v1043_v61, 16  ;;  %v1203_v25 = vshll.u32 %v1043_v61, 16  ;;  %v680_v26 = vsel %vm5623_vm11, %v672_v7, %v679_v10  ;;  %v1270_v27 = vsel %vm5615_vm10, %v1265_v14, %v1269_v52  ;;  %910 = vst [vmem:[#allocation2 + $0x6c] sm:$0xf] %v909_v22 }
  0x57   : > { %v1209_v28 = vshll.u32 %v1044_v23, 16  ;;  %v1213_v29 = vshrl.u32 %v1044_v23, 16  ;;  %v5818_v31 = vrot.slane %v1240_v13, 4  ;;  %1493 = vrot.lane.b32.xlu0 %v1270_v27, %s5491_s28  ;;  %911 = vst.msk [vmem:[#allocation2 + $0x70] sm:$0xf] %vm373_vm0, %v680_v26  ;;  %v359_v42 = vmax.f32 %v327_v3, 0.0 }
  0x58   : > { %v1202_v32 = vrot.slane %v1200_v24, 4  ;;  %v1205_v33 = vrot.slane %v1203_v25, 5  ;;  %v891_v34 = vld [vmem:[#allocation2 + $0x50] sm:$0x1]  ;;  %v360_v43 = vmax.f32 %v328_v17, 0.0  ;;  %v472_v46 = vsel %vm5561_vm5, 0, %v471_v18 }
  0x59   : > { %v1211_v40 = vrot.slane %v1209_v28, 5  ;;  %v892_v41 = vsel %vm5536_vm3, %v630_v38, %v891_v34  ;;  %v457_v47 = vsel %vm5561_vm5, 0, %v456_v19  ;;  %v613_v45 = vrot.slane %v5769_v62, 4  ;;  %473 = vst [vmem:[#allocation2 + $0x80] sm:$0x1] %v472_v46 }
  0x5a   : > { %v1206_v44 = vor.u32 %v1205_v33, %v1202_v32  ;;  %893 = vst [vmem:[#allocation2 + $0x50] sm:$0x1] %v892_v41  ;;  %v5832_v50 = vpack.c.bf16 %v359_v42, %v359_v42  ;;  %v514_v49 = vpack.c.bf16 %v360_v43, %v360_v43  ;;  %v1215_v51 = vrot.slane %v1213_v29, 4  ;;  %v260_v33 = vld [vmem:[%s5570_s27 + $0xb8] sm:$0xff]  ;;  %v421_v42 = vld [vmem:[#allocation2 + $0x90] sm:$0x1] }
  0x5b   : > { %v323_v38 = vadd.f32 %v5555_v4, %v287_v35  ;;  %458 = vst [vmem:[#allocation2 + $0x44] sm:$0x1] %v457_v47  ;;  %v324_v52 = vadd.f32 %v5555_v4, %v288_v36  ;;  %v410_v53 = vsel %vm5536_vm3, 0, %v409_v37  ;;  %v295_v56 = vmul.f32 %v5548_v2, %v259_v30  ;;  %v1040_v58 = vld [vmem:[#allocation2 + $0x30] sm:$0xf] }
  0x5c   : > { %v1207_v48 = vrot.slane %v1206_v44, 4  ;;  %v683_v59 = vshrl.u32 %v5832_v50, 16  ;;  %v691_v62 = vshrl.u32 %v514_v49, 16  ;;  %v694_v60 = vshll.u32 %v514_v49, 16  ;;  %411 = vst [vmem:[#allocation2 + $0x60] sm:$0x1] %v410_v53 }
  0x5d   : > { %v1216_v0 = vor.u32 %v1215_v51, %v1211_v40  ;;  %v1055_v5 = vld [vmem:[#allocation2 + $0x6c] sm:$0xf]  ;;  %v1176_v7 = vshrl.u32 %v1040_v58, 16  ;;  %v1179_v10 = vshll.u32 %v1040_v58, 16  ;;  %v355_v11 = vmax.f32 %v323_v38, 0.0 }
  0x5e   : > { %v1212_v3 = vsel %vm5615_vm10, %v1207_v48, %v1211_v40  ;;  %v5843_v13 = vld [vmem:[#allocation2 + $0x70] sm:$0xf]  ;;  %v1296_v8 = vshrl.u32 %v1055_v5, 16  ;;  %v1299_v14 = vshll.u32 %v1055_v5, 16  ;;  %v5845_v54 = vrot.slane %v683_v59, 7 }
  0x5f   : > { %1483 = vrot.lane.b32.xlu1 %v1212_v3, %s5491_s28  ;;  %v693_v61 = vrot.slane %v691_v62, 7  ;;  %v1305_v12 = vshll.u32 %v5843_v13, 16  ;;  %v1309_v17 = vshrl.u32 %v5843_v13, 16  ;;  %v1178_v18 = vrot.slane %v1176_v7, 4  ;;  %v406_v38 = vld [vmem:[#allocation2 + $0x54] sm:$0x1] }
  0x60   : > { %v1181_v19 = vrot.slane %v1179_v10, 5  ;;  %v1298_v20 = vrot.slane %v1296_v8, 4  ;;  %v1301_v23 = vrot.slane %v1299_v14, 5  ;;  %v689_v25 = vrot.slane %v5845_v54, 4  ;;  %v919_v32 = vld [vmem:[#allocation2 + $0x80] sm:$0x1] }
  0x61   : > { %v1048_v24 = vld [vmem:[#allocation2 + $0x50] sm:$0x1]  ;;  %v696_v26 = vor.u32 %v694_v60, %v693_v61  ;;  %v5850_v22 = vrot.slane %v1305_v12, 5  ;;  %v698_v29 = vrot.slane %v693_v61, 4  ;;  %v5855_v40 = vrot.slane %v1216_v0, 4 }
  0x62   : > { %v1182_v27 = vor.u32 %v1181_v19, %v1178_v18  ;;  %v1243_v28 = vshll.u32 %v1048_v24, 16  ;;  %v1302_v34 = vor.u32 %v1301_v23, %v1298_v20  ;;  %v884_v36 = vld [vmem:[#allocation2 + $0x44] sm:$0x1]  ;;  %v356_v41 = vmax.f32 %v324_v52, 0.0  ;;  %v468_v58 = vld [vmem:[#allocation2 + $0x74] sm:$0x1] }
  0x63   : > { %v697_v35 = vsel %vm5623_vm11, %v689_v25, %v696_v26  ;;  %v920_v30 = vsel %vm5536_vm3, %v698_v29, %v919_v32  ;;  %v885_v44 = vsel %vm5536_vm3, %v613_v45, %v884_v36  ;;  %v509_v47 = vpack.c.bf16 %v355_v11, %v355_v11  ;;  %v901_v60 = vld [vmem:[#allocation2 + $0x60] sm:$0xf]  ;;  %v480_v36 = vld [vmem:[#allocation2 + $0xa4] sm:$0x1] }
  0x64   : > { %v1183_v43 = vrot.slane %v1182_v27, 4  ;;  %v1245_v37 = vrot.slane %v1243_v28, 5  ;;  %918 = vst.msk [vmem:[#allocation2 + $0x7c] sm:$0xf] %vm373_vm0, %v697_v35  ;;  %v1303_v46 = vrot.slane %v1302_v34, 4  ;;  %v510_v49 = vpack.c.bf16 %v356_v41, %v356_v41  ;;  %v261_v32 = vld [vmem:[%s5570_s27 + $0xc0] sm:$0xff] }
  0x65   : > { %921 = vst [vmem:[#allocation2 + $0x80] sm:$0x1] %v920_v30  ;;  %v296_v51 = vmul.f32 %v5548_v2, %v260_v33  ;;  %v331_v53 = vadd.f32 %v5555_v4, %v295_v56  ;;  %v422_v45 = vsel %vm5536_vm3, 0, %v421_v42  ;;  %v652_v59 = vshll.u32 %v509_v47, 16 }
  0x66   : > { %v1188_v48 = vsel %vm5615_vm10, %v1183_v43, %v5705_v21  ;;  %v1246_v52 = vsel %vm5615_vm10, %v5818_v31, %v1245_v37  ;;  %886 = vst [vmem:[#allocation2 + $0x44] sm:$0x1] %v885_v44  ;;  %v1308_v2 = vsel %vm5615_vm10, %v1303_v46, %v5850_v22  ;;  %v649_v21 = vshrl.u32 %v509_v47, 16  ;;  %v262_v37 = vld [vmem:[%s5570_s27 + $0xc8] sm:$0xff] }
  0x67   : > { %1479 = vrot.lane.b32.xlu2 %v1188_v48, %s5491_s28  ;;  %1489 = vrot.lane.b32.xlu1 %v1246_v52, %s5491_s28  ;;  %v657_v62 = vshrl.u32 %v510_v49, 16  ;;  %v660_v31 = vshll.u32 %v510_v49, 16  ;;  %v332_v56 = vadd.f32 %v5555_v4, %v296_v51  ;;  %v363_v0 = vmax.f32 %v331_v53, 0.0  ;;  %423 = vst [vmem:[#allocation2 + $0x90] sm:$0x1] %v422_v45 }
  0x68   : > { %1499 = vrot.lane.b32.xlu0 %v1308_v2, %s5491_s28  ;;  %v407_v3 = vsel %vm5536_vm3, 0, %v406_v38  ;;  %v651_v5 = vrot.slane %v649_v21, 7  ;;  %v635_v10 = vshll.u32 %v5729_v57, 16  ;;  %v469_v11 = vsel %vm5561_vm5, 0, %v468_v58  ;;  %v257_v38 = vld [vmem:[%s5570_s27 + $0xa0] sm:$0xff] }
  0x69   : > { %v5881_v7 = vrot.slane %v657_v62, 7  ;;  %408 = vst [vmem:[#allocation2 + $0x54] sm:$0x1] %v407_v3  ;;  %v364_v13 = vmax.f32 %v332_v56, 0.0  ;;  %v517_v8 = vpack.c.bf16 %v363_v0, %v363_v0  ;;  %v681_v14 = vrot.slane %v5795_v55, 4 }
  0x6a   : > { %470 = vst [vmem:[#allocation2 + $0x74] sm:$0x1] %v469_v11  ;;  %v1311_v4 = vrot.slane %v1309_v17, 4  ;;  %v654_v12 = vor.u32 %v652_v59, %v651_v5  ;;  %v655_v18 = vrot.slane %v651_v5, 4  ;;  %v637_v20 = vor.u32 %v635_v10, %v5744_v15  ;;  %v5908_v58 = vld [vmem:[%s7703_s1] ss:$0 sm:$0xff] }
  0x6b   : > { %v1059_v61 = vld [vmem:[#allocation2 + $0x7c] sm:$0xf]  ;;  %v662_v19 = vor.u32 %v660_v31, %v5881_v7  ;;  %v518_v25 = vpack.c.bf16 %v364_v13, %v364_v13  ;;  %v717_v26 = vshrl.u32 %v517_v8, 16  ;;  %v720_v29 = vshll.u32 %v517_v8, 16  ;;  %v465_v21 = vld [vmem:[#allocation2 + $0x68] sm:$0x1] }
  0x6c   : > { %v1060_v23 = vld [vmem:[#allocation2 + $0x80] sm:$0x1]  ;;  %v1329_v24 = vshll.u32 %v1059_v61, 16  ;;  %v1333_v57 = vshrl.u32 %v1059_v61, 16  ;;  %v902_v17 = vsel %vm5609_vm9, %v654_v12, %v901_v60  ;;  %v1312_v51 = vor.u32 %v1311_v4, %v5850_v22  ;;  %v258_v60 = vld [vmem:[%s5570_s27 + $0xa8] sm:$0xff] }
  0x6d   : > { %v1339_v27 = vshll.u32 %v1060_v23, 16  ;;  %v1045_v28 = vld [vmem:[#allocation2 + $0x44] sm:$0x1]  ;;  %v663_v55 = vsel %vm5623_vm11, %v655_v18, %v662_v19  ;;  %903 = vst [vmem:[#allocation2 + $0x60] sm:$0xf] %v902_v17  ;;  %v719_v35 = vrot.slane %v717_v26, 7  ;;  %v297_v2 = vmul.f32 %v5908_v58, %v261_v32 }
  0x6e   : > { %v5894_v33 = vrot.slane %v1329_v24, 5  ;;  %v1335_v34 = vrot.slane %v1333_v57, 4  ;;  %v1219_v15 = vshll.u32 %v1045_v28, 16  ;;  %904 = vst.msk [vmem:[#allocation2 + $0x64] sm:$0xf] %vm373_vm0, %v663_v55  ;;  %v725_v42 = vshrl.u32 %v518_v25, 16 }
  0x6f   : > { %v1341_v41 = vrot.slane %v1339_v27, 5  ;;  %v728_v43 = vshll.u32 %v518_v25, 16  ;;  %v722_v46 = vor.u32 %v720_v29, %v719_v35  ;;  %v929_v47 = vld [vmem:[#allocation2 + $0x90] sm:$0xf]  ;;  %v723_v48 = vrot.slane %v719_v35, 4 }
  0x70   : > { %v1336_v30 = vor.u32 %v1335_v34, %v5894_v33  ;;  %v1221_v44 = vrot.slane %v1219_v15, 5  ;;  %v894_v49 = vld [vmem:[#allocation2 + $0x54] sm:$0xf]  ;;  %v5901_v52 = vrot.slane %v725_v42, 7  ;;  %v298_v0 = vmul.f32 %v5908_v58, %v262_v37  ;;  %v5925_v3 = vld [vmem:[%s7704_s2] ss:$0 sm:$0xff] }
  0x71   : > { %v895_v53 = vsel %vm5609_vm9, %v637_v20, %v894_v49  ;;  %v912_v45 = vld [vmem:[#allocation2 + $0x74] sm:$0x1]  ;;  %v930_v62 = vsel %vm5609_vm9, %v722_v46, %v929_v47  ;;  %v481_v5 = vsel %vm5561_vm5, 0, %v480_v36  ;;  %v5932_v11 = vrot.slane %v1312_v51, 4 }
  0x72   : > { %v1337_v59 = vrot.slane %v1336_v30, 4  ;;  %v1222_v22 = vsel %vm5615_vm10, %v5855_v40, %v1221_v44  ;;  %896 = vst [vmem:[#allocation2 + $0x54] sm:$0xf] %v895_v53  ;;  %v913_v31 = vsel %vm5536_vm3, %v681_v14, %v912_v45  ;;  %v730_v56 = vor.u32 %v728_v43, %v5901_v52  ;;  %v265_v45 = vld [vmem:[%s5570_s27 + $0xe0] sm:$0xff] }
  0x73   : > { %1485 = vrot.lane.b32.xlu2 %v1222_v22, %s5491_s28  ;;  %931 = vst [vmem:[#allocation2 + $0x90] sm:$0xf] %v930_v62  ;;  %v333_v40 = vadd.f32 %v5925_v3, %v297_v2  ;;  %v466_v13 = vsel %vm5561_vm5, 0, %v465_v21  ;;  %v293_v8 = vmul.f32 %v5908_v58, %v257_v38  ;;  %v334_v61 = vadd.f32 %v5925_v3, %v298_v0 }
  0x74   : > { %v1342_v10 = vsel %vm5615_vm10, %v1337_v59, %v1341_v41  ;;  %914 = vst [vmem:[#allocation2 + $0x74] sm:$0x1] %v913_v31  ;;  %v1052_v14 = vld [vmem:[#allocation2 + $0x60] sm:$0xf]  ;;  %v731_v4 = vsel %vm5623_vm11, %v723_v48, %v730_v56  ;;  %v294_v18 = vmul.f32 %v5908_v58, %v258_v60  ;;  %v664_v17 = vrot.slane %v5881_v7, 4 }
  0x75   : > { %1505 = vrot.lane.b32.xlu0 %v1342_v10, %s5491_s28  ;;  %v365_v12 = vmax.f32 %v333_v40, 0.0  ;;  %482 = vst [vmem:[#allocation2 + $0xa4] sm:$0x1] %v481_v5  ;;  %v1053_v19 = vld [vmem:[#allocation2 + $0x64] sm:$0xf]  ;;  %v1272_v20 = vshrl.u32 %v1052_v14, 16  ;;  %v5944_v24 = vadd.f32 %v5925_v3, %v293_v8 }
  0x76   : > { %v1275_v23 = vshll.u32 %v1052_v14, 16  ;;  %932 = vst.msk [vmem:[#allocation2 + $0x94] sm:$0xf] %vm373_vm0, %v731_v4  ;;  %v1281_v57 = vshll.u32 %v1053_v19, 16  ;;  %v1285_v25 = vshrl.u32 %v1053_v19, 16  ;;  %v366_v26 = vmax.f32 %v334_v61, 0.0 }
  0x77   : > { %v5946_v27 = vpack.c.bf16 %v365_v12, %v365_v12  ;;  %467 = vst [vmem:[#allocation2 + $0x68] sm:$0x1] %v466_v13  ;;  %v1274_v28 = vrot.slane %v1272_v20, 4  ;;  %v330_v29 = vadd.f32 %v5925_v3, %v294_v18  ;;  %v361_v36 = vmax.f32 %v5944_v24, 0.0  ;;  %v418_v4 = vld [vmem:[#allocation2 + $0x84] sm:$0x1] }
  0x78   : > { %v1277_v55 = vrot.slane %v1275_v23, 5  ;;  %v5950_v32 = vrot.slane %v1281_v57, 5  ;;  %v520_v15 = vpack.c.bf16 %v366_v26, %v366_v26  ;;  %v5954_v30 = vrot.slane %v1285_v25, 4  ;;  %v430_v20 = vld [vmem:[#allocation2 + $0xb4] sm:$0x1]  ;;  %v266_v26 = vld [vmem:[%s5570_s27 + $0xe8] sm:$0xff] }
  0x79   : > { %v1049_v34 = vld [vmem:[#allocation2 + $0x54] sm:$0xf]  ;;  %v734_v35 = vshrl.u32 %v5946_v27, 16  ;;  %v362_v62 = vmax.f32 %v330_v29, 0.0  ;;  %v301_v19 = vmul.f32 %v5908_v58, %v265_v45  ;;  %v515_v29 = vpack.c.bf16 %v361_v36, %v361_v36 }
  0x7a   : > { %v1278_v41 = vor.u32 %v1277_v55, %v1274_v28  ;;  %v1064_v42 = vld [vmem:[#allocation2 + $0x90] sm:$0xf]  ;;  %v1248_v43 = vshrl.u32 %v1049_v34, 16  ;;  %v1251_v37 = vshll.u32 %v1049_v34, 16  ;;  %v742_v49 = vshrl.u32 %v520_v15, 16 }
  0x7b   : > { %v1368_v44 = vshrl.u32 %v1064_v42, 16  ;;  %v1371_v46 = vshll.u32 %v1064_v42, 16  ;;  %v1057_v7 = vld [vmem:[#allocation2 + $0x74] sm:$0x1]  ;;  %v5956_v47 = vrot.slane %v734_v35, 7  ;;  %v745_v8 = vshll.u32 %v520_v15, 16 }
  0x7c   : > { %v1279_v51 = vrot.slane %v1278_v41, 4  ;;  %v1250_v38 = vrot.slane %v1248_v43, 4  ;;  %v1253_v48 = vrot.slane %v1251_v37, 5  ;;  %v1315_v53 = vshll.u32 %v1057_v7, 16  ;;  %v940_v40 = vld [vmem:[#allocation2 + $0xa4] sm:$0x1] }
  0x7d   : > { %v5959_v2 = vld [vmem:[#allocation2 + $0x94] sm:$0xf]  ;;  %v1370_v21 = vrot.slane %v1368_v44, 4  ;;  %v1373_v59 = vrot.slane %v1371_v46, 5  ;;  %v744_v22 = vrot.slane %v742_v49, 7  ;;  %v740_v0 = vrot.slane %v5956_v47, 4 }
  0x7e   : > { %v1284_v31 = vsel %vm5615_vm10, %v1279_v51, %v5950_v32  ;;  %v1377_v60 = vshll.u32 %v5959_v2, 16  ;;  %v1254_v56 = vor.u32 %v1253_v48, %v1250_v38  ;;  %v905_v5 = vld [vmem:[#allocation2 + $0x68] sm:$0x1]  ;;  %v1317_v13 = vrot.slane %v1315_v53, 5  ;;  %v415_v34 = vld [vmem:[#allocation2 + $0x78] sm:$0x1] }
  0x7f   : > { %1495 = vrot.lane.b32.xlu1 %v1284_v31, %s5491_s28  ;;  %v1374_v10 = vor.u32 %v1373_v59, %v1370_v21  ;;  %v749_v14 = vrot.slane %v744_v22, 4  ;;  %v906_v18 = vsel %vm5536_vm3, %v664_v17, %v905_v5  ;;  %v747_v24 = vor.u32 %v745_v8, %v744_v22  ;;  %v477_v35 = vld [vmem:[#allocation2 + $0x98] sm:$0x1] }
  0x80   : > { %v5967_v61 = vrot.slane %v1377_v60, 5  ;;  %v1255_v12 = vrot.slane %v1254_v56, 4  ;;  %907 = vst [vmem:[#allocation2 + $0x68] sm:$0x1] %v906_v18  ;;  %v1288_v25 = vor.u32 %v5954_v30, %v5950_v32  ;;  %v1318_v55 = vsel %vm5615_vm10, %v5932_v11, %v1317_v13  ;;  %v263_v18 = vld [vmem:[%s5570_s27 + $0xd0] sm:$0xff] }
  0x81   : > { %v1375_v23 = vrot.slane %v1374_v10, 4  ;;  %v941_v57 = vsel %vm5536_vm3, %v749_v14, %v940_v40  ;;  %v419_v17 = vsel %vm5536_vm3, 0, %v418_v4  ;;  %v748_v32 = vsel %vm5623_vm11, %v740_v0, %v747_v24 }
  0x82   : > { %v1260_v28 = vsel %vm5615_vm10, %v1255_v12, %v5793_v39  ;;  %942 = vst [vmem:[#allocation2 + $0xa4] sm:$0x1] %v941_v57  ;;  %v516_v39 = vpack.c.bf16 %v362_v62, %v362_v62  ;;  %v431_v11 = vsel %vm5536_vm3, 0, %v430_v20  ;;  %v700_v36 = vshrl.u32 %v515_v29, 16 }
  0x83   : > { %v1380_v15 = vsel %vm5615_vm10, %v1375_v23, %v5967_v61  ;;  %1491 = vrot.lane.b32.xlu2 %v1260_v28, %s5491_s28  ;;  %420 = vst [vmem:[#allocation2 + $0x84] sm:$0x1] %v419_v17  ;;  %v703_v41 = vshll.u32 %v515_v29, 16  ;;  %v302_v42 = vmul.f32 %v5908_v58, %v266_v26  ;;  %v337_v43 = vadd.f32 %v5925_v3, %v301_v19  ;;  %v264_v28 = vld [vmem:[%s5570_s27 + $0xd8] sm:$0xff] }
  0x84   : > { %1511 = vrot.lane.b32.xlu0 %v1380_v15, %s5491_s28  ;;  %939 = vst.msk [vmem:[#allocation2 + $0xa0] sm:$0xf] %vm373_vm0, %v748_v32  ;;  %v708_v37 = vshrl.u32 %v516_v39, 16  ;;  %v711_v30 = vshll.u32 %v516_v39, 16  ;;  %v416_v44 = vsel %vm5536_vm3, 0, %v415_v34  ;;  %v686_v46 = vshll.u32 %v5832_v50, 16 }
  0x85   : > { %432 = vst [vmem:[#allocation2 + $0xb4] sm:$0x1] %v431_v11  ;;  %v702_v7 = vrot.slane %v700_v36, 7  ;;  %v338_v49 = vadd.f32 %v5925_v3, %v302_v42  ;;  %v369_v51 = vmax.f32 %v337_v43, 0.0  ;;  %v478_v38 = vsel %vm5561_vm5, 0, %v477_v35 }
  0x86   : > { %417 = vst [vmem:[#allocation2 + $0x78] sm:$0x1] %v416_v44  ;;  %v6004_v48 = vrot.slane %v708_v37, 7  ;;  %v1381_v50 = vshrl.u32 %v5959_v2, 16  ;;  %v1289_v31 = vrot.slane %v1288_v25, 4  ;;  %v688_v13 = vor.u32 %v686_v46, %v5845_v54 }
  0x87   : > { %1501 = vrot.lane.b32.xlu1 %v1318_v55, %s5491_s28  ;;  %479 = vst [vmem:[#allocation2 + $0x98] sm:$0x1] %v478_v38  ;;  %v1054_v53 = vld [vmem:[#allocation2 + $0x68] sm:$0x1]  ;;  %v705_v45 = vor.u32 %v703_v41, %v702_v7  ;;  %v706_v21 = vrot.slane %v702_v7, 4  ;;  %v370_v59 = vmax.f32 %v338_v49, 0.0  ;;  %v523_v22 = vpack.c.bf16 %v369_v51, %v369_v51 }
  0x88   : > { %v1291_v60 = vshll.u32 %v1054_v53, 16  ;;  %v713_v56 = vor.u32 %v711_v30, %v6004_v48  ;;  %v732_v12 = vrot.slane %v5901_v52, 4  ;;  %v474_v34 = vld [vmem:[#allocation2 + $0x8c] sm:$0x1]  ;;  %v299_v15 = vmul.f32 %v5908_v58, %v263_v18  ;;  %v427_v36 = vld [vmem:[#allocation2 + $0xa8] sm:$0x1] }
  0x89   : > { %v1069_v62 = vld [vmem:[#allocation2 + $0xa4] sm:$0x1]  ;;  %v524_v40 = vpack.c.bf16 %v370_v59, %v370_v59  ;;  %v768_v5 = vshrl.u32 %v523_v22, 16  ;;  %v771_v10 = vshll.u32 %v523_v22, 16  ;;  %v475_v44 = vsel %vm5561_vm5, 0, %v474_v34 }
  0x8a   : > { %v922_v0 = vld [vmem:[#allocation2 + $0x84] sm:$0xf]  ;;  %v1293_v14 = vrot.slane %v1291_v60, 5  ;;  %v714_v4 = vsel %vm5623_vm11, %v706_v21, %v713_v56  ;;  %v1411_v23 = vshll.u32 %v1069_v62, 16  ;;  %v300_v7 = vmul.f32 %v5908_v58, %v264_v28  ;;  %v424_v38 = vld [vmem:[#allocation2 + $0x9c] sm:$0x1] }
  0x8b   : > { %v1068_v8 = vld [vmem:[#allocation2 + $0xa0] sm:$0xf]  ;;  %v923_v2 = vsel %vm5609_vm9, %v705_v45, %v922_v0  ;;  %v770_v24 = vrot.slane %v768_v5, 7  ;;  %925 = vst.msk [vmem:[#allocation2 + $0x88] sm:$0xf] %vm373_vm0, %v714_v4  ;;  %v776_v57 = vshrl.u32 %v524_v40, 16  ;;  %v335_v49 = vadd.f32 %v5925_v3, %v299_v15 }
  0x8c   : > { %v1401_v19 = vshll.u32 %v1068_v8, 16  ;;  %v1405_v20 = vshrl.u32 %v1068_v8, 16  ;;  %924 = vst [vmem:[#allocation2 + $0x84] sm:$0xf] %v923_v2  ;;  %v1294_v54 = vsel %vm5615_vm10, %v1289_v31, %v1293_v14  ;;  %v779_v25 = vshll.u32 %v524_v40, 16 }
  0x8d   : > { %v950_v26 = vld [vmem:[#allocation2 + $0xb4] sm:$0xf]  ;;  %1497 = vrot.lane.b32.xlu2 %v1294_v54, %s5491_s28  ;;  %v773_v52 = vor.u32 %v771_v10, %v770_v24  ;;  %v915_v29 = vld [vmem:[#allocation2 + $0x78] sm:$0xf]  ;;  %v774_v32 = vrot.slane %v770_v24, 4  ;;  %v6023_v39 = vrot.slane %v776_v57, 7  ;;  %v336_v58 = vadd.f32 %v5925_v3, %v300_v7 }
  0x8e   : > { %v6019_v55 = vrot.slane %v1401_v19, 5  ;;  %v1407_v17 = vrot.slane %v1405_v20, 4  ;;  %v916_v11 = vsel %vm5609_vm9, %v688_v13, %v915_v29  ;;  %v933_v35 = vld [vmem:[#allocation2 + $0x98] sm:$0x1]  ;;  %v1413_v42 = vrot.slane %v1411_v23, 5 }
  0x8f   : > { %v951_v43 = vsel %vm5609_vm9, %v773_v52, %v950_v26  ;;  %917 = vst [vmem:[#allocation2 + $0x78] sm:$0xf] %v916_v11  ;;  %v934_v37 = vsel %vm5536_vm3, %v732_v12, %v933_v35  ;;  %v781_v30 = vor.u32 %v779_v25, %v6023_v39  ;;  %v428_v51 = vsel %vm5536_vm3, 0, %v427_v36 }
  0x90   : > { %v1408_v41 = vor.u32 %v1407_v17, %v6019_v55  ;;  %952 = vst [vmem:[#allocation2 + $0xb4] sm:$0xf] %v951_v43  ;;  %v1383_v21 = vrot.slane %v1381_v50, 4  ;;  %v367_v56 = vmax.f32 %v335_v49, 0.0  ;;  %v368_v5 = vmax.f32 %v336_v58, 0.0 }
  0x91   : > { %935 = vst [vmem:[#allocation2 + $0x98] sm:$0x1] %v934_v37  ;;  %v782_v45 = vsel %vm5623_vm11, %v774_v32, %v781_v30  ;;  %v425_v50 = vsel %vm5536_vm3, 0, %v424_v38  ;;  %v715_v14 = vrot.slane %v6004_v48, 4  ;;  %vm1559_vm15 = vcmask 519424  }
  0x92   : > { %v1409_v46 = vrot.slane %v1408_v41, 4  ;;  %476 = vst [vmem:[#allocation2 + $0x8c] sm:$0x1] %v475_v44  ;;  %v1062_v22 = vld [vmem:[#allocation2 + $0x88] sm:$0xf]  ;;  %v521_v4 = vpack.c.bf16 %v367_v56, %v367_v56  ;;  %v1384_v19 = vor.u32 %v1383_v21, %v5967_v61  ;;  %v522_v54 = vpack.c.bf16 %v368_v5, %v368_v5 }
  0x93   : > { %v1061_v53 = vld [vmem:[#allocation2 + $0x84] sm:$0xf]  ;;  %953 = vst.msk [vmem:[#allocation2 + $0xb8] sm:$0xf] %vm373_vm0, %v782_v45  ;;  %v1353_v60 = vshll.u32 %v1062_v22, 16  ;;  %v1357_v13 = vshrl.u32 %v1062_v22, 16 }
  0x94   : > { %v1414_v59 = vsel %vm5615_vm10, %v1409_v46, %v1413_v42  ;;  %v1344_v62 = vshrl.u32 %v1061_v53, 16  ;;  %v1347_v31 = vshll.u32 %v1061_v53, 16  ;;  %429 = vst [vmem:[#allocation2 + $0xa8] sm:$0x1] %v428_v51  ;;  %v751_v57 = vshrl.u32 %v521_v4, 16 }
  0x95   : > { %1517 = vrot.lane.b32.xlu0 %v1414_v59, %s5491_s28  ;;  %v6048_v10 = vrot.slane %v1353_v60, 5  ;;  %426 = vst [vmem:[#allocation2 + $0x9c] sm:$0x1] %v425_v50  ;;  %v1359_v61 = vrot.slane %v1357_v13, 4  ;;  %v1385_v36 = vrot.slane %v1384_v19, 4  ;;  %v754_v30 = vshll.u32 %v521_v4, 16 }
  0x96   : > { %v1346_v0 = vrot.slane %v1344_v62, 4  ;;  %v1349_v40 = vrot.slane %v1347_v31, 5  ;;  %v1058_v8 = vld [vmem:[#allocation2 + $0x78] sm:$0xf]  ;;  %v6060_v41 = vld [vmem:[#allocation2 + $0x4] sm:$0xf] }
  0x97   : > { %v1073_v3 = vld [vmem:[#allocation2 + $0xb4] sm:$0xf]  ;;  %v1320_v12 = vshrl.u32 %v1058_v8, 16  ;;  %v1323_v18 = vshll.u32 %v1058_v8, 16  ;;  %v753_v37 = vrot.slane %v751_v57, 7  ;;  %v759_v49 = vshrl.u32 %v522_v54, 16 }
  0x98   : > { %v1350_v2 = vor.u32 %v1349_v40, %v1346_v0  ;;  %v1440_v20 = vshrl.u32 %v1073_v3, 16  ;;  %v1443_v23 = vshll.u32 %v1073_v3, 16  ;;  %v1066_v24 = vld [vmem:[#allocation2 + $0x98] sm:$0x1]  ;;  %v486_v44 = vld [vmem:[#allocation2 + $0xbc] sm:$0x1]  ;;  %v1360_v59 = vor.u32 %v1359_v61, %v6048_v10 }
  0x99   : > { %v1322_v26 = vrot.slane %v1320_v12, 4  ;;  %v1325_v28 = vrot.slane %v1323_v18, 5  ;;  %v1387_v17 = vshll.u32 %v1066_v24, 16  ;;  %v926_v52 = vld [vmem:[#allocation2 + $0x8c] sm:$0x1]  ;;  %v762_v51 = vshll.u32 %v522_v54, 16 }
  0x9a   : > { %v1351_v25 = vrot.slane %v1350_v2, 4  ;;  %v6052_v48 = vld [vmem:[#allocation2 + $0xb8] sm:$0xf]  ;;  %v1442_v29 = vrot.slane %v1440_v20, 4  ;;  %v1445_v34 = vrot.slane %v1443_v23, 5  ;;  %v927_v15 = vsel %vm5536_vm3, %v715_v14, %v926_v52 }
  0x9b   : > { %v1449_v11 = vshll.u32 %v6052_v48, 16  ;;  %v1326_v35 = vor.u32 %v1325_v28, %v1322_v26  ;;  %928 = vst [vmem:[#allocation2 + $0x8c] sm:$0x1] %v927_v15  ;;  %v1389_v43 = vrot.slane %v1387_v17, 5  ;;  %v943_v38 = vld [vmem:[#allocation2 + $0xa8] sm:$0xf]  ;;  %v756_v22 = vor.u32 %v754_v30, %v753_v37 }
  0x9c   : > { %v1356_v32 = vsel %vm5615_vm10, %v1351_v25, %v6048_v10  ;;  %v1446_v42 = vor.u32 %v1445_v34, %v1442_v29  ;;  %v1594_v45 = vld [vmem:[#allocation2 + $0x8] sm:$0x1]  ;;  %v1693_v21 = vrot.slane %v6060_v41, 5  ;;  %v757_v31 = vrot.slane %v753_v37, 4  ;;  %v483_v56 = vld [vmem:[#allocation2 + $0xb0] sm:$0x1] }
  0x9d   : > { %1507 = vrot.lane.b32.xlu1 %v1356_v32, %s5491_s28  ;;  %v6063_v46 = vrot.slane %v1449_v11, 5  ;;  %v1327_v7 = vrot.slane %v1326_v35, 4  ;;  %v761_v58 = vrot.slane %v759_v49, 7  ;;  %v737_v60 = vshll.u32 %v5946_v27, 16  ;;  %v936_v5 = vld [vmem:[#allocation2 + $0x9c] sm:$0xf]  ;;  %v1466_v11 = vpop.permute.xlu0 %1465 }
  0x9e   : > { %v1447_v53 = vrot.slane %v1446_v42, 4  ;;  %v944_v40 = vsel %vm5609_vm9, %v756_v22, %v943_v38  ;;  %v487_v50 = vsel %vm5561_vm5, 0, %v486_v44  ;;  %v1696_v27 = vrot.slane %v1594_v45, 5  ;;  %v1598_v19 = vld [vmem:[#allocation2 + $0x18] sm:$0xe] }
  0x9f   : > { %v1332_v62 = vsel %vm5615_vm10, %v1327_v7, %v5894_v33  ;;  %v1390_v33 = vsel %vm5615_vm10, %v1385_v36, %v1389_v43  ;;  %v764_v10 = vor.u32 %v762_v51, %v761_v58  ;;  %945 = vst [vmem:[#allocation2 + $0xa8] sm:$0xf] %v944_v40  ;;  %v739_v13 = vor.u32 %v737_v60, %v5956_v47  ;;  %v6098_v23 = vld [vmem:[#allocation2 + $0x1c] sm:$0xf]  ;;  %v6109_v15 = vld [vmem:[#allocation2 + $0x28] sm:$0xf] }
  0xa0   : > { %v1452_v0 = vsel %vm5615_vm10, %v1447_v53, %v6063_v46  ;;  %1503 = vrot.lane.b32.xlu2 %v1332_v62, %s5491_s28  ;;  %v1695_v8 = vrot.slane %v1693_v21, 4  ;;  %488 = vst [vmem:[#allocation2 + $0xbc] sm:$0x1] %v487_v50  ;;  %v484_v4 = vsel %vm5561_vm5, 0, %v483_v56  ;;  %v1361_v3 = vrot.slane %v1360_v59, 4 }
  0xa1   : > { %1523 = vrot.lane.b32.xlu0 %v1452_v0, %s5491_s28  ;;  %v765_v18 = vsel %vm5623_vm11, %v757_v31, %v764_v10  ;;  %v937_v47 = vsel %vm5609_vm9, %v739_v13, %v936_v5  ;;  %485 = vst [vmem:[#allocation2 + $0xb0] sm:$0x1] %v484_v4  ;;  %v1453_v24 = vshrl.u32 %v6052_v48, 16  ;;  %v783_v57 = vrot.slane %v6023_v39, 4  ;;  %v965_v35 = vld [vmem:[#allocation2 + $0x4] sm:$0xf] }
  0xa2   : > { %v1063_v14 = vld [vmem:[#allocation2 + $0x8c] sm:$0x1]  ;;  %946 = vst.msk [vmem:[#allocation2 + $0xac] sm:$0xf] %vm373_vm0, %v765_v18  ;;  %v1697_v54 = vsel %vm6088_vm14, %v1695_v8, %v1696_v27  ;;  %v766_v26 = vrot.slane %v761_v58, 4  ;;  %v5050_v17 = vrot.slane %v1598_v19, 9 }
  0xa3   : > { %v1363_v12 = vshll.u32 %v1063_v14, 16  ;;  %938 = vst [vmem:[#allocation2 + $0x9c] sm:$0xf] %v937_v47  ;;  %v1707_v52 = vrot.slane %v6098_v23, 5  ;;  %v1455_v61 = vrot.slane %v1453_v24, 4  ;;  %v1714_v62 = vrot.slane %v6109_v15, 5 }
  0xa4   : > { %997 = vst.msk [vmem:[#allocation3 + $0xc] sm:$0xf] %vm373_vm0, %v965_v35  ;;  %v1603_v22 = vld [vmem:[#allocation2 + $0x2c] sm:$0x1]  ;;  %v964_v10 = vld [vmem:[#allocation2] sm:$0xf] }
  0xa5   : > { %1513 = vrot.lane.b32.xlu1 %v1390_v33, %s5491_s28  ;;  %v1365_v20 = vrot.slane %v1363_v12, 5  ;;  %v1708_v45 = vsel %vm6088_vm14, %v5050_v17, %v1707_v52  ;;  %v1456_v59 = vor.u32 %v1455_v61, %v6063_v46  ;;  %1561 = vst.msk [vmem:[#allocation3 + $0xc] sm:$0xf] %vm1559_vm15, %v1466_v11  ;;  %v1717_v5 = vrot.slane %v1603_v22, 5  ;;  %v1464_v27 = vpop.permute.xlu0 %1463  ;;  %v968_v18 = vld [vmem:[#allocation2 + $0x18] sm:$0xf] }
  0xa6   : > { %v1070_v28 = vld [vmem:[#allocation2 + $0xa8] sm:$0xf]  ;;  %v1716_v33 = vrot.slane %v1714_v62, 4  ;;  %996 = vst.msk [vmem:[#allocation3] sm:$0xf] %vm373_vm0, %v964_v10  ;;  %vm1899_vm1 = vcmask 781824  }
  0xa7   : > { %v1366_v25 = vsel %vm5615_vm10, %v1361_v3, %v1365_v20  ;;  %v1416_v29 = vshrl.u32 %v1070_v28, 16  ;;  %v1419_v48 = vshll.u32 %v1070_v28, 16  ;;  %v954_v34 = vld [vmem:[#allocation2 + $0xbc] sm:$0x1]  ;;  %v1457_v46 = vrot.slane %v1456_v59, 4  ;;  %v1472_v13 = vpop.permute.xlu2 %1471 }
  0xa8   : > { %1509 = vrot.lane.b32.xlu2 %v1366_v25, %s5491_s28  ;;  %v955_v39 = vsel %vm5536_vm3, %v783_v57, %v954_v34  ;;  %v947_v32 = vld [vmem:[#allocation2 + $0xb0] sm:$0x1]  ;;  %1560 = vst.msk [vmem:[#allocation3] sm:$0xf] %vm1559_vm15, %v1464_v27  ;;  %v1718_v20 = vsel %vm6088_vm14, %v1716_v33, %v1717_v5  ;;  %v1607_v25 = vld [vmem:[#allocation2 + $0x3c] sm:$0xe] }
  0xa9   : > { %1805 = vrot.lane.b32.xlu0 %v1697_v54, %s5492_s8  ;;  %v1071_v36 = vld [vmem:[#allocation2 + $0xac] sm:$0xf]  ;;  %v1418_v42 = vrot.slane %v1416_v29, 4  ;;  %v1421_v43 = vrot.slane %v1419_v48, 5  ;;  %956 = vst [vmem:[#allocation2 + $0xbc] sm:$0x1] %v955_v39  ;;  %v948_v37 = vsel %vm5536_vm3, %v766_v26, %v947_v32 }
  0xaa   : > { %v1425_v30 = vshll.u32 %v1071_v36, 16  ;;  %v1429_v44 = vshrl.u32 %v1071_v36, 16  ;;  %v1067_v7 = vld [vmem:[#allocation2 + $0x9c] sm:$0xf]  ;;  %949 = vst [vmem:[#allocation2 + $0xb0] sm:$0x1] %v948_v37 }
  0xab   : > { %v1422_v49 = vor.u32 %v1421_v43, %v1418_v42  ;;  %v1392_v51 = vshrl.u32 %v1067_v7, 16  ;;  %v1395_v38 = vshll.u32 %v1067_v7, 16  ;;  %1000 = vst.msk [vmem:[#allocation3 + $0x30] sm:$0xf] %vm373_vm0, %v968_v18  ;;  %v6141_v26 = vld [vmem:[#allocation2 + $0x40] sm:$0xf]  ;;  %v1468_v42 = vpop.permute.xlu1 %1467 }
  0xac   : > { %v1427_v53 = vrot.slane %v1425_v30, 5  ;;  %v1431_v56 = vrot.slane %v1429_v44, 4  ;;  %1564 = vst.msk [vmem:[#allocation3 + $0x30] sm:$0xf] %vm1559_vm15, %v1472_v13  ;;  %v1595_v28 = vld [vmem:[#allocation2 + $0xc] sm:$0xe] }
  0xad   : > { %v1423_v31 = vrot.slane %v1422_v49, 4  ;;  %v1394_v58 = vrot.slane %v1392_v51, 4  ;;  %v1397_v60 = vrot.slane %v1395_v38, 5  ;;  %v5053_v17 = vrot.slane %v1607_v25, 9  ;;  %v1476_v48 = vpop.permute.xlu0 %1475  ;;  %v970_v34 = vld [vmem:[#allocation2 + $0x24] sm:$0xf] }
  0xae   : > { %v1432_v3 = vor.u32 %v1431_v56, %v1427_v53  ;;  %v1728_v29 = vrot.slane %v6141_v26, 5  ;;  %v969_v39 = vld [vmem:[#allocation2 + $0x1c] sm:$0xf]  ;;  %v5049_v11 = vrot.slane %v1595_v28, 9  ;;  %v6148_v36 = vld [vmem:[#allocation2 + $0x4c] sm:$0xf] }
  0xaf   : > { %v1428_v0 = vsel %vm5615_vm10, %v1423_v31, %v1427_v53  ;;  %v1398_v40 = vor.u32 %v1397_v60, %v1394_v58  ;;  %1002 = vst.msk [vmem:[#allocation3 + $0x48] sm:$0xf] %vm373_vm0, %v970_v34  ;;  %v1592_v43 = vld [vmem:[#allocation2] sm:$0xe]  ;;  %v966_v37 = vld [vmem:[#allocation2 + $0xc] sm:$0xf] }
  0xb0   : > { %1519 = vrot.lane.b32.xlu1 %v1428_v0, %s5491_s28  ;;  %v1075_v50 = vld [vmem:[#allocation2 + $0xbc] sm:$0x1]  ;;  %v1433_v54 = vrot.slane %v1432_v3, 4  ;;  %v1474_v61 = vpop.permute.xlu2 %1473  ;;  %1566 = vst.msk [vmem:[#allocation3 + $0x48] sm:$0xf] %vm1559_vm15, %v1476_v48  ;;  %v1729_v30 = vsel %vm6088_vm14, %v5053_v17, %v1728_v29  ;;  %v1735_v44 = vrot.slane %v6148_v36, 5 }
  0xb1   : > { %1811 = vrot.lane.b32.xlu0 %v1708_v45, %s5492_s8  ;;  %v1399_v8 = vrot.slane %v1398_v40, 4  ;;  %v1459_v14 = vshll.u32 %v1075_v50, 16  ;;  %v1072_v4 = vld [vmem:[#allocation2 + $0xb0] sm:$0x1]  ;;  %1001 = vst.msk [vmem:[#allocation3 + $0x3c] sm:$0xf] %vm373_vm0, %v969_v39 }
  0xb2   : > { %v1435_v12 = vshll.u32 %v1072_v4, 16  ;;  %1565 = vst.msk [vmem:[#allocation3 + $0x3c] sm:$0xf] %vm1559_vm15, %v1474_v61  ;;  %v5048_v49 = vrot.slane %v1592_v43, 9  ;;  %v1612_v51 = vld [vmem:[#allocation2 + $0x50] sm:$0x1] }
  0xb3   : > { %v1404_v47 = vsel %vm5615_vm10, %v1399_v8, %v6019_v55  ;;  %v1461_v19 = vrot.slane %v1459_v14, 5  ;;  %v1596_v55 = vld [vmem:[#allocation2 + $0x10] sm:$0xf]  ;;  %998 = vst.msk [vmem:[#allocation3 + $0x18] sm:$0xf] %vm373_vm0, %v966_v37  ;;  %v1737_v53 = vrot.slane %v1735_v44, 4  ;;  %v1470_v5 = vpop.permute.xlu1 %1469 }
  0xb4   : > { %1515 = vrot.lane.b32.xlu2 %v1404_v47, %s5491_s28  ;;  %v1437_v57 = vrot.slane %v1435_v12, 5  ;;  %v1700_v35 = vrot.slane %v1596_v55, 5  ;;  %v1600_v38 = vld [vmem:[#allocation2 + $0x20] sm:$0x1]  ;;  %1562 = vst.msk [vmem:[#allocation3 + $0x18] sm:$0xf] %vm1559_vm15, %v1468_v42  ;;  %v1694_v58 = vsel %vm6088_vm14, %v5048_v49, %v1693_v21 }
  0xb5   : > { %v1462_v24 = vsel %vm5615_vm10, %v1457_v46, %v1461_v19  ;;  %v1738_v45 = vrot.slane %v1612_v51, 5  ;;  %v973_v59 = vld [vmem:[#allocation2 + $0x34] sm:$0xf]  ;;  %v1482_v22 = vpop.permute.xlu0 %1481  ;;  %v972_v31 = vld [vmem:[#allocation2 + $0x30] sm:$0xf]  ;;  %v1709_v60 = vrot.slane %v1707_v52, 4 }
  0xb6   : > { %v1438_v32 = vsel %vm5615_vm10, %v1433_v54, %v1437_v57  ;;  %v1701_v7 = vsel %vm6088_vm14, %v5049_v11, %v1700_v35  ;;  %v1710_v56 = vrot.slane %v1600_v38, 5  ;;  %v1597_v0 = vld [vmem:[#allocation2 + $0x14] sm:$0x1]  ;;  %1005 = vst.msk [vmem:[#allocation3 + $0x6c] sm:$0xf] %vm373_vm0, %v973_v59  ;;  %v1702_v21 = vrot.slane %v1700_v35, 4 }
  0xb7   : > { %1569 = vst.msk [vmem:[#allocation3 + $0x6c] sm:$0xf] %vm1559_vm15, %v1482_v22  ;;  %v967_v50 = vld [vmem:[#allocation2 + $0x10] sm:$0xf]  ;;  %v1739_v41 = vsel %vm6088_vm14, %v1737_v53, %v1738_v45  ;;  %v1703_v46 = vrot.slane %v1597_v0, 5  ;;  %v1730_v39 = vrot.slane %v1728_v29, 4 }
  0xb8   : > { %1525 = vrot.lane.b32.xlu1 %v1462_v24, %s5491_s28  ;;  %1004 = vst.msk [vmem:[#allocation3 + $0x60] sm:$0xf] %vm373_vm0, %v972_v31  ;;  %v1711_v23 = vsel %vm6088_vm14, %v1709_v60, %v1710_v56  ;;  %v1616_v52 = vld [vmem:[#allocation2 + $0x60] sm:$0xe]  ;;  %v6183_v33 = vld [vmem:[#allocation2 + $0x64] sm:$0xf] }
  0xb9   : > { %1817 = vrot.lane.b32.xlu0 %v1718_v20, %s5492_s8  ;;  %999 = vst.msk [vmem:[#allocation3 + $0x24] sm:$0xf] %vm373_vm0, %v967_v50  ;;  %v1604_v27 = vld [vmem:[#allocation2 + $0x30] sm:$0xe]  ;;  %v1605_v10 = vld [vmem:[#allocation2 + $0x34] sm:$0xf]  ;;  %v1704_v12 = vsel %vm6088_vm14, %v1702_v21, %v1703_v46 }
  0xba   : > { %1563 = vst.msk [vmem:[#allocation3 + $0x24] sm:$0xf] %vm1559_vm15, %v1470_v5  ;;  %v5056_v13 = vrot.slane %v1616_v52, 9  ;;  %v1749_v8 = vrot.slane %v6183_v33, 5  ;;  %v976_v14 = vld [vmem:[#allocation2 + $0x48] sm:$0xf] }
  0xbb   : > { %v975_v3 = vld [vmem:[#allocation2 + $0x40] sm:$0xf]  ;;  %v5052_v18 = vrot.slane %v1604_v27, 9  ;;  %v1721_v47 = vrot.slane %v1605_v10, 5  ;;  %v6192_v19 = vld [vmem:[#allocation2 + $0x70] sm:$0xf]  ;;  %v1478_v20 = vpop.permute.xlu1 %1477 }
  0xbc   : > { %1521 = vrot.lane.b32.xlu2 %v1438_v32, %s5491_s28  ;;  %1008 = vst.msk [vmem:[#allocation3 + $0x90] sm:$0xf] %vm373_vm0, %v976_v14  ;;  %v1601_v24 = vld [vmem:[#allocation2 + $0x24] sm:$0xe]  ;;  %v971_v54 = vld [vmem:[#allocation2 + $0x28] sm:$0xf]  ;;  %v1750_v25 = vsel %vm6088_vm14, %v5056_v13, %v1749_v8 }
  0xbd   : > { %v1488_v4 = vpop.permute.xlu0 %1487  ;;  %1007 = vst.msk [vmem:[#allocation3 + $0x84] sm:$0xf] %vm373_vm0, %v975_v3  ;;  %v1609_v28 = vld [vmem:[#allocation2 + $0x44] sm:$0x1]  ;;  %v1756_v55 = vrot.slane %v6192_v19, 5  ;;  %v1722_v17 = vsel %vm6088_vm14, %v5052_v18, %v1721_v47  ;;  %v5051_v48 = vrot.slane %v1601_v24, 9 }
  0xbe   : > { %1572 = vst.msk [vmem:[#allocation3 + $0x90] sm:$0xf] %vm1559_vm15, %v1488_v4  ;;  %v1621_v34 = vld [vmem:[#allocation2 + $0x74] sm:$0x1]  ;;  %v1731_v61 = vrot.slane %v1609_v28, 5  ;;  %v1723_v49 = vrot.slane %v1721_v47, 4 }
  0xbf   : > { %1003 = vst.msk [vmem:[#allocation3 + $0x54] sm:$0xf] %vm373_vm0, %v971_v54  ;;  %v1758_v32 = vrot.slane %v1756_v55, 4  ;;  %v1759_v11 = vrot.slane %v1621_v34, 5  ;;  %v979_v35 = vld [vmem:[#allocation2 + $0x58] sm:$0xf]  ;;  %v1715_v37 = vsel %vm6088_vm14, %v5051_v48, %v1714_v62 }
  0xc0   : > { %1807 = vrot.lane.b32.xlu1 %v1701_v7, %s5492_s8  ;;  %1567 = vst.msk [vmem:[#allocation3 + $0x54] sm:$0xf] %vm1559_vm15, %v1478_v20  ;;  %v978_v43 = vld [vmem:[#allocation2 + $0x54] sm:$0xf]  ;;  %v974_v26 = vld [vmem:[#allocation2 + $0x3c] sm:$0xf]  ;;  %v1732_v15 = vsel %vm6088_vm14, %v1730_v39, %v1731_v61 }
  0xc1   : > { %1823 = vrot.lane.b32.xlu0 %v1729_v30, %s5492_s8  ;;  %v1480_v40 = vpop.permute.xlu2 %1479  ;;  %v1606_v30 = vld [vmem:[#allocation2 + $0x38] sm:$0x1]  ;;  %1011 = vst.msk [vmem:[#allocation3 + $0xb4] sm:$0xf] %vm373_vm0, %v979_v35  ;;  %v1760_v7 = vsel %vm6088_vm14, %v1758_v32, %v1759_v11  ;;  %v1625_v62 = vld [vmem:[#allocation2 + $0x84] sm:$0xe] }
  0xc2   : > { %1568 = vst.msk [vmem:[#allocation3 + $0x60] sm:$0xf] %vm1559_vm15, %v1480_v40  ;;  %v1724_v51 = vrot.slane %v1606_v30, 5  ;;  %v6227_v38 = vld [vmem:[#allocation2 + $0x88] sm:$0xf]  ;;  %v5059_v59 = vrot.slane %v1625_v62, 9 }
  0xc3   : > { %1010 = vst.msk [vmem:[#allocation3 + $0xa8] sm:$0xf] %vm373_vm0, %v978_v43  ;;  %v1613_v53 = vld [vmem:[#allocation2 + $0x54] sm:$0xe]  ;;  %v1614_v45 = vld [vmem:[#allocation2 + $0x58] sm:$0xf] }
  0xc4   : > { %1803 = vrot.lane.b32.xlu2 %v1694_v58, %s5492_s8  ;;  %1006 = vst.msk [vmem:[#allocation3 + $0x78] sm:$0xf] %vm373_vm0, %v974_v26  ;;  %v1770_v22 = vrot.slane %v6227_v38, 5  ;;  %v6233_v31 = vld [vmem:[#allocation2 + $0x94] sm:$0xf]  ;;  %v1725_v60 = vsel %vm6088_vm14, %v1723_v49, %v1724_v51  ;;  %v5055_v56 = vrot.slane %v1613_v53, 9 }
  0xc5   : > { %v982_v58 = vld [vmem:[#allocation2 + $0x6c] sm:$0xf]  ;;  %v1742_v0 = vrot.slane %v1614_v45, 5  ;;  %v981_v5 = vld [vmem:[#allocation2 + $0x64] sm:$0xf]  ;;  %v1777_v46 = vrot.slane %v6233_v31, 5 }
  0xc6   : > { %1014 = vst.msk [vmem:[#allocation3 + $0xd8] sm:$0xf] %vm373_vm0, %v982_v58  ;;  %v1610_v50 = vld [vmem:[#allocation2 + $0x48] sm:$0xe]  ;;  %v977_v21 = vld [vmem:[#allocation2 + $0x4c] sm:$0xf]  ;;  %v1771_v52 = vsel %vm6088_vm14, %v5059_v59, %v1770_v22 }
  0xc7   : > { %v1630_v27 = vld [vmem:[#allocation2 + $0x98] sm:$0x1]  ;;  %1013 = vst.msk [vmem:[#allocation3 + $0xcc] sm:$0xf] %vm373_vm0, %v981_v5  ;;  %v1743_v10 = vsel %vm6088_vm14, %v5055_v56, %v1742_v0  ;;  %v5054_v13 = vrot.slane %v1610_v50, 9  ;;  %v1779_v4 = vrot.slane %v1777_v46, 4 }
  0xc8   : > { %1813 = vrot.lane.b32.xlu1 %v1711_v23, %s5492_s8  ;;  %1009 = vst.msk [vmem:[#allocation3 + $0x9c] sm:$0xf] %vm373_vm0, %v977_v21  ;;  %v1618_v14 = vld [vmem:[#allocation2 + $0x68] sm:$0x1]  ;;  %v1780_v3 = vrot.slane %v1630_v27, 5  ;;  %v1751_v54 = vrot.slane %v1749_v8, 4 }
  0xc9   : > { %1829 = vrot.lane.b32.xlu0 %v1739_v41, %s5492_s8  ;;  %v1494_v42 = vpop.permute.xlu0 %1493  ;;  %v985_v18 = vld [vmem:[#allocation2 + $0x7c] sm:$0xf]  ;;  %v984_v47 = vld [vmem:[#allocation2 + $0x78] sm:$0xf]  ;;  %v980_v20 = vld [vmem:[#allocation2 + $0x60] sm:$0xf]  ;;  %v1736_v24 = vsel %vm6088_vm14, %v5054_v13, %v1735_v44 }
  0xca   : > { %1575 = vst.msk [vmem:[#allocation3 + $0xb4] sm:$0xf] %vm1559_vm15, %v1494_v42  ;;  %v1781_v36 = vsel %vm6088_vm14, %v1779_v4, %v1780_v3  ;;  %v1744_v8 = vrot.slane %v1742_v0, 4  ;;  %v1622_v39 = vld [vmem:[#allocation2 + $0x78] sm:$0xe]  ;;  %v1772_v50 = vrot.slane %v1770_v22, 4 }
  0xcb   : > { %1017 = vst.msk [vmem:[#allocation3 + $0xfc] sm:$0xf] %vm373_vm0, %v985_v18  ;;  %v1623_v61 = vld [vmem:[#allocation2 + $0x7c] sm:$0xf]  ;;  %v988_v42 = vld [vmem:[#allocation2 + $0x90] sm:$0xf] }
  0xcc   : > { %1809 = vrot.lane.b32.xlu2 %v1704_v12, %s5492_s8  ;;  %v6254_v12 = vld [vmem:[#allocation2 + $0x10] sm:$0xf]  ;;  %1016 = vst.msk [vmem:[#allocation3 + $0xf0] sm:$0xf] %vm373_vm0, %v984_v47  ;;  %v3151_v35 = vld [vmem:[#allocation2 + $0x1c] sm:$0xf] }
  0xcd   : > { %v1486_v57 = vpop.permute.xlu2 %1485  ;;  %v2719_v28 = vrot.slane %v6254_v12, 5  ;;  %1012 = vst.msk [vmem:[#allocation3 + $0xc0] sm:$0xf] %vm373_vm0, %v980_v20  ;;  %v987_v43 = vld [vmem:[#allocation2 + $0x88] sm:$0xf]  ;;  %v5058_v26 = vrot.slane %v1622_v39, 9 }
  0xce   : > { %1571 = vst.msk [vmem:[#allocation3 + $0x84] sm:$0xf] %vm1559_vm15, %v1486_v57  ;;  %v1752_v57 = vrot.slane %v1618_v14, 5  ;;  %v3208_v49 = vshll.u32 %v3151_v35, 16  ;;  %v3212_v51 = vshrl.u32 %v3151_v35, 16  ;;  %vm2092_vm2 = vcmask 1044224  }
  0xcf   : > { %v2721_v32 = vrot.slane %v2719_v28, 4  ;;  %1020 = vst.msk [vmem:[#allocation3 + $0x120] sm:$0xf] %vm373_vm0, %v988_v42  ;;  %v1627_v45 = vld [vmem:[#allocation2 + $0x8c] sm:$0x1]  ;;  %vm4430_vm4 = vcmask 261120  }
  0xd0   : > { %1819 = vrot.lane.b32.xlu1 %v1722_v17, %s5492_s8  ;;  %v2623_v17 = vld [vmem:[#allocation2 + $0x14] sm:$0x1]  ;;  %v1753_v33 = vsel %vm6088_vm14, %v1751_v54, %v1752_v57  ;;  %1019 = vst.msk [vmem:[#allocation3 + $0x114] sm:$0xf] %vm373_vm0, %v987_v43  ;;  %v6290_v58 = vrot.slane %v3208_v49, 5 }
  0xd1   : > { %1835 = vrot.lane.b32.xlu0 %v1750_v25, %s5492_s8  ;;  %v1484_v29 = vpop.permute.xlu1 %1483  ;;  %v1615_v25 = vld [vmem:[#allocation2 + $0x5c] sm:$0x1]  ;;  %v2722_v11 = vrot.slane %v2623_v17, 5  ;;  %v991_v56 = vld [vmem:[#allocation2 + $0xa0] sm:$0xf] }
  0xd2   : > { %1570 = vst.msk [vmem:[#allocation3 + $0x78] sm:$0xf] %vm1559_vm15, %v1484_v29  ;;  %v1745_v48 = vrot.slane %v1615_v25, 5  ;;  %v1763_v29 = vrot.slane %v1623_v61, 5  ;;  %v990_v0 = vld [vmem:[#allocation2 + $0x9c] sm:$0xf] }
  0xd3   : > { %v3152_v21 = vld [vmem:[#allocation2 + $0x20] sm:$0x1]  ;;  %1023 = vst.msk [vmem:[#allocation3 + $0x144] sm:$0xf] %vm373_vm0, %v991_v56  ;;  %v1932_v27 = vld [vmem:[#allocation2 + $0xc] sm:$0xf] }
  0xd4   : > { %1815 = vrot.lane.b32.xlu2 %v1715_v37, %s5492_s8  ;;  %v983_v37 = vld [vmem:[#allocation2 + $0x70] sm:$0xf]  ;;  %v1746_v30 = vsel %vm6088_vm14, %v1744_v8, %v1745_v48  ;;  %v1764_v62 = vsel %vm6088_vm14, %v5058_v26, %v1763_v29  ;;  %1022 = vst.msk [vmem:[#allocation3 + $0x138] sm:$0xf] %vm373_vm0, %v990_v0  ;;  %v1765_v38 = vrot.slane %v1763_v29, 4 }
  0xd5   : > { %1015 = vst.msk [vmem:[#allocation3 + $0xe4] sm:$0xf] %vm373_vm0, %v983_v37  ;;  %v1631_v13 = vld [vmem:[#allocation2 + $0x9c] sm:$0xe]  ;;  %v6307_v14 = vld [vmem:[#allocation2 + $0xa0] sm:$0xf] }
  0xd6   : > { %v994_v20 = vld [vmem:[#allocation2 + $0xb4] sm:$0xf]  ;;  %v5061_v57 = vrot.slane %v1631_v13, 9  ;;  %v1784_v25 = vrot.slane %v6307_v14, 5  ;;  %v1628_v17 = vld [vmem:[#allocation2 + $0x90] sm:$0xe] }
  0xd7   : > { %1026 = vst.msk [vmem:[#allocation3 + $0x168] sm:$0xf] %vm373_vm0, %v994_v20  ;;  %v5060_v8 = vrot.slane %v1628_v17, 9  ;;  %v2621_v61 = vld [vmem:[#allocation2 + $0xc] sm:$0xe] }
  0xd8   : > { %1825 = vrot.lane.b32.xlu1 %v1732_v15, %s5492_s8  ;;  %v2723_v15 = vsel %vm6088_vm14, %v2721_v32, %v2722_v11  ;;  %v2958_v32 = vld [vmem:[#allocation2 + $0x18] sm:$0xf]  ;;  %v2960_v11 = vld [vmem:[#allocation2 + $0x24] sm:$0xf]  ;;  %v5064_v42 = vrot.slane %v2621_v61, 9 }
  0xd9   : > { %1841 = vrot.lane.b32.xlu0 %v1760_v7, %s5492_s8  ;;  %v1490_v23 = vpop.permute.xlu1 %1489  ;;  %v1619_v7 = vld [vmem:[#allocation2 + $0x6c] sm:$0xe]  ;;  %v1778_v39 = vsel %vm6088_vm14, %v5060_v8, %v1777_v46  ;;  %v3150_v43 = vld [vmem:[#allocation2 + $0x18] sm:$0xf]  ;;  %v1933_v26 = vld [vmem:[#allocation2 + $0x10] sm:$0xf] }
  0xda   : > { %v1500_v40 = vpop.permute.xlu0 %1499  ;;  %1573 = vst.msk [vmem:[#allocation3 + $0x9c] sm:$0xf] %vm1559_vm15, %v1490_v23  ;;  %v5057_v53 = vrot.slane %v1619_v7, 9  ;;  %v1624_v23 = vld [vmem:[#allocation2 + $0x80] sm:$0x1]  ;;  %v3199_v31 = vshrl.u32 %v3150_v43, 16 }
  0xdb   : > { %1578 = vst.msk [vmem:[#allocation3 + $0xd8] sm:$0xf] %vm1559_vm15, %v1500_v40  ;;  %v986_v40 = vld [vmem:[#allocation2 + $0x84] sm:$0xf]  ;;  %v1766_v22 = vrot.slane %v1624_v23, 5  ;;  %v3202_v46 = vshll.u32 %v3150_v43, 16 }
  0xdc   : > { %1821 = vrot.lane.b32.xlu2 %v1725_v60, %s5492_s8  ;;  %v3214_v60 = vrot.slane %v3212_v51, 4  ;;  %v1757_v5 = vsel %vm6088_vm14, %v5057_v53, %v1756_v55  ;;  %1018 = vst.msk [vmem:[#allocation3 + $0x108] sm:$0xf] %vm373_vm0, %v986_v40  ;;  %v995_v37 = vld [vmem:[#allocation2 + $0xb8] sm:$0xf]  ;;  %v3201_v49 = vrot.slane %v3199_v31, 4 }
  0xdd   : > { %v1492_v41 = vpop.permute.xlu2 %1491  ;;  %v1767_v54 = vsel %vm6088_vm14, %v1765_v38, %v1766_v22  ;;  %1027 = vst.msk [vmem:[#allocation3 + $0x174] sm:$0xf] %vm373_vm0, %v995_v37  ;;  %v1935_v7 = vld [vmem:[#allocation2 + $0x1c] sm:$0xf]  ;;  %v3204_v51 = vrot.slane %v3202_v46, 5 }
  0xde   : > { %1574 = vst.msk [vmem:[#allocation3 + $0xa8] sm:$0xf] %vm1559_vm15, %v1492_v41  ;;  %v1773_v41 = vrot.slane %v1627_v45, 5  ;;  %v3215_v19 = vor.u32 %v3214_v60, %v6290_v58  ;;  %v2624_v45 = vld [vmem:[#allocation2 + $0x18] sm:$0xe] }
  0xdf   : > { %v2625_v12 = vld [vmem:[#allocation2 + $0x1c] sm:$0xf]  ;;  %v5065_v56 = vrot.slane %v2624_v45, 9 }
  0xe0   : > { %1831 = vrot.lane.b32.xlu1 %v1743_v10, %s5492_s8  ;;  %v3218_v10 = vshll.u32 %v3152_v21, 16  ;;  %v1774_v55 = vsel %vm6088_vm14, %v1772_v50, %v1773_v41  ;;  %v3216_v18 = vrot.slane %v3215_v19, 4  ;;  %v2959_v60 = vld [vmem:[#allocation2 + $0x1c] sm:$0xf]  ;;  %v2726_v0 = vrot.slane %v2625_v12, 5 }
  0xe1   : > { %1847 = vrot.lane.b32.xlu0 %v1771_v52, %s5492_s8  ;;  %v3156_v50 = vld [vmem:[#allocation2 + $0x30] sm:$0xf]  ;;  %v3153_v41 = vld [vmem:[#allocation2 + $0x24] sm:$0xf] }
  0xe2   : > { %v3220_v47 = vrot.slane %v3218_v10, 5  ;;  %v2727_v19 = vsel %vm6088_vm14, %v5065_v56, %v2726_v0  ;;  %v3226_v38 = vshll.u32 %v3153_v41, 16  ;;  %v2728_v8 = vrot.slane %v2726_v0, 4  ;;  %v1957_v56 = vld [vmem:[#allocation2 + $0xa0] sm:$0xf] }
  0xe4   : > { %1827 = vrot.lane.b32.xlu2 %v1736_v24, %s5492_s8  ;;  %v993_v24 = vld [vmem:[#allocation2 + $0xac] sm:$0xf]  ;;  %v3228_v20 = vrot.slane %v3226_v38, 5 }
  0xe5   : > { %1025 = vst.msk [vmem:[#allocation3 + $0x15c] sm:$0xf] %vm373_vm0, %v993_v24  ;;  %v3157_v24 = vld [vmem:[#allocation2 + $0x34] sm:$0xf] }
  0xe6   : > { %v3260_v0 = vshrl.u32 %v3157_v24, 16 }
  0xe7   : > { %v1506_v44 = vpop.permute.xlu0 %1505  ;;  %v1498_v34 = vpop.permute.xlu2 %1497 }
  0xe8   : > { %1581 = vst.msk [vmem:[#allocation3 + $0xfc] sm:$0xf] %vm1559_vm15, %v1506_v44  ;;  %1837 = vrot.lane.b32.xlu1 %v1753_v33, %s5492_s8  ;;  %v3221_v44 = vsel %vm5615_vm10, %v3216_v18, %v3220_v47  ;;  %v1785_v33 = vsel %vm6088_vm14, %v5061_v57, %v1784_v25  ;;  %v3154_v57 = vld [vmem:[#allocation2 + $0x28] sm:$0xf] }
  0xe9   : > { %1577 = vst.msk [vmem:[#allocation3 + $0xcc] sm:$0xf] %vm1559_vm15, %v1498_v34  ;;  %1853 = vrot.lane.b32.xlu0 %v1781_v36, %s5492_s8  ;;  %v989_v36 = vld [vmem:[#allocation2 + $0x94] sm:$0xf]  ;;  %v992_v34 = vld [vmem:[#allocation2 + $0xa8] sm:$0xf] }
  0xea   : > { %1021 = vst.msk [vmem:[#allocation3 + $0x12c] sm:$0xf] %vm373_vm0, %v989_v36  ;;  %v2963_v36 = vld [vmem:[#allocation2 + $0x34] sm:$0xf]  ;;  %v3236_v43 = vshrl.u32 %v3154_v57, 16 }
  0xeb   : > { %1024 = vst.msk [vmem:[#allocation3 + $0x150] sm:$0xf] %vm373_vm0, %v992_v34 }
  0xec   : > { %1833 = vrot.lane.b32.xlu2 %v1746_v30, %s5492_s8  ;;  %v2720_v30 = vsel %vm6088_vm14, %v5064_v42, %v2719_v28 }
  0xf0   : > { %1843 = vrot.lane.b32.xlu1 %v1764_v62, %s5492_s8  ;;  %v6345_v62 = vld [vmem:[#allocation2 + $0x28] sm:$0xf] }
  0xf1   : > { %v1496_v59 = vpop.permute.xlu1 %1495  ;;  %2831 = vrot.lane.b32.xlu0 %v2723_v15, %s5491_s28  ;;  %v2627_v15 = vld [vmem:[#allocation2 + $0x24] sm:$0xe] }
  0xf2   : > { %1576 = vst.msk [vmem:[#allocation3 + $0xc0] sm:$0xf] %vm1559_vm15, %v1496_v59  ;;  %v5066_v28 = vrot.slane %v2627_v15, 9  ;;  %v2733_v59 = vrot.slane %v6345_v62, 5 }
  0xf4   : > { %1839 = vrot.lane.b32.xlu2 %v1757_v5, %s5492_s8  ;;  %v3205_v5 = vor.u32 %v3204_v51, %v3201_v49  ;;  %v2734_v23 = vsel %vm6088_vm14, %v5066_v28, %v2733_v59  ;;  %v3155_v49 = vld [vmem:[#allocation2 + $0x2c] sm:$0x1]  ;;  %v1934_v51 = vld [vmem:[#allocation2 + $0x18] sm:$0xf]  ;;  %v2735_v15 = vrot.slane %v2733_v59, 4 }
  0xf5   : > { %v3242_v28 = vshll.u32 %v3155_v49, 16  ;;  %v2127_v49 = vld [vmem:[#allocation2 + $0x14] sm:$0x1] }
  0xf6   : > { %v1512_v52 = vpop.permute.xlu0 %1511  ;;  %v3206_v10 = vrot.slane %v3205_v5, 4 }
  0xf7   : > { %1584 = vst.msk [vmem:[#allocation3 + $0x120] sm:$0xf] %vm1559_vm15, %v1512_v52  ;;  %v3247_v52 = vshrl.u32 %v3156_v50, 16 }
  0xf8   : > { %1849 = vrot.lane.b32.xlu1 %v1774_v55, %s5492_s8  ;;  %v3223_v55 = vshrl.u32 %v3153_v41, 16 }
  0xf9   : > { %v1502_v4 = vpop.permute.xlu1 %1501  ;;  %1996 = vrot.lane.b32.xlu0 %v1932_v27, %s5493_s9  ;;  %v3250_v27 = vshll.u32 %v3156_v50, 16  ;;  %v3249_v13 = vrot.slane %v3247_v52, 4  ;;  %v3244_v50 = vrot.slane %v3242_v28, 5  ;;  %v3158_v52 = vld [vmem:[#allocation2 + $0x38] sm:$0x1] }
  0xfa   : > { %1579 = vst.msk [vmem:[#allocation3 + $0xe4] sm:$0xf] %vm1559_vm15, %v1502_v4  ;;  %v1504_v3 = vpop.permute.xlu2 %1503  ;;  %v3225_v47 = vrot.slane %v3223_v55, 4  ;;  %v3266_v55 = vshll.u32 %v3158_v52, 16 }
  0xfb   : > { %1580 = vst.msk [vmem:[#allocation3 + $0xf0] sm:$0xf] %vm1559_vm15, %v1504_v3  ;;  %v3252_v4 = vrot.slane %v3250_v27, 5  ;;  %v3211_v3 = vsel %vm5615_vm10, %v3206_v10, %v6290_v58  ;;  %v2964_v27 = vld [vmem:[#allocation2 + $0x3c] sm:$0xf] }
  0xfc   : > { %1845 = vrot.lane.b32.xlu2 %v1767_v54, %s5492_s8  ;;  %v2626_v54 = vld [vmem:[#allocation2 + $0x20] sm:$0x1]  ;;  %v3229_v34 = vor.u32 %v3228_v20, %v3225_v47  ;;  %v1939_v47 = vld [vmem:[#allocation2 + $0x34] sm:$0xf] }
  0xfd   : > { %v3253_v17 = vor.u32 %v3252_v4, %v3249_v13  ;;  %v3268_v4 = vrot.slane %v3266_v55, 5  ;;  %v6451_v55 = vld [vmem:[%s7705_s3 + $0x68] sm:$0xff] }
  0xff   : > { %v3254_v61 = vrot.slane %v3253_v17, 4  ;;  %v3159_v17 = vld [vmem:[#allocation2 + $0x3c] sm:$0xf] }
 0x100   : > { %1855 = vrot.lane.b32.xlu1 %v1785_v33, %s5492_s8  ;;  %v2961_v33 = vld [vmem:[#allocation2 + $0x28] sm:$0xf] }
 0x101   : > { %3584 = vrot.lane.b32.xlu0 %v3221_v44, %s5493_s9  ;;  %v3256_v44 = vshll.u32 %v3157_v24, 16  ;;  %v1633_v24 = vld [vmem:[#allocation2 + $0xa4] sm:$0x1] }
 0x102   : > { %v1510_v48 = vpop.permute.xlu2 %1509 }
 0x103   : > { %1583 = vst.msk [vmem:[#allocation3 + $0x114] sm:$0xf] %vm1559_vm15, %v1510_v48  ;;  %v2729_v48 = vrot.slane %v2626_v54, 5 }
 0x104   : > { %1851 = vrot.lane.b32.xlu2 %v1778_v39, %s5492_s8  ;;  %v3232_v39 = vshll.u32 %v3154_v57, 16  ;;  %v2630_v57 = vld [vmem:[#allocation2 + $0x30] sm:$0xe] }
 0x106   : > { %v3234_v42 = vrot.slane %v3232_v39, 5 }
 0x107   : > { %v1518_v35 = vpop.permute.xlu0 %1517 }
 0x108   : > { %1587 = vst.msk [vmem:[#allocation3 + $0x144] sm:$0xf] %vm1559_vm15, %v1518_v35  ;;  %3022 = vrot.lane.b32.xlu1 %v2958_v32, %s5492_s8  ;;  %v3258_v32 = vrot.slane %v3256_v44, 5  ;;  %v3230_v35 = vrot.slane %v3229_v34, 4  ;;  %v1786_v44 = vrot.slane %v1784_v25, 4 }
 0x109   : > { %3026 = vrot.lane.b32.xlu0 %v2960_v11, %s5492_s8  ;;  %v2730_v11 = vsel %vm6088_vm14, %v2728_v8, %v2729_v48  ;;  %v1937_v8 = vld [vmem:[#allocation2 + $0x28] sm:$0xf]  ;;  %v5067_v48 = vrot.slane %v2630_v57, 9  ;;  %v2633_v25 = vld [vmem:[#allocation2 + $0x3c] sm:$0xe] }
 0x10a   : > { %v3259_v37 = vsel %vm5615_vm10, %v3254_v61, %v3258_v32  ;;  %v3271_v61 = vshrl.u32 %v3159_v17, 16 }
 0x10c   : > { %2829 = vrot.lane.b32.xlu2 %v2720_v30, %s5491_s28  ;;  %v3235_v30 = vsel %vm5615_vm10, %v3230_v35, %v3234_v42  ;;  %v6421_v35 = vld [vmem:[#allocation2 + $0x40] sm:$0xf] }
 0x10e   : > { %v1516_v53 = vpop.permute.xlu2 %1515 }
 0x10f   : > { %v1508_v29 = vpop.permute.xlu1 %1507  ;;  %1586 = vst.msk [vmem:[#allocation3 + $0x138] sm:$0xf] %vm1559_vm15, %v1516_v53 }
 0x110   : > { %1582 = vst.msk [vmem:[#allocation3 + $0x108] sm:$0xf] %vm1559_vm15, %v1508_v29  ;;  %1998 = vrot.lane.b32.xlu1 %v1933_v26, %s5493_s9  ;;  %v3238_v26 = vrot.slane %v3236_v43, 4 }
 0x111   : > { %2002 = vrot.lane.b32.xlu0 %v1935_v7, %s5493_s9  ;;  %v2629_v7 = vld [vmem:[#allocation2 + $0x2c] sm:$0x1] }
 0x112   : > { %v2736_v53 = vrot.slane %v2629_v7, 5  ;;  %v3239_v12 = vor.u32 %v3238_v26, %v3234_v42  ;;  %v2747_v26 = vrot.slane %v6421_v35, 5  ;;  %v6430_v7 = vld [vmem:[#allocation2 + $0x40] sm:$0xf] }
 0x113   : > { %v1524_v40 = vpop.permute.xlu0 %1523 }
 0x114   : > { %1590 = vst.msk [vmem:[#allocation3 + $0x168] sm:$0xf] %vm1559_vm15, %v1524_v40  ;;  %3024 = vrot.lane.b32.xlu2 %v2959_v60, %s5492_s8  ;;  %v2737_v40 = vsel %vm6088_vm14, %v2735_v15, %v2736_v53  ;;  %v3240_v5 = vrot.slane %v3239_v12, 4  ;;  %v2125_v15 = vld [vmem:[#allocation2 + $0xc] sm:$0xf] }
 0x116   : > { %v1522_v22 = vpop.permute.xlu2 %1521  ;;  %v3245_v59 = vsel %vm5615_vm10, %v3240_v5, %v3244_v50  ;;  %v2177_v50 = vshll.u32 %v2125_v15, 16 }
 0x117   : > { %v1514_v21 = vpop.permute.xlu1 %1513  ;;  %1589 = vst.msk [vmem:[#allocation3 + $0x15c] sm:$0xf] %vm1559_vm15, %v1522_v22  ;;  %v2962_v22 = vld [vmem:[#allocation2 + $0x30] sm:$0xf] }
 0x118   : > { %1585 = vst.msk [vmem:[#allocation3 + $0x12c] sm:$0xf] %vm1559_vm15, %v1514_v21  ;;  %2833 = vrot.lane.b32.xlu1 %v2727_v19, %s5491_s28  ;;  %v3262_v21 = vrot.slane %v3260_v0, 4  ;;  %v1936_v19 = vld [vmem:[#allocation2 + $0x24] sm:$0xf] }
 0x119   : > { %2837 = vrot.lane.b32.xlu0 %v2734_v23, %s5491_s28 }
 0x11a   : > { %v3263_v10 = vor.u32 %v3262_v21, %v3258_v32  ;;  %v3274_v32 = vshll.u32 %v3159_v17, 16  ;;  %v5434_v17 = vld [vmem:[%s7705_s3 + $0x30] sm:$0xff] }
 0x11b   : > { %v1806_v18 = vpop.permute.xlu0 %1805 }
 0x11c   : > { %1901 = vst.msk [vmem:[#allocation3 + $0xc] sm:$0xf] %vm1899_vm1, %v1806_v18  ;;  %3582 = vrot.lane.b32.xlu2 %v3211_v3, %s5493_s9  ;;  %v3264_v13 = vrot.slane %v3263_v10, 4  ;;  %v5435_v10 = vld [vmem:[%s7705_s3 + $0x38] sm:$0xff] }
 0x11d   : > { %4479 = vmatpush.bf16.msra.mxu0 %v5435_v10  ;;  %5446 = vmatpush.bf16.msra.mxu3 %v5435_v10  ;;  %v6522_v10 = vld [vmem:[%s7705_s3 + $0x48] sm:$0xff] }
 0x11e   : > { %v1804_v58 = vpop.permute.xlu2 %1803  ;;  %v3269_v20 = vsel %vm5615_vm10, %v3264_v13, %v3268_v4  ;;  %v3280_v13 = vshll.u32 %v6430_v7, 16 }
 0x11f   : > { %1900 = vst.msk [vmem:[#allocation3] sm:$0xf] %vm1899_vm1, %v1804_v58 }
 0x120   : > { %3028 = vrot.lane.b32.xlu1 %v2961_v33, %s5492_s8  ;;  %v1787_v33 = vrot.slane %v1633_v24, 5  ;;  %v3284_v24 = vshrl.u32 %v6430_v7, 16  ;;  %v1938_v7 = vld [vmem:[#allocation2 + $0x30] sm:$0xf] }
 0x121   : > { %3032 = vrot.lane.b32.xlu0 %v2963_v36, %s5492_s8  ;;  %v2631_v36 = vld [vmem:[#allocation2 + $0x34] sm:$0xf]  ;;  %4480 = vmatpush.bf16.msra.mxu0 %v5434_v17 }
 0x122   : > { %v1520_v46 = vpop.permute.xlu1 %1519  ;;  %v2740_v34 = vrot.slane %v2631_v36, 5  ;;  %v1788_v14 = vsel %vm6088_vm14, %v1786_v44, %v1787_v33  ;;  %5447 = vmatpush.bf16.msra.mxu3 %v5434_v17  ;;  %v6542_v17 = vld [vmem:[#allocation2 + $0x48] sm:$0xe] }
 0x123   : > { %v1812_v31 = vpop.permute.xlu0 %1811  ;;  %1588 = vst.msk [vmem:[#allocation3 + $0x150] sm:$0xf] %vm1559_vm15, %v1520_v46  ;;  %v3276_v46 = vrot.slane %v3274_v32, 5 }
 0x124   : > { %1904 = vst.msk [vmem:[#allocation3 + $0x30] sm:$0xf] %vm1899_vm1, %v1812_v31  ;;  %2835 = vrot.lane.b32.xlu2 %v2730_v11, %s5491_s28  ;;  %v6416_v11 = vld [vmem:[%s7705_s3 + $0x78] sm:$0xff]  ;;  %v2741_v42 = vsel %vm6088_vm14, %v5067_v48, %v2740_v34  ;;  %v3273_v31 = vrot.slane %v3271_v61, 4  ;;  %v2742_v5 = vrot.slane %v2740_v34, 4 }
 0x125   : > { %4568 = vmatpush.bf16.msra.mxu1 %v6416_v11  ;;  %v6464_v34 = vld [vmem:[#allocation2 + $0x4c] sm:$0xf] }
 0x126   : > { %v1810_v29 = vpop.permute.xlu2 %1809 }
 0x127   : > { %1903 = vst.msk [vmem:[#allocation3 + $0x24] sm:$0xf] %vm1899_vm1, %v1810_v29  ;;  %v3162_v29 = vld [vmem:[#allocation2 + $0x48] sm:$0xf] }
 0x128   : > { %3586 = vrot.lane.b32.xlu1 %v3235_v30, %s5493_s9  ;;  %v5068_v30 = vrot.slane %v2633_v25, 9  ;;  %v3295_v52 = vshrl.u32 %v3162_v29, 16  ;;  %v6484_v25 = vld [vmem:[%s7705_s3 + $0x58] sm:$0xff] }
 0x129   : > { %3590 = vrot.lane.b32.xlu0 %v3259_v37, %s5493_s9  ;;  %v1956_v37 = vld [vmem:[#allocation2 + $0x9c] sm:$0xf] }
 0x12a   : > { %v1526_v60 = vpop.permute.xlu1 %1525 }
 0x12b   : > { %v1818_v45 = vpop.permute.xlu0 %1817  ;;  %1591 = vst.msk [vmem:[#allocation3 + $0x174] sm:$0xf] %vm1559_vm15, %v1526_v60  ;;  %v2174_v60 = vshrl.u32 %v2125_v15, 16 }
 0x12c   : > { %1907 = vst.msk [vmem:[#allocation3 + $0x54] sm:$0xf] %vm1899_vm1, %v1818_v45  ;;  %2000 = vrot.lane.b32.xlu2 %v1934_v51, %s5493_s9  ;;  %v2126_v51 = vld [vmem:[#allocation2 + $0x10] sm:$0xf]  ;;  %v2193_v45 = vshll.u32 %v2127_v49, 16 }
 0x12d   : > { %v2183_v12 = vshll.u32 %v2126_v51, 16  ;;  %v2187_v28 = vshrl.u32 %v2126_v51, 16  ;;  %v2176_v21 = vrot.slane %v2174_v60, 4  ;;  %v3711_v49 = vld [vmem:[#allocation2 + $0x1c] sm:$0xf] }
 0x12e   : > { %v1816_v62 = vpop.permute.xlu2 %1815  ;;  %v2195_v4 = vrot.slane %v2193_v45, 5  ;;  %v5432_v45 = vld [vmem:[%s7705_s3 + $0x20] sm:$0xff] }
 0x12f   : > { %1906 = vst.msk [vmem:[#allocation3 + $0x48] sm:$0xf] %vm1899_vm1, %v1816_v62  ;;  %v3277_v62 = vor.u32 %v3276_v46, %v3273_v31  ;;  %v3304_v31 = vshll.u32 %v6464_v34, 16 }
 0x130   : > { %2839 = vrot.lane.b32.xlu1 %v2737_v40, %s5491_s28  ;;  %v2632_v40 = vld [vmem:[#allocation2 + $0x38] sm:$0x1] }
 0x131   : > { %2046 = vrot.lane.b32.xlu0 %v1957_v56, %s5493_s9  ;;  %v6435_v56 = vld [vmem:[%s7705_s3 + $0x70] sm:$0xff]  ;;  %v3278_v33 = vrot.slane %v3277_v62, 4  ;;  %v6496_v15 = vrot.slane %v3304_v31, 5  ;;  %v6565_v31 = vld [vmem:[%s7705_s3 + $0x80] sm:$0xff] }
 0x132   : > { %v1808_v23 = vpop.permute.xlu1 %1807  ;;  %4569 = vmatpush.bf16.msra.mxu1 %v6435_v56 }
 0x133   : > { %v1824_v41 = vpop.permute.xlu0 %1823  ;;  %1902 = vst.msk [vmem:[#allocation3 + $0x18] sm:$0xf] %vm1899_vm1, %v1808_v23  ;;  %v2748_v23 = vsel %vm6088_vm14, %v5068_v30, %v2747_v26 }
 0x134   : > { %1910 = vst.msk [vmem:[#allocation3 + $0x78] sm:$0xf] %vm1899_vm1, %v1824_v41  ;;  %3588 = vrot.lane.b32.xlu2 %v3245_v59, %s5493_s9  ;;  %v2185_v59 = vrot.slane %v2183_v12, 5  ;;  %v2189_v41 = vrot.slane %v2187_v28, 4  ;;  %v3808_v12 = vrot.slane %v3711_v49, 5  ;;  %v5069_v49 = vrot.slane %v6542_v17, 9 }
 0x136   : > { %v1822_v38 = vpop.permute.xlu2 %1821  ;;  %4570 = vmatpush.bf16.msra.mxu1 %v6451_v55 }
 0x137   : > { %1909 = vst.msk [vmem:[#allocation3 + $0x6c] sm:$0xf] %vm1899_vm1, %v1822_v38  ;;  %v2965_v38 = vld [vmem:[#allocation2 + $0x40] sm:$0xf] }
 0x138   : > { %2004 = vrot.lane.b32.xlu1 %v1936_v19, %s5493_s9  ;;  %v2179_v19 = vrot.slane %v2177_v50, 5  ;;  %v3712_v50 = vld [vmem:[#allocation2 + $0x20] sm:$0x1] }
 0x139   : > { %3034 = vrot.lane.b32.xlu0 %v2964_v27, %s5492_s8  ;;  %v3298_v27 = vshll.u32 %v3162_v29, 16  ;;  %v3161_v29 = vld [vmem:[#allocation2 + $0x44] sm:$0x1] }
 0x13a   : > { %v1814_v18 = vpop.permute.xlu1 %1813 }
 0x13b   : > { %v1830_v3 = vpop.permute.xlu0 %1829  ;;  %1905 = vst.msk [vmem:[#allocation3 + $0x3c] sm:$0xf] %vm1899_vm1, %v1814_v18  ;;  %v3300_v57 = vrot.slane %v3298_v27, 5 }
 0x13c   : > { %1913 = vst.msk [vmem:[#allocation3 + $0x9c] sm:$0xf] %vm1899_vm1, %v1830_v3  ;;  %3030 = vrot.lane.b32.xlu2 %v2962_v22, %s5492_s8  ;;  %v2743_v22 = vrot.slane %v2632_v40, 5  ;;  %v2190_v3 = vor.u32 %v2189_v41, %v2185_v59  ;;  %v6506_v40 = vld [vmem:[%s7705_s3 + $0x50] sm:$0xff]  ;;  %v3810_v41 = vrot.slane %v3808_v12, 4 }
 0x13e   : > { %v1828_v54 = vpop.permute.xlu2 %1827  ;;  %v2744_v44 = vsel %vm6088_vm14, %v2742_v5, %v2743_v22  ;;  %v3710_v5 = vld [vmem:[#allocation2 + $0x18] sm:$0xe] }
 0x13f   : > { %1912 = vst.msk [vmem:[#allocation3 + $0x90] sm:$0xf] %vm1899_vm1, %v1828_v54  ;;  %v3297_v54 = vrot.slane %v3295_v52, 4 }
 0x140   : > { %3592 = vrot.lane.b32.xlu1 %v3269_v20, %s5493_s9  ;;  %v2191_v20 = vrot.slane %v2190_v3, 4 }
 0x141   : > { %2010 = vrot.lane.b32.xlu0 %v1939_v47, %s5493_s9  ;;  %v2180_v47 = vor.u32 %v2179_v19, %v2176_v21  ;;  %v3811_v21 = vrot.slane %v3712_v50, 5  ;;  %v5431_v19 = vld [vmem:[%s7705_s3 + $0x18] sm:$0xff]  ;;  %v3165_v50 = vld [vmem:[#allocation2 + $0x54] sm:$0xf] }
 0x142   : > { %v1820_v58 = vpop.permute.xlu1 %1819 }
 0x143   : > { %v1836_v39 = vpop.permute.xlu0 %1835  ;;  %1908 = vst.msk [vmem:[#allocation3 + $0x60] sm:$0xf] %vm1899_vm1, %v1820_v58  ;;  %v2181_v36 = vrot.slane %v2180_v47, 4  ;;  %v6471_v58 = vld [vmem:[%s7705_s3 + $0x60] sm:$0xff] }
 0x144   : > { %1916 = vst.msk [vmem:[#allocation3 + $0xc0] sm:$0xf] %vm1899_vm1, %v1836_v39  ;;  %2006 = vrot.lane.b32.xlu2 %v1937_v8, %s5493_s9  ;;  %v3282_v8 = vrot.slane %v3280_v13, 5  ;;  %v2196_v39 = vsel %vm5615_vm10, %v2191_v20, %v2195_v4  ;;  %4571 = vmatpush.bf16.msra.mxu1 %v6471_v58  ;;  %v1958_v13 = vld [vmem:[#allocation2 + $0xa8] sm:$0xf]  ;;  %v3308_v20 = vshrl.u32 %v6464_v34, 16 }
 0x145   : > { %v2186_v32 = vsel %vm5615_vm10, %v2181_v36, %v2185_v59  ;;  %2590 = vst.msk [vmem:[#allocation3 + $0x10] sm:$0xf] %vm373_vm0, %v2196_v39  ;;  %v5080_v59 = vrot.slane %v3710_v5, 9 }
 0x146   : > { %v1834_v43 = vpop.permute.xlu2 %1833  ;;  %v3283_v46 = vsel %vm5615_vm10, %v3278_v33, %v3282_v8  ;;  %2589 = vst.msk [vmem:[#allocation3 + $0x4] sm:$0xf] %vm373_vm0, %v2186_v32  ;;  %v2129_v33 = vld [vmem:[#allocation2 + $0x1c] sm:$0xf] }
 0x147   : > { %1915 = vst.msk [vmem:[#allocation3 + $0xb4] sm:$0xf] %vm1899_vm1, %v1834_v43  ;;  %v3301_v43 = vor.u32 %v3300_v57, %v3297_v54  ;;  %v3809_v22 = vsel %vm6088_vm14, %v5080_v59, %v3808_v12  ;;  %v3812_v54 = vsel %vm6088_vm14, %v3810_v41, %v3811_v21  ;;  %v2207_v39 = vshll.u32 %v2129_v33, 16  ;;  %v1959_v59 = vld [vmem:[#allocation2 + $0xac] sm:$0xf] }
 0x148   : > { %2841 = vrot.lane.b32.xlu1 %v2741_v42, %s5491_s28  ;;  %v2967_v42 = vld [vmem:[#allocation2 + $0x4c] sm:$0xf]  ;;  %4572 = vmatpush.bf16.msra.mxu1 %v6484_v25  ;;  %3950 = vst.msk [vmem:[#allocation3 + $0x8] sm:$0xf] %vm373_vm0, %v3809_v22 }
 0x149   : > { %1857 = vrot.lane.b32.xlu0 %v1788_v14, %s5492_s8  ;;  %v5433_v14 = vld [vmem:[%s7705_s3 + $0x28] sm:$0xff]  ;;  %v3302_v51 = vrot.slane %v3301_v43, 4  ;;  %3951 = vst.msk [vmem:[#allocation3 + $0x14] sm:$0xf] %vm373_vm0, %v3812_v54 }
 0x14a   : > { %v1826_v0 = vpop.permute.xlu1 %1825  ;;  %4481 = vmatpush.bf16.msra.mxu0 %v5433_v14  ;;  %5448 = vmatpush.bf16.msra.mxu3 %v5433_v14  ;;  %v6556_v14 = vld [vmem:[%s7705_s3 + $0x40] sm:$0xff]  ;;  %v6560_v43 = vld [vmem:[#allocation2 + $0x4c] sm:$0xf] }
 0x14b   : > { %v1842_v53 = vpop.permute.xlu0 %1841  ;;  %1911 = vst.msk [vmem:[#allocation3 + $0x84] sm:$0xf] %vm1899_vm1, %v1826_v0  ;;  %v3290_v0 = vshll.u32 %v3161_v29, 16  ;;  %v3307_v27 = vsel %vm5615_vm10, %v3302_v51, %v6496_v15  ;;  %v5429_v29 = vld [vmem:[%s7705_s3 + $0x8] sm:$0xff]  ;;  %v3310_v51 = vrot.slane %v3308_v20, 4 }
 0x14c   : > { %1919 = vst.msk [vmem:[#allocation3 + $0xe4] sm:$0xf] %vm1899_vm1, %v1842_v53  ;;  %2044 = vrot.lane.b32.xlu2 %v1956_v37, %s5493_s9  ;;  %v3286_v37 = vrot.slane %v3284_v24, 4  ;;  %v6498_v53 = vld [vmem:[#allocation2 + $0xac] sm:$0xf]  ;;  %4573 = vmatpush.bf16.msra.mxu1 %v6506_v40  ;;  %v2749_v24 = vrot.slane %v2747_v26, 4 }
 0x14d   : > { %v1791_v52 = vrot.slane %v6498_v53, 5  ;;  %v3292_v3 = vrot.slane %v3290_v0, 5  ;;  %v6546_v26 = vld [vmem:[#allocation2 + $0x50] sm:$0x1]  ;;  %v3715_v54 = vld [vmem:[#allocation2 + $0x2c] sm:$0x1] }
 0x14e   : > { %v1840_v18 = vpop.permute.xlu2 %1839  ;;  %v3287_v60 = vor.u32 %v3286_v37, %v3282_v8  ;;  %4482 = vmatpush.bf16.msra.mxu0 %v5432_v45  ;;  %5449 = vmatpush.bf16.msra.mxu3 %v5432_v45  ;;  %v2130_v8 = vld [vmem:[#allocation2 + $0x20] sm:$0x1]  ;;  %v6570_v37 = vrot.slane %v2207_v39, 5  ;;  %v2754_v45 = vrot.slane %v6560_v43, 5  ;;  %v3314_v12 = vshll.u32 %v6546_v26, 16 }
 0x14f   : > { %1918 = vst.msk [vmem:[#allocation3 + $0xd8] sm:$0xf] %vm1899_vm1, %v1840_v18  ;;  %v1636_v18 = vld [vmem:[#allocation2 + $0xb0] sm:$0x1]  ;;  %v1793_v36 = vrot.slane %v1791_v52, 4  ;;  %v2217_v32 = vshll.u32 %v2130_v8, 16 }
 0x150   : > { %3036 = vrot.lane.b32.xlu1 %v2965_v38, %s5492_s8  ;;  %v6527_v38 = vld [vmem:[%s7705_s3 + $0x88] sm:$0xff]  ;;  %v3288_v4 = vrot.slane %v3287_v60, 4  ;;  %4574 = vmatpush.bf16.msra.mxu1 %v6522_v10  ;;  %v1794_v35 = vrot.slane %v1636_v18, 5  ;;  %v5106_v5 = vld [vmem:[#allocation3 + $0x8] sm:$0xf]  ;;  %v2755_v17 = vsel %vm6088_vm14, %v5069_v49, %v2754_v45  ;;  %v3322_v8 = vshll.u32 %v3165_v50, 16 }
 0x151   : > { %2845 = vrot.lane.b32.xlu0 %v2748_v23, %s5491_s28  ;;  %v2635_v23 = vld [vmem:[#allocation2 + $0x44] sm:$0x1]  ;;  %4663 = vmatpush.bf16.msra.mxu2 %v6527_v38  ;;  %v2219_v60 = vrot.slane %v2217_v32, 5  ;;  %v6602_v26 = vld [vmem:[%s7703_s1] ss:$0 sm:$0xff]  ;;  %v3316_v49 = vrot.slane %v3314_v12, 5 }
 0x152   : > { %v1832_v61 = vpop.permute.xlu1 %1831  ;;  %4483 = vmatpush.bf16.msra.mxu0 %v5431_v19  ;;  %v2750_v57 = vrot.slane %v2635_v23, 5  ;;  %5450 = vmatpush.bf16.msra.mxu3 %v5431_v19  ;;  %v3714_v23 = vld [vmem:[#allocation2 + $0x28] sm:$0xf]  ;;  %v5428_v19 = vld [vmem:[%s7705_s3] sm:$0xff] }
 0x153   : > { %v1848_v48 = vpop.permute.xlu0 %1847  ;;  %1914 = vst.msk [vmem:[#allocation3 + $0xa8] sm:$0xf] %vm1899_vm1, %v1832_v61  ;;  %v2211_v61 = vshrl.u32 %v2129_v33, 16  ;;  %v3319_v33 = vshrl.u32 %v3165_v50, 16  ;;  %v6614_v32 = vld [vmem:[%s7704_s2] ss:$0 sm:$0xff] }
 0x154   : > { %1922 = vst.msk [vmem:[#allocation3 + $0x108] sm:$0xf] %vm1899_vm1, %v1848_v48  ;;  %2843 = vrot.lane.b32.xlu2 %v2744_v44, %s5491_s28  ;;  %v5430_v44 = vld [vmem:[%s7705_s3 + $0x10] sm:$0xff]  ;;  %v3293_v48 = vsel %vm5615_vm10, %v3288_v4, %v3292_v3  ;;  %4575 = vmatpush.bf16.msra.mxu1 %v6556_v14  ;;  %v3311_v3 = vor.u32 %v3310_v51, %v6496_v15  ;;  %v433_v50 = vld [vmem:[#allocation2 + $0xc0] sm:$0x1] }
 0x155   : > { %4664 = vmatpush.bf16.msra.mxu2 %v6565_v31 }
 0x156   : > { %v1846_v30 = vpop.permute.xlu2 %1845  ;;  %4484 = vmatpush.bf16.msra.mxu0 %v5430_v44  ;;  %5451 = vmatpush.bf16.msra.mxu3 %v5430_v44 }
 0x157   : > { %1921 = vst.msk [vmem:[#allocation3 + $0xfc] sm:$0xf] %vm1899_vm1, %v1846_v30  ;;  %v2213_v30 = vrot.slane %v2211_v61, 4 }
 0x158   : > { %3594 = vrot.lane.b32.xlu1 %v3283_v46, %s5493_s9  ;;  %v2751_v46 = vsel %vm6088_vm14, %v2749_v24, %v2750_v57  ;;  %v3713_v24 = vld [vmem:[#allocation2 + $0x24] sm:$0xe]  ;;  %v267_v57 = vld [vmem:[%s5570_s27 + $0xf0] sm:$0xff] }
 0x159   : > { %3040 = vrot.lane.b32.xlu0 %v2967_v42, %s5492_s8  ;;  %v5081_v15 = vrot.slane %v3713_v24, 9  ;;  %v303_v44 = vmul.f32 %v6602_v26, %v267_v57 }
 0x15a   : > { %v1838_v62 = vpop.permute.xlu1 %1837  ;;  %4485 = vmatpush.bf16.msra.mxu0 %v5429_v29  ;;  %5452 = vmatpush.bf16.msra.mxu3 %v5429_v29 }
 0x15b   : > { %v1854_v28 = vpop.permute.xlu0 %1853  ;;  %1917 = vst.msk [vmem:[#allocation3 + $0xcc] sm:$0xf] %vm1899_vm1, %v1838_v62  ;;  %v2128_v62 = vld [vmem:[#allocation2 + $0x18] sm:$0xf] }
 0x15c   : > { %1925 = vst.msk [vmem:[#allocation3 + $0x12c] sm:$0xf] %vm1899_vm1, %v1854_v28  ;;  %2008 = vrot.lane.b32.xlu2 %v1938_v7, %s5493_s9  ;;  %v1795_v7 = vsel %vm6088_vm14, %v1793_v36, %v1794_v35  ;;  %v2214_v28 = vor.u32 %v2213_v30, %v6570_v37  ;;  %v2198_v21 = vshrl.u32 %v2128_v62, 16  ;;  %v2201_v22 = vshll.u32 %v2128_v62, 16  ;;  %v2131_v62 = vld [vmem:[#allocation2 + $0x24] sm:$0xf] }
 0x15e   : > { %v1852_v47 = vpop.permute.xlu2 %1851  ;;  %v2215_v41 = vrot.slane %v2214_v28, 4  ;;  %v2200_v20 = vrot.slane %v2198_v21, 4  ;;  %4486 = vmatpush.bf16.msra.mxu0 %v5428_v19  ;;  %v2203_v35 = vrot.slane %v2201_v22, 5  ;;  %5453 = vmatpush.bf16.msra.mxu3 %v5428_v19  ;;  %v6628_v21 = vld [vmem:[#allocation2 + $0x58] sm:$0xf] }
 0x15f   : > { %1924 = vst.msk [vmem:[#allocation3 + $0x120] sm:$0xf] %vm1899_vm1, %v1852_v47 }
 0x160   : > { %2048 = vrot.lane.b32.xlu1 %v1958_v13, %s5493_s9  ;;  %v3815_v13 = vrot.slane %v3714_v23, 5  ;;  %v2220_v18 = vsel %vm5615_vm10, %v2215_v41, %v2219_v60  ;;  %v2204_v39 = vor.u32 %v2203_v35, %v2200_v20  ;;  %v2966_v60 = vld [vmem:[#allocation2 + $0x48] sm:$0xf]  ;;  %v2222_v23 = vshrl.u32 %v2131_v62, 16 }
 0x161   : > { %3598 = vrot.lane.b32.xlu0 %v3307_v27, %s5493_s9  ;;  %v5382_v27 = vld [vmem:[#allocation3 + $0x10] sm:$0xf0]  ;;  %2592 = vst.msk [vmem:[#allocation3 + $0x28] sm:$0xf] %vm373_vm0, %v2220_v18 }
 0x162   : > { %v1844_v42 = vpop.permute.xlu1 %1843  ;;  %v5107_v47 = vor.u32 %v5382_v27, %v5106_v5  ;;  %v3816_v61 = vsel %vm6088_vm14, %v5081_v15, %v3815_v13  ;;  %v2205_v51 = vrot.slane %v2204_v39, 4  ;;  %5454 = vmatpush.bf16.msrb.mxu3 %v6416_v11  ;;  %v3324_v5 = vrot.slane %v3322_v8, 5  ;;  %v1941_v15 = vld [vmem:[#allocation2 + $0x40] sm:$0xf] }
 0x163   : > { %v2832_v34 = vpop.permute.xlu0 %2831  ;;  %1920 = vst.msk [vmem:[#allocation3 + $0xf0] sm:$0xf] %vm1899_vm1, %v1844_v42  ;;  %v339_v42 = vadd.f32 %v6614_v32, %v303_v44  ;;  %v2225_v27 = vshll.u32 %v2131_v62, 16  ;;  %v1960_v62 = vld [vmem:[#allocation2 + $0xb4] sm:$0xf] }
 0x164   : > { %2926 = vst.msk [vmem:[#allocation3 + $0x10] sm:$0xf] %vm1559_vm15, %v2832_v34  ;;  %3596 = vrot.lane.b32.xlu2 %v3293_v48, %s5493_s9  ;;  %5360 = vmatmul.msk.bf16.vlgmr.msra.gmra.mxu2 %vm4430_vm4, %v5107_v47  ;;  %v3817_v48 = vrot.slane %v3815_v13, 4  ;;  %v3818_v34 = vrot.slane %v3715_v54, 5  ;;  %v2210_v12 = vsel %vm5615_vm10, %v2205_v51, %v6570_v37  ;;  %v2224_v37 = vrot.slane %v2222_v23, 4 }
 0x165   : > { %3952 = vst.msk [vmem:[#allocation3 + $0x20] sm:$0xf] %vm373_vm0, %v3816_v61  ;;  %v371_v28 = vmax.f32 %v339_v42, 0.0  ;;  %v2227_v22 = vrot.slane %v2225_v27, 5  ;;  %v3328_v47 = vshll.u32 %v6628_v21, 16 }
 0x166   : > { %v2830_v0 = vpop.permute.xlu2 %2829  ;;  %v3819_v30 = vsel %vm6088_vm14, %v3817_v48, %v3818_v34  ;;  %2591 = vst.msk [vmem:[#allocation3 + $0x1c] sm:$0xf] %vm373_vm0, %v2210_v12  ;;  %5455 = vmatpush.bf16.msrb.mxu3 %v6435_v56  ;;  %v3717_v48 = vld [vmem:[#allocation2 + $0x34] sm:$0xf]  ;;  %v1634_v34 = vld [vmem:[#allocation2 + $0xa8] sm:$0xe] }
 0x167   : > { %2925 = vst.msk [vmem:[#allocation3 + $0x4] sm:$0xf] %vm1559_vm15, %v2830_v0  ;;  %v3321_v0 = vrot.slane %v3319_v33, 4  ;;  %v525_v41 = vpack.c.bf16 %v371_v28, %v371_v28  ;;  %v2228_v54 = vor.u32 %v2227_v22, %v2224_v37  ;;  %v6645_v61 = vrot.slane %v3328_v47, 5  ;;  %v3718_v51 = vld [vmem:[#allocation2 + $0x38] sm:$0x1] }
 0x168   : > { %2847 = vrot.lane.b32.xlu1 %v2751_v46, %s5491_s28  ;;  %v1940_v46 = vld [vmem:[#allocation2 + $0x3c] sm:$0xf]  ;;  %3953 = vst.msk [vmem:[#allocation3 + $0x2c] sm:$0xf] %vm373_vm0, %v3819_v30  ;;  %v3825_v12 = vrot.slane %v3718_v51, 5  ;;  %v5062_v27 = vrot.slane %v1634_v34, 9 }
 0x169   : > { %1861 = vrot.lane.b32.xlu0 %v1795_v7, %s5492_s8  ;;  %v3312_v7 = vrot.slane %v3311_v3, 4  ;;  %v2969_v3 = vld [vmem:[#allocation2 + $0x58] sm:$0xf]  ;;  %v3325_v18 = vor.u32 %v3324_v5, %v3321_v0  ;;  %v785_v20 = vshrl.u32 %v525_v41, 16  ;;  %v788_v35 = vshll.u32 %v525_v41, 16 }
 0x16a   : > { %v1850_v36 = vpop.permute.xlu1 %1849  ;;  %5456 = vmatpush.bf16.msrb.mxu3 %v6451_v55  ;;  %v2229_v44 = vrot.slane %v2228_v54, 4  ;;  %v268_v30 = vld [vmem:[%s5570_s27 + $0xf8] sm:$0xff]  ;;  %v2133_v23 = vld [vmem:[#allocation2 + $0x2c] sm:$0x1] }
 0x16b   : > { %v1997_v4 = vpop.permute.xlu0 %1996  ;;  %1923 = vst.msk [vmem:[#allocation3 + $0x114] sm:$0xf] %vm1899_vm1, %v1850_v36  ;;  %v3317_v24 = vsel %vm5615_vm10, %v3312_v7, %v3316_v49  ;;  %v3326_v39 = vrot.slane %v3325_v18, 4  ;;  %v6650_v7 = vld [vmem:[#allocation2 + $0xb8] sm:$0xf]  ;;  %v304_v28 = vmul.f32 %v6602_v26, %v268_v30 }
 0x16c   : > { %2093 = vst.msk [vmem:[#allocation3] sm:$0xf] %vm2092_vm2, %v1997_v4  ;;  %2050 = vrot.lane.b32.xlu2 %v1959_v59, %s5493_s9  ;;  %v2132_v59 = vld [vmem:[#allocation2 + $0x28] sm:$0xf]  ;;  %v434_v4 = vsel %vm5536_vm3, 0, %v433_v50 }
 0x16d   : > { %v2231_v13 = vshll.u32 %v2132_v59, 16  ;;  %v5118_v56 = vld [vmem:[#allocation3 + $0x20] sm:$0xf]  ;;  %v2235_v36 = vshrl.u32 %v2132_v59, 16  ;;  %435 = vst [vmem:[#allocation2 + $0xc0] sm:$0x1] %v434_v4  ;;  %v340_v41 = vadd.f32 %v6614_v32, %v304_v28  ;;  %v3331_v26 = vsel %vm5615_vm10, %v3326_v39, %v6645_v61 }
 0x16e   : > { %v3025_v29 = vpop.permute.xlu2 %3024  ;;  %v3716_v49 = vld [vmem:[#allocation2 + $0x30] sm:$0xe]  ;;  %5457 = vmatpush.bf16.msrb.mxu3 %v6471_v58  ;;  %v2638_v32 = vld [vmem:[#allocation2 + $0x50] sm:$0x1]  ;;  %v2639_v39 = vld [vmem:[#allocation2 + $0x54] sm:$0xe] }
 0x16f   : > { %3119 = vst.msk [vmem:[#allocation3 + $0x10] sm:$0xf] %vm1899_vm1, %v3025_v29  ;;  %v2233_v33 = vrot.slane %v2231_v13, 5  ;;  %v5385_v8 = vld [vmem:[#allocation3 + $0x28] sm:$0xf0]  ;;  %v5082_v5 = vrot.slane %v3716_v49, 9 }
 0x170   : > { %2012 = vrot.lane.b32.xlu1 %v1940_v46, %s5493_s9  ;;  %v5119_v42 = vor.u32 %v5385_v8, %v5118_v56  ;;  %v3822_v46 = vrot.slane %v3717_v48, 5  ;;  %v2237_v59 = vrot.slane %v2235_v36, 4  ;;  %v372_v47 = vmax.f32 %v340_v41, 0.0  ;;  %v1961_v51 = vld [vmem:[#allocation2 + $0xb8] sm:$0xf] }
 0x171   : > { %2849 = vrot.lane.b32.xlu0 %v2755_v17, %s5491_s28  ;;  %v6640_v17 = vrot.slane %v785_v20, 7  ;;  %v2234_v55 = vsel %vm5615_vm10, %v2229_v44, %v2233_v33  ;;  %v2756_v36 = vrot.slane %v2754_v45, 4 }
 0x172   : > { %v1856_v19 = vpop.permute.xlu1 %1855  ;;  %2593 = vst.msk [vmem:[#allocation3 + $0x34] sm:$0xf] %vm373_vm0, %v2234_v55  ;;  %v3824_v50 = vrot.slane %v3822_v46, 4  ;;  %v3823_v58 = vsel %vm6088_vm14, %v5082_v5, %v3822_v46  ;;  %v2238_v22 = vor.u32 %v2237_v59, %v2233_v33  ;;  %5458 = vmatpush.bf16.msrb.mxu3 %v6484_v25  ;;  %v526_v56 = vpack.c.bf16 %v372_v47, %v372_v47 }
 0x173   : > { %v3585_v11 = vpop.permute.xlu0 %3584  ;;  %1926 = vst.msk [vmem:[#allocation3 + $0x138] sm:$0xf] %vm1899_vm1, %v1856_v19  ;;  %v790_v0 = vor.u32 %v788_v35, %v6640_v17  ;;  %v1639_v19 = vld [vmem:[#allocation2 + $0xbc] sm:$0x1]  ;;  %v1792_v25 = vsel %vm6088_vm14, %v5062_v27, %v1791_v52  ;;  %v2757_v35 = vrot.slane %v2638_v32, 5  ;;  %v3332_v52 = vshrl.u32 %v6628_v21, 16 }
 0x174   : > { %3679 = vst.msk [vmem:[#allocation3 + $0x10] sm:$0xf] %vm2092_vm2, %v3585_v11  ;;  %3038 = vrot.lane.b32.xlu2 %v2966_v60, %s5492_s8  ;;  %5361 = vmatmul.msk.bf16.gmra.mxu2 %vm4430_vm4, %v5119_v42  ;;  %v1798_v11 = vrot.slane %v6650_v7, 5  ;;  %v957_v37 = vld [vmem:[#allocation2 + $0xc0] sm:$0xf]  ;;  %v3826_v18 = vsel %vm6088_vm14, %v3824_v50, %v3825_v12  ;;  %v2239_v20 = vrot.slane %v2238_v22, 4 }
 0x175   : > { %v958_v4 = vsel %vm5609_vm9, %v790_v0, %v957_v37  ;;  %3954 = vst.msk [vmem:[#allocation3 + $0x38] sm:$0xf] %vm373_vm0, %v3823_v58  ;;  %v793_v8 = vshrl.u32 %v526_v56, 16  ;;  %v796_v48 = vshll.u32 %v526_v56, 16  ;;  %v2758_v34 = vsel %vm6088_vm14, %v2756_v36, %v2757_v35  ;;  %v6699_v42 = vld [vmem:[#allocation2 + $0x58] sm:$0xf] }
 0x176   : > { %v3583_v57 = vpop.permute.xlu2 %3582  ;;  %v1800_v63 = vrot.slane %v1798_v11, 4  ;;  %959 = vst [vmem:[#allocation2 + $0xc0] sm:$0xf] %v958_v4  ;;  %5459 = vmatpush.bf16.msrb.mxu3 %v6506_v40  ;;  %v5098_v46 = vld [vmem:[#allocation3] sm:$0xf]  ;;  %v791_v55 = vrot.slane %v6640_v17, 4 }
 0x177   : > { %3955 = vst.msk [vmem:[#allocation3 + $0x44] sm:$0xf] %vm373_vm0, %v3826_v18  ;;  %v3168_v21 = vld [vmem:[#allocation2 + $0x60] sm:$0xf]  ;;  %v6702_v49 = vrot.slane %v793_v8, 7  ;;  %v3334_v28 = vrot.slane %v3332_v52, 4 }
 0x178   : > { %3600 = vrot.lane.b32.xlu1 %v3317_v24, %s5493_s9  ;;  %v1801_v24 = vrot.slane %v1639_v19, 5  ;;  %v5070_v0 = vrot.slane %v2639_v39, 9  ;;  %v2761_v5 = vrot.slane %v6699_v42, 5  ;;  %v3167_v50 = vld [vmem:[#allocation2 + $0x5c] sm:$0x1]  ;;  %v3343_v41 = vshrl.u32 %v3168_v21, 16 }
 0x179   : > { %3044 = vrot.lane.b32.xlu0 %v2969_v3, %s5492_s8  ;;  %v2241_v3 = vshll.u32 %v2133_v23, 16  ;;  %v798_v17 = vor.u32 %v796_v48, %v6702_v49  ;;  %v3335_v22 = vor.u32 %v3334_v28, %v6645_v61  ;;  %v3721_v32 = vld [vmem:[#allocation2 + $0x44] sm:$0x1] }
 0x17a   : > { %v3023_v60 = vpop.permute.xlu1 %3022  ;;  %v1802_v45 = vsel %vm6088_vm14, %v1800_v63, %v1801_v24  ;;  %5460 = vmatpush.bf16.msrb.mxu3 %v6522_v10  ;;  %v3346_v10 = vshll.u32 %v3168_v21, 16  ;;  %v2762_v16 = vsel %vm6088_vm14, %v5070_v0, %v2761_v5  ;;  %v3832_v63 = vrot.slane %v3721_v32, 5  ;;  %v6730_v56 = vld [vmem:[#allocation2 + $0x64] sm:$0xf]  ;;  %v1943_v0 = vld [vmem:[#allocation2 + $0x4c] sm:$0xf] }
 0x17b   : > { %v6648_v29 = vpop.permute.xlu0 %3026  ;;  %3118 = vst.msk [vmem:[#allocation3 + $0x4] sm:$0xf] %vm1899_vm1, %v3023_v60  ;;  %v2243_v54 = vrot.slane %v2241_v3, 5  ;;  %v3720_v60 = vld [vmem:[#allocation2 + $0x40] sm:$0xf]  ;;  %v799_v19 = vsel %vm5623_vm11, %v791_v55, %v798_v17  ;;  %v3336_v24 = vrot.slane %v3335_v22, 4 }
 0x17c   : > { %3678 = vst.msk [vmem:[#allocation3 + $0x4] sm:$0xf] %vm2092_vm2, %v3583_v57  ;;  %2014 = vrot.lane.b32.xlu2 %v1941_v15, %s5493_s9  ;;  %v5100_v57 = vld [vmem:[#allocation3 + $0xc] sm:$0xf0]  ;;  %v5130_v30 = vld [vmem:[#allocation3 + $0x38] sm:$0xf] }
 0x17d   : > { %v2244_v33 = vsel %vm5615_vm10, %v2239_v20, %v2243_v54  ;;  %v3829_v23 = vrot.slane %v3720_v60, 5  ;;  %v1942_v3 = vld [vmem:[#allocation2 + $0x48] sm:$0xf]  ;;  %v3348_v18 = vrot.slane %v3346_v10, 5  ;;  %960 = vst.msk [vmem:[#allocation2 + $0xc4] sm:$0xf] %vm373_vm0, %v799_v19 }
 0x17e   : > { %v2836_v13 = vpop.permute.xlu2 %2835  ;;  %2594 = vst.msk [vmem:[#allocation3 + $0x40] sm:$0xf] %vm373_vm0, %v2244_v33  ;;  %v5388_v12 = vld [vmem:[#allocation3 + $0x40] sm:$0xf0]  ;;  %5461 = vmatpush.bf16.msrb.mxu3 %v6556_v14  ;;  %v3345_v14 = vrot.slane %v3343_v41, 4  ;;  %v3352_v52 = vshll.u32 %v6730_v56, 16 }
 0x17f   : > { %2928 = vst.msk [vmem:[#allocation3 + $0x28] sm:$0xf] %vm1559_vm15, %v2836_v13  ;;  %v5131_v59 = vor.u32 %v5388_v12, %v5130_v30  ;;  %v3338_v13 = vshll.u32 %v3167_v50, 16  ;;  %v3831_v47 = vrot.slane %v3829_v23, 4  ;;  %v2971_v48 = vld [vmem:[#allocation2 + $0x64] sm:$0xf] }
 0x180   : > { %2052 = vrot.lane.b32.xlu1 %v1960_v62, %s5493_s9  ;;  %v2134_v60 = vld [vmem:[#allocation2 + $0x30] sm:$0xf]  ;;  %v6750_v50 = vrot.slane %v3352_v52, 5  ;;  %v1637_v41 = vld [vmem:[#allocation2 + $0xb4] sm:$0xe] }
 0x181   : > { %3602 = vrot.lane.b32.xlu0 %v3331_v26, %s5493_s9  ;;  %v3719_v26 = vld [vmem:[#allocation2 + $0x3c] sm:$0xe]  ;;  %v3340_v54 = vrot.slane %v3338_v13, 5  ;;  %v3833_v36 = vsel %vm6088_vm14, %v3831_v47, %v3832_v63  ;;  %v2246_v17 = vshrl.u32 %v2134_v60, 16  ;;  %v3722_v13 = vld [vmem:[#allocation2 + $0x48] sm:$0xe] }
 0x182   : > { %v1999_v44 = vpop.permute.xlu1 %1998  ;;  %v5083_v4 = vrot.slane %v3719_v26, 9  ;;  %3957 = vst.msk [vmem:[#allocation3 + $0x5c] sm:$0xf] %vm373_vm0, %v3833_v36  ;;  %v3186_v26 = vld [vmem:[#allocation2 + $0xa8] sm:$0xf] }
 0x183   : > { %v2003_v15 = vpop.permute.xlu0 %2002  ;;  %2094 = vst.msk [vmem:[#allocation3 + $0xc] sm:$0xf] %vm2092_vm2, %v1999_v44  ;;  %v5380_v53 = vld [vmem:[#allocation3 + $0x4] sm:$0xf]  ;;  %v3724_v32 = vld [vmem:[#allocation2 + $0x50] sm:$0x1] }
 0x184   : > { %2096 = vst.msk [vmem:[#allocation3 + $0x24] sm:$0xf] %vm2092_vm2, %v2003_v15  ;;  %v5103_v43 = vor.u32 %v5380_v53, %v5100_v57  ;;  %1859 = vrot.lane.b32.xlu2 %v1792_v25, %s5492_s8  ;;  %5362 = vmatmul.msk.bf16.gmra.mxu2 %vm4430_vm4, %v5131_v59  ;;  %v3830_v61 = vsel %vm6088_vm14, %v5083_v4, %v3829_v23  ;;  %v2135_v57 = vld [vmem:[#allocation2 + $0x34] sm:$0xf]  ;;  %v2136_v25 = vld [vmem:[#allocation2 + $0x38] sm:$0x1] }
 0x185   : > { %3956 = vst.msk [vmem:[#allocation3 + $0x50] sm:$0xf] %vm373_vm0, %v3830_v61  ;;  %v3349_v15 = vor.u32 %v3348_v18, %v3345_v14  ;;  %v2255_v44 = vshll.u32 %v2135_v57, 16  ;;  %v2259_v33 = vshrl.u32 %v2135_v57, 16  ;;  %v2265_v8 = vshll.u32 %v2136_v25, 16 }
 0x186   : > { %4576 = vmatmul.bf16.vlgmr.msra.gmra.mxu1 %v5103_v43  ;;  %v2001_v40 = vpop.permute.xlu2 %2000  ;;  %v3723_v23 = vld [vmem:[#allocation2 + $0x4c] sm:$0xf]  ;;  %v3487_v18 = vshrl.u32 %v3186_v26, 16  ;;  %v3490_v61 = vshll.u32 %v3186_v26, 16  ;;  %v1962_v57 = vld [vmem:[#allocation2 + $0xc0] sm:$0xf] }
 0x187   : > { %2095 = vst.msk [vmem:[#allocation3 + $0x18] sm:$0xf] %vm2092_vm2, %v2001_v40  ;;  %v6739_v43 = vrot.slane %v2255_v44, 5  ;;  %v2267_v21 = vrot.slane %v2265_v8, 5  ;;  %v3836_v14 = vrot.slane %v3723_v23, 5  ;;  %v5063_v25 = vrot.slane %v1637_v41, 9 }
 0x188   : > { %2851 = vrot.lane.b32.xlu1 %v2758_v34, %s5491_s28  ;;  %v3341_v34 = vsel %vm5615_vm10, %v3336_v24, %v3340_v54  ;;  %v2641_v44 = vld [vmem:[#allocation2 + $0x5c] sm:$0x1]  ;;  %v3489_v52 = vrot.slane %v3487_v18, 4  ;;  %v2138_v26 = vld [vmem:[#allocation2 + $0x40] sm:$0xf] }
 0x189   : > { %1865 = vrot.lane.b32.xlu0 %v1802_v45, %s5492_s8  ;;  %v2261_v45 = vrot.slane %v2259_v33, 4  ;;  %v5391_v10 = vld [vmem:[#allocation3 + $0x58] sm:$0xf0]  ;;  %v3838_v54 = vrot.slane %v3836_v14, 4  ;;  %v1963_v23 = vld [vmem:[#allocation2 + $0xc4] sm:$0xf] }
 0x18a   : > { %v2834_v58 = vpop.permute.xlu1 %2833  ;;  %v5381_v27 = vld [vmem:[#allocation3 + $0x8] sm:$0xf0]  ;;  %v2279_v18 = vshll.u32 %v2138_v26, 16 }
 0x18b   : > { %v2838_v62 = vpop.permute.xlu0 %2837  ;;  %2927 = vst.msk [vmem:[#allocation3 + $0x1c] sm:$0xf] %vm1559_vm15, %v2834_v58  ;;  %v5099_v37 = vor.u32 %v5381_v27, %v5098_v46  ;;  %v5384_v40 = vld [vmem:[#allocation3 + $0x20] sm:$0xf0]  ;;  %v3350_v46 = vrot.slane %v3349_v15, 4  ;;  %v2262_v30 = vor.u32 %v2261_v45, %v6739_v43  ;;  %v3492_v45 = vrot.slane %v3490_v61, 5 }
 0x18c   : > { %2929 = vst.msk [vmem:[#allocation3 + $0x34] sm:$0xf] %vm1559_vm15, %v2838_v62  ;;  %2054 = vrot.lane.b32.xlu2 %v1961_v51, %s5493_s9  ;;  %v6746_v51 = vld [vmem:[#allocation2 + $0xa0] sm:$0xf]  ;;  %v5142_v28 = vld [vmem:[#allocation3 + $0x50] sm:$0xf] }
 0x18d   : > { %3120 = vst.msk [vmem:[#allocation3 + $0x1c] sm:$0xf] %vm1899_vm1, %v6648_v29  ;;  %4487 = vmatmul.bf16.vlgmr.msra.gmra.mxu0 %v5099_v37  ;;  %v2968_v29 = vld [vmem:[#allocation2 + $0x54] sm:$0xf]  ;;  %v2263_v12 = vrot.slane %v2262_v30, 4  ;;  %v2249_v62 = vshll.u32 %v2134_v60, 16  ;;  %v5143_v19 = vor.u32 %v5391_v10, %v5142_v28  ;;  %v3355_v63 = vsel %vm5615_vm10, %v3350_v46, %v6750_v50 }
 0x18e   : > { %v3589_v20 = vpop.permute.xlu2 %3588  ;;  %v5110_v39 = vld [vmem:[#allocation3 + $0x18] sm:$0xf]  ;;  %v2248_v37 = vrot.slane %v2246_v17, 4  ;;  %v2763_v46 = vrot.slane %v2761_v5, 4  ;;  %v2764_v30 = vrot.slane %v2641_v44, 5  ;;  %v3356_v28 = vshrl.u32 %v6730_v56, 16 }
 0x18f   : > { %v5111_v59 = vor.u32 %v5384_v40, %v5110_v39  ;;  %v2268_v27 = vsel %vm5615_vm10, %v2263_v12, %v2267_v21  ;;  %v2251_v22 = vrot.slane %v2249_v62, 5  ;;  %v6777_v39 = vld [vmem:[#allocation2 + $0xac] sm:$0xf]  ;;  %v1799_v40 = vsel %vm6088_vm14, %v5063_v25, %v1798_v11  ;;  %v2137_v10 = vld [vmem:[#allocation2 + $0x3c] sm:$0xf] }
 0x190   : > { %2016 = vrot.lane.b32.xlu1 %v1942_v3, %s5493_s9  ;;  %v2803_v3 = vrot.slane %v6746_v51, 5  ;;  %2596 = vst.msk [vmem:[#allocation3 + $0x58] sm:$0xf] %vm373_vm0, %v2268_v27  ;;  %v3493_v7 = vor.u32 %v3492_v45, %v3489_v52  ;;  %v2765_v42 = vsel %vm6088_vm14, %v2763_v46, %v2764_v30  ;;  %v3358_v56 = vrot.slane %v3356_v28, 4  ;;  %v6805_v27 = vld [vmem:[#allocation2 + $0x64] sm:$0xf] }
 0x191   : > { %2853 = vrot.lane.b32.xlu0 %v2762_v16, %s5491_s28  ;;  %v5084_v16 = vrot.slane %v3722_v13, 9  ;;  %v2252_v47 = vor.u32 %v2251_v22, %v2248_v37  ;;  %v2270_v37 = vshrl.u32 %v2137_v10, 16  ;;  %v2273_v22 = vshll.u32 %v2137_v10, 16  ;;  %v3727_v25 = vld [vmem:[#allocation2 + $0x5c] sm:$0x1] }
 0x192   : > { %v3029_v53 = vpop.permute.xlu1 %3028  ;;  %v2805_v33 = vrot.slane %v2803_v3, 4  ;;  %v3494_v17 = vrot.slane %v3493_v7, 4  ;;  %v2970_v45 = vld [vmem:[#allocation2 + $0x60] sm:$0xf]  ;;  %v3172_v7 = vld [vmem:[#allocation2 + $0x70] sm:$0xf] }
 0x193   : > { %v6734_v35 = vpop.permute.xlu0 %3032  ;;  %3121 = vst.msk [vmem:[#allocation3 + $0x28] sm:$0xf] %vm1899_vm1, %v3029_v53  ;;  %v3837_v24 = vsel %vm6088_vm14, %v5084_v16, %v3836_v14  ;;  %v2253_v36 = vrot.slane %v2252_v47, 4  ;;  %v2272_v16 = vrot.slane %v2270_v37, 4  ;;  %v2275_v14 = vrot.slane %v2273_v22, 5 }
 0x194   : > { %3681 = vst.msk [vmem:[#allocation3 + $0x28] sm:$0xf] %vm2092_vm2, %v3589_v20  ;;  %3042 = vrot.lane.b32.xlu2 %v2968_v29, %s5492_s8  ;;  %5363 = vmatmul.msk.bf16.gmra.mxu2 %vm4430_vm4, %v5143_v19  ;;  %v3839_v20 = vrot.slane %v3724_v32, 5  ;;  %v2659_v29 = vld [vmem:[#allocation2 + $0xa4] sm:$0x1] }
 0x195   : > { %3958 = vst.msk [vmem:[#allocation3 + $0x68] sm:$0xf] %vm373_vm0, %v3837_v24  ;;  %v2806_v53 = vrot.slane %v2659_v29, 5  ;;  %v3725_v29 = vld [vmem:[#allocation2 + $0x54] sm:$0xe]  ;;  %v3359_v24 = vor.u32 %v3358_v56, %v6750_v50 }
 0x196   : > { %v3031_v55 = vpop.permute.xlu2 %3030  ;;  %v3840_v8 = vsel %vm6088_vm14, %v3838_v54, %v3839_v20  ;;  %v2644_v54 = vld [vmem:[#allocation2 + $0x68] sm:$0x1] }
 0x197   : > { %3122 = vst.msk [vmem:[#allocation3 + $0x34] sm:$0xf] %vm1899_vm1, %v3031_v55  ;;  %v2807_v11 = vsel %vm6088_vm14, %v2805_v33, %v2806_v53  ;;  %v3846_v53 = vrot.slane %v3727_v25, 5  ;;  %v2771_v30 = vrot.slane %v2644_v54, 5  ;;  %v3729_v54 = vld [vmem:[#allocation2 + $0x64] sm:$0xf] }
 0x198   : > { %3604 = vrot.lane.b32.xlu1 %v3341_v34, %s5493_s9  ;;  %3959 = vst.msk [vmem:[#allocation3 + $0x74] sm:$0xf] %vm373_vm0, %v3840_v8  ;;  %v2283_v8 = vshrl.u32 %v2138_v26, 16  ;;  %v2982_v25 = vld [vmem:[#allocation2 + $0xa8] sm:$0xf] }
 0x199   : > { %3048 = vrot.lane.b32.xlu0 %v2971_v48, %s5492_s8  ;;  %v2258_v48 = vsel %vm5615_vm10, %v2253_v36, %v6739_v43  ;;  %v5085_v36 = vrot.slane %v3725_v29, 9 }
 0x19a   : > { %v3587_v4 = vpop.permute.xlu1 %3586  ;;  %2595 = vst.msk [vmem:[#allocation3 + $0x4c] sm:$0xf] %vm373_vm0, %v2258_v48  ;;  %v2285_v56 = vrot.slane %v2283_v8, 4 }
 0x19b   : > { %v3591_v58 = vpop.permute.xlu0 %3590  ;;  %3680 = vst.msk [vmem:[#allocation3 + $0x1c] sm:$0xf] %vm2092_vm2, %v3587_v4  ;;  %v5112_v34 = vld [vmem:[#allocation3 + $0x24] sm:$0xf0]  ;;  %v1944_v4 = vld [vmem:[#allocation2 + $0x54] sm:$0xf] }
 0x19c   : > { %3682 = vst.msk [vmem:[#allocation3 + $0x34] sm:$0xf] %vm2092_vm2, %v3591_v58  ;;  %2018 = vrot.lane.b32.xlu2 %v1943_v0, %s5493_s9  ;;  %v3496_v0 = vshll.u32 %v6777_v39, 16  ;;  %v5154_v12 = vld [vmem:[#allocation3 + $0x68] sm:$0xf] }
 0x19d   : > { %4492 = vmatmul.bf16.gmra.mxu0 %v5111_v59  ;;  %v3726_v59 = vld [vmem:[#allocation2 + $0x58] sm:$0xf] }
 0x19e   : > { %v2007_v15 = vpop.permute.xlu2 %2006  ;;  %v6800_v62 = vrot.slane %v3496_v0, 5  ;;  %v3843_v32 = vrot.slane %v3726_v59, 5  ;;  %v2139_v59 = vld [vmem:[#allocation2 + $0x44] sm:$0x1] }
 0x19f   : > { %2098 = vst.msk [vmem:[#allocation3 + $0x3c] sm:$0xf] %vm2092_vm2, %v2007_v15  ;;  %v5394_v41 = vld [vmem:[#allocation3 + $0x70] sm:$0xf0]  ;;  %v2289_v10 = vshll.u32 %v2139_v59, 16 }
 0x1a0   : > { %2056 = vrot.lane.b32.xlu1 %v1962_v57, %s5493_s9  ;;  %v5155_v19 = vor.u32 %v5394_v41, %v5154_v12  ;;  %v3499_v47 = vsel %vm5615_vm10, %v3494_v17, %v6800_v62  ;;  %v2276_v57 = vor.u32 %v2275_v14, %v2272_v16  ;;  %v3845_v15 = vrot.slane %v3843_v32, 4  ;;  %v3732_v59 = vld [vmem:[#allocation2 + $0x70] sm:$0xf] }
 0x1a1   : > { %3606 = vrot.lane.b32.xlu0 %v3355_v63, %s5493_s9  ;;  %v2768_v63 = vrot.slane %v6805_v27, 5  ;;  %v3844_v50 = vsel %vm6088_vm14, %v5085_v36, %v3843_v32  ;;  %v3376_v17 = vshll.u32 %v3172_v7, 16  ;;  %v2291_v22 = vrot.slane %v2289_v10, 5  ;;  %v3728_v36 = vld [vmem:[#allocation2 + $0x60] sm:$0xe] }
 0x1a2   : > { %v2840_v43 = vpop.permute.xlu1 %2839  ;;  %v5383_v55 = vld [vmem:[#allocation3 + $0x1c] sm:$0xf]  ;;  %v2277_v48 = vrot.slane %v2276_v57, 4  ;;  %3960 = vst.msk [vmem:[#allocation3 + $0x80] sm:$0xf] %vm373_vm0, %v3844_v50 }
 0x1a3   : > { %v2047_v21 = vpop.permute.xlu0 %2046  ;;  %2930 = vst.msk [vmem:[#allocation3 + $0x40] sm:$0xf] %vm1559_vm15, %v2840_v43  ;;  %v5115_v60 = vor.u32 %v5383_v55, %v5112_v34  ;;  %v2281_v34 = vrot.slane %v2279_v18, 5  ;;  %v2770_v46 = vrot.slane %v2768_v63, 4  ;;  %v3360_v43 = vrot.slane %v3359_v24, 4 }
 0x1a4   : > { %2118 = vst.msk [vmem:[#allocation3 + $0x12c] sm:$0xf] %vm2092_vm2, %v2047_v21  ;;  %1863 = vrot.lane.b32.xlu2 %v1799_v40, %s5492_s8  ;;  %5364 = vmatmul.msk.bf16.gmra.mxu2 %vm4430_vm4, %v5155_v19  ;;  %v3847_v21 = vsel %vm6088_vm14, %v3845_v15, %v3846_v53  ;;  %v6842_v32 = vrot.slane %v3376_v17, 5  ;;  %v2657_v18 = vld [vmem:[#allocation2 + $0x9c] sm:$0xe] }
 0x1a5   : > { %3123 = vst.msk [vmem:[#allocation3 + $0x40] sm:$0xf] %vm1899_vm1, %v6734_v35  ;;  %4581 = vmatmul.bf16.gmra.mxu1 %v5115_v60  ;;  %v3170_v35 = vld [vmem:[#allocation2 + $0x68] sm:$0x1]  ;;  %v2282_v60 = vsel %vm5615_vm10, %v2277_v48, %v2281_v34  ;;  %v2772_v12 = vsel %vm6088_vm14, %v2770_v46, %v2771_v30  ;;  %v2286_v41 = vor.u32 %v2285_v56, %v2281_v34  ;;  %v3850_v46 = vrot.slane %v3729_v54, 5 }
 0x1a6   : > { %v2045_v5 = vpop.permute.xlu2 %2044  ;;  %v3362_v20 = vshll.u32 %v3170_v35, 16  ;;  %v5387_v40 = vld [vmem:[#allocation3 + $0x38] sm:$0xf0]  ;;  %3961 = vst.msk [vmem:[#allocation3 + $0x8c] sm:$0xf] %vm373_vm0, %v3847_v21  ;;  %v3380_v35 = vshrl.u32 %v3172_v7, 16 }
 0x1a7   : > { %2117 = vst.msk [vmem:[#allocation3 + $0x120] sm:$0xf] %vm2092_vm2, %v2045_v5  ;;  %v3500_v5 = vshrl.u32 %v6777_v39, 16  ;;  %v1945_v39 = vld [vmem:[#allocation2 + $0x58] sm:$0xf]  ;;  %v2287_v37 = vrot.slane %v2286_v41, 4 }
 0x1a8   : > { %2855 = vrot.lane.b32.xlu1 %v2765_v42, %s5491_s28  ;;  %v3364_v55 = vrot.slane %v3362_v20, 5  ;;  %2597 = vst.msk [vmem:[#allocation3 + $0x64] sm:$0xf] %vm373_vm0, %v2282_v60  ;;  %v3730_v15 = vld [vmem:[#allocation2 + $0x68] sm:$0x1] }
 0x1a9   : > { %2879 = vrot.lane.b32.xlu0 %v2807_v11, %s5491_s28  ;;  %v5166_v19 = vld [vmem:[#allocation3 + $0x80] sm:$0xf]  ;;  %v2292_v24 = vsel %vm5615_vm10, %v2287_v37, %v2291_v22  ;;  %v3853_v30 = vrot.slane %v3730_v15, 5 }
 0x1aa   : > { %v2005_v13 = vpop.permute.xlu1 %2004  ;;  %2598 = vst.msk [vmem:[#allocation3 + $0x70] sm:$0xf] %vm373_vm0, %v2292_v24 }
 0x1ab   : > { %v6803_v58 = vpop.permute.xlu0 %3034  ;;  %2097 = vst.msk [vmem:[#allocation3 + $0x30] sm:$0xf] %vm2092_vm2, %v2005_v13  ;;  %v5417_v61 = vld [vmem:[#allocation3 + $0x128] sm:$0xf0]  ;;  %v3502_v13 = vrot.slane %v3500_v5, 4 }
 0x1ac   : > { %2058 = vrot.lane.b32.xlu2 %v1963_v23, %s5493_s9  ;;  %v5386_v23 = vld [vmem:[#allocation3 + $0x34] sm:$0xf] }
 0x1ad   : > { %v5397_v16 = vld [vmem:[#allocation3 + $0x88] sm:$0xf0] }
 0x1ae   : > { %v2844_v44 = vpop.permute.xlu2 %2843  ;;  %v5242_v33 = vld [vmem:[#allocation3 + $0x120] sm:$0xf] }
 0x1af   : > { %2932 = vst.msk [vmem:[#allocation3 + $0x58] sm:$0xf] %vm1559_vm15, %v2844_v44  ;;  %v5243_v52 = vor.u32 %v5417_v61, %v5242_v33  ;;  %v3188_v61 = vld [vmem:[#allocation2 + $0xb0] sm:$0x1]  ;;  %v1946_v44 = vld [vmem:[#allocation2 + $0x60] sm:$0xf] }
 0x1b0   : > { %2020 = vrot.lane.b32.xlu1 %v1944_v4, %s5493_s9  ;;  %v3382_v4 = vrot.slane %v3380_v35, 4  ;;  %v3506_v48 = vshll.u32 %v3188_v61, 16  ;;  %v2983_v35 = vld [vmem:[#allocation2 + $0xac] sm:$0xf]  ;;  %v3857_v61 = vrot.slane %v3732_v59, 5 }
 0x1b1   : > { %3630 = vrot.lane.b32.xlu0 %v3499_v47, %s5493_s9  ;;  %4547 = vmatmul.bf16.vlgmr.msra.gmra.mxu3 %v5243_v52  ;;  %v3173_v47 = vld [vmem:[#allocation2 + $0x74] sm:$0x1]  ;;  %v5076_v52 = vrot.slane %v2657_v18, 9 }
 0x1b2   : > { %v3593_v0 = vpop.permute.xlu1 %3592  ;;  %v5122_v11 = vld [vmem:[#allocation3 + $0x30] sm:$0xf]  ;;  %5462 = vmatpush.bf16.msra.mxu3 %v6527_v38  ;;  %v3365_v38 = vsel %vm5615_vm10, %v3360_v43, %v3364_v55  ;;  %v3383_v33 = vor.u32 %v3382_v4, %v6842_v32  ;;  %v3386_v8 = vshll.u32 %v3173_v47, 16  ;;  %v3852_v55 = vrot.slane %v3850_v46, 4 }
 0x1b3   : > { %v2011_v28 = vpop.permute.xlu0 %2010  ;;  %3683 = vst.msk [vmem:[#allocation3 + $0x40] sm:$0xf] %vm2092_vm2, %v3593_v0  ;;  %v5123_v42 = vor.u32 %v5387_v40, %v5122_v11  ;;  %v5086_v40 = vrot.slane %v3728_v36, 9  ;;  %v3508_v7 = vrot.slane %v3506_v48, 5  ;;  %v3190_v11 = vld [vmem:[#allocation2 + $0xb8] sm:$0xf] }
 0x1b4   : > { %2100 = vst.msk [vmem:[#allocation3 + $0x54] sm:$0xf] %vm2092_vm2, %v2011_v28  ;;  %3046 = vrot.lane.b32.xlu2 %v2970_v45, %s5492_s8  ;;  %v3503_v45 = vor.u32 %v3502_v13, %v6800_v62  ;;  %v3388_v21 = vrot.slane %v3386_v8, 5  ;;  %v2804_v62 = vsel %vm6088_vm14, %v5076_v52, %v2803_v3  ;;  %v3854_v5 = vsel %vm6088_vm14, %v3852_v55, %v3853_v30  ;;  %v3731_v13 = vld [vmem:[#allocation2 + $0x6c] sm:$0xe] }
 0x1b5   : > { %4497 = vmatmul.bf16.gmra.mxu0 %v5123_v42  ;;  %v3851_v43 = vsel %vm6088_vm14, %v5086_v40, %v3850_v46  ;;  %v3520_v3 = vshll.u32 %v3190_v11, 16  ;;  %v3524_v56 = vshrl.u32 %v3190_v11, 16  ;;  %3963 = vst.msk [vmem:[#allocation3 + $0xa4] sm:$0xf] %vm373_vm0, %v3854_v5  ;;  %v5087_v18 = vrot.slane %v3731_v13, 9 }
 0x1b6   : > { %v2009_v26 = vpop.permute.xlu2 %2008  ;;  %5463 = vmatpush.bf16.msra.mxu3 %v6565_v31  ;;  %v5167_v31 = vor.u32 %v5397_v16, %v5166_v19  ;;  %v3504_v60 = vrot.slane %v3503_v45, 4  ;;  %3962 = vst.msk [vmem:[#allocation3 + $0x98] sm:$0xf] %vm373_vm0, %v3851_v43  ;;  %v3191_v19 = vld [vmem:[#allocation2 + $0xbc] sm:$0x1] }
 0x1b7   : > { %2099 = vst.msk [vmem:[#allocation3 + $0x48] sm:$0xf] %vm2092_vm2, %v2009_v26  ;;  %v6878_v41 = vrot.slane %v3520_v3, 5  ;;  %v3526_v10 = vrot.slane %v3524_v56, 4  ;;  %v2140_v26 = vld [vmem:[#allocation2 + $0x48] sm:$0xf]  ;;  %v3858_v8 = vsel %vm6088_vm14, %v5087_v18, %v3857_v61 }
 0x1b8   : > { %3608 = vrot.lane.b32.xlu1 %v3365_v38, %s5493_s9  ;;  %5365 = vmatmul.msk.bf16.gmra.mxu2 %vm4430_vm4, %v5167_v31  ;;  %v2642_v38 = vld [vmem:[#allocation2 + $0x60] sm:$0xe]  ;;  %v2294_v37 = vshrl.u32 %v2140_v26, 16  ;;  %v2297_v22 = vshll.u32 %v2140_v26, 16  ;;  %v3530_v54 = vshll.u32 %v3191_v19, 16 }
 0x1b9   : > { %2859 = vrot.lane.b32.xlu0 %v2772_v12, %s5491_s28  ;;  %v3509_v12 = vsel %vm5615_vm10, %v3504_v60, %v3508_v7  ;;  %v3527_v24 = vor.u32 %v3526_v10, %v6878_v41  ;;  %v2972_v36 = vld [vmem:[#allocation2 + $0x6c] sm:$0xf]  ;;  %v5071_v15 = vrot.slane %v2642_v38, 9  ;;  %3964 = vst.msk [vmem:[#allocation3 + $0xb0] sm:$0xf] %vm373_vm0, %v3858_v8 }
 0x1ba   : > { %v2842_v20 = vpop.permute.xlu1 %2841  ;;  %v5124_v29 = vld [vmem:[#allocation3 + $0x3c] sm:$0xf0]  ;;  %v2296_v47 = vrot.slane %v2294_v37, 4  ;;  %v2299_v31 = vrot.slane %v2297_v22, 5  ;;  %v3171_v52 = vld [vmem:[#allocation2 + $0x6c] sm:$0xf] }
 0x1bb   : > { %v1858_v14 = vpop.permute.xlu0 %1857  ;;  %2931 = vst.msk [vmem:[#allocation3 + $0x4c] sm:$0xf] %vm1559_vm15, %v2842_v20  ;;  %v5127_v57 = vor.u32 %v5386_v23, %v5124_v29  ;;  %v5390_v53 = vld [vmem:[#allocation3 + $0x50] sm:$0xf0]  ;;  %v3733_v20 = vld [vmem:[#allocation2 + $0x74] sm:$0x1] }
 0x1bc   : > { %1927 = vst.msk [vmem:[#allocation3 + $0x144] sm:$0xf] %vm1899_vm1, %v1858_v14  ;;  %2022 = vrot.lane.b32.xlu2 %v1945_v39, %s5493_s9  ;;  %v2141_v23 = vld [vmem:[#allocation2 + $0x4c] sm:$0xf]  ;;  %v2984_v29 = vld [vmem:[#allocation2 + $0xb4] sm:$0xf] }
 0x1bd   : > { %3124 = vst.msk [vmem:[#allocation3 + $0x4c] sm:$0xf] %vm1899_vm1, %v6803_v58  ;;  %4586 = vmatmul.bf16.gmra.mxu1 %v5127_v57  ;;  %v3384_v58 = vrot.slane %v3383_v33, 4  ;;  %v5178_v16 = vld [vmem:[#allocation3 + $0x98] sm:$0xf]  ;;  %v2303_v14 = vshll.u32 %v2141_v23, 16  ;;  %v2300_v33 = vor.u32 %v2299_v31, %v2296_v47 }
 0x1be   : > { %v3597_v34 = vpop.permute.xlu2 %3596  ;;  %v5134_v50 = vld [vmem:[#allocation3 + $0x48] sm:$0xf]  ;;  %v5400_v57 = vld [vmem:[#allocation3 + $0xa0] sm:$0xf0]  ;;  %v3860_v45 = vrot.slane %v3733_v20, 5  ;;  %v3528_v46 = vrot.slane %v3527_v24, 4 }
 0x1bf   : > { %v5135_v28 = vor.u32 %v5390_v53, %v5134_v50  ;;  %v3389_v51 = vsel %vm5615_vm10, %v3384_v58, %v3388_v21  ;;  %v2301_v48 = vrot.slane %v2300_v33, 4  ;;  %v2307_v50 = vshrl.u32 %v2141_v23, 16  ;;  %v2660_v5 = vld [vmem:[#allocation2 + $0xa8] sm:$0xe]  ;;  %v2973_v38 = vld [vmem:[#allocation2 + $0x70] sm:$0xf] }
 0x1c0   : > { %3070 = vrot.lane.b32.xlu1 %v2982_v25, %s5492_s8  ;;  %v3859_v25 = vrot.slane %v3857_v61, 4  ;;  %v3532_v30 = vrot.slane %v3530_v54, 5  ;;  %v2769_v21 = vsel %vm6088_vm14, %v5071_v15, %v2768_v63  ;;  %v3367_v55 = vshrl.u32 %v3171_v52, 16  ;;  %v2142_v63 = vld [vmem:[#allocation2 + $0x50] sm:$0x1] }
 0x1c1   : > { %2024 = vrot.lane.b32.xlu0 %v1946_v44, %s5493_s9  ;;  %v5179_v44 = vor.u32 %v5400_v57, %v5178_v16  ;;  %v2309_v11 = vrot.slane %v2307_v50, 4  ;;  %v2313_v59 = vshll.u32 %v2142_v63, 16  ;;  %v5190_v10 = vld [vmem:[#allocation3 + $0xb0] sm:$0xf]  ;;  %v3735_v37 = vld [vmem:[#allocation2 + $0x7c] sm:$0xf] }
 0x1c2   : > { %v3037_v42 = vpop.permute.xlu1 %3036  ;;  %v3861_v58 = vsel %vm6088_vm14, %v3859_v25, %v3860_v45  ;;  %v3533_v27 = vsel %vm5615_vm10, %v3528_v46, %v3532_v30  ;;  %v5077_v22 = vrot.slane %v2660_v5, 9  ;;  %v3864_v18 = vrot.slane %v3735_v37, 5  ;;  %v3736_v24 = vld [vmem:[#allocation2 + $0x80] sm:$0x1]  ;;  %v2974_v54 = vld [vmem:[#allocation2 + $0x78] sm:$0xf] }
 0x1c3   : > { %v2846_v0 = vpop.permute.xlu0 %2845  ;;  %3125 = vst.msk [vmem:[#allocation3 + $0x58] sm:$0xf] %vm1899_vm1, %v3037_v42  ;;  %v1947_v42 = vld [vmem:[#allocation2 + $0x64] sm:$0xf]  ;;  %v2315_v19 = vrot.slane %v2313_v59, 5 }
 0x1c4   : > { %2933 = vst.msk [vmem:[#allocation3 + $0x64] sm:$0xf] %vm1559_vm15, %v2846_v0  ;;  %2877 = vrot.lane.b32.xlu2 %v2804_v62, %s5491_s28  ;;  %v3866_v25 = vrot.slane %v3864_v18, 4  ;;  %v2662_v50 = vld [vmem:[#allocation2 + $0xb0] sm:$0x1] }
 0x1c5   : > { %3685 = vst.msk [vmem:[#allocation3 + $0x58] sm:$0xf] %vm2092_vm2, %v3597_v34  ;;  %4502 = vmatmul.bf16.gmra.mxu0 %v5135_v28  ;;  %v2305_v34 = vrot.slane %v2303_v14, 5  ;;  %v3370_v28 = vshll.u32 %v3171_v52, 16  ;;  %v3734_v14 = vld [vmem:[#allocation2 + $0x78] sm:$0xe] }
 0x1c6   : > { %v2051_v17 = vpop.permute.xlu2 %2050  ;;  %3965 = vst.msk [vmem:[#allocation3 + $0xbc] sm:$0xf] %vm373_vm0, %v3861_v58  ;;  %v5088_v57 = vrot.slane %v3734_v14, 9  ;;  %v6937_v30 = vld [vmem:[#allocation2 + $0x70] sm:$0xf] }
 0x1c7   : > { %2120 = vst.msk [vmem:[#allocation3 + $0x144] sm:$0xf] %vm2092_vm2, %v2051_v17  ;;  %v2306_v62 = vsel %vm5615_vm10, %v2301_v48, %v2305_v34  ;;  %v3372_v3 = vrot.slane %v3370_v28, 5  ;;  %v2310_v56 = vor.u32 %v2309_v11, %v2305_v34  ;;  %v2663_v58 = vld [vmem:[#allocation2 + $0xb4] sm:$0xe]  ;;  %v2775_v11 = vrot.slane %v6937_v30, 5 }
 0x1c8   : > { %3632 = vrot.lane.b32.xlu1 %v3509_v12, %s5493_s9  ;;  %5366 = vmatmul.msk.bf16.gmra.mxu2 %vm4430_vm4, %v5179_v44  ;;  %2599 = vst.msk [vmem:[#allocation3 + $0x7c] sm:$0xf] %vm373_vm0, %v2306_v62  ;;  %v3189_v44 = vld [vmem:[#allocation2 + $0xb4] sm:$0xf]  ;;  %v3865_v8 = vsel %vm6088_vm14, %v5088_v57, %v3864_v18  ;;  %v2985_v62 = vld [vmem:[#allocation2 + $0xb8] sm:$0xf] }
 0x1c9   : > { %3612 = vrot.lane.b32.xlu0 %v3389_v51, %s5493_s9  ;;  %v3369_v51 = vrot.slane %v3367_v55, 4  ;;  %v2311_v26 = vrot.slane %v2310_v56, 4  ;;  %v3514_v52 = vshll.u32 %v3189_v44, 16  ;;  %3966 = vst.msk [vmem:[#allocation3 + $0xc8] sm:$0xf] %vm373_vm0, %v3865_v8  ;;  %v5078_v63 = vrot.slane %v2663_v58, 9 }
 0x1ca   : > { %v3595_v4 = vpop.permute.xlu1 %3594  ;;  %v1949_v55 = vld [vmem:[#allocation2 + $0x70] sm:$0xf]  ;;  %v6948_v59 = vld [vmem:[#allocation2 + $0x58] sm:$0xf]  ;;  %v3737_v37 = vld [vmem:[#allocation2 + $0x84] sm:$0xe] }
 0x1cb   : > { %v6880_v39 = vpop.permute.xlu0 %3040  ;;  %3684 = vst.msk [vmem:[#allocation3 + $0x4c] sm:$0xf] %vm2092_vm2, %v3595_v4  ;;  %v3373_v16 = vor.u32 %v3372_v3, %v3369_v51  ;;  %v2316_v31 = vsel %vm5615_vm10, %v2311_v26, %v2315_v19  ;;  %v3516_v28 = vrot.slane %v3514_v52, 5  ;;  %v6954_v26 = vld [vmem:[#allocation2 + $0x7c] sm:$0xf] }
 0x1cc   : > { %3072 = vrot.lane.b32.xlu2 %v2983_v35, %s5492_s8  ;;  %v5136_v40 = vld [vmem:[#allocation3 + $0x54] sm:$0xf0]  ;;  %v6907_v35 = vld [vmem:[#allocation2 + $0xac] sm:$0xf]  ;;  %2600 = vst.msk [vmem:[#allocation3 + $0x88] sm:$0xf] %vm373_vm0, %v2316_v31 }
 0x1cd   : > { %v5403_v23 = vld [vmem:[#allocation3 + $0xb8] sm:$0xf0]  ;;  %v2810_v13 = vrot.slane %v6907_v35, 5  ;;  %v3374_v15 = vrot.slane %v3373_v16, 4  ;;  %v2327_v31 = vshll.u32 %v6948_v59, 16 }
 0x1ce   : > { %v3039_v53 = vpop.permute.xlu2 %3038  ;;  %v5420_v17 = vld [vmem:[#allocation3 + $0x140] sm:$0xf0]  ;;  %v2143_v35 = vld [vmem:[#allocation2 + $0x54] sm:$0xf] }
 0x1cf   : > { %3126 = vst.msk [vmem:[#allocation3 + $0x64] sm:$0xf] %vm1899_vm1, %v3039_v53  ;;  %v3867_v53 = vrot.slane %v3736_v24, 5  ;;  %v3379_v48 = vsel %vm5615_vm10, %v3374_v15, %v6842_v32  ;;  %v2321_v19 = vshll.u32 %v2143_v35, 16  ;;  %v3400_v24 = vshll.u32 %v6954_v26, 16 }
 0x1d0   : > { %3050 = vrot.lane.b32.xlu1 %v2972_v36, %s5492_s8  ;;  %v2811_v36 = vsel %vm6088_vm14, %v5077_v22, %v2810_v13  ;;  %v5202_v56 = vld [vmem:[#allocation3 + $0xc8] sm:$0xf]  ;;  %v3738_v15 = vld [vmem:[#allocation2 + $0x88] sm:$0xf] }
 0x1d1   : > { %3074 = vrot.lane.b32.xlu0 %v2984_v29, %s5492_s8  ;;  %v5191_v29 = vor.u32 %v5403_v23, %v5190_v10  ;;  %v3868_v45 = vsel %vm6088_vm14, %v3866_v25, %v3867_v53  ;;  %v2318_v23 = vshrl.u32 %v2143_v35, 16  ;;  %v6966_v25 = vld [vmem:[#allocation2 + $0x74] sm:$0x1]  ;;  %v6997_v35 = vld [vmem:[#allocation2 + $0x7c] sm:$0xf] }
 0x1d2   : > { %v2049_v60 = vpop.permute.xlu1 %2048  ;;  %v5389_v7 = vld [vmem:[#allocation3 + $0x4c] sm:$0xf]  ;;  %3967 = vst.msk [vmem:[#allocation3 + $0xd4] sm:$0xf] %vm373_vm0, %v3868_v45  ;;  %v3871_v45 = vrot.slane %v3738_v15, 5  ;;  %v2778_v30 = vrot.slane %v6966_v25, 5 }
 0x1d3   : > { %v3599_v43 = vpop.permute.xlu0 %3598  ;;  %2119 = vst.msk [vmem:[#allocation3 + $0x138] sm:$0xf] %vm2092_vm2, %v2049_v60  ;;  %v5139_v0 = vor.u32 %v5389_v7, %v5136_v40  ;;  %v2645_v40 = vld [vmem:[#allocation2 + $0x6c] sm:$0xe]  ;;  %v2812_v60 = vrot.slane %v2810_v13, 4  ;;  %v2813_v7 = vrot.slane %v2662_v50, 5 }
 0x1d4   : > { %3686 = vst.msk [vmem:[#allocation3 + $0x64] sm:$0xf] %vm2092_vm2, %v3599_v43  ;;  %2857 = vrot.lane.b32.xlu2 %v2769_v21, %s5491_s28  ;;  %v6940_v21 = vld [vmem:[#allocation2 + $0xb8] sm:$0xf]  ;;  %v2331_v50 = vshrl.u32 %v6948_v59, 16 }
 0x1d5   : > { %4591 = vmatmul.bf16.gmra.mxu1 %v5139_v0  ;;  %v3174_v43 = vld [vmem:[#allocation2 + $0x78] sm:$0xf]  ;;  %v5072_v0 = vrot.slane %v2645_v40, 9 }
 0x1d6   : > { %v2015_v12 = vpop.permute.xlu2 %2014  ;;  %v3391_v5 = vshrl.u32 %v3174_v43, 16  ;;  %v3394_v51 = vshll.u32 %v3174_v43, 16  ;;  %v3873_v43 = vrot.slane %v3871_v45, 4 }
 0x1d7   : > { %2102 = vst.msk [vmem:[#allocation3 + $0x6c] sm:$0xf] %vm2092_vm2, %v2015_v12  ;;  %v2776_v57 = vsel %vm6088_vm14, %v5072_v0, %v2775_v11 }
 0x1d8   : > { %2026 = vrot.lane.b32.xlu1 %v1947_v42, %s5493_s9  ;;  %5367 = vmatmul.msk.bf16.gmra.mxu2 %vm4430_vm4, %v5191_v29  ;;  %v2817_v42 = vrot.slane %v6940_v21, 5  ;;  %v3396_v16 = vrot.slane %v3394_v51, 5  ;;  %v2975_v51 = vld [vmem:[#allocation2 + $0x7c] sm:$0xf] }
 0x1d9   : > { %3636 = vrot.lane.b32.xlu0 %v3533_v27, %s5493_s9 }
 0x1da   : > { %v2848_v61 = vpop.permute.xlu1 %2847  ;;  %v5254_v47 = vld [vmem:[#allocation3 + $0x138] sm:$0xf]  ;;  %v2818_v29 = vsel %vm6088_vm14, %v5078_v63, %v2817_v42  ;;  %v3192_v63 = vld [vmem:[#allocation2 + $0xc0] sm:$0xf]  ;;  %v7002_v59 = vrot.slane %v2817_v42, 4 }
 0x1db   : > { %v1862_v4 = vpop.permute.xlu0 %1861  ;;  %2934 = vst.msk [vmem:[#allocation3 + $0x70] sm:$0xf] %vm1559_vm15, %v2848_v61  ;;  %v5255_v20 = vor.u32 %v5420_v17, %v5254_v47  ;;  %v5406_v17 = vld [vmem:[#allocation3 + $0xd0] sm:$0xf0]  ;;  %v2320_v61 = vrot.slane %v2318_v23, 4  ;;  %v2323_v47 = vrot.slane %v2321_v19, 5 }
 0x1dc   : > { %1929 = vst.msk [vmem:[#allocation3 + $0x15c] sm:$0xf] %vm1899_vm1, %v1862_v4  ;;  %3052 = vrot.lane.b32.xlu2 %v2973_v38, %s5492_s8  ;;  %v2814_v38 = vsel %vm6088_vm14, %v2812_v60, %v2813_v7  ;;  %v3393_v4 = vrot.slane %v3391_v5, 4  ;;  %v5203_v14 = vor.u32 %v5406_v17, %v5202_v56  ;;  %v5392_v53 = vld [vmem:[#allocation3 + $0x64] sm:$0xf]  ;;  %v3404_v60 = vshrl.u32 %v6954_v26, 16 }
 0x1dd   : > { %3127 = vst.msk [vmem:[#allocation3 + $0x70] sm:$0xf] %vm1899_vm1, %v6880_v39  ;;  %4552 = vmatmul.bf16.gmra.mxu3 %v5255_v20  ;;  %v3511_v39 = vshrl.u32 %v3189_v44, 16  ;;  %v3739_v44 = vld [vmem:[#allocation2 + $0x8c] sm:$0x1]  ;;  %v2333_v56 = vrot.slane %v2331_v50, 4 }
 0x1de   : > { %v1860_v33 = vpop.permute.xlu2 %1859  ;;  %v5393_v3 = vld [vmem:[#allocation3 + $0x68] sm:$0xf0]  ;;  %v3874_v40 = vrot.slane %v3739_v44, 5  ;;  %v2648_v7 = vld [vmem:[#allocation2 + $0x78] sm:$0xe]  ;;  %v3535_v26 = vshrl.u32 %v3192_v63, 16 }
 0x1df   : > { %1928 = vst.msk [vmem:[#allocation3 + $0x150] sm:$0xf] %vm1899_vm1, %v1860_v33  ;;  %v3513_v32 = vrot.slane %v3511_v39, 4  ;;  %v800_v33 = vrot.slane %v6702_v49, 4  ;;  %v3397_v39 = vor.u32 %v3396_v16, %v3393_v4  ;;  %v2987_v17 = vld [vmem:[#allocation2 + $0xc4] sm:$0xf] }
 0x1e0   : > { %2881 = vrot.lane.b32.xlu1 %v2811_v36, %s5491_s28  ;;  %v2324_v36 = vor.u32 %v2323_v47, %v2320_v61  ;;  %v3875_v5 = vsel %vm6088_vm14, %v3873_v43, %v3874_v40  ;;  %v2782_v4 = vrot.slane %v6997_v35, 5  ;;  %v3538_v21 = vshll.u32 %v3192_v63, 16  ;;  %v7013_v61 = vld [vmem:[#allocation2 + $0xbc] sm:$0x1]  ;;  %v7015_v47 = vld [vmem:[#allocation2 + $0xc4] sm:$0xf] }
 0x1e1   : > { %3054 = vrot.lane.b32.xlu0 %v2974_v54, %s5492_s8  ;;  %v3517_v12 = vor.u32 %v3516_v28, %v3513_v32  ;;  %v5089_v54 = vrot.slane %v3737_v37, 9  ;;  %3969 = vst.msk [vmem:[#allocation3 + $0xec] sm:$0xf] %vm373_vm0, %v3875_v5  ;;  %v3406_v50 = vrot.slane %v3404_v60, 4  ;;  %v1948_v63 = vld [vmem:[#allocation2 + $0x6c] sm:$0xf] }
 0x1e2   : > { %v2013_v46 = vpop.permute.xlu1 %2012  ;;  %v7055_v5 = vld [vmem:[#allocation2 + $0x88] sm:$0xf] }
 0x1e3   : > { %v2850_v34 = vpop.permute.xlu0 %2849  ;;  %2101 = vst.msk [vmem:[#allocation3 + $0x60] sm:$0xf] %vm2092_vm2, %v2013_v46  ;;  %v3518_v20 = vrot.slane %v3517_v12, 4  ;;  %v2777_v46 = vrot.slane %v2775_v11, 4  ;;  %v3872_v58 = vsel %vm6088_vm14, %v5089_v54, %v3871_v45  ;;  %v3740_v45 = vld [vmem:[#allocation2 + $0x90] sm:$0xe] }
 0x1e4   : > { %2935 = vst.msk [vmem:[#allocation3 + $0x7c] sm:$0xf] %vm1559_vm15, %v2850_v34  ;;  %3610 = vrot.lane.b32.xlu2 %v3379_v48, %s5493_s9  ;;  %v2325_v48 = vrot.slane %v2324_v36, 4  ;;  %v2329_v34 = vrot.slane %v2327_v31, 5  ;;  %v3741_v31 = vld [vmem:[#allocation2 + $0x94] sm:$0xf] }
 0x1e5   : > { %v3523_v32 = vsel %vm5615_vm10, %v3518_v20, %v6878_v41  ;;  %3968 = vst.msk [vmem:[#allocation3 + $0xe0] sm:$0xf] %vm373_vm0, %v3872_v58  ;;  %v2820_v58 = vrot.slane %v7013_v61, 5  ;;  %v3424_v1 = vshll.u32 %v7055_v5, 16  ;;  %v3428_v35 = vshrl.u32 %v7055_v5, 16 }
 0x1e6   : > { %v2055_v27 = vpop.permute.xlu2 %2054  ;;  %v2330_v0 = vsel %vm5615_vm10, %v2325_v48, %v2329_v34  ;;  %v2334_v23 = vor.u32 %v2333_v56, %v2329_v34  ;;  %v3878_v48 = vrot.slane %v3741_v31, 5  ;;  %v2161_v56 = vld [vmem:[#allocation2 + $0x9c] sm:$0xf] }
 0x1e7   : > { %2122 = vst.msk [vmem:[#allocation3 + $0x15c] sm:$0xf] %vm2092_vm2, %v2055_v27  ;;  %v6969_v52 = vpop.f32.mrf.mxu2 }
 0x1e8   : > { %3076 = vrot.lane.b32.xlu1 %v2985_v62, %s5492_s8  ;;  %5368 = vmatmul.msk.bf16.gmra.mxu2 %vm4430_vm4, %v5203_v14  ;;  %v6982_v62 = vrot.slane %v3400_v24, 5  ;;  %2601 = vst.msk [vmem:[#allocation3 + $0x94] sm:$0xf] %vm373_vm0, %v2330_v0  ;;  %v2335_v42 = vrot.slane %v2334_v23, 4  ;;  %v7019_v24 = vld [vmem:[#allocation2 + $0x80] sm:$0x1] }
 0x1e9   : > { %2030 = vrot.lane.b32.xlu0 %v1949_v55, %s5493_s9  ;;  %v489_v55 = vld [vmem:[#allocation2 + $0xc8] sm:$0x1]  ;;  %v5409_v40 = vld [vmem:[#allocation3 + $0xe8] sm:$0xf0]  ;;  %v2465_v23 = vshll.u32 %v2161_v56, 16 }
 0x1ea   : > { %v3601_v22 = vpop.permute.xlu1 %3600  ;;  %v5146_v13 = vld [vmem:[#allocation3 + $0x60] sm:$0xf]  ;;  %v490_v12 = vsel %vm5561_vm5, 0, %v489_v55 }
 0x1eb   : > { %v6952_v10 = vpop.permute.xlu0 %3044  ;;  %3687 = vst.msk [vmem:[#allocation3 + $0x70] sm:$0xf] %vm2092_vm2, %v3601_v22  ;;  %v5147_v18 = vor.u32 %v5393_v3, %v5146_v13  ;;  %v6992_v3 = vrot.slane %v3397_v39, 4  ;;  %v3177_v22 = vld [vmem:[#allocation2 + $0x84] sm:$0xf]  ;;  %v2467_v31 = vrot.slane %v2465_v23, 5 }
 0x1ec   : > { %2883 = vrot.lane.b32.xlu2 %v2814_v38, %s5491_s28  ;;  %v5073_v38 = vrot.slane %v2648_v7, 9  ;;  %v2145_v13 = vld [vmem:[#allocation2 + $0x5c] sm:$0x1]  ;;  %491 = vst [vmem:[#allocation2 + $0xc8] sm:$0x1] %v490_v12  ;;  %v3415_v54 = vshrl.u32 %v3177_v22, 16 }
 0x1ed   : > { %4507 = vmatmul.bf16.gmra.mxu0 %v5147_v18  ;;  %v2337_v16 = vshll.u32 %v2145_v13, 16  ;;  %v2779_v18 = vsel %vm6088_vm14, %v2777_v46, %v2778_v30  ;;  %v5214_v44 = vld [vmem:[#allocation3 + $0xe0] sm:$0xf]  ;;  %v5090_v46 = vrot.slane %v3740_v45, 9  ;;  %v3403_v30 = vsel %vm5615_vm10, %v6992_v3, %v6982_v62  ;;  %v436_v3 = vld [vmem:[#allocation2 + $0xcc] sm:$0x1] }
 0x1ee   : > { %v3043_v8 = vpop.permute.xlu2 %3042  ;;  %v5423_v14 = vld [vmem:[#allocation3 + $0x158] sm:$0xf0]  ;;  %v2783_v34 = vsel %vm6088_vm14, %v5073_v38, %v2782_v4  ;;  %v5215_v43 = vor.u32 %v5409_v40, %v5214_v44  ;;  %v7042_v60 = vrot.slane %v3415_v54, 4  ;;  %v2162_v12 = vld [vmem:[#allocation2 + $0xa0] sm:$0xf] }
 0x1ef   : > { %3128 = vst.msk [vmem:[#allocation3 + $0x7c] sm:$0xf] %vm1899_vm1, %v3043_v8  ;;  %v7005_v37 = vpop.f32.mrf.mxu2  ;;  %v2339_v25 = vrot.slane %v2337_v16, 5  ;;  %v2163_v13 = vld [vmem:[#allocation2 + $0xa4] sm:$0x1] }
 0x1f0   : > { %2861 = vrot.lane.b32.xlu1 %v2776_v57, %s5491_s28  ;;  %v3418_v57 = vshll.u32 %v3177_v22, 16  ;;  %v2475_v22 = vshrl.u32 %v2162_v12, 16  ;;  %v2977_v16 = vld [vmem:[#allocation2 + $0x88] sm:$0xf] }
 0x1f1   : > { %2885 = vrot.lane.b32.xlu0 %v2818_v29, %s5491_s28  ;;  %v7017_v29 = vrot.slane %v3535_v26, 4  ;;  %v2340_v39 = vsel %vm5615_vm10, %v2335_v42, %v2339_v25  ;;  %v2462_v26 = vshrl.u32 %v2161_v56, 16  ;;  %v3548_v42 = vshrl.u32 %v7015_v47, 16 }
 0x1f2   : > { %v2053_v11 = vpop.permute.xlu1 %2052  ;;  %v5148_v27 = vld [vmem:[#allocation3 + $0x6c] sm:$0xf0]  ;;  %2602 = vst.msk [vmem:[#allocation3 + $0xa0] sm:$0xf] %vm373_vm0, %v2340_v39  ;;  %v7044_v7 = vrot.slane %v3418_v57, 5 }
 0x1f3   : > { %v3603_v28 = vpop.permute.xlu0 %3602  ;;  %2121 = vst.msk [vmem:[#allocation3 + $0x150] sm:$0xf] %vm2092_vm2, %v2053_v11  ;;  %v5151_v41 = vor.u32 %v5392_v53, %v5148_v27  ;;  %v7023_v53 = vrot.slane %v3538_v21, 5  ;;  %v961_v55 = vld [vmem:[#allocation2 + $0xc8] sm:$0x1]  ;;  %v2464_v61 = vrot.slane %v2462_v26, 4 }
 0x1f4   : > { %3688 = vst.msk [vmem:[#allocation3 + $0x7c] sm:$0xf] %vm2092_vm2, %v3603_v28  ;;  %3634 = vrot.lane.b32.xlu2 %v3523_v32, %s5493_s9  ;;  %v3410_v28 = vshll.u32 %v7019_v24, 16  ;;  %v962_v11 = vsel %vm5536_vm3, %v800_v33, %v961_v55  ;;  %v3742_v27 = vld [vmem:[#allocation2 + $0x98] sm:$0x1]  ;;  %v3407_v33 = vor.u32 %v3406_v50, %v6982_v62  ;;  %v3421_v54 = vor.u32 %v7044_v7, %v7042_v60 }
 0x1f5   : > { %4596 = vmatmul.bf16.gmra.mxu1 %v5151_v41  ;;  %v3880_v41 = vrot.slane %v3878_v48, 4  ;;  %v3541_v49 = vor.u32 %v7023_v53, %v7017_v29  ;;  %963 = vst [vmem:[#allocation2 + $0xc8] sm:$0x1] %v962_v11  ;;  %v2477_v29 = vrot.slane %v2475_v22, 4  ;;  %v7074_v24 = vld [vmem:[#allocation2 + $0x80] sm:$0x1] }
 0x1f6   : > { %v2019_v19 = vpop.permute.xlu2 %2018  ;;  %v3408_v57 = vrot.slane %v3407_v33, 4  ;;  %v3412_v25 = vrot.slane %v3410_v28, 5  ;;  %v7083_v53 = vld [vmem:[#allocation2 + $0xc4] sm:$0xf]  ;;  %v2785_v50 = vrot.slane %v7074_v24, 5  ;;  %v3550_v40 = vrot.slane %v3548_v42, 4 }
 0x1f7   : > { %2104 = vst.msk [vmem:[#allocation3 + $0x84] sm:$0xf] %vm2092_vm2, %v2019_v19  ;;  %v7046_v0 = vpop.f32.mrf.mxu2  ;;  %v2471_v19 = vshll.u32 %v2162_v12, 16  ;;  %v2824_v28 = vrot.slane %v7083_v53, 5  ;;  %v7103_v60 = vld [vmem:[#allocation2 + $0xd0] sm:$0xf] }
 0x1f8   : > { %3056 = vrot.lane.b32.xlu1 %v2975_v51, %s5492_s8  ;;  %5369 = vmatmul.msk.bf16.gmra.mxu2 %vm4430_vm4, %v5215_v43  ;;  %v3881_v51 = vrot.slane %v3742_v27, 5  ;;  %v3413_v55 = vsel %vm5615_vm10, %v3408_v57, %v3412_v25 }
 0x1f9   : > { %3080 = vrot.lane.b32.xlu0 %v2987_v17, %s5492_s8  ;;  %v3879_v17 = vsel %vm6088_vm14, %v5090_v46, %v3878_v48  ;;  %v3542_v48 = vrot.slane %v3541_v49, 4 }
 0x1fa   : > { %v2852_v36 = vpop.permute.xlu1 %2851  ;;  %v5266_v15 = vld [vmem:[#allocation3 + $0x150] sm:$0xf]  ;;  %v3882_v62 = vsel %vm6088_vm14, %v3880_v41, %v3881_v51  ;;  %3970 = vst.msk [vmem:[#allocation3 + $0xf8] sm:$0xf] %vm373_vm0, %v3879_v17  ;;  %v3743_v51 = vld [vmem:[#allocation2 + $0x9c] sm:$0xe] }
 0x1fb   : > { %v1866_v20 = vpop.permute.xlu0 %1865  ;;  %2936 = vst.msk [vmem:[#allocation3 + $0x88] sm:$0xf] %vm1559_vm15, %v2852_v36  ;;  %v5267_v8 = vor.u32 %v5423_v14, %v5266_v15  ;;  %v2481_v14 = vshll.u32 %v2163_v13, 16  ;;  %v2468_v36 = vor.u32 %v2467_v31, %v2464_v61  ;;  %v5091_v42 = vrot.slane %v3743_v51, 9 }
 0x1fc   : > { %1931 = vst.msk [vmem:[#allocation3 + $0x174] sm:$0xf] %vm1899_vm1, %v1866_v20  ;;  %2863 = vrot.lane.b32.xlu2 %v2779_v18, %s5491_s28  ;;  %v437_v18 = vsel %vm5536_vm3, 0, %v436_v3  ;;  %v2473_v20 = vrot.slane %v2471_v19, 5  ;;  %v3744_v3 = vld [vmem:[#allocation2 + $0xa0] sm:$0xf] }
 0x1fd   : > { %3129 = vst.msk [vmem:[#allocation3 + $0x88] sm:$0xf] %vm1899_vm1, %v6952_v10  ;;  %4557 = vmatmul.bf16.gmra.mxu3 %v5267_v8  ;;  %v3544_v10 = vshll.u32 %v7015_v47, 16  ;;  %v2821_v47 = vsel %vm6088_vm14, %v7002_v59, %v2820_v58  ;;  %v2483_v39 = vrot.slane %v2481_v14, 5  ;;  %v7095_v58 = vrot.slane %v3424_v1, 5 }
 0x1fe   : > { %v1864_v32 = vpop.permute.xlu2 %1863  ;;  %v2478_v15 = vor.u32 %v2477_v29, %v2473_v20  ;;  %3971 = vst.msk [vmem:[#allocation3 + $0x104] sm:$0xf] %vm373_vm0, %v3882_v62  ;;  %v5396_v46 = vld [vmem:[#allocation3 + $0x80] sm:$0xf0]  ;;  %v2668_v56 = vld [vmem:[#allocation2 + $0xc8] sm:$0x1] }
 0x1ff   : > { %1930 = vst.msk [vmem:[#allocation3 + $0x168] sm:$0xf] %vm1899_vm1, %v1864_v32  ;;  %v7081_v8 = vrot.slane %v3544_v10, 5  ;;  %v7085_v59 = vpop.f32.mrf.mxu2  ;;  %v2469_v10 = vrot.slane %v2468_v36, 4  ;;  %v3568_v19 = vshll.u32 %v7103_v60, 16  ;;  %v2826_v62 = vrot.slane %v2824_v28, 4 }
 0x200   : > { %3614 = vrot.lane.b32.xlu1 %v3403_v30, %s5493_s9  ;;  %438 = vst [vmem:[#allocation2 + $0xcc] sm:$0x1] %v437_v18  ;;  %v3422_v30 = vrot.slane %v3421_v54, 4  ;;  %v2479_v43 = vrot.slane %v2478_v15, 4  ;;  %v2827_v18 = vrot.slane %v2668_v56, 5  ;;  %v7141_v54 = vrot.slane %v3428_v35, 4 }
 0x201   : > { %2865 = vrot.lane.b32.xlu0 %v2783_v34, %s5491_s28  ;;  %v7091_v34 = vrot.slane %v2782_v4, 4  ;;  %v3194_v4 = vld [vmem:[#allocation2 + $0xc8] sm:$0x1]  ;;  %v3551_v33 = vor.u32 %v3550_v40, %v7081_v8  ;;  %v5226_v12 = vld [vmem:[#allocation3 + $0xf8] sm:$0xf]  ;;  %v3547_v17 = vsel %vm5615_vm10, %v3542_v48, %v7081_v8  ;;  %v7143_v25 = vrot.slane %v3568_v19, 5 }
 0x202   : > { %v2017_v21 = vpop.permute.xlu1 %2016  ;;  %v2484_v41 = vsel %vm5615_vm10, %v2479_v43, %v2483_v39  ;;  %v3554_v26 = vshll.u32 %v3194_v4, 16  ;;  %v5395_v29 = vld [vmem:[#allocation3 + $0x7c] sm:$0xf]  ;;  %v2146_v8 = vld [vmem:[#allocation2 + $0x60] sm:$0xf]  ;;  %vm4950_vm3 = vcmask 254976  }
 0x203   : > { %v2854_v38 = vpop.permute.xlu0 %2853  ;;  %2103 = vst.msk [vmem:[#allocation3 + $0x78] sm:$0xf] %vm2092_vm2, %v2017_v21  ;;  %v4577_v45 = vpop.f32.mrf.mxu1  ;;  %v3745_v39 = vld [vmem:[#allocation2 + $0xa4] sm:$0x1]  ;;  %v2786_v43 = vsel %vm6088_vm14, %v7091_v34, %v2785_v50 }
 0x204   : > { %2937 = vst.msk [vmem:[#allocation3 + $0x94] sm:$0xf] %vm1559_vm15, %v2854_v38  ;;  %2028 = vrot.lane.b32.xlu2 %v1948_v63, %s5493_s9  ;;  %v2474_v63 = vsel %vm5615_vm10, %v2469_v10, %v2473_v20  ;;  %v3427_v38 = vsel %vm5615_vm10, %v3422_v30, %v7095_v58  ;;  %v2147_v35 = vld [vmem:[#allocation2 + $0x64] sm:$0xf] }
 0x205   : > { %2613 = vst.msk [vmem:[#allocation3 + $0x124] sm:$0xf] %vm373_vm0, %v2474_v63  ;;  %v5412_v23 = vld [vmem:[#allocation3 + $0x100] sm:$0xf0]  ;;  %v2148_v63 = vld [vmem:[#allocation2 + $0x68] sm:$0x1] }
 0x206   : > { %v2059_v44 = vpop.permute.xlu2 %2058  ;;  %2614 = vst.msk [vmem:[#allocation3 + $0x130] sm:$0xf] %vm373_vm0, %v2484_v41  ;;  %v5227_v13 = vor.u32 %v5412_v23, %v5226_v12  ;;  %v2351_v41 = vshll.u32 %v2147_v35, 16  ;;  %v2355_v51 = vshrl.u32 %v2147_v35, 16  ;;  %v2361_v34 = vshll.u32 %v2148_v63, 16 }
 0x207   : > { %2124 = vst.msk [vmem:[#allocation3 + $0x174] sm:$0xf] %vm2092_vm2, %v2059_v44  ;;  %v3195_v21 = vld [vmem:[#allocation2 + $0xcc] sm:$0xf]  ;;  %v7131_v20 = vpop.f32.mrf.mxu2  ;;  %v7145_v44 = vrot.slane %v3554_v26, 5 }
 0x208   : > { %2887 = vrot.lane.b32.xlu1 %v2821_v47, %s5491_s28  ;;  %v3559_v61 = vshrl.u32 %v3195_v21, 16  ;;  %v3562_v31 = vshll.u32 %v3195_v21, 16  ;;  %v7136_v47 = vrot.slane %v3551_v33, 4  ;;  %5370 = vmatmul.msk.bf16.gmra.mxu2 %vm4430_vm4, %v5227_v13  ;;  %v2357_v26 = vrot.slane %v2355_v51, 4  ;;  %v7169_v13 = vld [vmem:[#allocation2 + $0x88] sm:$0xf] }
 0x209   : > { %3060 = vrot.lane.b32.xlu0 %v2977_v16, %s5492_s8  ;;  %v3885_v16 = vrot.slane %v3744_v3, 5  ;;  %v2976_v51 = vld [vmem:[#allocation2 + $0x84] sm:$0xf] }
 0x20a   : > { %v4488_v7 = vpop.f32.mrf.mxu0  ;;  %v3605_v11 = vpop.permute.xlu1 %3604  ;;  %v5158_v27 = vld [vmem:[#allocation3 + $0x78] sm:$0xf]  ;;  %v3561_v1 = vrot.slane %v3559_v61, 4  ;;  %v3564_v57 = vrot.slane %v3562_v31, 5  ;;  %v3557_v31 = vsel %vm5615_vm10, %v7136_v47, %v7145_v44 }
 0x20b   : > { %v7099_v32 = vpop.permute.xlu0 %3048  ;;  %v4578_v49 = vadd.f32 %v4577_v45, %v4488_v7  ;;  %3689 = vst.msk [vmem:[#allocation3 + $0x88] sm:$0xf] %vm2092_vm2, %v3605_v11  ;;  %v5159_v5 = vor.u32 %v5396_v46, %v5158_v27  ;;  %v4579_v36 = vpop.f32.mrf.mxu1  ;;  %v3886_v45 = vsel %vm6088_vm14, %v5091_v42, %v3885_v16  ;;  %v3887_v48 = vrot.slane %v3885_v16, 4 }
 0x20c   : > { %3616 = vrot.lane.b32.xlu2 %v3413_v55, %s5493_s9  ;;  %v2828_v55 = vsel %vm6088_vm14, %v2826_v62, %v2827_v18  ;;  %v2342_v11 = vshrl.u32 %v2146_v8, 16  ;;  %v2345_v27 = vshll.u32 %v2146_v8, 16  ;;  %v3565_v24 = vor.u32 %v3564_v57, %v3561_v1  ;;  %3972 = vst.msk [vmem:[#allocation3 + $0x110] sm:$0xf] %vm373_vm0, %v3886_v45  ;;  %v492_v57 = vld [vmem:[#allocation2 + $0xd4] sm:$0x1] }
 0x20d   : > { %v4667_v22 = vadd.f32 %v6969_v52, %v4578_v49  ;;  %4512 = vmatmul.bf16.gmra.mxu0 %v5159_v5  ;;  %v2986_v52 = vld [vmem:[#allocation2 + $0xc0] sm:$0xf]  ;;  %v3888_v5 = vrot.slane %v3745_v39, 5  ;;  %v2363_v18 = vrot.slane %v2361_v34, 5  ;;  %v3572_v34 = vshrl.u32 %v7103_v60, 16 }
 0x20e   : > { %v3047_v14 = vpop.permute.xlu2 %3046  ;;  %v2344_v3 = vrot.slane %v2342_v11, 4  ;;  %v2347_v49 = vrot.slane %v2345_v27, 5  ;;  %v5426_v16 = vld [vmem:[#allocation3 + $0x170] sm:$0xf0]  ;;  %v3181_v27 = vld [vmem:[#allocation2 + $0x94] sm:$0xf] }
 0x20f   : > { %4746 = vst.msk [vmem:[%s7116_s15] sm:$0xff] %vm4430_vm4, %v4667_v22  ;;  %v4847_v40 = vmul.f32 %v4667_v22, %v4667_v22  ;;  %v4778_v33 = vsel %vm4430_vm4, %v4667_v22, 0.0  ;;  %v3889_v22 = vsel %vm6088_vm14, %v3887_v48, %v3888_v5  ;;  %v1950_v48 = vld [vmem:[#allocation2 + $0x78] sm:$0xf] }
 0x210   : > { %3638 = vrot.lane.b32.xlu1 %v3547_v17, %s5493_s9  ;;  %3130 = vst.msk [vmem:[#allocation3 + $0x94] sm:$0xf] %vm1899_vm1, %v3047_v14  ;;  %v7163_v17 = vpop.f32.mrf.mxu2  ;;  %v2348_v21 = vor.u32 %v2347_v49, %v2344_v3  ;;  %v3566_v14 = vrot.slane %v3565_v24, 4  ;;  %v3748_v49 = vld [vmem:[#allocation2 + $0xb0] sm:$0x1] }
 0x211   : > { %3618 = vrot.lane.b32.xlu0 %v3427_v38, %s5493_s9  ;;  %v4879_v56 = vsel %vm4430_vm4, %v4847_v40, 0.0  ;;  %v2353_v38 = vrot.slane %v2351_v41, 5  ;;  %3973 = vst.msk [vmem:[#allocation3 + $0x11c] sm:$0xf] %vm373_vm0, %v3889_v22  ;;  %v2789_v40 = vrot.slane %v7169_v13, 5 }
 0x212   : > { %v4490_v46 = vpop.f32.mrf.mxu0  ;;  %v2057_v30 = vpop.permute.xlu1 %2056  ;;  %v5160_v10 = vld [vmem:[#allocation3 + $0x84] sm:$0xf0]  ;;  %v2349_v1 = vrot.slane %v2348_v21, 4  ;;  %v3750_v13 = vld [vmem:[#allocation2 + $0xb8] sm:$0xf] }
 0x213   : > { %v3607_v15 = vpop.permute.xlu0 %3606  ;;  %v4580_v4 = vadd.f32 %v4579_v36, %v4490_v46  ;;  %2123 = vst.msk [vmem:[#allocation3 + $0x168] sm:$0xf] %vm2092_vm2, %v2057_v30  ;;  %v5163_v7 = vor.u32 %v5395_v29, %v5160_v10  ;;  %v2358_v62 = vor.u32 %v2357_v26, %v2353_v38  ;;  %v493_v10 = vsel %vm5561_vm5, 0, %v492_v57 }
 0x214   : > { %3690 = vst.msk [vmem:[#allocation3 + $0x94] sm:$0xf] %vm2092_vm2, %v3607_v15  ;;  %3078 = vrot.lane.b32.xlu2 %v2986_v52, %s5492_s8  ;;  %v3431_v52 = vor.u32 %v7141_v54, %v7095_v58  ;;  %v2354_v44 = vsel %vm5615_vm10, %v2349_v1, %v2353_v38  ;;  %v3571_v58 = vsel %vm5615_vm10, %v3566_v14, %v7143_v25  ;;  %v2653_v54 = vld [vmem:[#allocation2 + $0x8c] sm:$0x1]  ;;  %v2791_v6 = vrot.slane %v2789_v40, 4 }
 0x215   : > { %v4669_v50 = vadd.f32 %v7005_v37, %v4580_v4  ;;  %4601 = vmatmul.bf16.gmra.mxu1 %v5163_v7  ;;  %v3179_v37 = vld [vmem:[#allocation2 + $0x8c] sm:$0x1]  ;;  %v2359_v39 = vrot.slane %v2358_v62, 4  ;;  %2603 = vst.msk [vmem:[#allocation3 + $0xac] sm:$0xf] %vm373_vm0, %v2354_v44  ;;  %v2792_v24 = vrot.slane %v2653_v54, 5 }
 0x216   : > { %v2023_v12 = vpop.permute.xlu2 %2022  ;;  %v3434_v47 = vshll.u32 %v3179_v37, 16  ;;  %v3432_v30 = vrot.slane %v3431_v52, 4  ;;  %v3747_v4 = vld [vmem:[#allocation2 + $0xac] sm:$0xf]  ;;  %494 = vst [vmem:[#allocation2 + $0xd4] sm:$0x1] %v493_v10 }
 0x217   : > { %4747 = vst.msk [vmem:[%s7116_s15 + $0x8] sm:$0xff] %vm4430_vm4, %v4669_v50  ;;  %v4779_v23 = vsel %vm4430_vm4, %v4669_v50, 0.0  ;;  %v4848_v19 = vmul.f32 %v4669_v50, %v4669_v50  ;;  %v2364_v46 = vsel %vm5615_vm10, %v2359_v39, %v2363_v18  ;;  %v3892_v5 = vrot.slane %v3747_v4, 5  ;;  %v1951_v52 = vld [vmem:[#allocation2 + $0x7c] sm:$0xf] }
 0x218   : > { %v7173_v42 = vadd.f32 %v4779_v23, %v4778_v33  ;;  %2867 = vrot.lane.b32.xlu1 %v2786_v43, %s5491_s28  ;;  %2106 = vst.msk [vmem:[#allocation3 + $0x9c] sm:$0xf] %vm2092_vm2, %v2023_v12  ;;  %v7204_v35 = vpop.f32.mrf.mxu2  ;;  %v3436_v11 = vrot.slane %v3434_v47, 5  ;;  %v5415_v41 = vld [vmem:[#allocation3 + $0x118] sm:$0xf0]  ;;  %v3448_v12 = vshll.u32 %v3181_v27, 16  ;;  %v2793_v37 = vsel %vm6088_vm14, %v2791_v6, %v2792_v24 }
 0x219   : > { %2891 = vrot.lane.b32.xlu0 %v2828_v55, %s5491_s28  ;;  %v4880_v61 = vsel %vm4430_vm4, %v4848_v19, 0.0  ;;  %2604 = vst.msk [vmem:[#allocation3 + $0xb8] sm:$0xf] %vm373_vm0, %v2364_v46  ;;  %v5238_v55 = vld [vmem:[#allocation3 + $0x110] sm:$0xf]  ;;  %v3452_v38 = vshrl.u32 %v3181_v27, 16 }
 0x21a   : > { %v7185_v36 = vadd.f32 %v4880_v61, %v4879_v56  ;;  %v2856_v15 = vpop.permute.xlu1 %2855  ;;  %v5278_v8 = vld [vmem:[#allocation3 + $0x168] sm:$0xf]  ;;  %v4493_v7 = vpop.f32.mrf.mxu0  ;;  %v5239_v3 = vor.u32 %v5415_v41, %v5238_v55  ;;  %v3895_v26 = vrot.slane %v3748_v49, 5  ;;  %v3894_v60 = vrot.slane %v3892_v5, 4  ;;  %v3182_v1 = vld [vmem:[#allocation2 + $0x98] sm:$0x1] }
 0x21b   : > { %v2880_v29 = vpop.permute.xlu0 %2879  ;;  %2938 = vst.msk [vmem:[#allocation3 + $0xa0] sm:$0xf] %vm1559_vm15, %v2856_v15  ;;  %v5279_v45 = vor.u32 %v5426_v16, %v5278_v8  ;;  %v3437_v22 = vsel %vm5615_vm10, %v3432_v30, %v3436_v11  ;;  %v3574_v16 = vrot.slane %v3572_v34, 4  ;;  %v7227_v18 = vrot.slane %v3448_v12, 5  ;;  %v2666_v8 = vld [vmem:[#allocation2 + $0xc0] sm:$0xe] }
 0x21c   : > { %2950 = vst.msk [vmem:[#allocation3 + $0x130] sm:$0xf] %vm1559_vm15, %v2880_v29  ;;  %3640 = vrot.lane.b32.xlu2 %v3557_v31, %s5493_s9  ;;  %5371 = vmatmul.msk.bf16.gmra.mxu2 %vm4430_vm4, %v5239_v3  ;;  %v3896_v14 = vsel %vm6088_vm14, %v3894_v60, %v3895_v26  ;;  %v3454_v61 = vrot.slane %v3452_v38, 4  ;;  %v2166_v11 = vld [vmem:[#allocation2 + $0xb0] sm:$0x1]  ;;  %v5079_v34 = vrot.slane %v2666_v8, 9 }
 0x21d   : > { %3131 = vst.msk [vmem:[#allocation3 + $0xa0] sm:$0xf] %vm1899_vm1, %v7099_v32  ;;  %4562 = vmatmul.bf16.gmra.mxu3 %v5279_v45  ;;  %v3746_v32 = vld [vmem:[#allocation2 + $0xa8] sm:$0xe]  ;;  %v3197_v47 = vld [vmem:[#allocation2 + $0xd4] sm:$0x1]  ;;  %v3575_v44 = vor.u32 %v3574_v16, %v7143_v25 }
 0x21e   : > { %v2878_v43 = vpop.permute.xlu2 %2877  ;;  %v5092_v63 = vrot.slane %v3746_v32, 9  ;;  %3975 = vst.msk [vmem:[#allocation3 + $0x134] sm:$0xf] %vm373_vm0, %v3896_v14  ;;  %v3455_v32 = vor.u32 %v3454_v61, %v7227_v18  ;;  %v2164_v27 = vld [vmem:[#allocation2 + $0xa8] sm:$0xf]  ;;  %v2505_v6 = vshll.u32 %v2166_v11, 16  ;;  %v2825_v61 = vsel %vm6088_vm14, %v5079_v34, %v2824_v28 }
 0x21f   : > { %2949 = vst.msk [vmem:[#allocation3 + $0x124] sm:$0xf] %vm1559_vm15, %v2878_v43  ;;  %v5399_v15 = vld [vmem:[#allocation3 + $0x98] sm:$0xf0]  ;;  %v3458_v43 = vshll.u32 %v3182_v1, 16  ;;  %v2489_v16 = vshll.u32 %v2164_v27, 16 }
 0x220   : > { %2032 = vrot.lane.b32.xlu1 %v1950_v48, %s5493_s9  ;;  %v3893_v19 = vsel %vm6088_vm14, %v5092_v63, %v3892_v5  ;;  %v7229_v31 = vpop.f32.mrf.mxu2  ;;  %v2988_v41 = vld [vmem:[#allocation2 + $0xcc] sm:$0xf]  ;;  %v3576_v5 = vrot.slane %v3575_v44, 4  ;;  %v2651_v44 = vld [vmem:[#allocation2 + $0x84] sm:$0xe] }
 0x221   : > { %3642 = vrot.lane.b32.xlu0 %v3571_v58, %s5493_s9  ;;  %3974 = vst.msk [vmem:[#allocation3 + $0x128] sm:$0xf] %vm373_vm0, %v3893_v19  ;;  %v2165_v58 = vld [vmem:[#allocation2 + $0xac] sm:$0xf]  ;;  %v2486_v19 = vshrl.u32 %v2164_v27, 16  ;;  %v2491_v8 = vrot.slane %v2489_v16, 5 }
 0x222   : > { %v4582_v33 = vpop.f32.mrf.mxu1  ;;  %v2021_v56 = vpop.permute.xlu1 %2020  ;;  %v2495_v55 = vshll.u32 %v2165_v58, 16  ;;  %v2499_v63 = vshrl.u32 %v2165_v58, 16  ;;  %v3180_v11 = vld [vmem:[#allocation2 + $0x90] sm:$0xf]  ;;  %v2149_v34 = vld [vmem:[#allocation2 + $0x6c] sm:$0xf] }
 0x223   : > { %v7212_v50 = vpop.permute.xlu0 %3630  ;;  %v4583_v23 = vadd.f32 %v4582_v33, %v4493_v7  ;;  %2105 = vst.msk [vmem:[#allocation3 + $0x90] sm:$0xf] %vm2092_vm2, %v2021_v56  ;;  %v4495_v45 = vpop.f32.mrf.mxu0  ;;  %v3456_v33 = vrot.slane %v3455_v32, 4  ;;  %v3460_v56 = vrot.slane %v3458_v43, 5  ;;  %v3757_v9 = vld [vmem:[#allocation2 + $0xd4] sm:$0x1] }
 0x224   : > { %3058 = vrot.lane.b32.xlu2 %v2976_v51, %s5492_s8  ;;  %v3578_v51 = vshll.u32 %v3197_v47, 16  ;;  %v2501_v38 = vrot.slane %v2499_v63, 4 }
 0x225   : > { %v4672_v21 = vadd.f32 %v7046_v0, %v4583_v23  ;;  %v5418_v3 = vld [vmem:[#allocation3 + $0x130] sm:$0xf0]  ;;  %v3461_v53 = vsel %vm5615_vm10, %v3456_v33, %v3460_v56  ;;  %v2366_v33 = vshrl.u32 %v2149_v34, 16  ;;  %v2369_v56 = vshll.u32 %v2149_v34, 16 }
 0x226   : > { %v3073_v62 = vpop.permute.xlu2 %3072 }
 0x227   : > { %4748 = vst.msk [vmem:[%s7116_s15 + $0x10] sm:$0xff] %vm4430_vm4, %v4672_v21  ;;  %v4781_v29 = vsel %vm4430_vm4, %v4672_v21, 0.0  ;;  %v4849_v0 = vmul.f32 %v4672_v21, %v4672_v21  ;;  %v2371_v16 = vrot.slane %v2369_v56, 5 }
 0x228   : > { %v4782_v57 = vadd.f32 %v4781_v29, %v7173_v42  ;;  %3620 = vrot.lane.b32.xlu1 %v3437_v22, %s5493_s9  ;;  %3143 = vst.msk [vmem:[#allocation3 + $0x130] sm:$0xf] %vm1899_vm1, %v3073_v62  ;;  %v1952_v42 = vld [vmem:[#allocation2 + $0x84] sm:$0xf]  ;;  %v5250_v25 = vld [vmem:[#allocation3 + $0x128] sm:$0xf]  ;;  %v7249_v12 = vpop.f32.mrf.mxu2 }
 0x229   : > { %2871 = vrot.lane.b32.xlu0 %v2793_v37, %s5491_s28  ;;  %v4882_v39 = vsel %vm4430_vm4, %v4849_v0, 0.0  ;;  %v5398_v37 = vld [vmem:[#allocation3 + $0x94] sm:$0xf]  ;;  %v2507_v22 = vrot.slane %v2505_v6, 5  ;;  %v3580_v62 = vrot.slane %v3578_v51, 5  ;;  %v2488_v0 = vrot.slane %v2486_v19, 4 }
 0x22a   : > { %v4883_v54 = vadd.f32 %v4882_v39, %v7185_v36  ;;  %v4584_v46 = vpop.f32.mrf.mxu1  ;;  %v3609_v30 = vpop.permute.xlu1 %3608  ;;  %v5170_v10 = vld [vmem:[#allocation3 + $0x90] sm:$0xf]  ;;  %v7246_v36 = vrot.slane %v2495_v55, 5  ;;  %v2150_v55 = vld [vmem:[#allocation2 + $0x70] sm:$0xf] }
 0x22b   : > { %v2860_v48 = vpop.permute.xlu0 %2859  ;;  %v4585_v4 = vadd.f32 %v4584_v46, %v4495_v45  ;;  %3691 = vst.msk [vmem:[#allocation3 + $0xa0] sm:$0xf] %vm2092_vm2, %v3609_v30  ;;  %v5171_v7 = vor.u32 %v5399_v15, %v5170_v10  ;;  %v2492_v45 = vor.u32 %v2491_v8, %v2488_v0  ;;  %v2989_v30 = vld [vmem:[#allocation2 + $0xd0] sm:$0xf]  ;;  %v2375_v27 = vshll.u32 %v2150_v55, 16 }
 0x22c   : > { %2940 = vst.msk [vmem:[#allocation3 + $0xb8] sm:$0xf] %vm1559_vm15, %v2860_v48  ;;  %2034 = vrot.lane.b32.xlu2 %v1951_v52, %s5493_s9  ;;  %v2502_v21 = vor.u32 %v2501_v38, %v7246_v36  ;;  %v3581_v48 = vsel %vm5615_vm10, %v3576_v5, %v3580_v62  ;;  %v3439_v5 = vshrl.u32 %v3180_v11, 16  ;;  %v3749_v38 = vld [vmem:[#allocation2 + $0xb4] sm:$0xe] }
 0x22d   : > { %v4674_v24 = vadd.f32 %v7085_v59, %v4585_v4  ;;  %4517 = vmatmul.bf16.gmra.mxu0 %v5171_v7  ;;  %v5251_v59 = vor.u32 %v5418_v3, %v5250_v25  ;;  %v2151_v4 = vld [vmem:[#allocation2 + $0x74] sm:$0x1]  ;;  %v2379_v25 = vshrl.u32 %v2150_v55, 16  ;;  %v3751_v0 = vld [vmem:[#allocation2 + $0xbc] sm:$0x1] }
 0x22e   : > { %v2858_v49 = vpop.permute.xlu2 %2857  ;;  %v2503_v15 = vrot.slane %v2502_v21, 4  ;;  %v2385_v63 = vshll.u32 %v2151_v4, 16  ;;  %v3442_v21 = vshll.u32 %v3180_v11, 16  ;;  %v7321_v55 = vld [vmem:[#allocation2 + $0x94] sm:$0xf] }
 0x22f   : > { %4749 = vst.msk [vmem:[%s7116_s15 + $0x18] sm:$0xff] %vm4430_vm4, %v4674_v24  ;;  %v4783_v26 = vsel %vm4430_vm4, %v4674_v24, 0.0  ;;  %v4850_v23 = vmul.f32 %v4674_v24, %v4674_v24  ;;  %5372 = vmatmul.msk.bf16.gmra.mxu2 %vm4430_vm4, %v5251_v59  ;;  %v2978_v24 = vld [vmem:[#allocation2 + $0x90] sm:$0xf]  ;;  %v2381_v51 = vrot.slane %v2379_v25, 4 }
 0x230   : > { %v7255_v60 = vadd.f32 %v4783_v26, %v4782_v57  ;;  %3082 = vrot.lane.b32.xlu1 %v2988_v41, %s5492_s8  ;;  %2939 = vst.msk [vmem:[#allocation3 + $0xac] sm:$0xf] %vm1559_vm15, %v2858_v49  ;;  %v2508_v28 = vsel %vm5615_vm10, %v2503_v15, %v2507_v22  ;;  %v7280_v58 = vpop.f32.mrf.mxu2  ;;  %v7293_v41 = vrot.slane %v2375_v27, 5  ;;  %v2387_v19 = vrot.slane %v2385_v63, 5  ;;  %v3183_v63 = vld [vmem:[#allocation2 + $0x9c] sm:$0xf] }
 0x231   : > { %2036 = vrot.lane.b32.xlu0 %v1952_v42, %s5493_s9  ;;  %v4884_v14 = vsel %vm4430_vm4, %v4850_v23, 0.0  ;;  %2616 = vst.msk [vmem:[#allocation3 + $0x148] sm:$0xf] %vm373_vm0, %v2508_v28  ;;  %v5074_v42 = vrot.slane %v2651_v44, 9  ;;  %v2368_v22 = vrot.slane %v2366_v33, 4 }
 0x232   : > { %v7265_v52 = vadd.f32 %v4884_v14, %v4883_v54  ;;  %v3071_v1 = vpop.permute.xlu1 %3070  ;;  %v5172_v57 = vld [vmem:[#allocation3 + $0x9c] sm:$0xf0]  ;;  %v4498_v54 = vpop.f32.mrf.mxu0  ;;  %v2382_v59 = vor.u32 %v2381_v51, %v7293_v41 }
 0x233   : > { %v2025_v29 = vpop.permute.xlu0 %2024  ;;  %3142 = vst.msk [vmem:[#allocation3 + $0x124] sm:$0xf] %vm1899_vm1, %v3071_v1  ;;  %v5175_v39 = vor.u32 %v5398_v37, %v5172_v57  ;;  %v2790_v49 = vsel %vm6088_vm14, %v5074_v42, %v2789_v40  ;;  %v5093_v1 = vrot.slane %v3749_v38, 9  ;;  %v3899_v57 = vrot.slane %v3750_v13, 5 }
 0x234   : > { %2107 = vst.msk [vmem:[#allocation3 + $0xa8] sm:$0xf] %vm2092_vm2, %v2025_v29  ;;  %2889 = vrot.lane.b32.xlu2 %v2825_v61, %s5491_s28  ;;  %v2383_v29 = vrot.slane %v2382_v59, 4  ;;  %v3441_v42 = vrot.slane %v3439_v5, 4  ;;  %v3463_v38 = vshrl.u32 %v3183_v63, 16 }
 0x235   : > { %3702 = vst.msk [vmem:[#allocation3 + $0x124] sm:$0xf] %vm2092_vm2, %v7212_v50  ;;  %4606 = vmatmul.bf16.gmra.mxu1 %v5175_v39  ;;  %v2493_v50 = vrot.slane %v2492_v45, 4  ;;  %v2168_v59 = vld [vmem:[#allocation2 + $0xb8] sm:$0xf] }
 0x236   : > { %v3053_v47 = vpop.permute.xlu2 %3052  ;;  %v2388_v44 = vsel %vm5615_vm10, %v2383_v29, %v2387_v19 }
 0x237   : > { %3133 = vst.msk [vmem:[#allocation3 + $0xb8] sm:$0xf] %vm1899_vm1, %v3053_v47  ;;  %v2498_v46 = vsel %vm5615_vm10, %v2493_v50, %v7246_v36  ;;  %v2980_v36 = vld [vmem:[#allocation2 + $0x9c] sm:$0xf]  ;;  %v1955_v47 = vld [vmem:[#allocation2 + $0x94] sm:$0xf]  ;;  %v3900_v50 = vsel %vm6088_vm14, %v5093_v1, %v3899_v57 }
 0x238   : > { %3644 = vrot.lane.b32.xlu1 %v3581_v48, %s5493_s9  ;;  %2615 = vst.msk [vmem:[#allocation3 + $0x13c] sm:$0xf] %vm373_vm0, %v2498_v46  ;;  %v2654_v48 = vld [vmem:[#allocation2 + $0x90] sm:$0xe]  ;;  %v3902_v46 = vrot.slane %v3751_v0, 5  ;;  %v3465_v1 = vrot.slane %v3463_v38, 4 }
 0x239   : > { %3624 = vrot.lane.b32.xlu0 %v3461_v53, %s5493_s9  ;;  %v2372_v53 = vor.u32 %v2371_v16, %v2368_v22  ;;  %2606 = vst.msk [vmem:[#allocation3 + $0xd0] sm:$0xf] %vm373_vm0, %v2388_v44  ;;  %v5075_v11 = vrot.slane %v2654_v48, 9  ;;  %v2519_v22 = vshll.u32 %v2168_v59, 16 }
 0x23a   : > { %v4587_v32 = vpop.f32.mrf.mxu1  ;;  %v3633_v43 = vpop.permute.xlu1 %3632  ;;  %3976 = vst.msk [vmem:[#allocation3 + $0x140] sm:$0xf] %vm373_vm0, %v3900_v50  ;;  %v2656_v50 = vld [vmem:[#allocation2 + $0x98] sm:$0x1] }
 0x23b   : > { %v3613_v10 = vpop.permute.xlu0 %3612  ;;  %v4588_v7 = vadd.f32 %v4587_v32, %v4498_v54  ;;  %3703 = vst.msk [vmem:[#allocation3 + $0x130] sm:$0xf] %vm2092_vm2, %v3633_v43  ;;  %v7303_v23 = vpop.f32.mrf.mxu2  ;;  %v3901_v54 = vrot.slane %v3899_v57, 4  ;;  %v3444_v32 = vrot.slane %v3442_v21, 5  ;;  %v5182_v0 = vld [vmem:[#allocation3 + $0xa8] sm:$0xf] }
 0x23c   : > { %3693 = vst.msk [vmem:[#allocation3 + $0xb8] sm:$0xf] %vm2092_vm2, %v3613_v10  ;;  %3084 = vrot.lane.b32.xlu2 %v2989_v30, %s5492_s8  ;;  %v5416_v40 = vld [vmem:[#allocation3 + $0x124] sm:$0xf]  ;;  %v4500_v62 = vpop.f32.mrf.mxu0  ;;  %v1953_v10 = vld [vmem:[#allocation2 + $0x88] sm:$0xf] }
 0x23d   : > { %v4677_v6 = vadd.f32 %v7131_v20, %v4588_v7  ;;  %v3903_v27 = vsel %vm6088_vm14, %v3901_v54, %v3902_v46  ;;  %v3445_v34 = vor.u32 %v3444_v32, %v3441_v42 }
 0x23e   : > { %v3611_v3 = vpop.permute.xlu2 %3610  ;;  %3977 = vst.msk [vmem:[#allocation3 + $0x14c] sm:$0xf] %vm373_vm0, %v3903_v27 }
 0x23f   : > { %4750 = vst.msk [vmem:[%s7116_s15 + $0x20] sm:$0xff] %vm4430_vm4, %v4677_v6  ;;  %v4785_v26 = vsel %vm4430_vm4, %v4677_v6, 0.0  ;;  %v4851_v20 = vmul.f32 %v4677_v6, %v4677_v6  ;;  %v3446_v13 = vrot.slane %v3445_v34, 4 }
 0x240   : > { %v4786_v37 = vadd.f32 %v4785_v26, %v7255_v60  ;;  %3062 = vrot.lane.b32.xlu1 %v2978_v24, %s5492_s8  ;;  %v3466_v26 = vshll.u32 %v3183_v63, 16 }
 0x241   : > { %3066 = vrot.lane.b32.xlu0 %v2980_v36, %s5492_s8  ;;  %v4886_v14 = vsel %vm4430_vm4, %v4851_v20, 0.0  ;;  %v2979_v36 = vld [vmem:[#allocation2 + $0x94] sm:$0xf] }
 0x242   : > { %v4887_v15 = vadd.f32 %v4886_v14, %v7265_v52  ;;  %v4589_v8 = vpop.f32.mrf.mxu1  ;;  %v3051_v39 = vpop.permute.xlu1 %3050  ;;  %v5244_v60 = vld [vmem:[#allocation3 + $0x12c] sm:$0xf0]  ;;  %v2373_v52 = vrot.slane %v2372_v53, 4  ;;  %v2167_v20 = vld [vmem:[#allocation2 + $0xb4] sm:$0xf]  ;;  %v3468_v57 = vrot.slane %v3466_v26, 5 }
 0x243   : > { %v7309_v61 = vpop.permute.xlu0 %3074  ;;  %v4590_v28 = vadd.f32 %v4589_v8, %v4500_v62  ;;  %3132 = vst.msk [vmem:[#allocation3 + $0xac] sm:$0xf] %vm1899_vm1, %v3051_v39  ;;  %v5247_v45 = vor.u32 %v5416_v40, %v5244_v60  ;;  %v5184_v24 = vld [vmem:[#allocation3 + $0xb4] sm:$0xf0]  ;;  %v2513_v40 = vshll.u32 %v2167_v20, 16  ;;  %v3451_v8 = vsel %vm5615_vm10, %v3446_v13, %v7227_v18 }
 0x244   : > { %3692 = vst.msk [vmem:[#allocation3 + $0xac] sm:$0xf] %vm2092_vm2, %v3611_v3  ;;  %2869 = vrot.lane.b32.xlu2 %v2790_v49, %s5491_s28  ;;  %v2378_v4 = vsel %vm5615_vm10, %v2373_v52, %v7293_v41  ;;  %v2796_v41 = vrot.slane %v7321_v55, 5  ;;  %v7341_v3 = vpop.f32.mrf.mxu2  ;;  %v4503_v16 = vpop.f32.mrf.mxu0  ;;  %v5262_v14 = vld [vmem:[#allocation3 + $0x140] sm:$0xf]  ;;  %v2521_v52 = vrot.slane %v2519_v22, 5  ;;  %v3469_v42 = vor.u32 %v3468_v57, %v3465_v1 }
 0x245   : > { %v4679_v30 = vadd.f32 %v7163_v17, %v4590_v28  ;;  %4636 = vmatmul.bf16.vlgmr.msrb.gmra.mxu3 %v5247_v45  ;;  %2605 = vst.msk [vmem:[#allocation3 + $0xc4] sm:$0xf] %vm373_vm0, %v2378_v4  ;;  %v2515_v29 = vrot.slane %v2513_v40, 5  ;;  %v3184_v60 = vld [vmem:[#allocation2 + $0xa0] sm:$0xf] }
 0x246   : > { %v2884_v43 = vpop.permute.xlu2 %2883  ;;  %v2797_v19 = vsel %vm6088_vm14, %v5075_v11, %v2796_v41  ;;  %v5421_v53 = vld [vmem:[#allocation3 + $0x148] sm:$0xf0]  ;;  %v2981_v18 = vld [vmem:[#allocation2 + $0xa0] sm:$0xf]  ;;  %v3472_v32 = vshll.u32 %v3184_v60, 16  ;;  %v2798_v4 = vrot.slane %v2796_v41, 4 }
 0x247   : > { %4751 = vst.msk [vmem:[%s7116_s15 + $0x28] sm:$0xff] %vm4430_vm4, %v4679_v30  ;;  %v4787_v7 = vsel %vm4430_vm4, %v4679_v30, 0.0  ;;  %v4852_v17 = vmul.f32 %v4679_v30, %v4679_v30  ;;  %v5263_v44 = vor.u32 %v5421_v53, %v5262_v14  ;;  %v3476_v38 = vshrl.u32 %v3184_v60, 16  ;;  %v3185_v22 = vld [vmem:[#allocation2 + $0xa4] sm:$0x1] }
 0x248   : > { %v7333_v25 = vadd.f32 %v4787_v7, %v4786_v37  ;;  %2038 = vrot.lane.b32.xlu1 %v1953_v10, %s5493_s9  ;;  %2952 = vst.msk [vmem:[#allocation3 + $0x148] sm:$0xf] %vm1559_vm15, %v2884_v43  ;;  %v2510_v37 = vshrl.u32 %v2167_v20, 16  ;;  %v2799_v7 = vrot.slane %v2656_v50, 5  ;;  %v2153_v53 = vld [vmem:[#allocation2 + $0x7c] sm:$0xf] }
 0x249   : > { %2042 = vrot.lane.b32.xlu0 %v1955_v47, %s5493_s9  ;;  %v4888_v6 = vsel %vm4430_vm4, %v4852_v17, 0.0  ;;  %5373 = vmatmul.msk.bf16.gmra.mxu2 %vm4430_vm4, %v5263_v44  ;;  %v2399_v44 = vshll.u32 %v2153_v53, 16  ;;  %v2403_v50 = vshrl.u32 %v2153_v53, 16 }
 0x24a   : > { %v7344_v49 = vadd.f32 %v4888_v6, %v4887_v15  ;;  %v2027_v5 = vpop.permute.xlu1 %2026  ;;  %v2512_v62 = vrot.slane %v2510_v37, 4  ;;  %v2523_v15 = vshrl.u32 %v2168_v59, 16  ;;  %v2800_v20 = vsel %vm6088_vm14, %v2798_v4, %v2799_v7  ;;  %v2154_v7 = vld [vmem:[#allocation2 + $0x80] sm:$0x1] }
 0x24b   : > { %v7339_v51 = vpop.permute.xlu0 %3636  ;;  %2108 = vst.msk [vmem:[#allocation3 + $0xb4] sm:$0xf] %vm2092_vm2, %v2027_v5  ;;  %v5401_v33 = vld [vmem:[#allocation3 + $0xac] sm:$0xf] }
 0x24c   : > { %v5187_v56 = vor.u32 %v5401_v33, %v5184_v24  ;;  %3064 = vrot.lane.b32.xlu2 %v2979_v36, %s5492_s8  ;;  %v2516_v28 = vor.u32 %v2515_v29, %v2512_v62  ;;  %v7358_v30 = vpop.f32.mrf.mxu2  ;;  %v2525_v43 = vrot.slane %v2523_v15, 4  ;;  %v3474_v24 = vrot.slane %v3472_v32, 5  ;;  %v4505_v5 = vpop.f32.mrf.mxu0 }
 0x24d   : > { %v2405_v32 = vrot.slane %v2403_v50, 4 }
 0x24e   : > { %4611 = vmatmul.bf16.gmra.mxu1 %v5187_v56  ;;  %v3635_v21 = vpop.permute.xlu2 %3634  ;;  %v2517_v10 = vrot.slane %v2516_v28, 4  ;;  %v2526_v27 = vor.u32 %v2525_v43, %v2521_v52  ;;  %v3470_v56 = vrot.slane %v3469_v42, 4  ;;  %v2401_v42 = vrot.slane %v2399_v44, 5 }
 0x250   : > { %2873 = vrot.lane.b32.xlu1 %v2797_v19, %s5491_s28  ;;  %v2522_v17 = vsel %vm5615_vm10, %v2517_v10, %v2521_v52  ;;  %v2527_v41 = vrot.slane %v2526_v27, 4  ;;  %v2409_v27 = vshll.u32 %v2154_v7, 16  ;;  %v7442_v7 = vpop.f32.mrf.mxu3 }
 0x251   : > { %2617 = vst.msk [vmem:[#allocation3 + $0x154] sm:$0xf] %vm373_vm0, %v2522_v17 }
 0x252   : > { %v4592_v45 = vpop.f32.mrf.mxu1  ;;  %v2882_v48 = vpop.permute.xlu1 %2881  ;;  %v5402_v47 = vld [vmem:[#allocation3 + $0xb0] sm:$0xf0] }
 0x253   : > { %v7355_v39 = vpop.permute.xlu0 %3054  ;;  %v4593_v54 = vadd.f32 %v4592_v45, %v4503_v16  ;;  %2951 = vst.msk [vmem:[#allocation3 + $0x13c] sm:$0xf] %vm1559_vm15, %v2882_v48  ;;  %v5183_v46 = vor.u32 %v5402_v47, %v5182_v0  ;;  %v3478_v16 = vrot.slane %v3476_v38, 4  ;;  %v1954_v0 = vld [vmem:[#allocation2 + $0x90] sm:$0xf] }
 0x254   : > { %3144 = vst.msk [vmem:[#allocation3 + $0x13c] sm:$0xf] %vm1899_vm1, %v7309_v61  ;;  %3622 = vrot.lane.b32.xlu2 %v3451_v8, %s5493_s9  ;;  %v2169_v61 = vld [vmem:[#allocation2 + $0xbc] sm:$0x1]  ;;  %v7383_v40 = vpop.f32.mrf.mxu2 }
 0x255   : > { %v4682_v55 = vadd.f32 %v7204_v35, %v4593_v54  ;;  %3704 = vst.msk [vmem:[#allocation3 + $0x13c] sm:$0xf] %vm2092_vm2, %v3635_v21  ;;  %4522 = vmatmul.bf16.gmra.mxu0 %v5183_v46  ;;  %v2529_v36 = vshll.u32 %v2169_v61, 16  ;;  %v3475_v21 = vsel %vm5615_vm10, %v3470_v56, %v3474_v24  ;;  %v3479_v60 = vor.u32 %v3478_v16, %v3474_v24 }
 0x256   : > { %v2864_v11 = vpop.permute.xlu2 %2863 }
 0x257   : > { %4752 = vst.msk [vmem:[%s7116_s15 + $0x30] sm:$0xff] %vm4430_vm4, %v4682_v55  ;;  %v4789_v63 = vsel %vm4430_vm4, %v4682_v55, 0.0  ;;  %v4853_v6 = vmul.f32 %v4682_v55, %v4682_v55  ;;  %v2531_v34 = vrot.slane %v2529_v36, 5  ;;  %v3480_v55 = vrot.slane %v3479_v60, 4 }
 0x258   : > { %v4790_v35 = vadd.f32 %v4789_v63, %v7333_v25  ;;  %3068 = vrot.lane.b32.xlu1 %v2981_v18, %s5492_s8  ;;  %2942 = vst.msk [vmem:[#allocation3 + $0xd0] sm:$0xf] %vm1559_vm15, %v2864_v11  ;;  %v2406_v11 = vor.u32 %v2405_v32, %v2401_v42 }
 0x259   : > { %v4890_v33 = vsel %vm4430_vm4, %v4853_v6, 0.0  ;;  %v2532_v13 = vsel %vm5615_vm10, %v2527_v41, %v2531_v34 }
 0x25a   : > { %v4891_v59 = vadd.f32 %v4890_v33, %v7344_v49  ;;  %v4594_v25 = vpop.f32.mrf.mxu1  ;;  %v3077_v19 = vpop.permute.xlu1 %3076  ;;  %2618 = vst.msk [vmem:[#allocation3 + $0x160] sm:$0xf] %vm373_vm0, %v2532_v13 }
 0x25b   : > { %v2031_v26 = vpop.permute.xlu0 %2030  ;;  %v4595_v37 = vadd.f32 %v4594_v25, %v4505_v5  ;;  %3145 = vst.msk [vmem:[#allocation3 + $0x148] sm:$0xf] %vm1899_vm1, %v3077_v19 }
 0x25c   : > { %2110 = vst.msk [vmem:[#allocation3 + $0xcc] sm:$0xf] %vm2092_vm2, %v2031_v26  ;;  %2875 = vrot.lane.b32.xlu2 %v2800_v20, %s5491_s28  ;;  %v5419_v15 = vld [vmem:[#allocation3 + $0x13c] sm:$0xf]  ;;  %v7404_v54 = vpop.f32.mrf.mxu2 }
 0x25d   : > { %3705 = vst.msk [vmem:[#allocation3 + $0x148] sm:$0xf] %vm2092_vm2, %v7339_v51  ;;  %v4684_v49 = vadd.f32 %v7229_v31, %v4595_v37  ;;  %v3482_v31 = vshll.u32 %v3185_v22, 16  ;;  %v2152_v51 = vld [vmem:[#allocation2 + $0x78] sm:$0xf] }
 0x25e   : > { %v2029_v14 = vpop.permute.xlu2 %2028  ;;  %v2390_v28 = vshrl.u32 %v2152_v51, 16  ;;  %v2393_v47 = vshll.u32 %v2152_v51, 16 }
 0x25f   : > { %4753 = vst.msk [vmem:[%s7116_s15 + $0x38] sm:$0xff] %vm4430_vm4, %v4684_v49  ;;  %v4791_v62 = vsel %vm4430_vm4, %v4684_v49, 0.0  ;;  %v4854_v29 = vmul.f32 %v4684_v49, %v4684_v49  ;;  %v3484_v4 = vrot.slane %v3482_v31, 5 }
 0x260   : > { %v7395_v1 = vadd.f32 %v4791_v62, %v4790_v35  ;;  %3626 = vrot.lane.b32.xlu1 %v3475_v21, %s5493_s9  ;;  %2109 = vst.msk [vmem:[#allocation3 + $0xc0] sm:$0xf] %vm2092_vm2, %v2029_v14  ;;  %v2392_v46 = vrot.slane %v2390_v28, 4  ;;  %v2395_v18 = vrot.slane %v2393_v47, 5  ;;  %v2407_v35 = vrot.slane %v2406_v11, 4 }
 0x261   : > { %v4892_v57 = vsel %vm4430_vm4, %v4854_v29, 0.0  ;;  %v3485_v41 = vsel %vm5615_vm10, %v3480_v55, %v3484_v4  ;;  %v2171_v62 = vld [vmem:[#allocation2 + $0xc4] sm:$0xf] }
 0x262   : > { %v7400_v45 = vadd.f32 %v4892_v57, %v4891_v59  ;;  %v2862_v48 = vpop.permute.xlu1 %2861  ;;  %v2396_v61 = vor.u32 %v2395_v18, %v2392_v46  ;;  %v2170_v59 = vld [vmem:[#allocation2 + $0xc0] sm:$0xf]  ;;  %v2543_v31 = vshll.u32 %v2171_v62, 16  ;;  %v2547_v47 = vshrl.u32 %v2171_v62, 16  ;;  %v2172_v18 = vld [vmem:[#allocation2 + $0xc8] sm:$0x1] }
 0x263   : > { %v2886_v8 = vpop.permute.xlu0 %2885  ;;  %2941 = vst.msk [vmem:[#allocation3 + $0xc4] sm:$0xf] %vm1559_vm15, %v2862_v48  ;;  %v5405_v43 = vld [vmem:[#allocation3 + $0xc8] sm:$0xf0]  ;;  %v2534_v13 = vshrl.u32 %v2170_v59, 16  ;;  %v2537_v37 = vshll.u32 %v2170_v59, 16 }
 0x264   : > { %2953 = vst.msk [vmem:[#allocation3 + $0x154] sm:$0xf] %vm1559_vm15, %v2886_v8  ;;  %v5256_v52 = vld [vmem:[#allocation3 + $0x144] sm:$0xf0]  ;;  %2040 = vrot.lane.b32.xlu2 %v1954_v0, %s5493_s9  ;;  %v2397_v6 = vrot.slane %v2396_v61, 4  ;;  %v7414_v33 = vpop.f32.mrf.mxu2  ;;  %v2545_v53 = vrot.slane %v2543_v31, 5 }
 0x265   : > { %3134 = vst.msk [vmem:[#allocation3 + $0xc4] sm:$0xf] %vm1899_vm1, %v7355_v39  ;;  %v5259_v10 = vor.u32 %v5419_v15, %v5256_v52  ;;  %v2411_v39 = vrot.slane %v2409_v27, 5  ;;  %v2536_v21 = vrot.slane %v2534_v13, 4  ;;  %v2539_v22 = vrot.slane %v2537_v37, 5 }
 0x266   : > { %v3617_v17 = vpop.permute.xlu2 %3616  ;;  %v2402_v5 = vsel %vm5615_vm10, %v2397_v6, %v2401_v42  ;;  %v2549_v32 = vrot.slane %v2547_v47, 4 }
 0x267   : > { %4641 = vmatmul.bf16.gmra.mxu3 %v5259_v10  ;;  %v5194_v36 = vld [vmem:[#allocation3 + $0xc0] sm:$0xf]  ;;  %v2412_v56 = vsel %vm5615_vm10, %v2407_v35, %v2411_v39  ;;  %2607 = vst.msk [vmem:[#allocation3 + $0xdc] sm:$0xf] %vm373_vm0, %v2402_v5  ;;  %v2540_v0 = vor.u32 %v2539_v22, %v2536_v21  ;;  %v2155_v39 = vld [vmem:[#allocation2 + $0x84] sm:$0xf]  ;;  %v7460_v22 = vpop.f32.mrf.mxu3 }
 0x268   : > { %v5195_v63 = vor.u32 %v5405_v43, %v5194_v36  ;;  %2608 = vst.msk [vmem:[#allocation3 + $0xe8] sm:$0xf] %vm373_vm0, %v2412_v56  ;;  %v2553_v43 = vshll.u32 %v2172_v18, 16  ;;  %v2417_v5 = vshll.u32 %v2155_v39, 16  ;;  %v2156_v56 = vld [vmem:[#allocation2 + $0x88] sm:$0xf] }
 0x269   : > { %v2541_v60 = vrot.slane %v2540_v0, 4  ;;  %v2427_v59 = vshrl.u32 %v2156_v56, 16 }
 0x26a   : > { %v3057_v34 = vpop.permute.xlu1 %3056  ;;  %4527 = vmatmul.bf16.gmra.mxu0 %v5195_v63  ;;  %v4508_v26 = vpop.f32.mrf.mxu0  ;;  %v2555_v4 = vrot.slane %v2553_v43, 5 }
 0x26b   : > { %v3081_v24 = vpop.permute.xlu0 %3080  ;;  %3135 = vst.msk [vmem:[#allocation3 + $0xd0] sm:$0xf] %vm1899_vm1, %v3057_v34  ;;  %v2546_v10 = vsel %vm5615_vm10, %v2541_v60, %v2545_v53  ;;  %v2414_v34 = vshrl.u32 %v2155_v39, 16  ;;  %v2429_v21 = vrot.slane %v2427_v59, 4 }
 0x26c   : > { %3695 = vst.msk [vmem:[#allocation3 + $0xd0] sm:$0xf] %vm2092_vm2, %v3617_v17  ;;  %3628 = vrot.lane.b32.xlu2 %v3485_v41, %s5493_s9  ;;  %v7426_v14 = vpop.f32.mrf.mxu2  ;;  %s235_s9 = scalar_lea.vmem %s7707_s5, %s5047_s22 }
 0x26d   : > { %2619 = vst.msk [vmem:[#allocation3 + $0x16c] sm:$0xf] %vm373_vm0, %v2546_v10 }
 0x26e   : > { %v3079_v38 = vpop.permute.xlu2 %3078 }
 0x26f   : > { %3146 = vst.msk [vmem:[#allocation3 + $0x154] sm:$0xf] %vm1899_vm1, %v3079_v38  ;;  %v2416_v38 = vrot.slane %v2414_v34, 4 }
 0x272   : > { %v4597_v25 = vpop.f32.mrf.mxu1  ;;  %v3615_v19 = vpop.permute.xlu1 %3614 }
 0x273   : > { %v2866_v20 = vpop.permute.xlu0 %2865  ;;  %v4598_v49 = vadd.f32 %v4597_v25, %v4508_v26  ;;  %3694 = vst.msk [vmem:[#allocation3 + $0xc4] sm:$0xf] %vm2092_vm2, %v3615_v19  ;;  %v5196_v8 = vld [vmem:[#allocation3 + $0xcc] sm:$0xf0]  ;;  %v4510_v48 = vpop.f32.mrf.mxu0  ;;  %v2419_v26 = vrot.slane %v2417_v5, 5 }
 0x274   : > { %2943 = vst.msk [vmem:[#allocation3 + $0xdc] sm:$0xf] %vm1559_vm15, %v2866_v20  ;;  %v7448_v27 = vpop.f32.mrf.mxu2  ;;  %v2423_v20 = vshll.u32 %v2156_v56, 16  ;;  %v2157_v25 = vld [vmem:[#allocation2 + $0x8c] sm:$0x1] }
 0x275   : > { %v4687_v16 = vadd.f32 %v7249_v12, %v4598_v49  ;;  %v2433_v13 = vshll.u32 %v2157_v25, 16  ;;  %v2420_v37 = vor.u32 %v2419_v26, %v2416_v38 }
 0x276   : > { %v3641_v29 = vpop.permute.xlu2 %3640  ;;  %v2425_v49 = vrot.slane %v2423_v20, 5 }
 0x277   : > { %4754 = vst.msk [vmem:[%s7116_s15 + $0x40] sm:$0xff] %vm4430_vm4, %v4687_v16  ;;  %v4793_v51 = vsel %vm4430_vm4, %v4687_v16, 0.0  ;;  %v4855_v57 = vmul.f32 %v4687_v16, %v4687_v16  ;;  %v2421_v0 = vrot.slane %v2420_v37, 4 }
 0x278   : > { %v4794_v15 = vadd.f32 %v4793_v51, %v7395_v1  ;;  %v2430_v31 = vor.u32 %v2429_v21, %v2425_v49  ;;  %v2435_v51 = vrot.slane %v2433_v13, 5 }
 0x279   : > { %v4894_v28 = vsel %vm4430_vm4, %v4855_v57, 0.0  ;;  %v2426_v60 = vsel %vm5615_vm10, %v2421_v0, %v2425_v49 }
 0x27a   : > { %v4895_v44 = vadd.f32 %v4894_v28, %v7400_v45  ;;  %v4599_v50 = vpop.f32.mrf.mxu1  ;;  %v2888_v52 = vpop.permute.xlu1 %2887  ;;  %v5404_v46 = vld [vmem:[#allocation3 + $0xc4] sm:$0xf]  ;;  %v2550_v45 = vor.u32 %v2549_v32, %v2545_v53  ;;  %v2431_v53 = vrot.slane %v2430_v31, 4  ;;  %2609 = vst.msk [vmem:[#allocation3 + $0xf4] sm:$0xf] %vm373_vm0, %v2426_v60 }
 0x27b   : > { %v7433_v12 = vpop.permute.xlu0 %3060  ;;  %v4600_v1 = vadd.f32 %v4599_v50, %v4510_v48  ;;  %2954 = vst.msk [vmem:[#allocation3 + $0x160] sm:$0xf] %vm1559_vm15, %v2888_v52  ;;  %v5199_v42 = vor.u32 %v5404_v46, %v5196_v8 }
 0x27c   : > { %3147 = vst.msk [vmem:[#allocation3 + $0x160] sm:$0xf] %vm1899_vm1, %v3081_v24  ;;  %v2551_v36 = vrot.slane %v2550_v45, 4  ;;  %v2436_v28 = vsel %vm5615_vm10, %v2431_v53, %v2435_v51 }
 0x27d   : > { %v4689_v55 = vadd.f32 %v7280_v58, %v4600_v1  ;;  %3707 = vst.msk [vmem:[#allocation3 + $0x160] sm:$0xf] %vm2092_vm2, %v3641_v29  ;;  %4616 = vmatmul.bf16.gmra.mxu1 %v5199_v42  ;;  %v7462_v29 = vpop.f32.mrf.mxu2  ;;  %v3753_v42 = vld [vmem:[#allocation2 + $0xc4] sm:$0xf] }
 0x27e   : > { %v3059_v17 = vpop.permute.xlu2 %3058  ;;  %v2556_v35 = vsel %vm5615_vm10, %v2551_v36, %v2555_v4  ;;  %2610 = vst.msk [vmem:[#allocation3 + $0x100] sm:$0xf] %vm373_vm0, %v2436_v28  ;;  %v3906_v45 = vrot.slane %v3753_v42, 5 }
 0x27f   : > { %4755 = vst.msk [vmem:[%s7116_s15 + $0x48] sm:$0xff] %vm4430_vm4, %v4689_v55  ;;  %v4795_v61 = vsel %vm4430_vm4, %v4689_v55, 0.0  ;;  %v4856_v11 = vmul.f32 %v4689_v55, %v4689_v55 }
 0x280   : > { %v4796_v63 = vadd.f32 %v4795_v61, %v4794_v15  ;;  %3136 = vst.msk [vmem:[#allocation3 + $0xdc] sm:$0xf] %vm1899_vm1, %v3059_v17  ;;  %v3752_v17 = vld [vmem:[#allocation2 + $0xc0] sm:$0xe]  ;;  %v3754_v61 = vld [vmem:[#allocation2 + $0xc8] sm:$0x1] }
 0x281   : > { %v4896_v58 = vsel %vm4430_vm4, %v4856_v11, 0.0  ;;  %2620 = vst.msk [vmem:[#allocation3 + $0x178] sm:$0xf] %vm373_vm0, %v2556_v35  ;;  %v5094_v35 = vrot.slane %v3752_v17, 9  ;;  %v3908_v37 = vrot.slane %v3906_v45, 4  ;;  %v3909_v31 = vrot.slane %v3754_v61, 5 }
 0x282   : > { %v7454_v24 = vadd.f32 %v4896_v58, %v4895_v44  ;;  %v3639_v41 = vpop.permute.xlu1 %3638  ;;  %v7475_v44 = vpop.f32.mrf.mxu3  ;;  %v3756_v61 = vld [vmem:[#allocation2 + $0xd0] sm:$0xf] }
 0x283   : > { %v3619_v6 = vpop.permute.xlu0 %3618  ;;  %3706 = vst.msk [vmem:[#allocation3 + $0x154] sm:$0xf] %vm2092_vm2, %v3639_v41 }
 0x284   : > { %3696 = vst.msk [vmem:[#allocation3 + $0xdc] sm:$0xf] %vm2092_vm2, %v3619_v6  ;;  %v5268_v16 = vld [vmem:[#allocation3 + $0x15c] sm:$0xf0]  ;;  %v2159_v6 = vld [vmem:[#allocation2 + $0x94] sm:$0xf] }
 0x285   : > { %v7480_v10 = vpop.f32.mrf.mxu2  ;;  %v2447_v56 = vshll.u32 %v2159_v6, 16 }
 0x286   : > { %v2035_v19 = vpop.permute.xlu2 %2034 }
 0x287   : > { %2112 = vst.msk [vmem:[#allocation3 + $0xe4] sm:$0xf] %vm2092_vm2, %v2035_v19  ;;  %v2449_v19 = vrot.slane %v2447_v56, 5 }
 0x28a   : > { %v2868_v57 = vpop.permute.xlu1 %2867  ;;  %v5422_v15 = vld [vmem:[#allocation3 + $0x154] sm:$0xf]  ;;  %v4513_v47 = vpop.f32.mrf.mxu0 }
 0x28b   : > { %v2892_v62 = vpop.permute.xlu0 %2891  ;;  %2944 = vst.msk [vmem:[#allocation3 + $0xe8] sm:$0xf] %vm1559_vm15, %v2868_v57  ;;  %v5271_v8 = vor.u32 %v5422_v15, %v5268_v16  ;;  %v7491_v25 = vpop.f32.mrf.mxu3  ;;  %v2160_v16 = vld [vmem:[#allocation2 + $0x98] sm:$0x1] }
 0x28c   : > { %2956 = vst.msk [vmem:[#allocation3 + $0x178] sm:$0xf] %vm1559_vm15, %v2892_v62  ;;  %v2457_v15 = vshll.u32 %v2160_v16, 16 }
 0x28d   : > { %3137 = vst.msk [vmem:[#allocation3 + $0xe8] sm:$0xf] %vm1899_vm1, %v7433_v12  ;;  %4646 = vmatmul.bf16.gmra.mxu3 %v5271_v8  ;;  %v7496_v21 = vpop.f32.mrf.mxu2 }
 0x28e   : > { %v2890_v48 = vpop.permute.xlu2 %2889  ;;  %v5408_v55 = vld [vmem:[#allocation3 + $0xe0] sm:$0xf0] }
 0x28f   : > { %2955 = vst.msk [vmem:[#allocation3 + $0x16c] sm:$0xf] %vm1559_vm15, %v2890_v48  ;;  %v5407_v48 = vld [vmem:[#allocation3 + $0xdc] sm:$0xf] }
 0x292   : > { %v4602_v52 = vpop.f32.mrf.mxu1  ;;  %v2033_v46 = vpop.permute.xlu1 %2032 }
 0x293   : > { %v7477_v50 = vpop.permute.xlu0 %3642  ;;  %v4603_v12 = vadd.f32 %v4602_v52, %v4513_v47  ;;  %2111 = vst.msk [vmem:[#allocation3 + $0xd8] sm:$0xf] %vm2092_vm2, %v2033_v46  ;;  %v4515_v36 = vpop.f32.mrf.mxu0  ;;  %v2459_v52 = vrot.slane %v2457_v15, 5 }
 0x295   : > { %v4692_v18 = vadd.f32 %v7303_v23, %v4603_v12  ;;  %v2158_v23 = vld [vmem:[#allocation2 + $0x90] sm:$0xf] }
 0x296   : > { %v3085_v1 = vpop.permute.xlu2 %3084  ;;  %v2438_v20 = vshrl.u32 %v2158_v23, 16  ;;  %v2441_v59 = vshll.u32 %v2158_v23, 16 }
 0x297   : > { %4756 = vst.msk [vmem:[%s7116_s15 + $0x50] sm:$0xff] %vm4430_vm4, %v4692_v18  ;;  %v4797_v32 = vsel %vm4430_vm4, %v4692_v18, 0.0  ;;  %v4857_v43 = vmul.f32 %v4692_v18, %v4692_v18 }
 0x298   : > { %v4798_v4 = vadd.f32 %v4797_v32, %v4796_v63  ;;  %3149 = vst.msk [vmem:[#allocation3 + $0x178] sm:$0xf] %vm1899_vm1, %v3085_v1  ;;  %v2451_v63 = vshrl.u32 %v2159_v6, 16  ;;  %v2440_v62 = vrot.slane %v2438_v20, 4  ;;  %v2443_v0 = vrot.slane %v2441_v59, 5 }
 0x299   : > { %v4898_v11 = vsel %vm4430_vm4, %v4857_v43, 0.0 }
 0x29a   : > { %v4899_v39 = vadd.f32 %v4898_v11, %v7454_v24  ;;  %v4604_v41 = vpop.f32.mrf.mxu1  ;;  %v3621_v34 = vpop.permute.xlu1 %3620  ;;  %v5206_v5 = vld [vmem:[#allocation3 + $0xd8] sm:$0xf]  ;;  %v2453_v13 = vrot.slane %v2451_v63, 4  ;;  %v3907_v24 = vsel %vm6088_vm14, %v5094_v35, %v3906_v45  ;;  %v2444_v53 = vor.u32 %v2443_v0, %v2440_v62 }
 0x29b   : > { %v2872_v58 = vpop.permute.xlu0 %2871  ;;  %v4605_v38 = vadd.f32 %v4604_v41, %v4515_v36  ;;  %3697 = vst.msk [vmem:[#allocation3 + $0xe8] sm:$0xf] %vm2092_vm2, %v3621_v34  ;;  %v5207_v26 = vor.u32 %v5408_v55, %v5206_v5  ;;  %v7520_v11 = vpop.f32.mrf.mxu2  ;;  %v3913_v36 = vrot.slane %v3756_v61, 5 }
 0x29c   : > { %2946 = vst.msk [vmem:[#allocation3 + $0x100] sm:$0xf] %vm1559_vm15, %v2872_v58  ;;  %v2454_v57 = vor.u32 %v2453_v13, %v2449_v19  ;;  %v2445_v18 = vrot.slane %v2444_v53, 4  ;;  %v3755_v58 = vld [vmem:[#allocation2 + $0xcc] sm:$0xe] }
 0x29d   : > { %v4694_v49 = vadd.f32 %v7341_v3, %v4605_v38  ;;  %4532 = vmatmul.bf16.gmra.mxu0 %v5207_v26  ;;  %3978 = vst.msk [vmem:[#allocation3 + $0x158] sm:$0xf] %vm373_vm0, %v3907_v24  ;;  %v3910_v3 = vsel %vm6088_vm14, %v3908_v37, %v3909_v31  ;;  %v5095_v23 = vrot.slane %v3755_v58, 9  ;;  %v3915_v35 = vrot.slane %v3913_v36, 4 }
 0x29e   : > { %v2870_v51 = vpop.permute.xlu2 %2869  ;;  %v2455_v47 = vrot.slane %v2454_v57, 4  ;;  %3979 = vst.msk [vmem:[#allocation3 + $0x164] sm:$0xf] %vm373_vm0, %v3910_v3  ;;  %v2450_v45 = vsel %vm5615_vm10, %v2445_v18, %v2449_v19 }
 0x29f   : > { %4757 = vst.msk [vmem:[%s7116_s15 + $0x58] sm:$0xff] %vm4430_vm4, %v4694_v49  ;;  %v4799_v8 = vsel %vm4430_vm4, %v4694_v49, 0.0  ;;  %v4858_v60 = vmul.f32 %v4694_v49, %v4694_v49 }
 0x2a0   : > { %v4800_v28 = vadd.f32 %v4799_v8, %v4798_v4  ;;  %2945 = vst.msk [vmem:[#allocation3 + $0xf4] sm:$0xf] %vm1559_vm15, %v2870_v51  ;;  %v2460_v43 = vsel %vm5615_vm10, %v2455_v47, %v2459_v52  ;;  %v7513_v4 = vpop.f32.mrf.mxu3 }
 0x2a1   : > { %v4900_v46 = vsel %vm4430_vm4, %v4858_v60, 0.0  ;;  %2612 = vst.msk [vmem:[#allocation3 + $0x118] sm:$0xf] %vm373_vm0, %v2460_v43 }
 0x2a2   : > { %v4901_v1 = vadd.f32 %v4900_v46, %v4899_v39  ;;  %v3083_v42 = vpop.permute.xlu1 %3082  ;;  %v5208_v32 = vld [vmem:[#allocation3 + $0xe4] sm:$0xf0]  ;;  %2611 = vst.msk [vmem:[#allocation3 + $0x10c] sm:$0xf] %vm373_vm0, %v2450_v45  ;;  %v3916_v39 = vrot.slane %v3757_v9, 5 }
 0x2a3   : > { %v2037_v12 = vpop.permute.xlu0 %2036  ;;  %3148 = vst.msk [vmem:[#allocation3 + $0x16c] sm:$0xf] %vm1899_vm1, %v3083_v42  ;;  %v5211_v55 = vor.u32 %v5407_v48, %v5208_v32  ;;  %v7532_v26 = vpop.f32.mrf.mxu2 }
 0x2a4   : > { %2113 = vst.msk [vmem:[#allocation3 + $0xf0] sm:$0xf] %vm2092_vm2, %v2037_v12  ;;  %v3917_v34 = vsel %vm6088_vm14, %v3915_v35, %v3916_v39  ;;  %v5274_v46 = vld [vmem:[#allocation3 + $0x158] sm:$0xf] }
 0x2a5   : > { %3708 = vst.msk [vmem:[#allocation3 + $0x16c] sm:$0xf] %vm2092_vm2, %v7477_v50  ;;  %4621 = vmatmul.bf16.gmra.mxu1 %v5211_v55  ;;  %v3914_v50 = vsel %vm6088_vm14, %v5095_v23, %v3913_v36  ;;  %v5424_v12 = vld [vmem:[#allocation3 + $0x160] sm:$0xf0] }
 0x2a6   : > { %v3065_v17 = vpop.permute.xlu2 %3064  ;;  %3980 = vst.msk [vmem:[#allocation3 + $0x170] sm:$0xf] %vm373_vm0, %v3914_v50 }
 0x2a7   : > { %3139 = vst.msk [vmem:[#allocation3 + $0x100] sm:$0xf] %vm1899_vm1, %v3065_v17  ;;  %v5275_v17 = vor.u32 %v5424_v12, %v5274_v46 }
 0x2a8   : > { %3981 = vst.msk [vmem:[#allocation3 + $0x17c] sm:$0xf] %vm373_vm0, %v3917_v34  ;;  %v7530_v5 = vpop.f32.mrf.mxu3  ;;  %vm4948_vm0 = vcmask 1040384  }
 0x2aa   : > { %v3645_v41 = vpop.permute.xlu1 %3644  ;;  %v4518_v63 = vpop.f32.mrf.mxu0 }
 0x2ab   : > { %v3625_v6 = vpop.permute.xlu0 %3624  ;;  %3709 = vst.msk [vmem:[#allocation3 + $0x178] sm:$0xf] %vm2092_vm2, %v3645_v41  ;;  %v7546_v47 = vpop.f32.mrf.mxu2  ;;  %v5218_v55 = vld [vmem:[#allocation3 + $0xf0] sm:$0xf] }
 0x2ac   : > { %3699 = vst.msk [vmem:[#allocation3 + $0x100] sm:$0xf] %vm2092_vm2, %v3625_v6  ;;  %v5425_v38 = vld [vmem:[#allocation3 + $0x16c] sm:$0xf] }
 0x2ad   : > { %v5286_v50 = vld [vmem:[#allocation3 + $0x170] sm:$0xf] }
 0x2ae   : > { %v3623_v56 = vpop.permute.xlu2 %3622 }
 0x2b0   : > { %v7537_v49 = vpop.f32.mrf.mxu3 }
 0x2b2   : > { %v4607_v59 = vpop.f32.mrf.mxu1  ;;  %v3063_v19 = vpop.permute.xlu1 %3062  ;;  %v5280_v13 = vld [vmem:[#allocation3 + $0x174] sm:$0xf0] }
 0x2b3   : > { %v3067_v20 = vpop.permute.xlu0 %3066  ;;  %v4608_v24 = vadd.f32 %v4607_v59, %v4518_v63  ;;  %3138 = vst.msk [vmem:[#allocation3 + $0xf4] sm:$0xf] %vm1899_vm1, %v3063_v19  ;;  %v5283_v2 = vor.u32 %v5425_v38, %v5280_v13  ;;  %v4520_v57 = vpop.f32.mrf.mxu0  ;;  %v5220_v15 = vld [vmem:[#allocation3 + $0xfc] sm:$0xf0]  ;;  %v5427_v63 = vld [vmem:[#allocation3 + $0x178] sm:$0xf0] }
 0x2b4   : > { %3698 = vst.msk [vmem:[#allocation3 + $0xf4] sm:$0xf] %vm2092_vm2, %v3623_v56  ;;  %v4726_v9 = vpop.f32.mrf.mxu2  ;;  %v5287_v13 = vor.u32 %v5427_v63, %v5286_v50 }
 0x2b5   : > { %v4697_v37 = vadd.f32 %v7358_v30, %v4608_v24  ;;  %4651 = vmatmul.bf16.gmra.mxu3 %v5283_v2 }
 0x2b6   : > { %v2876_v16 = vpop.permute.xlu2 %2875 }
 0x2b7   : > { %4758 = vst.msk [vmem:[%s7116_s15 + $0x60] sm:$0xff] %vm4430_vm4, %v4697_v37  ;;  %v4801_v62 = vsel %vm4430_vm4, %v4697_v37, 0.0  ;;  %v4859_v0 = vmul.f32 %v4697_v37, %v4697_v37 }
 0x2b8   : > { %v4802_v31 = vadd.f32 %v4801_v62, %v4800_v28  ;;  %2948 = vst.msk [vmem:[#allocation3 + $0x118] sm:$0xf] %vm1559_vm15, %v2876_v16  ;;  %v7552_v32 = vpop.f32.mrf.mxu3 }
 0x2b9   : > { %v4902_v51 = vsel %vm4430_vm4, %v4859_v0, 0.0 }
 0x2ba   : > { %v4903_v60 = vadd.f32 %v4902_v51, %v4901_v1  ;;  %v4609_v30 = vpop.f32.mrf.mxu1  ;;  %v2039_v53 = vpop.permute.xlu1 %2038 }
 0x2bb   : > { %v2043_v8 = vpop.permute.xlu0 %2042  ;;  %v4610_v3 = vadd.f32 %v4609_v30, %v4520_v57  ;;  %2114 = vst.msk [vmem:[#allocation3 + $0xfc] sm:$0xf] %vm2092_vm2, %v2039_v53  ;;  %v5410_v48 = vld [vmem:[#allocation3 + $0xf4] sm:$0xf] }
 0x2bc   : > { %2116 = vst.msk [vmem:[#allocation3 + $0x114] sm:$0xf] %vm2092_vm2, %v2043_v8  ;;  %v5223_v28 = vor.u32 %v5410_v48, %v5220_v15  ;;  %v4728_v38 = vpop.f32.mrf.mxu2 }
 0x2bd   : > { %v4699_v52 = vadd.f32 %v7383_v40, %v4610_v3 }
 0x2be   : > { %4626 = vmatmul.bf16.gmra.mxu1 %v5223_v28  ;;  %v2041_v18 = vpop.permute.xlu2 %2040 }
 0x2bf   : > { %4759 = vst.msk [vmem:[%s7116_s15 + $0x68] sm:$0xff] %vm4430_vm4, %v4699_v52  ;;  %v4803_v1 = vsel %vm4430_vm4, %v4699_v52, 0.0  ;;  %v4860_v42 = vmul.f32 %v4699_v52, %v4699_v52 }
 0x2c0   : > { %v4804_v43 = vadd.f32 %v4803_v1, %v4802_v31  ;;  %2115 = vst.msk [vmem:[#allocation3 + $0x108] sm:$0xf] %vm2092_vm2, %v2041_v18 }
 0x2c1   : > { %v4904_v45 = vsel %vm4430_vm4, %v4860_v42, 0.0 }
 0x2c2   : > { %v4905_v61 = vadd.f32 %v4904_v45, %v4903_v60  ;;  %v2874_v40 = vpop.permute.xlu1 %2873  ;;  %v5411_v36 = vld [vmem:[#allocation3 + $0xf8] sm:$0xf0] }
 0x2c3   : > { %2947 = vst.msk [vmem:[#allocation3 + $0x10c] sm:$0xf] %vm1559_vm15, %v2874_v40  ;;  %v5219_v58 = vor.u32 %v5411_v36, %v5218_v55  ;;  %v5414_v56 = vld [vmem:[#allocation3 + $0x110] sm:$0xf0] }
 0x2c4   : > { %3140 = vst.msk [vmem:[#allocation3 + $0x10c] sm:$0xf] %vm1899_vm1, %v3067_v20 }
 0x2c5   : > { %4537 = vmatmul.bf16.gmra.mxu0 %v5219_v58  ;;  %5374 = vmatmul.msk.bf16.vlgmr.msra.gmra.mxu3 %vm4430_vm4, %v5275_v17 }
 0x2c6   : > { %v3629_v35 = vpop.permute.xlu2 %3628 }
 0x2c7   : > { %v5230_v34 = vld [vmem:[#allocation3 + $0x108] sm:$0xf] }
 0x2c8   : > { %v4637_v6 = vpop.f32.mrf.mxu3  ;;  %v5231_v19 = vor.u32 %v5414_v56, %v5230_v34 }
 0x2c9   : > { %v4638_v23 = vadd.f32 %v4637_v6, %v7442_v7 }
 0x2ca   : > { %v3069_v39 = vpop.permute.xlu1 %3068 }
 0x2cb   : > { %v7560_v41 = vadd.f32 %v4726_v9, %v4638_v23  ;;  %3141 = vst.msk [vmem:[#allocation3 + $0x118] sm:$0xf] %vm1899_vm1, %v3069_v39  ;;  %v4612_v20 = vpop.f32.mrf.mxu1 }
 0x2cc   : > { %3701 = vst.msk [vmem:[#allocation3 + $0x118] sm:$0xf] %vm2092_vm2, %v3629_v35  ;;  %v4731_v18 = vpop.f32.mrf.mxu2 }
 0x2cd   : > { %4770 = vst.msk [vmem:[%s7116_s15 + $0xc0] sm:$0xff] %vm4430_vm4, %v7560_v41 }
 0x2d0   : > { %v4639_v7 = vpop.f32.mrf.mxu3 }
 0x2d1   : > { %v4640_v59 = vadd.f32 %v4639_v7, %v7460_v22 }
 0x2d2   : > { %v3627_v24 = vpop.permute.xlu1 %3626  ;;  %v4523_v2 = vpop.f32.mrf.mxu0 }
 0x2d3   : > { %v7568_v37 = vadd.f32 %v4728_v38, %v4640_v59  ;;  %3700 = vst.msk [vmem:[#allocation3 + $0x10c] sm:$0xf] %vm2092_vm2, %v3627_v24  ;;  %v4613_v16 = vadd.f32 %v4612_v20, %v4523_v2  ;;  %v5232_v51 = vld [vmem:[#allocation3 + $0x114] sm:$0xf0]  ;;  %v4614_v8 = vpop.f32.mrf.mxu1 }
 0x2d4   : > { %v4733_v55 = vpop.f32.mrf.mxu2 }
 0x2d5   : > { %4771 = vst.msk [vmem:[%s7116_s15 + $0xc8] sm:$0xff] %vm4430_vm4, %v7568_v37  ;;  %v4702_v62 = vadd.f32 %v7404_v54, %v4613_v16  ;;  %4542 = vmatmul.bf16.gmra.mxu0 %v5231_v19  ;;  %5375 = vmatmul.msk.bf16.gmra.mxu3 %vm4430_vm4, %v5287_v13 }
 0x2d7   : > { %4760 = vst.msk [vmem:[%s7116_s15 + $0x70] sm:$0xff] %vm4430_vm4, %v4702_v62  ;;  %v4805_v22 = vsel %vm4430_vm4, %v4702_v62, 0.0  ;;  %v4861_v0 = vmul.f32 %v4702_v62, %v4702_v62 }
 0x2d8   : > { %v4806_v31 = vadd.f32 %v4805_v22, %v4804_v43 }
 0x2d9   : > { %v4906_v57 = vsel %vm4430_vm4, %v4861_v0, 0.0 }
 0x2da   : > { %v4907_v15 = vadd.f32 %v4906_v57, %v4905_v61  ;;  %v4525_v60 = vpop.f32.mrf.mxu0  ;;  %v5413_v30 = vld [vmem:[#allocation3 + $0x10c] sm:$0xf] }
 0x2db   : > { %v4615_v53 = vadd.f32 %v4614_v8, %v4525_v60  ;;  %v5235_v54 = vor.u32 %v5413_v30, %v5232_v51 }
 0x2dd   : > { %v4704_v3 = vadd.f32 %v7414_v33, %v4615_v53  ;;  %4631 = vmatmul.bf16.gmra.mxu1 %v5235_v54 }
 0x2df   : > { %4761 = vst.msk [vmem:[%s7116_s15 + $0x78] sm:$0xff] %vm4430_vm4, %v4704_v3  ;;  %v4807_v48 = vsel %vm4430_vm4, %v4704_v3, 0.0  ;;  %v4862_v28 = vmul.f32 %v4704_v3, %v4704_v3 }
 0x2e0   : > { %v4808_v52 = vadd.f32 %v4807_v48, %v4806_v31 }
 0x2e1   : > { %v4908_v46 = vsel %vm4430_vm4, %v4862_v28, 0.0 }
 0x2e2   : > { %v4909_v12 = vadd.f32 %v4908_v46, %v4907_v15 }
 0x2e7   : > { %v4528_v61 = vpop.f32.mrf.mxu0 }
 0x2ea   : > { %v4642_v1 = vpop.f32.mrf.mxu3 }
 0x2eb   : > { %v4643_v42 = vadd.f32 %v4642_v1, %v7475_v44 }
 0x2ed   : > { %v7586_v43 = vadd.f32 %v4731_v18, %v4643_v42 }
 0x2ef   : > { %4772 = vst.msk [vmem:[%s7116_s15 + $0xd0] sm:$0xff] %vm4430_vm4, %v7586_v43 }
 0x2f2   : > { %v4644_v33 = vpop.f32.mrf.mxu3 }
 0x2f3   : > { %v4645_v45 = vadd.f32 %v4644_v33, %v7491_v25  ;;  %v4530_v25 = vpop.f32.mrf.mxu0 }
 0x2f5   : > { %v7592_v17 = vadd.f32 %v4733_v55, %v4645_v45 }
 0x2f7   : > { %4773 = vst.msk [vmem:[%s7116_s15 + $0xd8] sm:$0xff] %vm4430_vm4, %v7592_v17 }
 0x2fa   : > { %v4617_v40 = vpop.f32.mrf.mxu1 }
 0x2fb   : > { %v4618_v36 = vadd.f32 %v4617_v40, %v4528_v61 }
 0x2fd   : > { %v4707_v44 = vadd.f32 %v7426_v14, %v4618_v36 }
 0x2ff   : > { %4762 = vst.msk [vmem:[%s7116_s15 + $0x80] sm:$0xff] %vm4430_vm4, %v4707_v44  ;;  %v4809_v58 = vsel %vm4430_vm4, %v4707_v44, 0.0  ;;  %v4863_v9 = vmul.f32 %v4707_v44, %v4707_v44 }
 0x300   : > { %v4810_v6 = vadd.f32 %v4809_v58, %v4808_v52 }
 0x301   : > { %v4910_v23 = vsel %vm4430_vm4, %v4863_v9, 0.0 }
 0x302   : > { %v4911_v35 = vadd.f32 %v4910_v23, %v4909_v12  ;;  %v4619_v39 = vpop.f32.mrf.mxu1 }
 0x303   : > { %v4620_v50 = vadd.f32 %v4619_v39, %v4530_v25 }
 0x305   : > { %v4709_v34 = vadd.f32 %v7448_v27, %v4620_v50 }
 0x307   : > { %4763 = vst.msk [vmem:[%s7116_s15 + $0x88] sm:$0xff] %vm4430_vm4, %v4709_v34  ;;  %v4811_v14 = vsel %vm4430_vm4, %v4709_v34, 0.0  ;;  %v4864_v56 = vmul.f32 %v4709_v34, %v4709_v34 }
 0x308   : > { %v4812_v63 = vadd.f32 %v4811_v14, %v4810_v6 }
 0x309   : > { %v4912_v38 = vsel %vm4430_vm4, %v4864_v56, 0.0 }
 0x30a   : > { %v4913_v20 = vadd.f32 %v4912_v38, %v4911_v35 }
 0x310   : > { %v4647_v24 = vpop.f32.mrf.mxu3 }
 0x311   : > { %v4648_v8 = vadd.f32 %v4647_v24, %v7513_v4 }
 0x318   : > { %v4649_v22 = vpop.f32.mrf.mxu3 }
 0x319   : > { %v4650_v48 = vadd.f32 %v4649_v22, %v7530_v5 }
 0x31a   : > { %v4533_v7 = vpop.f32.mrf.mxu0 }
 0x322   : > { %v4622_v59 = vpop.f32.mrf.mxu1  ;;  %v4535_v27 = vpop.f32.mrf.mxu0 }
 0x323   : > { %v4623_v19 = vadd.f32 %v4622_v59, %v4533_v7 }
 0x325   : > { %v4712_v13 = vadd.f32 %v7462_v29, %v4623_v19 }
 0x327   : > { %4764 = vst.msk [vmem:[%s7116_s15 + $0x90] sm:$0xff] %vm4430_vm4, %v4712_v13  ;;  %v4865_v12 = vmul.f32 %v4712_v13, %v4712_v13 }
 0x329   : > { %v4914_v33 = vsel %vm4430_vm4, %v4865_v12, 0.0 }
 0x32a   : > { %v4624_v2 = vpop.f32.mrf.mxu1  ;;  %v4915_v9 = vadd.f32 %v4914_v33, %v4913_v20 }
 0x32b   : > { %v4625_v16 = vadd.f32 %v4624_v2, %v4535_v27  ;;  %v4871_v27 = vmul.f32 %v7560_v41, %v7560_v41 }
 0x32d   : > { %v4714_v62 = vadd.f32 %v7480_v10, %v4625_v16 }
 0x32f   : > { %4765 = vst.msk [vmem:[%s7116_s15 + $0x98] sm:$0xff] %vm4430_vm4, %v4714_v62  ;;  %v4866_v5 = vmul.f32 %v4714_v62, %v4714_v62  ;;  %v4815_v55 = vsel %vm4430_vm4, %v4714_v62, 0.0 }
 0x331   : > { %v4916_v40 = vsel %vm4430_vm4, %v4866_v5, 0.0 }
 0x332   : > { %v4917_v50 = vadd.f32 %v4916_v40, %v4915_v9 }
 0x338   : > { %v4652_v0 = vpop.f32.mrf.mxu3 }
 0x339   : > { %v4653_v28 = vadd.f32 %v4652_v0, %v7537_v49  ;;  %v4825_v0 = vsel %vm4430_vm4, %v7560_v41, 0.0  ;;  %v4829_v41 = vsel %vm4430_vm4, %v7586_v43, 0.0 }
 0x33b   : > { %v4627_v31 = vpop.f32.mrf.mxu1 }
 0x340   : > { %v4654_v51 = vpop.f32.mrf.mxu3 }
 0x341   : > { %v4655_v36 = vadd.f32 %v4654_v51, %v7552_v32 }
 0x342   : > { %v4538_v57 = vpop.f32.mrf.mxu0 }
 0x343   : > { %v4628_v29 = vadd.f32 %v4627_v31, %v4538_v57  ;;  %v4629_v10 = vpop.f32.mrf.mxu1  ;;  %v4872_v31 = vmul.f32 %v7568_v37, %v7568_v37 }
 0x345   : > { %v4717_v15 = vadd.f32 %v7496_v21, %v4628_v29  ;;  %v4926_v29 = vsel %vm4430_vm4, %v4871_v27, 0.0 }
 0x347   : > { %4766 = vst.msk [vmem:[%s7116_s15 + $0xa0] sm:$0xff] %vm4430_vm4, %v4717_v15  ;;  %v4867_v45 = vmul.f32 %v4717_v15, %v4717_v15  ;;  %v4817_v44 = vsel %vm4430_vm4, %v4717_v15, 0.0  ;;  %v4827_v15 = vsel %vm4430_vm4, %v7568_v37, 0.0  ;;  %v4831_v37 = vsel %vm4430_vm4, %v7592_v17, 0.0 }
 0x348   : > { %v4736_v60 = vpop.f32.mrf.mxu3 }
 0x349   : > { %v7617_v30 = vadd.f32 %v4736_v60, %v4648_v8  ;;  %v4918_v25 = vsel %vm4430_vm4, %v4867_v45, 0.0  ;;  %v4873_v8 = vmul.f32 %v7586_v43, %v7586_v43 }
 0x34a   : > { %v4540_v53 = vpop.f32.mrf.mxu0  ;;  %v4919_v20 = vadd.f32 %v4918_v25, %v4917_v50 }
 0x34b   : > { %4774 = vst.msk [vmem:[%s7116_s15 + $0xe0] sm:$0xff] %vm4430_vm4, %v7617_v30  ;;  %v4630_v54 = vadd.f32 %v4629_v10, %v4540_v53  ;;  %v4928_v53 = vsel %vm4430_vm4, %v4872_v31, 0.0  ;;  %v4833_v43 = vsel %vm4430_vm4, %v7617_v30, 0.0 }
 0x34d   : > { %v4719_v3 = vadd.f32 %v7520_v11, %v4630_v54  ;;  %v4813_v11 = vsel %vm4430_vm4, %v4712_v13, 0.0  ;;  %v4874_v54 = vmul.f32 %v7592_v17, %v7592_v17 }
 0x34e   : > { %v4814_v61 = vadd.f32 %v4813_v11, %v4812_v63 }
 0x34f   : > { %4767 = vst.msk [vmem:[%s7116_s15 + $0xa8] sm:$0xff] %vm4430_vm4, %v4719_v3  ;;  %v4868_v58 = vmul.f32 %v4719_v3, %v4719_v3  ;;  %v4819_v35 = vsel %vm4430_vm4, %v4719_v3, 0.0  ;;  %v4932_v12 = vsel %vm4430_vm4, %v4874_v54, 0.0 }
 0x350   : > { %v4738_v21 = vpop.f32.mrf.mxu3  ;;  %v4816_v6 = vadd.f32 %v4815_v55, %v4814_v61 }
 0x351   : > { %v7626_v4 = vadd.f32 %v4738_v21, %v4650_v48  ;;  %v4920_v56 = vsel %vm4430_vm4, %v4868_v58, 0.0  ;;  %v4930_v21 = vsel %vm4430_vm4, %v4873_v8, 0.0 }
 0x352   : > { %v4543_v52 = vpop.f32.mrf.mxu0  ;;  %v4818_v34 = vadd.f32 %v4817_v44, %v4816_v6  ;;  %v4921_v13 = vadd.f32 %v4920_v56, %v4919_v20 }
 0x353   : > { %4775 = vst.msk [vmem:[%s7116_s15 + $0xe8] sm:$0xff] %vm4430_vm4, %v7626_v4  ;;  %v4835_v17 = vsel %vm4430_vm4, %v7626_v4, 0.0 }
 0x354   : > { %v4820_v7 = vadd.f32 %v4819_v35, %v4818_v34 }
 0x358   : > { %v4741_v46 = vpop.f32.mrf.mxu3 }
 0x359   : > { %v7632_v18 = vadd.f32 %v4741_v46, %v4653_v28  ;;  %v4875_v28 = vmul.f32 %v7617_v30, %v7617_v30 }
 0x35a   : > { %v4632_v1 = vpop.f32.mrf.mxu1  ;;  %v4545_v14 = vpop.f32.mrf.mxu0 }
 0x35b   : > { %4776 = vst.msk [vmem:[%s7116_s15 + $0xf0] sm:$0xff] %vm4430_vm4, %v7632_v18  ;;  %v4633_v42 = vadd.f32 %v4632_v1, %v4543_v52  ;;  %v4876_v1 = vmul.f32 %v7626_v4, %v7626_v4  ;;  %v4877_v33 = vmul.f32 %v7632_v18, %v7632_v18  ;;  %v4837_v30 = vsel %vm4430_vm4, %v7632_v18, 0.0 }
 0x35d   : > { %v4722_v49 = vadd.f32 %v7532_v26, %v4633_v42  ;;  %v4934_v42 = vsel %vm4430_vm4, %v4875_v28, 0.0  ;;  %v4938_v44 = vsel %vm4430_vm4, %v4877_v33, 0.0 }
 0x35f   : > { %4768 = vst.msk [vmem:[%s7116_s15 + $0xb0] sm:$0xff] %vm4430_vm4, %v4722_v49  ;;  %v4869_v39 = vmul.f32 %v4722_v49, %v4722_v49  ;;  %v4821_v63 = vsel %vm4430_vm4, %v4722_v49, 0.0  ;;  %v4936_v49 = vsel %vm4430_vm4, %v4876_v1, 0.0 }
 0x360   : > { %v4743_v23 = vpop.f32.mrf.mxu3  ;;  %v4822_v24 = vadd.f32 %v4821_v63, %v4820_v7 }
 0x361   : > { %v4744_v26 = vadd.f32 %v4743_v23, %v4655_v36  ;;  %v4922_v59 = vsel %vm4430_vm4, %v4869_v39, 0.0 }
 0x362   : > { %v4634_v32 = vpop.f32.mrf.mxu1  ;;  %v4923_v62 = vadd.f32 %v4922_v59, %v4921_v13 }
 0x363   : > { %4777 = vst.msk [vmem:[%s7116_s15 + $0xf8] sm:$0xff] %vm4430_vm4, %v4744_v26  ;;  %v4635_v38 = vadd.f32 %v4634_v32, %v4545_v14  ;;  %v4878_v61 = vmul.f32 %v4744_v26, %v4744_v26  ;;  %v4839_v58 = vsel %vm4430_vm4, %v4744_v26, 0.0 }
 0x365   : > { %v4724_v19 = vadd.f32 %v7546_v47, %v4635_v38  ;;  %v4940_v6 = vsel %vm4430_vm4, %v4878_v61, 0.0 }
 0x367   : > { %4769 = vst.msk [vmem:[%s7116_s15 + $0xb8] sm:$0xff] %vm4430_vm4, %v4724_v19  ;;  %v4823_v2 = vsel %vm4430_vm4, %v4724_v19, 0.0  ;;  %v4870_v16 = vmul.f32 %v4724_v19, %v4724_v19 }
 0x368   : > { %v4824_v22 = vadd.f32 %v4823_v2, %v4822_v24 }
 0x369   : > { %v4924_v47 = vsel %vm4430_vm4, %v4870_v16, 0.0 }
 0x36a   : > { %v4826_v51 = vadd.f32 %v4825_v0, %v4824_v22  ;;  %v4925_v57 = vadd.f32 %v4924_v47, %v4923_v62 }
 0x36c   : > { %v4828_v60 = vadd.f32 %v4827_v15, %v4826_v51  ;;  %v4927_v10 = vadd.f32 %v4926_v29, %v4925_v57 }
 0x36e   : > { %v4830_v3 = vadd.f32 %v4829_v41, %v4828_v60  ;;  %v4929_v48 = vadd.f32 %v4928_v53, %v4927_v10 }
 0x370   : > { %v4832_v52 = vadd.f32 %v4831_v37, %v4830_v3  ;;  %v4931_v46 = vadd.f32 %v4930_v21, %v4929_v48 }
 0x372   : > { %v4834_v11 = vadd.f32 %v4833_v43, %v4832_v52  ;;  %v4933_v5 = vadd.f32 %v4932_v12, %v4931_v46 }
 0x374   : > { %v4836_v55 = vadd.f32 %v4835_v17, %v4834_v11  ;;  %v4935_v45 = vadd.f32 %v4934_v42, %v4933_v5 }
 0x376   : > { %v4838_v40 = vadd.f32 %v4837_v30, %v4836_v55  ;;  %v4937_v36 = vadd.f32 %v4936_v49, %v4935_v45 }
 0x378   : > { %v4840_v9 = vadd.f32 %v4839_v58, %v4838_v40  ;;  %v4939_v4 = vadd.f32 %v4938_v44, %v4937_v36 }
 0x37a   : > { %v4841_v23 = vrot.slane %v4840_v9, 4  ;;  %v4941_v25 = vadd.f32 %v4940_v6, %v4939_v4 }
 0x37c   : > { %v4842_v35 = vadd.f32 %v4841_v23, %v4840_v9  ;;  %v4942_v39 = vrot.slane %v4941_v25, 4 }
 0x37e   : > { %v4843_v50 = vrot.slane %v4842_v35, 2  ;;  %v4943_v34 = vadd.f32 %v4942_v39, %v4941_v25 }
 0x380   : > { %v4844_v14 = vadd.f32 %v4843_v50, %v4842_v35  ;;  %v4944_v18 = vrot.slane %v4943_v34, 2 }
 0x382   : > { %v4845_v32 = vrot.slane %v4844_v14, 1  ;;  %v4945_v56 = vadd.f32 %v4944_v18, %v4943_v34 }
 0x384   : > { %v4946_v63 = vrot.slane %v4945_v56, 1  ;;  %v4846_v26 = vadd.f32 %v4845_v32, %v4844_v14 }
 0x386   : > { %v4947_v38 = vadd.f32 %v4946_v63, %v4945_v56 }
 0x388   : > { %v4949_v20 = vsel %vm4948_vm0, %v4846_v26, %v4947_v38 }
 0x389   : > { %4951 = vst.msk [vmem:[%s235_s9] sm:$0x3] %vm4950_vm3, %v4949_v20 }
 0x38a PF: > { %s16_s18 = sadd.s32 1, %s5488_s18  }
 0x38b   : > { %p13_p4 = scmp.ge.s32.totalorder %s16_s18, 6  }
 0x38d   :  { %15 = sbr.rel (!%p13_p4) target bundleno = 1 (0x1), region = 81 }

</bundles_post_ra>
